<compile_context>
chip_gen: v7x
topology: tpu7x:2x2x1
jax: 0.10.0
libtpu: 0.0.40
codegen_flags: <defaults>
</compile_context>

<pallas_src>
import functools

import jax
import jax.numpy as jnp
from jax.experimental import pallas as pl
from jax.experimental.pallas import tpu as pltpu


def _self_attention_kernel(x_ref,       # (Nb, C, HW)   f32, channel-major
                           wf_ref,      # (3*Cr, C)     fused [Wq; Wk; Wv] (rows padded)
                           bf_ref,      # (3*Cr, 1)     fused biases (rows padded)
                           gamma_ref,   # (1,) f32 in SMEM
                           out_ref,     # (Nb, C, HW)
                           *, nb, c, cr):
    wf = wf_ref[...]                                       # tiny, grid-invariant
    bf = bf_ref[...]
    gamma = gamma_ref[0]

    for b in range(nb):                                    # static unroll, Nb small
        xb = x_ref[b]                                      # (C, HW)

        # Fused 1x1-conv projections, channel-major: one NN matmul on the MXU.
        qkv = jnp.dot(wf, xb, preferred_element_type=jnp.float32) + bf   # (3Cr, HW)
        q = qkv[0 * cr:1 * cr, :]                          # (Cr, HW); rows >= C are 0
        k = qkv[1 * cr:2 * cr, :]                          # (Cr, HW); rows >= C are 0
        v = qkv[2 * cr:2 * cr + c, :]                      # (C,  HW); real rows only

        # scores[i, j] = sum_c q[c, i] * k[c, j]   (contract the channel/sublane dim;
        # zero-padded channel rows contribute nothing).
        scores = jax.lax.dot_general(
            q, k, (((0,), (0,)), ((), ())),
            preferred_element_type=jnp.float32)            # (HW, HW)

        # Numerically stable row softmax (XLU reductions, EUP exp).
        m = jnp.max(scores, axis=-1, keepdims=True)
        e = jnp.exp(scores - m)
        denom = jnp.sum(e, axis=-1, keepdims=True)
        attn = e * pl.reciprocal(denom, approx=False)      # exact 1/denom

        # out[c, i] = sum_j v[c, j] * attn[i, j]  -> stays channel-major, lane-dense.
        out = jax.lax.dot_general(
            v, attn, (((1,), (1,)), ((), ())),
            preferred_element_type=jnp.float32)            # (C, HW)

        out_ref[b] = gamma * out + xb


def _pick_images_per_step(batch):
    """Largest divisor <= 8 of `batch`, preferring an even grid >= 2 (v7x: 2 TCs)."""
    divisors = [d for d in range(1, min(batch, 8) + 1) if batch % d == 0]
    even = [d for d in divisors if (batch // d) >= 2 and (batch // d) % 2 == 0]
    return max(even) if even else max(divisors)


@jax.jit
def self_attention(x, params):
    """x: (B, C, H, W) float32.
    params: (wq, bq, wk, bk, wv, bv, gamma) with conv weights in PyTorch
    (Cout, Cin) layout and gamma a scalar/(1,) parameter.
    Returns the module output, shape (30, 1, B*C*H*W // 30)."""
    wq, bq, wk, bk, wv, bv, gamma = params
    B, C, H, W = x.shape
    HW = H * W
    Cr = ((C + 7) // 8) * 8                      # sublane-aligned per-projection rows
    Nb = _pick_images_per_step(B)                # images per grid step
    grid = (B // Nb,)

    # Free, contiguous reshape -- no wrapper transpose or channel padding of x.
    x3 = x.reshape(B, C, HW).astype(jnp.float32)

    def pad_rows(w, b):
        # PyTorch conv weight is (Cout, Cin[,1,1]); kernel uses it as-is
        # (rows = output channels).  Pad rows to Cr with zeros (zero bias too)
        # so the padded output channels are exactly 0.
        wp = jnp.zeros((Cr, C), jnp.float32).at[:C, :].set(
            w.reshape(C, C).astype(jnp.float32))
        bp = jnp.zeros((Cr, 1), jnp.float32).at[:C, 0].set(
            b.reshape(C).astype(jnp.float32))
        return wp, bp

    wqp, bqp = pad_rows(wq, bq)
    wkp, bkp = pad_rows(wk, bk)
    wvp, bvp = pad_rows(wv, bv)
    wf = jnp.concatenate([wqp, wkp, wvp], axis=0)          # (3Cr, C)
    bf = jnp.concatenate([bqp, bkp, bvp], axis=0)          # (3Cr, 1)
    gamma_s = jnp.reshape(gamma, (1,)).astype(jnp.float32)

    x_spec = pl.BlockSpec((Nb, C, HW), lambda g: (g, 0, 0))
    w_spec = pl.BlockSpec((3 * Cr, C), lambda g: (0, 0))
    b_spec = pl.BlockSpec((3 * Cr, 1), lambda g: (0, 0))

    flops = B * (2 * (3 * Cr) * C * HW + 2 * HW * HW * Cr + 2 * HW * HW * C)
    cost = pl.CostEstimate(
        flops=flops,
        transcendentals=B * HW * HW,
        bytes_accessed=4 * (2 * B * C * HW + 3 * Cr * C + 3 * Cr + 1),
    )

    kernel = functools.partial(_self_attention_kernel, nb=Nb, c=C, cr=Cr)

    out3 = pl.pallas_call(
        kernel,
        out_shape=jax.ShapeDtypeStruct((B, C, HW), jnp.float32),
        grid_spec=pltpu.PrefetchScalarGridSpec(
            num_scalar_prefetch=0,
            grid=grid,
            in_specs=[
                x_spec,
                w_spec,
                b_spec,
                pl.BlockSpec(memory_space=pltpu.MemorySpace.SMEM),   # gamma scalar
            ],
            out_specs=x_spec,
        ),
        compiler_params=pltpu.CompilerParams(
            dimension_semantics=("parallel",)),
        cost_estimate=cost,
    )(x3, wf, bf, gamma_s)

    # The module hard-codes .view(30, 1, -1); row-major flattening of (B, C, HW)
    # equals row-major flattening of (B, C, H, W), so this is a free reshape.
    return out3.reshape(30, 1, -1)


def init_params(key, c):
    """PyTorch Conv2d(c, c, 1) default init: U(-1/sqrt(fan_in), +1/sqrt(fan_in))."""
    def conv1x1(k):
        kw, kb = jax.random.split(k)
        bound = 1.0 / (c ** 0.5)
        w = jax.random.uniform(kw, (c, c), jnp.float32, -bound, bound)   # (Cout, Cin)
        b = jax.random.uniform(kb, (c,), jnp.float32, -bound, bound)
        return w, b

    kq, kk, kv = jax.random.split(key, 3)
    wq, bq = conv1x1(kq)
    wk, bk = conv1x1(kk)
    wv, bv = conv1x1(kv)
    # PyTorch initializes gamma to 0 (output == input); use a nonzero value so
    # the attention path is actually exercised by the correctness check.
    gamma = jnp.full((1,), 0.5, jnp.float32)
    return (wq, bq, wk, bk, wv, bv, gamma)


def _reference(x, params):
    wq, bq, wk, bk, wv, bv, gamma = params
    B, C, H, W = x.shape
    hw = H * W
    hp = jax.lax.Precision.HIGHEST
    xf = x.reshape(B, C, hw)
    q = jnp.einsum('oc,bci->boi', wq, xf, precision=hp) + bq[None, :, None]
    k = jnp.einsum('oc,bci->boi', wk, xf, precision=hp) + bk[None, :, None]
    v = jnp.einsum('oc,bci->boi', wv, xf, precision=hp) + bv[None, :, None]
    qt = jnp.transpose(q, (0, 2, 1))                                      # (B, HW, C)
    attn = jax.nn.softmax(jnp.einsum('bic,bcj->bij', qt, k, precision=hp), axis=-1)
    out = jnp.einsum('bcj,bij->bci', v, attn, precision=hp)               # v @ attn^T
    out = gamma * out.reshape(B, C, H, W) + x
    return out.reshape(30, 1, -1)


if __name__ == "__main__":
    key = jax.random.PRNGKey(0)
    kx, kp = jax.random.split(key)

    # B*C*H*W must be divisible by 30: the module hard-codes .view(30, 1, -1).
    B, C, H, W = 30, 4, 16, 16
    x = jax.random.normal(kx, (B, C, H, W), jnp.float32)
    params = init_params(kp, C)

    out = self_attention(x, params)
    out = jax.block_until_ready(out)

    ref = _reference(x, params)
    assert out.shape == (30, 1, (B * C * H * W) // 30), out.shape
    max_err = float(jnp.max(jnp.abs(out - ref)))
    assert jnp.allclose(out, ref, atol=2e-3, rtol=2e-3), f"max abs err = {max_err}"

    print("KERNEL_OK")
</pallas_src>

<mosaic_0001>
module attributes {stable_mosaic.version = 11 : i64} {
  func.func @_self_attention_kernel(%arg0: i32, %arg1: memref<5x4x256xf32, #tpu.memory_space<vmem>>, %arg2: memref<24x4xf32, #tpu.memory_space<vmem>>, %arg3: memref<24x1xf32, #tpu.memory_space<vmem>>, %arg4: memref<1xf32, #tpu.memory_space<smem>>, %arg5: memref<5x4x256xf32, #tpu.memory_space<vmem>>) attributes {dimension_semantics = [#tpu.dimension_semantics<parallel>], iteration_bounds = array<i64: 6>, scalar_prefetch = 0 : i64, scratch_operands = 0 : i64, tpu.core_type = #tpu.core_type<tc>, window_params = [{transform_indices = @transform_0, window_bounds = array<i64: 5, 4, 256>}, {pipeline_mode = #tpu.pipeline_mode<synchronous>, transform_indices = @transform_1, window_bounds = array<i64: 24, 4>}, {pipeline_mode = #tpu.pipeline_mode<synchronous>, transform_indices = @transform_2, window_bounds = array<i64: 24, 1>}, {transform_indices = @transform_3, window_bounds = array<i64: 1>}, {transform_indices = @transform_4, window_bounds = array<i64: 5, 4, 256>}]} {
    %c0 = arith.constant 0 : index
    %c0_0 = arith.constant 0 : index
    %0 = vector.load %arg2[%c0, %c0_0] : memref<24x4xf32, #tpu.memory_space<vmem>>, vector<24x4xf32>
    %c0_1 = arith.constant 0 : index
    %c0_2 = arith.constant 0 : index
    %1 = vector.load %arg3[%c0_1, %c0_2] : memref<24x1xf32, #tpu.memory_space<vmem>>, vector<24x1xf32>
    %c0_3 = arith.constant 0 : index
    %2 = memref.load %arg4[%c0_3] : memref<1xf32, #tpu.memory_space<smem>>
    %c0_4 = arith.constant 0 : index
    %c0_5 = arith.constant 0 : index
    %c0_6 = arith.constant 0 : index
    %3 = vector.load %arg1[%c0_4, %c0_5, %c0_6] : memref<5x4x256xf32, #tpu.memory_space<vmem>>, vector<1x4x256xf32>
    %4 = vector.shape_cast %3 : vector<1x4x256xf32> to vector<4x256xf32>
    %cst = arith.constant dense<0.000000e+00> : vector<24x256xf32>
    %5 = tpu.matmul %0, %4, %cst {dimension_numbers = #tpu.dot_dimension_numbers<[1], [0], [0], [1], [0, 0, 1, 1], [], []>} : vector<24x4xf32>, vector<4x256xf32>, vector<24x256xf32> -> vector<24x256xf32>
    %6 = vector.broadcast %1 : vector<24x1xf32> to vector<24x256xf32>
    %7 = arith.addf %5, %6 : vector<24x256xf32>
    %8 = vector.extract_strided_slice %7 {offsets = [0, 0], sizes = [8, 256], strides = [1, 1]} : vector<24x256xf32> to vector<8x256xf32>
    %9 = vector.extract_strided_slice %7 {offsets = [8, 0], sizes = [8, 256], strides = [1, 1]} : vector<24x256xf32> to vector<8x256xf32>
    %10 = vector.extract_strided_slice %7 {offsets = [16, 0], sizes = [4, 256], strides = [1, 1]} : vector<24x256xf32> to vector<4x256xf32>
    %cst_7 = arith.constant dense<0.000000e+00> : vector<256x256xf32>
    %11 = tpu.matmul %8, %9, %cst_7 {dimension_numbers = #tpu.dot_dimension_numbers<[0], [0], [1], [1], [0, 1, 1, 1], [], []>} : vector<8x256xf32>, vector<8x256xf32>, vector<256x256xf32> -> vector<256x256xf32>
    %cst_8 = arith.constant dense<0xFF800000> : vector<256xf32>
    %12 = vector.multi_reduction <maximumf>, %11, %cst_8 [1] : vector<256x256xf32> to vector<256xf32>
    %13 = vector.shape_cast %12 : vector<256xf32> to vector<256x1xf32>
    %14 = vector.broadcast %13 : vector<256x1xf32> to vector<256x256xf32>
    %15 = arith.subf %11, %14 : vector<256x256xf32>
    %16 = math.exp %15 : vector<256x256xf32>
    %cst_9 = arith.constant dense<0.000000e+00> : vector<256xf32>
    %17 = vector.multi_reduction <add>, %16, %cst_9 [1] : vector<256x256xf32> to vector<256xf32>
    %18 = vector.shape_cast %17 : vector<256xf32> to vector<256x1xf32>
    %19 = tpu.reciprocal %18 : vector<256x1xf32> -> vector<256x1xf32>
    %20 = vector.broadcast %19 : vector<256x1xf32> to vector<256x256xf32>
    %21 = arith.mulf %16, %20 : vector<256x256xf32>
    %cst_10 = arith.constant dense<0.000000e+00> : vector<4x256xf32>
    %22 = tpu.matmul %10, %21, %cst_10 {dimension_numbers = #tpu.dot_dimension_numbers<[1], [1], [0], [0], [0, 0, 1, 0], [], []>} : vector<4x256xf32>, vector<256x256xf32>, vector<4x256xf32> -> vector<4x256xf32>
    %23 = vector.broadcast %2 : f32 to vector<4x256xf32>
    %24 = arith.mulf %23, %22 : vector<4x256xf32>
    %25 = arith.addf %24, %4 : vector<4x256xf32>
    %c0_11 = arith.constant 0 : index
    %c0_12 = arith.constant 0 : index
    %c0_13 = arith.constant 0 : index
    %26 = vector.load %arg5[%c0_11, %c0_12, %c0_13] : memref<5x4x256xf32, #tpu.memory_space<vmem>>, vector<1x4x256xf32>
    %27 = vector.shape_cast %26 : vector<1x4x256xf32> to vector<4x256xf32>
    %28 = vector.shape_cast %25 : vector<4x256xf32> to vector<1x4x256xf32>
    tpu.vector_store %arg5[%c0_11, %c0_12, %c0_13], %28 {strides = array<i32>} : memref<5x4x256xf32, #tpu.memory_space<vmem>>, vector<1x4x256xf32>,
    %c1 = arith.constant 1 : index
    %c0_14 = arith.constant 0 : index
    %c0_15 = arith.constant 0 : index
    %29 = vector.load %arg1[%c1, %c0_14, %c0_15] : memref<5x4x256xf32, #tpu.memory_space<vmem>>, vector<1x4x256xf32>
    %30 = vector.shape_cast %29 : vector<1x4x256xf32> to vector<4x256xf32>
    %cst_16 = arith.constant dense<0.000000e+00> : vector<24x256xf32>
    %31 = tpu.matmul %0, %30, %cst_16 {dimension_numbers = #tpu.dot_dimension_numbers<[1], [0], [0], [1], [0, 0, 1, 1], [], []>} : vector<24x4xf32>, vector<4x256xf32>, vector<24x256xf32> -> vector<24x256xf32>
    %32 = vector.broadcast %1 : vector<24x1xf32> to vector<24x256xf32>
    %33 = arith.addf %31, %32 : vector<24x256xf32>
    %34 = vector.extract_strided_slice %33 {offsets = [0, 0], sizes = [8, 256], strides = [1, 1]} : vector<24x256xf32> to vector<8x256xf32>
    %35 = vector.extract_strided_slice %33 {offsets = [8, 0], sizes = [8, 256], strides = [1, 1]} : vector<24x256xf32> to vector<8x256xf32>
    %36 = vector.extract_strided_slice %33 {offsets = [16, 0], sizes = [4, 256], strides = [1, 1]} : vector<24x256xf32> to vector<4x256xf32>
    %cst_17 = arith.constant dense<0.000000e+00> : vector<256x256xf32>
    %37 = tpu.matmul %34, %35, %cst_17 {dimension_numbers = #tpu.dot_dimension_numbers<[0], [0], [1], [1], [0, 1, 1, 1], [], []>} : vector<8x256xf32>, vector<8x256xf32>, vector<256x256xf32> -> vector<256x256xf32>
    %cst_18 = arith.constant dense<0xFF800000> : vector<256xf32>
    %38 = vector.multi_reduction <maximumf>, %37, %cst_18 [1] : vector<256x256xf32> to vector<256xf32>
    %39 = vector.shape_cast %38 : vector<256xf32> to vector<256x1xf32>
    %40 = vector.broadcast %39 : vector<256x1xf32> to vector<256x256xf32>
    %41 = arith.subf %37, %40 : vector<256x256xf32>
    %42 = math.exp %41 : vector<256x256xf32>
    %cst_19 = arith.constant dense<0.000000e+00> : vector<256xf32>
    %43 = vector.multi_reduction <add>, %42, %cst_19 [1] : vector<256x256xf32> to vector<256xf32>
    %44 = vector.shape_cast %43 : vector<256xf32> to vector<256x1xf32>
    %45 = tpu.reciprocal %44 : vector<256x1xf32> -> vector<256x1xf32>
    %46 = vector.broadcast %45 : vector<256x1xf32> to vector<256x256xf32>
    %47 = arith.mulf %42, %46 : vector<256x256xf32>
    %cst_20 = arith.constant dense<0.000000e+00> : vector<4x256xf32>
    %48 = tpu.matmul %36, %47, %cst_20 {dimension_numbers = #tpu.dot_dimension_numbers<[1], [1], [0], [0], [0, 0, 1, 0], [], []>} : vector<4x256xf32>, vector<256x256xf32>, vector<4x256xf32> -> vector<4x256xf32>
    %49 = vector.broadcast %2 : f32 to vector<4x256xf32>
    %50 = arith.mulf %49, %48 : vector<4x256xf32>
    %51 = arith.addf %50, %30 : vector<4x256xf32>
    %c1_21 = arith.constant 1 : index
    %c0_22 = arith.constant 0 : index
    %c0_23 = arith.constant 0 : index
    %52 = vector.load %arg5[%c1_21, %c0_22, %c0_23] : memref<5x4x256xf32, #tpu.memory_space<vmem>>, vector<1x4x256xf32>
    %53 = vector.shape_cast %52 : vector<1x4x256xf32> to vector<4x256xf32>
    %54 = vector.shape_cast %51 : vector<4x256xf32> to vector<1x4x256xf32>
    tpu.vector_store %arg5[%c1_21, %c0_22, %c0_23], %54 {strides = array<i32>} : memref<5x4x256xf32, #tpu.memory_space<vmem>>, vector<1x4x256xf32>,
    %c2 = arith.constant 2 : index
    %c0_24 = arith.constant 0 : index
    %c0_25 = arith.constant 0 : index
    %55 = vector.load %arg1[%c2, %c0_24, %c0_25] : memref<5x4x256xf32, #tpu.memory_space<vmem>>, vector<1x4x256xf32>
    %56 = vector.shape_cast %55 : vector<1x4x256xf32> to vector<4x256xf32>
    %cst_26 = arith.constant dense<0.000000e+00> : vector<24x256xf32>
    %57 = tpu.matmul %0, %56, %cst_26 {dimension_numbers = #tpu.dot_dimension_numbers<[1], [0], [0], [1], [0, 0, 1, 1], [], []>} : vector<24x4xf32>, vector<4x256xf32>, vector<24x256xf32> -> vector<24x256xf32>
    %58 = vector.broadcast %1 : vector<24x1xf32> to vector<24x256xf32>
    %59 = arith.addf %57, %58 : vector<24x256xf32>
    %60 = vector.extract_strided_slice %59 {offsets = [0, 0], sizes = [8, 256], strides = [1, 1]} : vector<24x256xf32> to vector<8x256xf32>
    %61 = vector.extract_strided_slice %59 {offsets = [8, 0], sizes = [8, 256], strides = [1, 1]} : vector<24x256xf32> to vector<8x256xf32>
    %62 = vector.extract_strided_slice %59 {offsets = [16, 0], sizes = [4, 256], strides = [1, 1]} : vector<24x256xf32> to vector<4x256xf32>
    %cst_27 = arith.constant dense<0.000000e+00> : vector<256x256xf32>
    %63 = tpu.matmul %60, %61, %cst_27 {dimension_numbers = #tpu.dot_dimension_numbers<[0], [0], [1], [1], [0, 1, 1, 1], [], []>} : vector<8x256xf32>, vector<8x256xf32>, vector<256x256xf32> -> vector<256x256xf32>
    %cst_28 = arith.constant dense<0xFF800000> : vector<256xf32>
    %64 = vector.multi_reduction <maximumf>, %63, %cst_28 [1] : vector<256x256xf32> to vector<256xf32>
    %65 = vector.shape_cast %64 : vector<256xf32> to vector<256x1xf32>
    %66 = vector.broadcast %65 : vector<256x1xf32> to vector<256x256xf32>
    %67 = arith.subf %63, %66 : vector<256x256xf32>
    %68 = math.exp %67 : vector<256x256xf32>
    %cst_29 = arith.constant dense<0.000000e+00> : vector<256xf32>
    %69 = vector.multi_reduction <add>, %68, %cst_29 [1] : vector<256x256xf32> to vector<256xf32>
    %70 = vector.shape_cast %69 : vector<256xf32> to vector<256x1xf32>
    %71 = tpu.reciprocal %70 : vector<256x1xf32> -> vector<256x1xf32>
    %72 = vector.broadcast %71 : vector<256x1xf32> to vector<256x256xf32>
    %73 = arith.mulf %68, %72 : vector<256x256xf32>
    %cst_30 = arith.constant dense<0.000000e+00> : vector<4x256xf32>
    %74 = tpu.matmul %62, %73, %cst_30 {dimension_numbers = #tpu.dot_dimension_numbers<[1], [1], [0], [0], [0, 0, 1, 0], [], []>} : vector<4x256xf32>, vector<256x256xf32>, vector<4x256xf32> -> vector<4x256xf32>
    %75 = vector.broadcast %2 : f32 to vector<4x256xf32>
    %76 = arith.mulf %75, %74 : vector<4x256xf32>
    %77 = arith.addf %76, %56 : vector<4x256xf32>
    %c2_31 = arith.constant 2 : index
    %c0_32 = arith.constant 0 : index
    %c0_33 = arith.constant 0 : index
    %78 = vector.load %arg5[%c2_31, %c0_32, %c0_33] : memref<5x4x256xf32, #tpu.memory_space<vmem>>, vector<1x4x256xf32>
    %79 = vector.shape_cast %78 : vector<1x4x256xf32> to vector<4x256xf32>
    %80 = vector.shape_cast %77 : vector<4x256xf32> to vector<1x4x256xf32>
    tpu.vector_store %arg5[%c2_31, %c0_32, %c0_33], %80 {strides = array<i32>} : memref<5x4x256xf32, #tpu.memory_space<vmem>>, vector<1x4x256xf32>,
    %c3 = arith.constant 3 : index
    %c0_34 = arith.constant 0 : index
    %c0_35 = arith.constant 0 : index
    %81 = vector.load %arg1[%c3, %c0_34, %c0_35] : memref<5x4x256xf32, #tpu.memory_space<vmem>>, vector<1x4x256xf32>
    %82 = vector.shape_cast %81 : vector<1x4x256xf32> to vector<4x256xf32>
    %cst_36 = arith.constant dense<0.000000e+00> : vector<24x256xf32>
    %83 = tpu.matmul %0, %82, %cst_36 {dimension_numbers = #tpu.dot_dimension_numbers<[1], [0], [0], [1], [0, 0, 1, 1], [], []>} : vector<24x4xf32>, vector<4x256xf32>, vector<24x256xf32> -> vector<24x256xf32>
    %84 = vector.broadcast %1 : vector<24x1xf32> to vector<24x256xf32>
    %85 = arith.addf %83, %84 : vector<24x256xf32>
    %86 = vector.extract_strided_slice %85 {offsets = [0, 0], sizes = [8, 256], strides = [1, 1]} : vector<24x256xf32> to vector<8x256xf32>
    %87 = vector.extract_strided_slice %85 {offsets = [8, 0], sizes = [8, 256], strides = [1, 1]} : vector<24x256xf32> to vector<8x256xf32>
    %88 = vector.extract_strided_slice %85 {offsets = [16, 0], sizes = [4, 256], strides = [1, 1]} : vector<24x256xf32> to vector<4x256xf32>
    %cst_37 = arith.constant dense<0.000000e+00> : vector<256x256xf32>
    %89 = tpu.matmul %86, %87, %cst_37 {dimension_numbers = #tpu.dot_dimension_numbers<[0], [0], [1], [1], [0, 1, 1, 1], [], []>} : vector<8x256xf32>, vector<8x256xf32>, vector<256x256xf32> -> vector<256x256xf32>
    %cst_38 = arith.constant dense<0xFF800000> : vector<256xf32>
    %90 = vector.multi_reduction <maximumf>, %89, %cst_38 [1] : vector<256x256xf32> to vector<256xf32>
    %91 = vector.shape_cast %90 : vector<256xf32> to vector<256x1xf32>
    %92 = vector.broadcast %91 : vector<256x1xf32> to vector<256x256xf32>
    %93 = arith.subf %89, %92 : vector<256x256xf32>
    %94 = math.exp %93 : vector<256x256xf32>
    %cst_39 = arith.constant dense<0.000000e+00> : vector<256xf32>
    %95 = vector.multi_reduction <add>, %94, %cst_39 [1] : vector<256x256xf32> to vector<256xf32>
    %96 = vector.shape_cast %95 : vector<256xf32> to vector<256x1xf32>
    %97 = tpu.reciprocal %96 : vector<256x1xf32> -> vector<256x1xf32>
    %98 = vector.broadcast %97 : vector<256x1xf32> to vector<256x256xf32>
    %99 = arith.mulf %94, %98 : vector<256x256xf32>
    %cst_40 = arith.constant dense<0.000000e+00> : vector<4x256xf32>
    %100 = tpu.matmul %88, %99, %cst_40 {dimension_numbers = #tpu.dot_dimension_numbers<[1], [1], [0], [0], [0, 0, 1, 0], [], []>} : vector<4x256xf32>, vector<256x256xf32>, vector<4x256xf32> -> vector<4x256xf32>
    %101 = vector.broadcast %2 : f32 to vector<4x256xf32>
    %102 = arith.mulf %101, %100 : vector<4x256xf32>
    %103 = arith.addf %102, %82 : vector<4x256xf32>
    %c3_41 = arith.constant 3 : index
    %c0_42 = arith.constant 0 : index
    %c0_43 = arith.constant 0 : index
    %104 = vector.load %arg5[%c3_41, %c0_42, %c0_43] : memref<5x4x256xf32, #tpu.memory_space<vmem>>, vector<1x4x256xf32>
    %105 = vector.shape_cast %104 : vector<1x4x256xf32> to vector<4x256xf32>
    %106 = vector.shape_cast %103 : vector<4x256xf32> to vector<1x4x256xf32>
    tpu.vector_store %arg5[%c3_41, %c0_42, %c0_43], %106 {strides = array<i32>} : memref<5x4x256xf32, #tpu.memory_space<vmem>>, vector<1x4x256xf32>,
    %c4 = arith.constant 4 : index
    %c0_44 = arith.constant 0 : index
    %c0_45 = arith.constant 0 : index
    %107 = vector.load %arg1[%c4, %c0_44, %c0_45] : memref<5x4x256xf32, #tpu.memory_space<vmem>>, vector<1x4x256xf32>
    %108 = vector.shape_cast %107 : vector<1x4x256xf32> to vector<4x256xf32>
    %cst_46 = arith.constant dense<0.000000e+00> : vector<24x256xf32>
    %109 = tpu.matmul %0, %108, %cst_46 {dimension_numbers = #tpu.dot_dimension_numbers<[1], [0], [0], [1], [0, 0, 1, 1], [], []>} : vector<24x4xf32>, vector<4x256xf32>, vector<24x256xf32> -> vector<24x256xf32>
    %110 = vector.broadcast %1 : vector<24x1xf32> to vector<24x256xf32>
    %111 = arith.addf %109, %110 : vector<24x256xf32>
    %112 = vector.extract_strided_slice %111 {offsets = [0, 0], sizes = [8, 256], strides = [1, 1]} : vector<24x256xf32> to vector<8x256xf32>
    %113 = vector.extract_strided_slice %111 {offsets = [8, 0], sizes = [8, 256], strides = [1, 1]} : vector<24x256xf32> to vector<8x256xf32>
    %114 = vector.extract_strided_slice %111 {offsets = [16, 0], sizes = [4, 256], strides = [1, 1]} : vector<24x256xf32> to vector<4x256xf32>
    %cst_47 = arith.constant dense<0.000000e+00> : vector<256x256xf32>
    %115 = tpu.matmul %112, %113, %cst_47 {dimension_numbers = #tpu.dot_dimension_numbers<[0], [0], [1], [1], [0, 1, 1, 1], [], []>} : vector<8x256xf32>, vector<8x256xf32>, vector<256x256xf32> -> vector<256x256xf32>
    %cst_48 = arith.constant dense<0xFF800000> : vector<256xf32>
    %116 = vector.multi_reduction <maximumf>, %115, %cst_48 [1] : vector<256x256xf32> to vector<256xf32>
    %117 = vector.shape_cast %116 : vector<256xf32> to vector<256x1xf32>
    %118 = vector.broadcast %117 : vector<256x1xf32> to vector<256x256xf32>
    %119 = arith.subf %115, %118 : vector<256x256xf32>
    %120 = math.exp %119 : vector<256x256xf32>
    %cst_49 = arith.constant dense<0.000000e+00> : vector<256xf32>
    %121 = vector.multi_reduction <add>, %120, %cst_49 [1] : vector<256x256xf32> to vector<256xf32>
    %122 = vector.shape_cast %121 : vector<256xf32> to vector<256x1xf32>
    %123 = tpu.reciprocal %122 : vector<256x1xf32> -> vector<256x1xf32>
    %124 = vector.broadcast %123 : vector<256x1xf32> to vector<256x256xf32>
    %125 = arith.mulf %120, %124 : vector<256x256xf32>
    %cst_50 = arith.constant dense<0.000000e+00> : vector<4x256xf32>
    %126 = tpu.matmul %114, %125, %cst_50 {dimension_numbers = #tpu.dot_dimension_numbers<[1], [1], [0], [0], [0, 0, 1, 0], [], []>} : vector<4x256xf32>, vector<256x256xf32>, vector<4x256xf32> -> vector<4x256xf32>
    %127 = vector.broadcast %2 : f32 to vector<4x256xf32>
    %128 = arith.mulf %127, %126 : vector<4x256xf32>
    %129 = arith.addf %128, %108 : vector<4x256xf32>
    %c4_51 = arith.constant 4 : index
    %c0_52 = arith.constant 0 : index
    %c0_53 = arith.constant 0 : index
    %130 = vector.load %arg5[%c4_51, %c0_52, %c0_53] : memref<5x4x256xf32, #tpu.memory_space<vmem>>, vector<1x4x256xf32>
    %131 = vector.shape_cast %130 : vector<1x4x256xf32> to vector<4x256xf32>
    %132 = vector.shape_cast %129 : vector<4x256xf32> to vector<1x4x256xf32>
    tpu.vector_store %arg5[%c4_51, %c0_52, %c0_53], %132 {strides = array<i32>} : memref<5x4x256xf32, #tpu.memory_space<vmem>>, vector<1x4x256xf32>,
    return
  }
  func.func @transform_0(%arg0: i32) -> (i32, i32, i32) {
    %c0_i32 = arith.constant 0 : i32
    %c0_i32_0 = arith.constant 0 : i32
    %c0_i32_1 = arith.constant 0 : i32
    return %arg0, %c0_i32, %c0_i32_0 : i32, i32, i32
  }
  func.func @transform_1(%arg0: i32) -> (i32, i32) {
    %c0_i32 = arith.constant 0 : i32
    %c0_i32_0 = arith.constant 0 : i32
    %c0_i32_1 = arith.constant 0 : i32
    return %c0_i32, %c0_i32_0 : i32, i32
  }
  func.func @transform_2(%arg0: i32) -> (i32, i32) {
    %c0_i32 = arith.constant 0 : i32
    %c0_i32_0 = arith.constant 0 : i32
    %c0_i32_1 = arith.constant 0 : i32
    return %c0_i32, %c0_i32_0 : i32, i32
  }
  func.func @transform_3(%arg0: i32) -> i32 {
    %c0_i32 = arith.constant 0 : i32
    %c0_i32_0 = arith.constant 0 : i32
    return %c0_i32 : i32
  }
  func.func @transform_4(%arg0: i32) -> (i32, i32, i32) {
    %c0_i32 = arith.constant 0 : i32
    %c0_i32_0 = arith.constant 0 : i32
    %c0_i32_1 = arith.constant 0 : i32
    return %arg0, %c0_i32, %c0_i32_0 : i32, i32, i32
  }
}

</mosaic_0001>

<bundles_post_ra>
// kernel: self_attention.1
= control target key start
LH: loop header
LB: loop body
LE: loop exit
PB: predicated region body
PF: predicated region fallthrough
CT: control target
= control target key end

     0   :  { %s7203_s17 = smov 0   ;;  %s10461_s0 = inlined_call_operand.vmem [shape: f32[30,4,256], index: 0, kind: input, shape index: {}]   ;;  %s10462_s1 = inlined_call_operand.vmem [shape: f32[24,4], index: 1, kind: input, shape index: {}]   ;;  %s10463_s2 = inlined_call_operand.vmem [shape: f32[24,1], index: 2, kind: input, shape index: {}]   ;;  %s10464_s3 = inlined_call_operand.<no memory space> [shape: f32[1], index: 3, kind: input, shape index: {}]   ;;  %s10465_s4 = inlined_call_operand.vmem [shape: f32[30,4,256], index: 4, kind: output, shape index: {}]  }
   0x1   :  { %9 = sst [smem:[#allocation2]] %s10464_s3 }
   0x2 LB: > { %s5648_s18 = sadd.s32 4294967295, %s7171_s17   ;;  %p5652_p0 = scmp.ge.s32.totalorder %s7171_s17, 1  ;;  %s7171_s17 = sphi %s7203_s17, %s15_s17  }
   0x3   : > { %p165_p1 = scmp.lt.s32.totalorder %s7171_s17, 7 }
   0x5   : > { %p166_p2 = pnand %p5652_p0, %p165_p1 }
   0x7   : > { %169 = sbr.rel (%p166_p2) target bundleno = 4294 (0x10c6), region = 36 }
   0xe   : > { %s193_s19 = smul.u32 5, %s5648_s18  ;;  %v10466_v0 = vmov 0.0   ;;  %v210_v1 = vld [vmem:[%s10463_s2] sm:$0xff]  ;;  %v7174_v2 = vmov 0   ;;  %v211_v3 = vld [vmem:[%s10463_s2 + $0x8] sm:$0xff]  ;;  %vm242_vm0 = vcmask 1043456  }
   0xf   : > { %311 = vmatprep.mubr.f32.mxu0 %v10466_v0  ;;  %555 = vmatprep.mubr.f32.mxu1 %v10466_v0  ;;  %v7235_v6 = vld [vmem:[%s10462_s1] sm:$0xff]  ;;  %vm232_vm1 = vcmask 31744   ;;  %v7246_v7 = vld [vmem:[%s10462_s1 + $0x8] sm:$0xff]  ;;  %vm394_vm2 = vcmask 64512   ;;  %s213_s15 = sld [smem:[#allocation2]] }
  0x10   : > { %p194_p3 = scmp.lt.s32.totalorder %s193_s19, 29  ;;  %6184 = vset.pattern.permute.xlu0 %v7174_v2 }
  0x11   : > { %217 = vperm.xlu0 %6184, %v210_v1  }
  0x12   : > { %s11019_s19 = smov (!%p194_p3, %s193_s19), 29 }
  0x13   : > { %s5852_s23 = sshll.u32 %s11019_s19, 3 }
  0x14   : > { %s7227_s26 = scalar_lea.vmem %s10461_s0, %s5852_s23  ;;  %s7992_s3 = scalar_lea.vmem %s10465_s4, %s5852_s23 }
  0x15   : > { %222 = vperm.xlu0 %6184, %v211_v3   ;;  %v214_v4 = vld [vmem:[%s7227_s26] sm:$0xff]  ;;  %v5694_v18 = vld [vmem:[%s7227_s26 + $0x8] sm:$0xff] }
  0x16   : > { %v7230_v5 = vcombine.high %v214_v4, %v214_v4  ;;  %v7260_v19 = vcombine.high %v5694_v18, %v5694_v18 }
  0x18   : > { %10633 = vst [vmem:[#allocation3_spill] sm:$0xff] %v7230_v5  ;;  %5657 = vmatprep.subr.msk.mxu0 %vm242_vm0, %v7230_v5  ;;  %10636 = vst [vmem:[#allocation6_spill] sm:$0xff] %v7260_v19 }
  0x19   : > { %5658 = vmatpush1.msk.msra.mxu0 %vm242_vm0, %v214_v4 }
  0x1a   : > { %5659 = vmatmul.mubr.msk.f32.vlgmr.msra.gmra.mrb[0].mxu0 %vm232_vm1, %v7235_v6 }
  0x1b   : > { %317 = vmatprep.mubr.f32.mxu0 %v10466_v0 }
  0x1e   : > { %5660 = vmatmul.mubr.msk.f32.gmra.mrb[2].mxu0 %vm232_vm1, %v7246_v7 }
  0x1f   : > { %323 = vmatprep.mubr.f32.mxu0 %v10466_v0 }
  0x90   : > { %v7251_v8 = vpop.permute.xlu0 %217 }
  0x91   : > { %10634 = vst [vmem:[#allocation4_spill] sm:$0xff] %v7251_v8 }
  0x94   : > { %v7254_v13 = vpop.permute.xlu0 %222 }
  0x95   : > { %10635 = vst [vmem:[#allocation5_spill] sm:$0xff] %v7254_v13 }
  0xed   : > { %v313_v9 = vpop.f32.mrb[0].mxu0 }
  0xee   : > { %v315_v10 = vpop.f32.mrb[1].mxu0  ;;  %v314_v11 = vadd.f32 %v313_v9, %v7251_v8 }
  0xef   : > { %v316_v17 = vadd.f32 %v315_v10, %v7251_v8 }
  0xf0   : > { %330 = vxpose.xlu1.b32.start.end [1/1] (short) %v314_v11, 128 }
  0xf1   : > { %v319_v12 = vpop.f32.mrb[2].mxu0 }
  0xf2   : > { %v321_v14 = vpop.f32.mrb[3].mxu0  ;;  %v320_v16 = vadd.f32 %v319_v12, %v7254_v13 }
  0xf3   : > { %v322_v15 = vadd.f32 %v321_v14, %v7254_v13 }
  0xf5   : > { %491 = vmatprep.subr.mxu1 %v322_v15 }
  0xf6   : > { %492 = vmatpush1.msra.mxu1 %v320_v16 }
  0xf7   : > { %5695 = vmatprep.subr.msk.mxu1 %vm242_vm0, %v7260_v19 }
 0x12d   : > { %362 = vxpose.xlu1.b32.start.end [1/1] (short) %v316_v17, 128 }
 0x14b   : > { %6185 = vset.pattern.permute.xlu1 %v7174_v2 }
 0x170   : > { %v346_v20 = vpop.trf.xlu1 }
 0x171   : > { %5662 = vmatmul.mubr.msk.f32.vlgmr.msra.gmra.mrb[0].mxu1 %vm394_vm2, %v346_v20 }
 0x172   : > { %561 = vmatprep.mubr.f32.mxu1 %v10466_v0  ;;  %5696 = vmatpush1.msk.msra.mxu1 %vm242_vm0, %v5694_v18 }
 0x174   : > { %v347_v21 = vpop.trf.xlu1 }
 0x175   : > { %5663 = vmatmul.mubr.msk.f32.gmra.mrb[2].mxu1 %vm394_vm2, %v347_v21 }
 0x176   : > { %567 = vmatprep.mubr.f32.mxu1 %v10466_v0 }
 0x178   : > { %v348_v22 = vpop.trf.xlu1 }
 0x179   : > { %5664 = vmatmul.mubr.msk.f32.gmra.mrb[4].mxu1 %vm394_vm2, %v348_v22 }
 0x17a   : > { %573 = vmatprep.mubr.f32.mxu1 %v10466_v0 }
 0x17c   : > { %v349_v23 = vpop.trf.xlu1 }
 0x17d   : > { %5665 = vmatmul.mubr.msk.f32.gmra.mrb[6].mxu1 %vm394_vm2, %v349_v23 }
 0x17e   : > { %579 = vmatprep.mubr.f32.mxu1 %v10466_v0 }
 0x180   : > { %v350_v24 = vpop.trf.xlu1 }
 0x181   : > { %5666 = vmatmul.mubr.msk.f32.gmra.mrb[8].mxu1 %vm394_vm2, %v350_v24 }
 0x182   : > { %585 = vmatprep.mubr.f32.mxu1 %v10466_v0 }
 0x184   : > { %v351_v25 = vpop.trf.xlu1 }
 0x185   : > { %5667 = vmatmul.mubr.msk.f32.gmra.mrb[10].mxu1 %vm394_vm2, %v351_v25 }
 0x186   : > { %591 = vmatprep.mubr.f32.mxu1 %v10466_v0 }
 0x188   : > { %v352_v26 = vpop.trf.xlu1 }
 0x189   : > { %5668 = vmatmul.mubr.msk.f32.gmra.mrb[12].mxu1 %vm394_vm2, %v352_v26 }
 0x18a   : > { %597 = vmatprep.mubr.f32.mxu1 %v10466_v0 }
 0x18c   : > { %v353_v27 = vpop.trf.xlu1 }
 0x18d   : > { %5669 = vmatmul.mubr.msk.f32.gmra.mrb[14].mxu1 %vm394_vm2, %v353_v27 }
 0x18e   : > { %603 = vmatprep.mubr.f32.mxu1 %v10466_v0 }
 0x190   : > { %v354_v28 = vpop.trf.xlu1 }
 0x191   : > { %5670 = vmatmul.mubr.msk.f32.gmra.mrb[16].mxu1 %vm394_vm2, %v354_v28 }
 0x192   : > { %609 = vmatprep.mubr.f32.mxu1 %v10466_v0 }
 0x194   : > { %v355_v29 = vpop.trf.xlu1 }
 0x195   : > { %5671 = vmatmul.mubr.msk.f32.gmra.mrb[18].mxu1 %vm394_vm2, %v355_v29 }
 0x196   : > { %615 = vmatprep.mubr.f32.mxu1 %v10466_v0 }
 0x198   : > { %v356_v30 = vpop.trf.xlu1 }
 0x199   : > { %5672 = vmatmul.mubr.msk.f32.gmra.mrb[20].mxu1 %vm394_vm2, %v356_v30 }
 0x19a   : > { %621 = vmatprep.mubr.f32.mxu1 %v10466_v0 }
 0x19c   : > { %v357_v31 = vpop.trf.xlu1 }
 0x19d   : > { %5673 = vmatmul.mubr.msk.f32.gmra.mrb[22].mxu1 %vm394_vm2, %v357_v31 }
 0x19e   : > { %627 = vmatprep.mubr.f32.mxu1 %v10466_v0 }
 0x1a0   : > { %v358_v32 = vpop.trf.xlu1 }
 0x1a1   : > { %5674 = vmatmul.mubr.msk.f32.gmra.mrb[24].mxu1 %vm394_vm2, %v358_v32 }
 0x1a2   : > { %633 = vmatprep.mubr.f32.mxu1 %v10466_v0 }
 0x1a4   : > { %v359_v33 = vpop.trf.xlu1 }
 0x1a5   : > { %5675 = vmatmul.mubr.msk.f32.gmra.mrb[26].mxu1 %vm394_vm2, %v359_v33 }
 0x1a6   : > { %639 = vmatprep.mubr.f32.mxu1 %v10466_v0 }
 0x1a8   : > { %v360_v34 = vpop.trf.xlu1 }
 0x1a9   : > { %5676 = vmatmul.mubr.msk.f32.gmra.mrb[28].mxu1 %vm394_vm2, %v360_v34 }
 0x1aa   : > { %645 = vmatprep.mubr.f32.mxu1 %v10466_v0 }
 0x1ac   : > { %v361_v35 = vpop.trf.xlu1 }
 0x1ad   : > { %5677 = vmatmul.mubr.msk.f32.gmra.mrb[30].mxu1 %vm394_vm2, %v361_v35 }
 0x1ae   : > { %651 = vmatprep.mubr.f32.mxu1 %v10466_v0 }
 0x1b0   : > { %v378_v36 = vpop.trf.xlu1 }
 0x1b1   : > { %5678 = vmatmul.mubr.msk.f32.gmra.mrb[32].mxu1 %vm394_vm2, %v378_v36 }
 0x1b2   : > { %657 = vmatprep.mubr.f32.mxu1 %v10466_v0 }
 0x1b4   : > { %v379_v37 = vpop.trf.xlu1 }
 0x1b5   : > { %5679 = vmatmul.mubr.msk.f32.gmra.mrb[34].mxu1 %vm394_vm2, %v379_v37 }
 0x1b6   : > { %663 = vmatprep.mubr.f32.mxu1 %v10466_v0 }
 0x1b8   : > { %v380_v38 = vpop.trf.xlu1 }
 0x1b9   : > { %5680 = vmatmul.mubr.msk.f32.gmra.mrb[36].mxu1 %vm394_vm2, %v380_v38 }
 0x1ba   : > { %669 = vmatprep.mubr.f32.mxu1 %v10466_v0 }
 0x1bc   : > { %v381_v39 = vpop.trf.xlu1 }
 0x1bd   : > { %5681 = vmatmul.mubr.msk.f32.gmra.mrb[38].mxu1 %vm394_vm2, %v381_v39 }
 0x1be   : > { %675 = vmatprep.mubr.f32.mxu1 %v10466_v0 }
 0x1c0   : > { %v382_v40 = vpop.trf.xlu1 }
 0x1c1   : > { %5682 = vmatmul.mubr.msk.f32.gmra.mrb[40].mxu1 %vm394_vm2, %v382_v40 }
 0x1c2   : > { %681 = vmatprep.mubr.f32.mxu1 %v10466_v0 }
 0x1c4   : > { %v383_v41 = vpop.trf.xlu1 }
 0x1c5   : > { %5683 = vmatmul.mubr.msk.f32.gmra.mrb[42].mxu1 %vm394_vm2, %v383_v41 }
 0x1c6   : > { %687 = vmatprep.mubr.f32.mxu1 %v10466_v0 }
 0x1c8   : > { %v384_v42 = vpop.trf.xlu1 }
 0x1c9   : > { %5684 = vmatmul.mubr.msk.f32.gmra.mrb[44].mxu1 %vm394_vm2, %v384_v42 }
 0x1ca   : > { %693 = vmatprep.mubr.f32.mxu1 %v10466_v0 }
 0x1cc   : > { %v385_v43 = vpop.trf.xlu1 }
 0x1cd   : > { %5685 = vmatmul.mubr.msk.f32.gmra.mrb[46].mxu1 %vm394_vm2, %v385_v43 }
 0x1ce   : > { %699 = vmatprep.mubr.f32.mxu1 %v10466_v0 }
 0x1d0   : > { %v386_v44 = vpop.trf.xlu1 }
 0x1d1   : > { %5686 = vmatmul.mubr.msk.f32.gmra.mrb[48].mxu1 %vm394_vm2, %v386_v44 }
 0x1d2   : > { %705 = vmatprep.mubr.f32.mxu1 %v10466_v0 }
 0x1d4   : > { %v387_v45 = vpop.trf.xlu1 }
 0x1d5   : > { %5687 = vmatmul.mubr.msk.f32.gmra.mrb[50].mxu1 %vm394_vm2, %v387_v45 }
 0x1d6   : > { %711 = vmatprep.mubr.f32.mxu1 %v10466_v0 }
 0x1d8   : > { %v388_v46 = vpop.trf.xlu1 }
 0x1d9   : > { %5688 = vmatmul.mubr.msk.f32.gmra.mrb[52].mxu1 %vm394_vm2, %v388_v46 }
 0x1da   : > { %717 = vmatprep.mubr.f32.mxu1 %v10466_v0 }
 0x1dc   : > { %v389_v47 = vpop.trf.xlu1 }
 0x1dd   : > { %5689 = vmatmul.mubr.msk.f32.gmra.mrb[54].mxu1 %vm394_vm2, %v389_v47 }
 0x1de   : > { %723 = vmatprep.mubr.f32.mxu1 %v10466_v0 }
 0x1e0   : > { %v390_v48 = vpop.trf.xlu1 }
 0x1e1   : > { %5690 = vmatmul.mubr.msk.f32.gmra.mrb[56].mxu1 %vm394_vm2, %v390_v48 }
 0x1e2   : > { %729 = vmatprep.mubr.f32.mxu1 %v10466_v0 }
 0x1e4   : > { %v391_v49 = vpop.trf.xlu1 }
 0x1e5   : > { %5691 = vmatmul.mubr.msk.f32.gmra.mrb[58].mxu1 %vm394_vm2, %v391_v49 }
 0x1e6   : > { %735 = vmatprep.mubr.f32.mxu1 %v10466_v0 }
 0x1e8   : > { %v392_v50 = vpop.trf.xlu1 }
 0x1e9   : > { %5692 = vmatmul.mubr.msk.f32.gmra.mrb[60].mxu1 %vm394_vm2, %v392_v50 }
 0x1ea   : > { %741 = vmatprep.mubr.f32.mxu1 %v10466_v0 }
 0x1ec   : > { %v393_v51 = vpop.trf.xlu1 }
 0x1ed   : > { %5693 = vmatmul.mubr.msk.f32.gmra.mrb[62].mxu1 %vm394_vm2, %v393_v51 }
 0x1ee   : > { %1382 = vmatprep.mubr.f32.mxu1 %v10466_v0 }
 0x1f1   : > { %5697 = vmatmul.mubr.msk.f32.vlgmr.msra.gmra.mrb[64].mxu1 %vm232_vm1, %v7235_v6 }
 0x1f2   : > { %1388 = vmatprep.mubr.f32.mxu1 %v10466_v0 }
 0x1f5   : > { %5698 = vmatmul.mubr.msk.f32.gmra.mrb[66].mxu1 %vm232_vm1, %v7246_v7 }
 0x1f6   : > { %1394 = vmatprep.mubr.f32.mxu1 %v10466_v0 }
 0x244   : > { %v7335_v52 = vpop.f32.mrb[0].mxu1 }
 0x245   : > { %v7337_v53 = vpop.f32.mrb[1].mxu1 }
 0x246   : > { %v748_v54 = vmax.f32 %v7335_v52, %v7337_v53 }
 0x248   : > { %749 = vmax.xlane.f32.xlu0 %v748_v54  ;;  %v7341_v55 = vpop.f32.mrb[2].mxu1 }
 0x249   : > { %v7343_v56 = vpop.f32.mrb[3].mxu1 }
 0x24a   : > { %v751_v57 = vmax.f32 %v7341_v55, %v7343_v56 }
 0x24c   : > { %752 = vmax.xlane.f32.xlu0 %v751_v57  ;;  %v7347_v58 = vpop.f32.mrb[4].mxu1 }
 0x24d   : > { %v7349_v59 = vpop.f32.mrb[5].mxu1 }
 0x24e   : > { %v754_v60 = vmax.f32 %v7347_v58, %v7349_v59 }
 0x250   : > { %755 = vmax.xlane.f32.xlu0 %v754_v60  ;;  %v7353_v61 = vpop.f32.mrb[6].mxu1 }
 0x251   : > { %v7355_v62 = vpop.f32.mrb[7].mxu1 }
 0x252   : > { %v757_v63 = vmax.f32 %v7353_v61, %v7355_v62 }
 0x254   : > { %758 = vmax.xlane.f32.xlu0 %v757_v63  ;;  %v7359_v1 = vpop.f32.mrb[8].mxu1 }
 0x255   : > { %v7361_v2 = vpop.f32.mrb[9].mxu1 }
 0x256   : > { %v760_v3 = vmax.f32 %v7359_v1, %v7361_v2 }
 0x258   : > { %761 = vmax.xlane.f32.xlu0 %v760_v3  ;;  %v7365_v4 = vpop.f32.mrb[10].mxu1 }
 0x259   : > { %v7367_v6 = vpop.f32.mrb[11].mxu1 }
 0x25a   : > { %v763_v7 = vmax.f32 %v7365_v4, %v7367_v6 }
 0x25c   : > { %764 = vmax.xlane.f32.xlu0 %v763_v7  ;;  %v7371_v9 = vpop.f32.mrb[12].mxu1 }
 0x25d   : > { %v7373_v10 = vpop.f32.mrb[13].mxu1 }
 0x25e   : > { %v766_v11 = vmax.f32 %v7371_v9, %v7373_v10 }
 0x260   : > { %767 = vmax.xlane.f32.xlu0 %v766_v11  ;;  %v7377_v12 = vpop.f32.mrb[14].mxu1 }
 0x261   : > { %v7379_v14 = vpop.f32.mrb[15].mxu1 }
 0x262   : > { %v769_v15 = vmax.f32 %v7377_v12, %v7379_v14 }
 0x264   : > { %770 = vmax.xlane.f32.xlu0 %v769_v15  ;;  %v7383_v16 = vpop.f32.mrb[16].mxu1 }
 0x265   : > { %v7385_v17 = vpop.f32.mrb[17].mxu1 }
 0x266   : > { %v772_v18 = vmax.f32 %v7383_v16, %v7385_v17 }
 0x268   : > { %773 = vmax.xlane.f32.xlu1 %v772_v18  ;;  %v7389_v20 = vpop.f32.mrb[18].mxu1 }
 0x269   : > { %v7391_v21 = vpop.f32.mrb[19].mxu1 }
 0x26a   : > { %v775_v22 = vmax.f32 %v7389_v20, %v7391_v21 }
 0x26c   : > { %776 = vmax.xlane.f32.xlu0 %v775_v22  ;;  %v7395_v23 = vpop.f32.mrb[20].mxu1 }
 0x26d   : > { %v7397_v24 = vpop.f32.mrb[21].mxu1 }
 0x26e   : > { %v778_v25 = vmax.f32 %v7395_v23, %v7397_v24 }
 0x270   : > { %779 = vmax.xlane.f32.xlu0 %v778_v25  ;;  %v7401_v26 = vpop.f32.mrb[22].mxu1 }
 0x271   : > { %v7403_v27 = vpop.f32.mrb[23].mxu1 }
 0x272   : > { %v781_v28 = vmax.f32 %v7401_v26, %v7403_v27 }
 0x274   : > { %782 = vmax.xlane.f32.xlu0 %v781_v28  ;;  %v7407_v29 = vpop.f32.mrb[24].mxu1 }
 0x275   : > { %v7409_v30 = vpop.f32.mrb[25].mxu1 }
 0x276   : > { %v784_v31 = vmax.f32 %v7407_v29, %v7409_v30 }
 0x278   : > { %785 = vmax.xlane.f32.xlu0 %v784_v31  ;;  %v7413_v32 = vpop.f32.mrb[26].mxu1 }
 0x279   : > { %v7415_v33 = vpop.f32.mrb[27].mxu1 }
 0x27a   : > { %v787_v34 = vmax.f32 %v7413_v32, %v7415_v33 }
 0x27c   : > { %788 = vmax.xlane.f32.xlu0 %v787_v34  ;;  %v7419_v35 = vpop.f32.mrb[28].mxu1 }
 0x27d   : > { %v7421_v36 = vpop.f32.mrb[29].mxu1 }
 0x27e   : > { %v790_v37 = vmax.f32 %v7419_v35, %v7421_v36 }
 0x280   : > { %791 = vmax.xlane.f32.xlu0 %v790_v37  ;;  %v7425_v38 = vpop.f32.mrb[30].mxu1 }
 0x281   : > { %v7427_v39 = vpop.f32.mrb[31].mxu1 }
 0x282   : > { %v793_v40 = vmax.f32 %v7425_v38, %v7427_v39 }
 0x284   : > { %794 = vmax.xlane.f32.xlu0 %v793_v40  ;;  %v7431_v41 = vpop.f32.mrb[32].mxu1 }
 0x285   : > { %v7433_v42 = vpop.f32.mrb[33].mxu1 }
 0x286   : > { %v796_v43 = vmax.f32 %v7431_v41, %v7433_v42 }
 0x288   : > { %797 = vmax.xlane.f32.xlu0 %v796_v43  ;;  %v7437_v44 = vpop.f32.mrb[34].mxu1 }
 0x289   : > { %v7439_v45 = vpop.f32.mrb[35].mxu1 }
 0x28a   : > { %v799_v46 = vmax.f32 %v7437_v44, %v7439_v45 }
 0x28c   : > { %800 = vmax.xlane.f32.xlu0 %v799_v46  ;;  %v7443_v47 = vpop.f32.mrb[36].mxu1 }
 0x28d   : > { %v7445_v48 = vpop.f32.mrb[37].mxu1 }
 0x28e   : > { %v802_v49 = vmax.f32 %v7443_v47, %v7445_v48 }
 0x290   : > { %803 = vmax.xlane.f32.xlu0 %v802_v49  ;;  %v7449_v50 = vpop.f32.mrb[38].mxu1 }
 0x291   : > { %v7451_v51 = vpop.f32.mrb[39].mxu1 }
 0x292   : > { %v805_v54 = vmax.f32 %v7449_v50, %v7451_v51 }
 0x294   : > { %806 = vmax.xlane.f32.xlu0 %v805_v54  ;;  %v7455_v57 = vpop.f32.mrb[40].mxu1 }
 0x295   : > { %v7457_v60 = vpop.f32.mrb[41].mxu1 }
 0x296   : > { %v808_v63 = vmax.f32 %v7455_v57, %v7457_v60 }
 0x298   : > { %809 = vmax.xlane.f32.xlu0 %v808_v63  ;;  %v7461_v3 = vpop.f32.mrb[42].mxu1 }
 0x299   : > { %v7463_v7 = vpop.f32.mrb[43].mxu1 }
 0x29a   : > { %v811_v11 = vmax.f32 %v7461_v3, %v7463_v7 }
 0x29c   : > { %812 = vmax.xlane.f32.xlu0 %v811_v11  ;;  %v7467_v15 = vpop.f32.mrb[44].mxu1 }
 0x29d   : > { %v7469_v18 = vpop.f32.mrb[45].mxu1 }
 0x29e   : > { %v814_v22 = vmax.f32 %v7467_v15, %v7469_v18 }
 0x2a0   : > { %815 = vmax.xlane.f32.xlu0 %v814_v22  ;;  %v7473_v25 = vpop.f32.mrb[46].mxu1 }
 0x2a1   : > { %10637 = vst [vmem:[#allocation7_spill] sm:$0xff] %v7473_v25  ;;  %v7475_v28 = vpop.f32.mrb[47].mxu1 }
 0x2a2   : > { %10638 = vst [vmem:[#allocation8_spill] sm:$0xff] %v7475_v28  ;;  %v817_v31 = vmax.f32 %v7473_v25, %v7475_v28  ;;  %v209_v28 = vld [vmem:[%s10462_s1 + $0x10] sm:$0xff] }
 0x2a3   : > { %5661 = vmatmul.mubr.msk.f32.gmra.mrb[4].mxu0 %vm232_vm1, %v209_v28  ;;  %5699 = vmatmul.mubr.msk.f32.gmra.mrb[68].mxu1 %vm232_vm1, %v209_v28 }
 0x2a4   : > { %818 = vmax.xlane.f32.xlu0 %v817_v31  ;;  %v7479_v34 = vpop.f32.mrb[48].mxu1 }
 0x2a5   : > { %10639 = vst [vmem:[#allocation9_spill] sm:$0xff] %v7479_v34  ;;  %v7481_v37 = vpop.f32.mrb[49].mxu1 }
 0x2a6   : > { %10640 = vst [vmem:[#allocation10_spill] sm:$0xff] %v7481_v37  ;;  %v820_v40 = vmax.f32 %v7479_v34, %v7481_v37 }
 0x2a8   : > { %821 = vmax.xlane.f32.xlu0 %v820_v40  ;;  %v7485_v43 = vpop.f32.mrb[50].mxu1 }
 0x2a9   : > { %10641 = vst [vmem:[#allocation11_spill] sm:$0xff] %v7485_v43  ;;  %v7487_v46 = vpop.f32.mrb[51].mxu1 }
 0x2aa   : > { %10642 = vst [vmem:[#allocation12_spill] sm:$0xff] %v7487_v46  ;;  %v823_v49 = vmax.f32 %v7485_v43, %v7487_v46 }
 0x2ac   : > { %824 = vmax.xlane.f32.xlu0 %v823_v49  ;;  %v7491_v54 = vpop.f32.mrb[52].mxu1 }
 0x2ad   : > { %10643 = vst [vmem:[#allocation13_spill] sm:$0xff] %v7491_v54  ;;  %v7493_v63 = vpop.f32.mrb[53].mxu1 }
 0x2ae   : > { %10644 = vst [vmem:[#allocation14_spill] sm:$0xff] %v7493_v63  ;;  %v826_v11 = vmax.f32 %v7491_v54, %v7493_v63 }
 0x2b0   : > { %827 = vmax.xlane.f32.xlu0 %v826_v11  ;;  %v7497_v22 = vpop.f32.mrb[54].mxu1 }
 0x2b1   : > { %10645 = vst [vmem:[#allocation15_spill] sm:$0xff] %v7497_v22  ;;  %v7499_v31 = vpop.f32.mrb[55].mxu1 }
 0x2b2   : > { %10646 = vst [vmem:[#allocation16_spill] sm:$0xff] %v7499_v31  ;;  %v829_v40 = vmax.f32 %v7497_v22, %v7499_v31 }
 0x2b4   : > { %830 = vmax.xlane.f32.xlu0 %v829_v40  ;;  %v7503_v0 = vpop.f32.mrb[56].mxu1 }
 0x2b5   : > { %10647 = vst [vmem:[#allocation17_spill] sm:$0xff] %v7503_v0  ;;  %v7505_v19 = vpop.f32.mrb[57].mxu1 }
 0x2b6   : > { %10648 = vst [vmem:[#allocation18_spill] sm:$0xff] %v7505_v19  ;;  %v832_v49 = vmax.f32 %v7503_v0, %v7505_v19 }
 0x2b8   : > { %833 = vmax.xlane.f32.xlu1 %v832_v49  ;;  %v7509_v5 = vpop.f32.mrb[58].mxu1 }
 0x2b9   : > { %v7511_v13 = vpop.f32.mrb[59].mxu1 }
 0x2bc   : > { %v7515_v8 = vpop.f32.mrb[60].mxu1 }
 0x2bd   : > { %v7517_v63 = vpop.f32.mrb[61].mxu1 }
 0x2c0   : > { %v7521_v31 = vpop.f32.mrb[62].mxu1 }
 0x2c1   : > { %v7523_v22 = vpop.f32.mrb[63].mxu1 }
 0x2c4   : > { %v7527_v19 = vpop.f32.mrb[64].mxu1 }
 0x2c5   : > { %10649 = vst [vmem:[#allocation19_spill] sm:$0xff] %v7527_v19  ;;  %v7529_v0 = vpop.f32.mrb[65].mxu1 }
 0x2c6   : > { %10650 = vst [vmem:[#allocation20_spill] sm:$0xff] %v7529_v0 }
 0x2c8   : > { %v7531_v54 = vpop.f32.mrb[66].mxu1 }
 0x2c9   : > { %10651 = vst [vmem:[#allocation21_spill] sm:$0xff] %v7531_v54  ;;  %v7533_v11 = vpop.f32.mrb[67].mxu1 }
 0x2ca   : > { %10652 = vst [vmem:[#allocation22_spill] sm:$0xff] %v7533_v11 }
 0x2d5   : > { %v750_v46 = vpop.xlane.xlu0 %749 }
 0x2d6   : > { %v844_v43 = vsub.f32 %v7335_v52, %v750_v46  ;;  %v845_v40 = vsub.f32 %v7337_v53, %v750_v46 }
 0x2d8   : > { %v908_v37 = vmul.f32 1.442695, %v844_v43  ;;  %v910_v34 = vmul.f32 1.442695, %v845_v40 }
 0x2d9   : > { %v753_v49 = vpop.xlane.xlu0 %752 }
 0x2da   : > { %6191 = vpow2.f32 %v908_v37  ;;  %v846_v54 = vsub.f32 %v7341_v55, %v753_v49  ;;  %v847_v11 = vsub.f32 %v7343_v56, %v753_v49 }
 0x2db   : > { %6193 = vpow2.f32 %v910_v34 }
 0x2dc   : > { %v912_v52 = vmul.f32 1.442695, %v846_v54  ;;  %v914_v0 = vmul.f32 1.442695, %v847_v11 }
 0x2dd   : > { %v756_v53 = vpop.xlane.xlu0 %755 }
 0x2de   : > { %6195 = vpow2.f32 %v912_v52  ;;  %v848_v43 = vsub.f32 %v7347_v58, %v756_v53  ;;  %v849_v46 = vsub.f32 %v7349_v59, %v756_v53 }
 0x2df   : > { %6197 = vpow2.f32 %v914_v0 }
 0x2e0   : > { %v916_v40 = vmul.f32 1.442695, %v848_v43  ;;  %v918_v19 = vmul.f32 1.442695, %v849_v46 }
 0x2e1   : > { %v759_v25 = vpop.xlane.xlu0 %758 }
 0x2e2   : > { %6199 = vpow2.f32 %v916_v40  ;;  %v850_v28 = vsub.f32 %v7353_v61, %v759_v25  ;;  %v851_v55 = vsub.f32 %v7355_v62, %v759_v25 }
 0x2e3   : > { %6201 = vpow2.f32 %v918_v19 }
 0x2e4   : > { %v7548_v56 = vpop.eup %6191  ;;  %v920_v34 = vmul.f32 1.442695, %v850_v28  ;;  %v922_v37 = vmul.f32 1.442695, %v851_v55 }
 0x2e5   : > { %v7550_v54 = vpop.eup %6193  ;;  %v762_v11 = vpop.xlane.xlu0 %761 }
 0x2e6   : > { %6203 = vpow2.f32 %v920_v34  ;;  %v852_v58 = vsub.f32 %v7359_v1, %v762_v11  ;;  %v853_v0 = vsub.f32 %v7361_v2, %v762_v11  ;;  %v1036_v59 = vadd.f32 %v7550_v54, %v7548_v56 }
 0x2e7   : > { %6205 = vpow2.f32 %v922_v37 }
 0x2e8   : > { %v7556_v61 = vpop.eup %6195  ;;  %v924_v62 = vmul.f32 1.442695, %v852_v58  ;;  %v926_v19 = vmul.f32 1.442695, %v853_v0  ;;  %1037 = vadd.xlane.f32.xlu0 %v1036_v59 }
 0x2e9   : > { %v7558_v25 = vpop.eup %6197  ;;  %v765_v49 = vpop.xlane.xlu0 %764 }
 0x2ea   : > { %6207 = vpow2.f32 %v924_v62  ;;  %v854_v52 = vsub.f32 %v7365_v4, %v765_v49  ;;  %v855_v53 = vsub.f32 %v7367_v6, %v765_v49  ;;  %v1039_v1 = vadd.f32 %v7558_v25, %v7556_v61 }
 0x2eb   : > { %6209 = vpow2.f32 %v926_v19 }
 0x2ec   : > { %v7564_v2 = vpop.eup %6199  ;;  %v928_v43 = vmul.f32 1.442695, %v854_v52  ;;  %v930_v46 = vmul.f32 1.442695, %v855_v53  ;;  %1040 = vadd.xlane.f32.xlu0 %v1039_v1 }
 0x2ed   : > { %v7566_v40 = vpop.eup %6201  ;;  %v768_v28 = vpop.xlane.xlu0 %767 }
 0x2ee   : > { %6211 = vpow2.f32 %v928_v43  ;;  %v856_v55 = vsub.f32 %v7371_v9, %v768_v28  ;;  %v857_v34 = vsub.f32 %v7373_v10, %v768_v28  ;;  %v1042_v4 = vadd.f32 %v7566_v40, %v7564_v2 }
 0x2ef   : > { %6213 = vpow2.f32 %v930_v46 }
 0x2f0   : > { %v7572_v6 = vpop.eup %6203  ;;  %v932_v37 = vmul.f32 1.442695, %v856_v55  ;;  %v934_v11 = vmul.f32 1.442695, %v857_v34  ;;  %1043 = vadd.xlane.f32.xlu0 %v1042_v4 }
 0x2f1   : > { %v7574_v58 = vpop.eup %6205  ;;  %v771_v0 = vpop.xlane.xlu0 %770 }
 0x2f2   : > { %6215 = vpow2.f32 %v932_v37  ;;  %v858_v59 = vsub.f32 %v7377_v12, %v771_v0  ;;  %v859_v62 = vsub.f32 %v7379_v14, %v771_v0  ;;  %v1045_v9 = vadd.f32 %v7574_v58, %v7572_v6 }
 0x2f3   : > { %6217 = vpow2.f32 %v934_v11 }
 0x2f4   : > { %v7580_v10 = vpop.eup %6207  ;;  %v936_v19 = vmul.f32 1.442695, %v858_v59  ;;  %v938_v49 = vmul.f32 1.442695, %v859_v62  ;;  %1046 = vadd.xlane.f32.xlu0 %v1045_v9 }
 0x2f5   : > { %v7582_v52 = vpop.eup %6209  ;;  %v774_v53 = vpop.xlane.xlu1 %773 }
 0x2f6   : > { %6219 = vpow2.f32 %v936_v19  ;;  %v860_v1 = vsub.f32 %v7383_v16, %v774_v53  ;;  %v861_v43 = vsub.f32 %v7385_v17, %v774_v53  ;;  %v1048_v12 = vadd.f32 %v7582_v52, %v7580_v10 }
 0x2f7   : > { %6221 = vpow2.f32 %v938_v49 }
 0x2f8   : > { %v7588_v14 = vpop.eup %6211  ;;  %v940_v46 = vmul.f32 1.442695, %v860_v1  ;;  %v942_v28 = vmul.f32 1.442695, %v861_v43  ;;  %1049 = vadd.xlane.f32.xlu0 %v1048_v12  ;;  %v10653_v1 = vmax.f32 %v7509_v5, %v7511_v13 }
 0x2f9   : > { %v7590_v55 = vpop.eup %6213  ;;  %v777_v34 = vpop.xlane.xlu0 %776 }
 0x2fa   : > { %6223 = vpow2.f32 %v940_v46  ;;  %v862_v4 = vsub.f32 %v7389_v20, %v777_v34  ;;  %v863_v37 = vsub.f32 %v7391_v21, %v777_v34  ;;  %v1051_v16 = vadd.f32 %v7590_v55, %v7588_v14 }
 0x2fb   : > { %6225 = vpow2.f32 %v942_v28 }
 0x2fc   : > { %v7596_v17 = vpop.eup %6215  ;;  %v944_v11 = vmul.f32 1.442695, %v862_v4  ;;  %v946_v0 = vmul.f32 1.442695, %v863_v37  ;;  %1052 = vadd.xlane.f32.xlu0 %v1051_v16  ;;  %v10654_v37 = vmax.f32 %v7515_v8, %v7517_v63 }
 0x2fd   : > { %v7598_v59 = vpop.eup %6217  ;;  %v780_v62 = vpop.xlane.xlu0 %779 }
 0x2fe   : > { %6227 = vpow2.f32 %v944_v11  ;;  %v864_v9 = vsub.f32 %v7395_v23, %v780_v62  ;;  %v865_v19 = vsub.f32 %v7397_v24, %v780_v62  ;;  %v1054_v20 = vadd.f32 %v7598_v59, %v7596_v17 }
 0x2ff   : > { %6229 = vpow2.f32 %v946_v0 }
 0x300   : > { %v7604_v21 = vpop.eup %6219  ;;  %v948_v49 = vmul.f32 1.442695, %v864_v9  ;;  %v950_v53 = vmul.f32 1.442695, %v865_v19  ;;  %1055 = vadd.xlane.f32.xlu1 %v1054_v20  ;;  %836 = vmax.xlane.f32.xlu0 %v10653_v1  ;;  %v10655_v20 = vmax.f32 %v7521_v31, %v7523_v22 }
 0x301   : > { %v7609_v43 = vpop.eup %6221  ;;  %v783_v12 = vpop.xlane.xlu0 %782 }
 0x302   : > { %6231 = vpow2.f32 %v948_v49  ;;  %v866_v23 = vsub.f32 %v7401_v26, %v783_v12  ;;  %v867_v24 = vsub.f32 %v7403_v27, %v783_v12  ;;  %v1057_v46 = vadd.f32 %v7609_v43, %v7604_v21 }
 0x303   : > { %6233 = vpow2.f32 %v950_v53 }
 0x304   : > { %v7615_v28 = vpop.eup %6223  ;;  %v952_v34 = vmul.f32 1.442695, %v866_v23  ;;  %v954_v4 = vmul.f32 1.442695, %v867_v24  ;;  %1058 = vadd.xlane.f32.xlu0 %v1057_v46  ;;  %839 = vmax.xlane.f32.xlu1 %v10654_v37 }
 0x305   : > { %v7620_v16 = vpop.eup %6225  ;;  %v786_v11 = vpop.xlane.xlu0 %785 }
 0x306   : > { %6235 = vpow2.f32 %v952_v34  ;;  %v868_v26 = vsub.f32 %v7407_v29, %v786_v11  ;;  %v869_v27 = vsub.f32 %v7409_v30, %v786_v11  ;;  %v1060_v0 = vadd.f32 %v7620_v16, %v7615_v28 }
 0x307   : > { %6237 = vpow2.f32 %v954_v4 }
 0x308   : > { %v7626_v62 = vpop.eup %6227  ;;  %v956_v9 = vmul.f32 1.442695, %v868_v26  ;;  %v958_v19 = vmul.f32 1.442695, %v869_v27  ;;  %842 = vmax.xlane.f32.xlu0 %v10655_v20  ;;  %1061 = vadd.xlane.f32.xlu1 %v1060_v0 }
 0x309   : > { %v7631_v49 = vpop.eup %6229  ;;  %v789_v53 = vpop.xlane.xlu0 %788 }
 0x30a   : > { %6239 = vpow2.f32 %v956_v9  ;;  %v870_v29 = vsub.f32 %v7413_v32, %v789_v53  ;;  %v871_v30 = vsub.f32 %v7415_v33, %v789_v53  ;;  %v1063_v1 = vadd.f32 %v7631_v49, %v7626_v62 }
 0x30b   : > { %6241 = vpow2.f32 %v958_v19 }
 0x30c   : > { %v7637_v12 = vpop.eup %6231  ;;  %v960_v23 = vmul.f32 1.442695, %v870_v29  ;;  %v962_v24 = vmul.f32 1.442695, %v871_v30  ;;  %1064 = vadd.xlane.f32.xlu0 %v1063_v1 }
 0x30d   : > { %v7639_v46 = vpop.eup %6233  ;;  %v792_v34 = vpop.xlane.xlu0 %791 }
 0x30e   : > { %6243 = vpow2.f32 %v960_v23  ;;  %v872_v4 = vsub.f32 %v7419_v35, %v792_v34  ;;  %v873_v37 = vsub.f32 %v7421_v36, %v792_v34  ;;  %v1066_v32 = vadd.f32 %v7639_v46, %v7637_v12 }
 0x30f   : > { %6245 = vpow2.f32 %v962_v24 }
 0x310   : > { %v7645_v33 = vpop.eup %6235  ;;  %v964_v11 = vmul.f32 1.442695, %v872_v4  ;;  %v966_v26 = vmul.f32 1.442695, %v873_v37  ;;  %1067 = vadd.xlane.f32.xlu1 %v1066_v32 }
 0x311   : > { %v7647_v27 = vpop.eup %6237  ;;  %v795_v0 = vpop.xlane.xlu0 %794 }
 0x312   : > { %6247 = vpow2.f32 %v964_v11  ;;  %v874_v9 = vsub.f32 %v7425_v38, %v795_v0  ;;  %v875_v19 = vsub.f32 %v7427_v39, %v795_v0  ;;  %v1069_v35 = vadd.f32 %v7647_v27, %v7645_v33 }
 0x313   : > { %6249 = vpow2.f32 %v966_v26 }
 0x314   : > { %v7653_v36 = vpop.eup %6239  ;;  %v968_v20 = vmul.f32 1.442695, %v874_v9  ;;  %v970_v53 = vmul.f32 1.442695, %v875_v19  ;;  %1070 = vadd.xlane.f32.xlu0 %v1069_v35 }
 0x315   : > { %v7655_v29 = vpop.eup %6241  ;;  %v798_v30 = vpop.xlane.xlu0 %797 }
 0x316   : > { %6251 = vpow2.f32 %v968_v20  ;;  %v876_v1 = vsub.f32 %v7431_v41, %v798_v30  ;;  %v877_v23 = vsub.f32 %v7433_v42, %v798_v30  ;;  %v1072_v38 = vadd.f32 %v7655_v29, %v7653_v36 }
 0x317   : > { %6253 = vpow2.f32 %v970_v53 }
 0x318   : > { %v7661_v39 = vpop.eup %6243  ;;  %v972_v24 = vmul.f32 1.442695, %v876_v1  ;;  %v974_v34 = vmul.f32 1.442695, %v877_v23  ;;  %1073 = vadd.xlane.f32.xlu1 %v1072_v38 }
 0x319   : > { %v7663_v4 = vpop.eup %6245  ;;  %v801_v37 = vpop.xlane.xlu0 %800 }
 0x31a   : > { %6255 = vpow2.f32 %v972_v24  ;;  %v878_v32 = vsub.f32 %v7437_v44, %v801_v37  ;;  %v879_v11 = vsub.f32 %v7439_v45, %v801_v37  ;;  %v1075_v41 = vadd.f32 %v7663_v4, %v7661_v39 }
 0x31b   : > { %6257 = vpow2.f32 %v974_v34 }
 0x31c   : > { %v7669_v42 = vpop.eup %6247  ;;  %v976_v26 = vmul.f32 1.442695, %v878_v32  ;;  %v978_v0 = vmul.f32 1.442695, %v879_v11  ;;  %1076 = vadd.xlane.f32.xlu0 %v1075_v41 }
 0x31d   : > { %v7671_v9 = vpop.eup %6249  ;;  %v804_v19 = vpop.xlane.xlu0 %803 }
 0x31e   : > { %6259 = vpow2.f32 %v976_v26  ;;  %v880_v35 = vsub.f32 %v7443_v47, %v804_v19  ;;  %v881_v20 = vsub.f32 %v7445_v48, %v804_v19  ;;  %v1078_v44 = vadd.f32 %v7671_v9, %v7669_v42 }
 0x31f   : > { %6261 = vpow2.f32 %v978_v0 }
 0x320   : > { %v7677_v45 = vpop.eup %6251  ;;  %v980_v53 = vmul.f32 1.442695, %v880_v35  ;;  %v982_v30 = vmul.f32 1.442695, %v881_v20  ;;  %1079 = vadd.xlane.f32.xlu1 %v1078_v44 }
 0x321   : > { %v7679_v1 = vpop.eup %6253  ;;  %v807_v23 = vpop.xlane.xlu0 %806 }
 0x322   : > { %6263 = vpow2.f32 %v980_v53  ;;  %v882_v38 = vsub.f32 %v7449_v50, %v807_v23  ;;  %v883_v24 = vsub.f32 %v7451_v51, %v807_v23  ;;  %v1081_v47 = vadd.f32 %v7679_v1, %v7677_v45 }
 0x323   : > { %6265 = vpow2.f32 %v982_v30 }
 0x324   : > { %v7685_v48 = vpop.eup %6255  ;;  %v984_v34 = vmul.f32 1.442695, %v882_v38  ;;  %v986_v37 = vmul.f32 1.442695, %v883_v24  ;;  %1082 = vadd.xlane.f32.xlu0 %v1081_v47 }
 0x325   : > { %v7687_v32 = vpop.eup %6257  ;;  %v810_v11 = vpop.xlane.xlu0 %809 }
 0x326   : > { %6267 = vpow2.f32 %v984_v34  ;;  %v884_v41 = vsub.f32 %v7455_v57, %v810_v11  ;;  %v885_v26 = vsub.f32 %v7457_v60, %v810_v11  ;;  %v1084_v50 = vadd.f32 %v7687_v32, %v7685_v48 }
 0x327   : > { %6269 = vpow2.f32 %v986_v37 }
 0x328   : > { %v7693_v51 = vpop.eup %6259  ;;  %v988_v0 = vmul.f32 1.442695, %v884_v41  ;;  %v990_v19 = vmul.f32 1.442695, %v885_v26  ;;  %1085 = vadd.xlane.f32.xlu1 %v1084_v50  ;;  %v10656_v50 = vld [vmem:[#allocation7_spill] sm:$0xff] }
 0x329   : > { %v7695_v35 = vpop.eup %6261  ;;  %v813_v20 = vpop.xlane.xlu0 %812 }
 0x32a   : > { %6271 = vpow2.f32 %v988_v0  ;;  %v886_v44 = vsub.f32 %v7461_v3, %v813_v20  ;;  %v887_v53 = vsub.f32 %v7463_v7, %v813_v20  ;;  %v1087_v57 = vadd.f32 %v7695_v35, %v7693_v51 }
 0x32b   : > { %6273 = vpow2.f32 %v990_v19  ;;  %v10657_v19 = vld [vmem:[#allocation8_spill] sm:$0xff] }
 0x32c   : > { %v7701_v60 = vpop.eup %6263  ;;  %v992_v30 = vmul.f32 1.442695, %v886_v44  ;;  %v994_v23 = vmul.f32 1.442695, %v887_v53  ;;  %1088 = vadd.xlane.f32.xlu0 %v1087_v57 }
 0x32d   : > { %v7703_v38 = vpop.eup %6265  ;;  %v816_v24 = vpop.xlane.xlu0 %815 }
 0x32e   : > { %6275 = vpow2.f32 %v992_v30  ;;  %v888_v47 = vsub.f32 %v7467_v15, %v816_v24  ;;  %v889_v34 = vsub.f32 %v7469_v18, %v816_v24  ;;  %v1090_v3 = vadd.f32 %v7703_v38, %v7701_v60 }
 0x32f   : > { %6277 = vpow2.f32 %v994_v23  ;;  %v10660_v23 = vld [vmem:[#allocation9_spill] sm:$0xff] }
 0x330   : > { %v7709_v7 = vpop.eup %6267  ;;  %v996_v37 = vmul.f32 1.442695, %v888_v47  ;;  %v998_v11 = vmul.f32 1.442695, %v889_v34  ;;  %1091 = vadd.xlane.f32.xlu1 %v1090_v3  ;;  %v10661_v47 = vld [vmem:[#allocation10_spill] sm:$0xff] }
 0x331   : > { %v7711_v41 = vpop.eup %6269  ;;  %v819_v26 = vpop.xlane.xlu0 %818 }
 0x332   : > { %6279 = vpow2.f32 %v996_v37  ;;  %v890_v0 = vsub.f32 %v10656_v50, %v819_v26  ;;  %v891_v20 = vsub.f32 %v10657_v19, %v819_v26  ;;  %v1093_v15 = vadd.f32 %v7711_v41, %v7709_v7  ;;  %v10664_v19 = vld [vmem:[#allocation11_spill] sm:$0xff] }
 0x333   : > { %6281 = vpow2.f32 %v998_v11 }
 0x334   : > { %v7717_v18 = vpop.eup %6271  ;;  %v1000_v44 = vmul.f32 1.442695, %v890_v0  ;;  %v1002_v53 = vmul.f32 1.442695, %v891_v20  ;;  %1094 = vadd.xlane.f32.xlu0 %v1093_v15  ;;  %v10665_v15 = vld [vmem:[#allocation12_spill] sm:$0xff] }
 0x335   : > { %10658 = vst [vmem:[#allocation7_spill] sm:$0xff] %v7717_v18  ;;  %v7719_v57 = vpop.eup %6273  ;;  %v822_v30 = vpop.xlane.xlu0 %821 }
 0x336   : > { %10659 = vst [vmem:[#allocation8_spill] sm:$0xff] %v7719_v57  ;;  %6283 = vpow2.f32 %v1000_v44  ;;  %v892_v24 = vsub.f32 %v10660_v23, %v822_v30  ;;  %v893_v34 = vsub.f32 %v10661_v47, %v822_v30  ;;  %v1096_v3 = vadd.f32 %v7719_v57, %v7717_v18 }
 0x337   : > { %6285 = vpow2.f32 %v1002_v53 }
 0x338   : > { %v7725_v37 = vpop.eup %6275  ;;  %v1004_v11 = vmul.f32 1.442695, %v892_v24  ;;  %v1006_v26 = vmul.f32 1.442695, %v893_v34  ;;  %1097 = vadd.xlane.f32.xlu1 %v1096_v3  ;;  %v10668_v3 = vld [vmem:[#allocation13_spill] sm:$0xff] }
 0x339   : > { %10662 = vst [vmem:[#allocation9_spill] sm:$0xff] %v7725_v37  ;;  %v7727_v50 = vpop.eup %6277  ;;  %v825_v0 = vpop.xlane.xlu0 %824 }
 0x33a   : > { %10663 = vst [vmem:[#allocation10_spill] sm:$0xff] %v7727_v50  ;;  %6287 = vpow2.f32 %v1004_v11  ;;  %v894_v20 = vsub.f32 %v10664_v19, %v825_v0  ;;  %v895_v44 = vsub.f32 %v10665_v15, %v825_v0  ;;  %v1099_v30 = vadd.f32 %v7727_v50, %v7725_v37  ;;  %v10669_v11 = vld [vmem:[#allocation14_spill] sm:$0xff] }
 0x33b   : > { %6289 = vpow2.f32 %v1006_v26 }
 0x33c   : > { %v7733_v23 = vpop.eup %6279  ;;  %v1008_v53 = vmul.f32 1.442695, %v894_v20  ;;  %v1010_v47 = vmul.f32 1.442695, %v895_v44  ;;  %1100 = vadd.xlane.f32.xlu0 %v1099_v30  ;;  %v10670_v30 = vld [vmem:[#allocation15_spill] sm:$0xff] }
 0x33d   : > { %10666 = vst [vmem:[#allocation11_spill] sm:$0xff] %v7733_v23  ;;  %v7735_v24 = vpop.eup %6281  ;;  %v828_v34 = vpop.xlane.xlu0 %827 }
 0x33e   : > { %10667 = vst [vmem:[#allocation12_spill] sm:$0xff] %v7735_v24  ;;  %6291 = vpow2.f32 %v1008_v53  ;;  %v896_v18 = vsub.f32 %v10668_v3, %v828_v34  ;;  %v897_v57 = vsub.f32 %v10669_v11, %v828_v34  ;;  %v1102_v0 = vadd.f32 %v7735_v24, %v7733_v23  ;;  %v10671_v53 = vld [vmem:[#allocation16_spill] sm:$0xff] }
 0x33f   : > { %6293 = vpow2.f32 %v1010_v47 }
 0x340   : > { %v7741_v19 = vpop.eup %6283  ;;  %v1012_v26 = vmul.f32 1.442695, %v896_v18  ;;  %v1014_v15 = vmul.f32 1.442695, %v897_v57  ;;  %1103 = vadd.xlane.f32.xlu1 %v1102_v0  ;;  %v10673_v0 = vld [vmem:[#allocation17_spill] sm:$0xff] }
 0x341   : > { %v7743_v20 = vpop.eup %6285  ;;  %v831_v44 = vpop.xlane.xlu0 %830 }
 0x342   : > { %6295 = vpow2.f32 %v1012_v26  ;;  %v898_v37 = vsub.f32 %v10670_v30, %v831_v44  ;;  %v899_v50 = vsub.f32 %v10671_v53, %v831_v44  ;;  %v1105_v34 = vadd.f32 %v7743_v20, %v7741_v19  ;;  %v10674_v26 = vld [vmem:[#allocation18_spill] sm:$0xff] }
 0x343   : > { %6297 = vpow2.f32 %v1014_v15 }
 0x344   : > { %v7749_v3 = vpop.eup %6287  ;;  %v1016_v47 = vmul.f32 1.442695, %v898_v37  ;;  %v1018_v11 = vmul.f32 1.442695, %v899_v50  ;;  %1106 = vadd.xlane.f32.xlu0 %v1105_v34 }
 0x345   : > { %10672 = vst [vmem:[#allocation13_spill] sm:$0xff] %v7749_v3  ;;  %v7751_v18 = vpop.eup %6289  ;;  %v834_v57 = vpop.xlane.xlu1 %833 }
 0x346   : > { %6299 = vpow2.f32 %v1016_v47  ;;  %v900_v23 = vsub.f32 %v10673_v0, %v834_v57  ;;  %v901_v24 = vsub.f32 %v10674_v26, %v834_v57  ;;  %v1108_v44 = vadd.f32 %v7751_v18, %v7749_v3 }
 0x347   : > { %6301 = vpow2.f32 %v1018_v11 }
 0x348   : > { %v7757_v30 = vpop.eup %6291  ;;  %v1020_v15 = vmul.f32 1.442695, %v900_v23  ;;  %v1022_v53 = vmul.f32 1.442695, %v901_v24  ;;  %1109 = vadd.xlane.f32.xlu1 %v1108_v44 }
 0x349   : > { %10675 = vst [vmem:[#allocation14_spill] sm:$0xff] %v7757_v30  ;;  %v7759_v37 = vpop.eup %6293 }
 0x34a   : > { %10676 = vst [vmem:[#allocation15_spill] sm:$0xff] %v7759_v37  ;;  %6303 = vpow2.f32 %v1020_v15  ;;  %v1111_v50 = vadd.f32 %v7759_v37, %v7757_v30 }
 0x34b   : > { %6305 = vpow2.f32 %v1022_v53 }
 0x34c   : > { %v7763_v34 = vpop.eup %6295  ;;  %1112 = vadd.xlane.f32.xlu0 %v1111_v50 }
 0x34d   : > { %10677 = vst [vmem:[#allocation16_spill] sm:$0xff] %v7763_v34  ;;  %v7765_v47 = vpop.eup %6297 }
 0x34e   : > { %10678 = vst [vmem:[#allocation17_spill] sm:$0xff] %v7765_v47  ;;  %v1114_v11 = vadd.f32 %v7765_v47, %v7763_v34 }
 0x350   : > { %v7769_v57 = vpop.eup %6299  ;;  %1115 = vadd.xlane.f32.xlu1 %v1114_v11 }
 0x351   : > { %10679 = vst [vmem:[#allocation18_spill] sm:$0xff] %v7769_v57  ;;  %v7771_v23 = vpop.eup %6301 }
 0x352   : > { %10680 = vst [vmem:[#allocation23_spill] sm:$0xff] %v7771_v23  ;;  %v1117_v24 = vadd.f32 %v7771_v23, %v7769_v57 }
 0x354   : > { %v7775_v0 = vpop.eup %6303  ;;  %1118 = vadd.xlane.f32.xlu0 %v1117_v24 }
 0x355   : > { %10681 = vst [vmem:[#allocation24_spill] sm:$0xff] %v7775_v0  ;;  %v7777_v26 = vpop.eup %6305 }
 0x356   : > { %10682 = vst [vmem:[#allocation25_spill] sm:$0xff] %v7777_v26  ;;  %v1120_v44 = vadd.f32 %v7777_v26, %v7775_v0 }
 0x358   : > { %1121 = vadd.xlane.f32.xlu1 %v1120_v44 }
 0x375   : > { %v1038_v15 = vpop.xlane.xlu0 %1037 }
 0x376   : > { %6307 = vrcp.f32 %v1038_v15 }
 0x379   : > { %v1041_v53 = vpop.xlane.xlu0 %1040 }
 0x37a   : > { %6309 = vrcp.f32 %v1041_v53 }
 0x37d   : > { %v1044_v50 = vpop.xlane.xlu0 %1043 }
 0x37e   : > { %6311 = vrcp.f32 %v1044_v50 }
 0x380   : > { %v6308_v34 = vpop.eup %6307 }
 0x381   : > { %v1047_v11 = vpop.xlane.xlu0 %1046  ;;  %v1165_v23 = vmul.f32 %v6308_v34, %v7550_v54  ;;  %v1164_v3 = vmul.f32 %v6308_v34, %v7548_v56 }
 0x382   : > { %6313 = vrcp.f32 %v1047_v11 }
 0x384   : > { %v6310_v47 = vpop.eup %6309 }
 0x385   : > { %v1050_v57 = vpop.xlane.xlu0 %1049  ;;  %v1167_v24 = vmul.f32 %v6310_v47, %v7558_v25  ;;  %v1166_v0 = vmul.f32 %v6310_v47, %v7556_v61 }
 0x386   : > { %6315 = vrcp.f32 %v1050_v57 }
 0x387   : > { %v5854_v44 = vpack.c.bf16 %v1167_v24, %v1165_v23  ;;  %v5856_v26 = vpack.c.bf16 %v1166_v0, %v1164_v3 }
 0x388   : > { %v6312_v53 = vpop.eup %6311 }
 0x389   : > { %5855 = vmatprep.subr.bf16.mxu0 %v5854_v44  ;;  %v1053_v15 = vpop.xlane.xlu0 %1052  ;;  %v1169_v37 = vmul.f32 %v6312_v53, %v7566_v40  ;;  %v1168_v25 = vmul.f32 %v6312_v53, %v7564_v2 }
 0x38a   : > { %6317 = vrcp.f32 %v1053_v15  ;;  %5857 = vmatpush1.bf16.xpose.msra.mxu0 %v5856_v26 }
 0x38c   : > { %v6314_v50 = vpop.eup %6313 }
 0x38d   : > { %v837_v11 = vpop.xlane.xlu0 %836  ;;  %v1056_v30 = vpop.xlane.xlu1 %1055  ;;  %v1171_v54 = vmul.f32 %v6314_v50, %v7574_v58  ;;  %v1170_v56 = vmul.f32 %v6314_v50, %v7572_v6 }
 0x38e   : > { %v902_v61 = vsub.f32 %v7509_v5, %v837_v11  ;;  %v903_v3 = vsub.f32 %v7511_v13, %v837_v11  ;;  %6319 = vrcp.f32 %v1056_v30 }
 0x38f   : > { %v5858_v34 = vpack.c.bf16 %v1171_v54, %v1169_v37  ;;  %v5860_v47 = vpack.c.bf16 %v1170_v56, %v1168_v25 }
 0x390   : > { %v1024_v57 = vmul.f32 1.442695, %v902_v61  ;;  %v1026_v23 = vmul.f32 1.442695, %v903_v3  ;;  %v6316_v24 = vpop.eup %6315 }
 0x391   : > { %5859 = vmatprep.subr.bf16.mxu0 %v5858_v34  ;;  %v1059_v0 = vpop.xlane.xlu0 %1058  ;;  %v840_v26 = vpop.xlane.xlu1 %839  ;;  %v1173_v37 = vmul.f32 %v6316_v24, %v7582_v52  ;;  %v1172_v44 = vmul.f32 %v6316_v24, %v7580_v10 }
 0x392   : > { %6321 = vpow2.f32 %v1024_v57  ;;  %v904_v40 = vsub.f32 %v7515_v8, %v840_v26  ;;  %v905_v2 = vsub.f32 %v7517_v63, %v840_v26  ;;  %5861 = vmatpush1.bf16.xpose.msra.mxu0 %v5860_v47 }
 0x393   : > { %6323 = vpow2.f32 %v1026_v23 }
 0x394   : > { %v6318_v6 = vpop.eup %6317  ;;  %6325 = vrcp.f32 %v1059_v0  ;;  %v1028_v5 = vmul.f32 1.442695, %v904_v40  ;;  %v1030_v13 = vmul.f32 1.442695, %v905_v2 }
 0x395   : > { %v843_v58 = vpop.xlane.xlu0 %842  ;;  %v1175_v30 = vmul.f32 %v6318_v6, %v7590_v55  ;;  %v1174_v15 = vmul.f32 %v6318_v6, %v7588_v14  ;;  %v1062_v53 = vpop.xlane.xlu1 %1061 }
 0x396   : > { %6327 = vpow2.f32 %v1028_v5  ;;  %v906_v8 = vsub.f32 %v7521_v31, %v843_v58  ;;  %v907_v63 = vsub.f32 %v7523_v22, %v843_v58 }
 0x397   : > { %6329 = vpow2.f32 %v1030_v13  ;;  %v5862_v50 = vpack.c.bf16 %v1175_v30, %v1173_v37  ;;  %v5864_v11 = vpack.c.bf16 %v1174_v15, %v1172_v44 }
 0x398   : > { %v1032_v54 = vmul.f32 1.442695, %v906_v8  ;;  %v1034_v25 = vmul.f32 1.442695, %v907_v63  ;;  %6331 = vrcp.f32 %v1062_v53  ;;  %v6320_v55 = vpop.eup %6319 }
 0x399   : > { %5863 = vmatprep.subr.bf16.mxu0 %v5862_v50  ;;  %v1065_v52 = vpop.xlane.xlu0 %1064  ;;  %v1177_v61 = vmul.f32 %v6320_v55, %v7598_v59  ;;  %v1176_v34 = vmul.f32 %v6320_v55, %v7596_v17 }
 0x39a   : > { %6333 = vpow2.f32 %v1032_v54  ;;  %5865 = vmatpush1.bf16.xpose.msra.mxu0 %v5864_v11 }
 0x39b   : > { %6335 = vpow2.f32 %v1034_v25 }
 0x39c   : > { %v7799_v10 = vpop.eup %6321  ;;  %6337 = vrcp.f32 %v1065_v52  ;;  %v212_v52 = vld [vmem:[%s10463_s2 + $0x10] sm:$0xff] }
 0x39d   : > { %v7801_v14 = vpop.eup %6323  ;;  %v1068_v31 = vpop.xlane.xlu1 %1067 }
 0x39e   : > { %v6326_v22 = vpop.eup %6325  ;;  %v1123_v56 = vadd.f32 %v7801_v14, %v7799_v10  ;;  %6339 = vrcp.f32 %v1068_v31 }
 0x39f   : > { %v1179_v3 = vmul.f32 %v6326_v22, %v7609_v43  ;;  %v1178_v47 = vmul.f32 %v6326_v22, %v7604_v21 }
 0x3a0   : > { %v7809_v57 = vpop.eup %6327  ;;  %1124 = vadd.xlane.f32.xlu0 %v1123_v56 }
 0x3a1   : > { %v7811_v23 = vpop.eup %6329  ;;  %v1071_v0 = vpop.xlane.xlu0 %1070  ;;  %v5866_v26 = vpack.c.bf16 %v1179_v3, %v1177_v61  ;;  %v5868_v24 = vpack.c.bf16 %v1178_v47, %v1176_v34 }
 0x3a2   : > { %6341 = vrcp.f32 %v1071_v0  ;;  %v1126_v40 = vadd.f32 %v7811_v23, %v7809_v57  ;;  %v6332_v59 = vpop.eup %6331 }
 0x3a3   : > { %5867 = vmatprep.subr.bf16.mxu0 %v5866_v26  ;;  %v1181_v5 = vmul.f32 %v6332_v59, %v7620_v16  ;;  %v1180_v58 = vmul.f32 %v6332_v59, %v7615_v28 }
 0x3a4   : > { %v7815_v43 = vpop.eup %6333  ;;  %5869 = vmatpush1.bf16.xpose.msra.mxu0 %v5868_v24  ;;  %1127 = vadd.xlane.f32.xlu1 %v1126_v40 }
 0x3a5   : > { %v7817_v17 = vpop.eup %6335  ;;  %v1074_v21 = vpop.xlane.xlu1 %1073 }
 0x3a6   : > { %v6338_v2 = vpop.eup %6337  ;;  %v1129_v6 = vadd.f32 %v7817_v17, %v7815_v43  ;;  %6343 = vrcp.f32 %v1074_v21 }
 0x3a7   : > { %v1183_v13 = vmul.f32 %v6338_v2, %v7631_v49  ;;  %v1182_v37 = vmul.f32 %v6338_v2, %v7626_v62 }
 0x3a8   : > { %1130 = vadd.xlane.f32.xlu0 %v1129_v6  ;;  %v6340_v8 = vpop.eup %6339 }
 0x3a9   : > { %v1077_v30 = vpop.xlane.xlu0 %1076  ;;  %v5870_v44 = vpack.c.bf16 %v1183_v13, %v1181_v5  ;;  %v5872_v15 = vpack.c.bf16 %v1182_v37, %v1180_v58  ;;  %v1185_v50 = vmul.f32 %v6340_v8, %v7639_v46  ;;  %v1184_v28 = vmul.f32 %v6340_v8, %v7637_v12  ;;  %v7846_v5 = vpop.f32.mrb[68].mxu1 }
 0x3aa   : > { %6345 = vrcp.f32 %v1077_v30  ;;  %10683 = vst [vmem:[#allocation26_spill] sm:$0xff] %v7846_v5 }
 0x3ab   : > { %5871 = vmatprep.subr.bf16.mxu0 %v5870_v44 }
 0x3ac   : > { %v6342_v63 = vpop.eup %6341  ;;  %5873 = vmatpush1.bf16.xpose.msra.mxu0 %v5872_v15  ;;  %v7853_v15 = vpop.f32.mrb[69].mxu1 }
 0x3ad   : > { %v1080_v53 = vpop.xlane.xlu1 %1079  ;;  %v1187_v16 = vmul.f32 %v6342_v63, %v7647_v27  ;;  %v1186_v49 = vmul.f32 %v6342_v63, %v7645_v33 }
 0x3ae   : > { %6347 = vrcp.f32 %v1080_v53 }
 0x3af   : > { %v5874_v62 = vpack.c.bf16 %v1187_v16, %v1185_v50  ;;  %v5876_v11 = vpack.c.bf16 %v1186_v49, %v1184_v28  ;;  %v10684_v49 = vld [vmem:[#allocation4_spill] sm:$0xff]  ;;  %v10685_v28 = vld [vmem:[#allocation19_spill] sm:$0xff] }
 0x3b0   : > { %v6344_v25 = vpop.eup %6343 }
 0x3b1   : > { %v1083_v54 = vpop.xlane.xlu0 %1082  ;;  %5875 = vmatprep.subr.bf16.mxu0 %v5874_v62  ;;  %v1189_v27 = vmul.f32 %v6344_v25, %v7655_v29  ;;  %v1188_v31 = vmul.f32 %v6344_v25, %v7653_v36  ;;  %v1385_v62 = vadd.f32 %v10685_v28, %v10684_v49 }
 0x3b2   : > { %6349 = vrcp.f32 %v1083_v54  ;;  %v10687_v54 = vld [vmem:[#allocation10_spill] sm:$0xff] }
 0x3b4   : > { %v6346_v55 = vpop.eup %6345  ;;  %5877 = vmatpush1.bf16.xpose.msra.mxu0 %v5876_v11 }
 0x3b5   : > { %227 = vperm.xlu1 %6185, %v212_v52   ;;  %v1086_v46 = vpop.xlane.xlu1 %1085  ;;  %v1191_v33 = vmul.f32 %v6346_v55, %v7663_v4  ;;  %v1190_v12 = vmul.f32 %v6346_v55, %v7661_v39  ;;  %v10688_v52 = vld [vmem:[#allocation9_spill] sm:$0xff]  ;;  %v10689_v55 = vld [vmem:[#allocation7_spill] sm:$0xff] }
 0x3b6   : > { %6351 = vrcp.f32 %v1086_v46 }
 0x3b7   : > { %v5878_v22 = vpack.c.bf16 %v1191_v33, %v1189_v27  ;;  %v5880_v56 = vpack.c.bf16 %v1190_v12, %v1188_v31 }
 0x3b8   : > { %v6348_v3 = vpop.eup %6347 }
 0x3b9   : > { %v1089_v61 = vpop.xlane.xlu0 %1088  ;;  %5879 = vmatprep.subr.bf16.mxu0 %v5878_v22  ;;  %v1193_v0 = vmul.f32 %v6348_v3, %v7671_v9  ;;  %v1192_v39 = vmul.f32 %v6348_v3, %v7669_v42  ;;  %v7844_v42 = vpop.f32.mrb[4].mxu0 }
 0x3ba   : > { %6353 = vrcp.f32 %v1089_v61  ;;  %v7848_v58 = vpop.f32.mrb[5].mxu0 }
 0x3bc   : > { %v6350_v34 = vpop.eup %6349  ;;  %5881 = vmatpush1.bf16.xpose.msra.mxu0 %v5880_v56  ;;  %v10690_v56 = vld [vmem:[#allocation20_spill] sm:$0xff] }
 0x3bd   : > { %v1092_v47 = vpop.xlane.xlu1 %1091  ;;  %v1195_v29 = vmul.f32 %v6350_v34, %v7679_v1  ;;  %v1194_v4 = vmul.f32 %v6350_v34, %v7677_v45  ;;  %v1387_v61 = vadd.f32 %v10690_v56, %v10684_v49  ;;  %v10691_v34 = vld [vmem:[#allocation12_spill] sm:$0xff] }
 0x3be   : > { %6355 = vrcp.f32 %v1092_v47 }
 0x3bf   : > { %v5882_v26 = vpack.c.bf16 %v1195_v29, %v1193_v0  ;;  %v5884_v36 = vpack.c.bf16 %v1194_v4, %v1192_v39  ;;  %v10692_v4 = vld [vmem:[#allocation11_spill] sm:$0xff] }
 0x3c0   : > { %v6352_v40 = vpop.eup %6351 }
 0x3c1   : > { %v1095_v24 = vpop.xlane.xlu0 %1094  ;;  %5883 = vmatprep.subr.bf16.mxu0 %v5882_v26  ;;  %v1197_v2 = vmul.f32 %v6352_v40, %v7687_v32  ;;  %v1196_v45 = vmul.f32 %v6352_v40, %v7685_v48 }
 0x3c2   : > { %6357 = vrcp.f32 %v1095_v24 }
 0x3c4   : > { %v6354_v59 = vpop.eup %6353  ;;  %5885 = vmatpush1.bf16.xpose.msra.mxu0 %v5884_v36 }
 0x3c5   : > { %v1098_v21 = vpop.xlane.xlu1 %1097  ;;  %v1199_v9 = vmul.f32 %v6354_v59, %v7695_v35  ;;  %v1198_v1 = vmul.f32 %v6354_v59, %v7693_v51 }
 0x3c6   : > { %6359 = vrcp.f32 %v1098_v21 }
 0x3c7   : > { %v5886_v6 = vpack.c.bf16 %v1199_v9, %v1197_v2  ;;  %v5888_v13 = vpack.c.bf16 %v1198_v1, %v1196_v45  ;;  %v10693_v2 = vld [vmem:[#allocation15_spill] sm:$0xff]  ;;  %v10694_v1 = vld [vmem:[#allocation14_spill] sm:$0xff]  ;;  %v10695_v45 = vld [vmem:[#allocation13_spill] sm:$0xff] }
 0x3c8   : > { %v6356_v30 = vpop.eup %6355 }
 0x3c9   : > { %v1101_v37 = vpop.xlane.xlu0 %1100  ;;  %5887 = vmatprep.subr.bf16.mxu0 %v5886_v6  ;;  %v1201_v51 = vmul.f32 %v6356_v30, %v7703_v38  ;;  %v1200_v8 = vmul.f32 %v6356_v30, %v7701_v60 }
 0x3ca   : > { %6361 = vrcp.f32 %v1101_v37 }
 0x3cc   : > { %v6358_v32 = vpop.eup %6357  ;;  %5889 = vmatpush1.bf16.xpose.msra.mxu0 %v5888_v13 }
 0x3cd   : > { %v1104_v35 = vpop.xlane.xlu1 %1103  ;;  %v1203_v48 = vmul.f32 %v6358_v32, %v7711_v41  ;;  %v1202_v44 = vmul.f32 %v6358_v32, %v7709_v7  ;;  %v10686_v41 = vld [vmem:[#allocation8_spill] sm:$0xff]  ;;  %v10696_v32 = vld [vmem:[#allocation17_spill] sm:$0xff] }
 0x3ce   : > { %6363 = vrcp.f32 %v1104_v35 }
 0x3cf   : > { %v5890_v63 = vpack.c.bf16 %v1203_v48, %v1201_v51  ;;  %v5892_v53 = vpack.c.bf16 %v1202_v44, %v1200_v8  ;;  %v10697_v51 = vld [vmem:[#allocation23_spill] sm:$0xff]  ;;  %v10698_v44 = vld [vmem:[#allocation18_spill] sm:$0xff] }
 0x3d0   : > { %v6360_v16 = vpop.eup %6359 }
 0x3d1   : > { %v1107_v50 = vpop.xlane.xlu0 %1106  ;;  %5891 = vmatprep.subr.bf16.mxu0 %v5890_v63  ;;  %v1205_v7 = vmul.f32 %v6360_v16, %v10686_v41  ;;  %v1204_v46 = vmul.f32 %v6360_v16, %v10689_v55  ;;  %v10699_v63 = vld [vmem:[#allocation16_spill] sm:$0xff] }
 0x3d2   : > { %6365 = vrcp.f32 %v1107_v50 }
 0x3d4   : > { %v6362_v11 = vpop.eup %6361  ;;  %5893 = vmatpush1.bf16.xpose.msra.mxu0 %v5892_v53 }
 0x3d5   : > { %1401 = vxpose.xlu0.b32.start.end [1/1] (short) %v1385_v62, 128  ;;  %v1110_v38 = vpop.xlane.xlu1 %1109  ;;  %v1207_v25 = vmul.f32 %v6362_v11, %v10687_v54  ;;  %v1206_v60 = vmul.f32 %v6362_v11, %v10688_v52  ;;  %v10701_v52 = vld [vmem:[#allocation25_spill] sm:$0xff] }
 0x3d6   : > { %6367 = vrcp.f32 %v1110_v38 }
 0x3d7   : > { %v5894_v27 = vpack.c.bf16 %v1207_v25, %v1205_v7  ;;  %v5896_v33 = vpack.c.bf16 %v1206_v60, %v1204_v46  ;;  %v10702_v46 = vld [vmem:[#allocation24_spill] sm:$0xff] }
 0x3d8   : > { %v6364_v31 = vpop.eup %6363 }
 0x3d9   : > { %v1113_v12 = vpop.xlane.xlu0 %1112  ;;  %5895 = vmatprep.subr.bf16.mxu0 %v5894_v27  ;;  %v1209_v47 = vmul.f32 %v6364_v31, %v10691_v34  ;;  %v1208_v39 = vmul.f32 %v6364_v31, %v10692_v4  ;;  %v10705_v4 = vld [vmem:[#allocation21_spill] sm:$0xff] }
 0x3da   : > { %6369 = vrcp.f32 %v1113_v12 }
 0x3dc   : > { %v6366_v22 = vpop.eup %6365  ;;  %5897 = vmatpush1.bf16.xpose.msra.mxu0 %v5896_v33 }
 0x3dd   : > { %v1116_v3 = vpop.xlane.xlu1 %1115  ;;  %v1211_v0 = vmul.f32 %v6366_v22, %v7743_v20  ;;  %v1210_v29 = vmul.f32 %v6366_v22, %v7741_v19 }
 0x3de   : > { %1433 = vxpose.xlu1.b32.start.end [1/1] (short) %v1387_v61, 128  ;;  %6371 = vrcp.f32 %v1116_v3 }
 0x3df   : > { %v5898_v26 = vpack.c.bf16 %v1211_v0, %v1209_v47  ;;  %v5900_v36 = vpack.c.bf16 %v1210_v29, %v1208_v39  ;;  %v10703_v47 = vld [vmem:[#allocation5_spill] sm:$0xff] }
 0x3e0   : > { %v6368_v40 = vpop.eup %6367 }
 0x3e1   : > { %v1119_v24 = vpop.xlane.xlu0 %1118  ;;  %5899 = vmatprep.subr.bf16.mxu0 %v5898_v26  ;;  %v1213_v21 = vmul.f32 %v6368_v40, %v7751_v18  ;;  %v1212_v19 = vmul.f32 %v6368_v40, %v10695_v45 }
 0x3e2   : > { %6373 = vrcp.f32 %v1119_v24 }
 0x3e4   : > { %v6370_v59 = vpop.eup %6369  ;;  %5901 = vmatpush1.bf16.xpose.msra.mxu0 %v5900_v36 }
 0x3e5   : > { %v1215_v9 = vmul.f32 %v6370_v59, %v10693_v2  ;;  %v1214_v20 = vmul.f32 %v6370_v59, %v10694_v1  ;;  %v1122_v16 = vpop.xlane.xlu1 %1121 }
 0x3e6   : > { %6375 = vrcp.f32 %v1122_v16 }
 0x3e7   : > { %v5902_v6 = vpack.c.bf16 %v1215_v9, %v1213_v21  ;;  %v5904_v13 = vpack.c.bf16 %v1214_v20, %v1212_v19 }
 0x3e8   : > { %v6372_v37 = vpop.eup %6371 }
 0x3e9   : > { %5903 = vmatprep.subr.bf16.mxu0 %v5902_v6  ;;  %v1217_v35 = vmul.f32 %v6372_v37, %v10696_v32  ;;  %v1216_v18 = vmul.f32 %v6372_v37, %v10699_v63 }
 0x3ec   : > { %v6374_v30 = vpop.eup %6373  ;;  %5905 = vmatpush1.bf16.xpose.msra.mxu0 %v5904_v13 }
 0x3ed   : > { %v1219_v48 = vmul.f32 %v6374_v30, %v10697_v51  ;;  %v1218_v8 = vmul.f32 %v6374_v30, %v10698_v44 }
 0x3ef   : > { %v5906_v53 = vpack.c.bf16 %v1219_v48, %v1217_v35  ;;  %v5908_v50 = vpack.c.bf16 %v1218_v8, %v1216_v18 }
 0x3f0   : > { %v6376_v41 = vpop.eup %6375 }
 0x3f1   : > { %5907 = vmatprep.subr.bf16.mxu0 %v5906_v53  ;;  %v1221_v60 = vmul.f32 %v6376_v41, %v10701_v52  ;;  %v1220_v27 = vmul.f32 %v6376_v41, %v10702_v46  ;;  %v7151_v41 = vld [vmem:[%s10462_s1] sm:$0xff] }
 0x3f4   : > { %5909 = vmatpush1.bf16.xpose.msra.mxu0 %v5908_v50 }
 0x42d   : > { %v1125_v28 = vpop.xlane.xlu0 %1124 }
 0x42e   : > { %6377 = vrcp.f32 %v1125_v28 }
 0x431   : > { %v1128_v62 = vpop.xlane.xlu1 %1127 }
 0x432   : > { %6379 = vrcp.f32 %v1128_v62 }
 0x435   : > { %v1131_v11 = vpop.xlane.xlu0 %1130  ;;  %v7876_v38 = vpop.permute.xlu1 %227 }
 0x436   : > { %10700 = vst [vmem:[#allocation19_spill] sm:$0xff] %v7876_v38  ;;  %6381 = vrcp.f32 %v1131_v11  ;;  %v328_v7 = vadd.f32 %v7848_v58, %v7876_v38  ;;  %v1399_v54 = vadd.f32 %v7853_v15, %v7876_v38  ;;  %v326_v29 = vadd.f32 %v7844_v42, %v7876_v38 }
 0x438   : > { %v6378_v25 = vpop.eup %6377  ;;  %1292 = vmatprep.mubr.f32.mxu0 %v328_v7  ;;  %2362 = vmatprep.mubr.f32.mxu1 %v1399_v54  ;;  %v7152_v7 = vld [vmem:[%s10462_s1 + $0x8] sm:$0xff]  ;;  %v7153_v54 = vld [vmem:[%s10462_s1 + $0x10] sm:$0xff] }
 0x439   : > { %v1223_v55 = vmul.f32 %v6378_v25, %v7801_v14  ;;  %v1222_v33 = vmul.f32 %v6378_v25, %v7799_v10  ;;  %v10704_v10 = vld [vmem:[#allocation22_spill] sm:$0xff]  ;;  %v7981_v25 = vstv %s213_s15 }
 0x43a   : > { %v1393_v0 = vadd.f32 %v10704_v10, %v10703_v47  ;;  %10708 = vst [vmem:[#allocation10_spill] sm:$0xff] %v7981_v25 }
 0x43b   : > { %v5910_v12 = vpack.c.bf16 %v1223_v55, %v1221_v60  ;;  %v5912_v31 = vpack.c.bf16 %v1222_v33, %v1220_v27  ;;  %v7154_v27 = vld [vmem:[%s7227_s26] sm:$0xff] }
 0x43c   : > { %v6380_v22 = vpop.eup %6379 }
 0x43d   : > { %5911 = vmatprep.subr.bf16.mxu0 %v5910_v12  ;;  %v1225_v15 = vmul.f32 %v6380_v22, %v7811_v23  ;;  %v1224_v61 = vmul.f32 %v6380_v22, %v7809_v57  ;;  %v1391_v23 = vadd.f32 %v10705_v4, %v10703_v47  ;;  %v5733_v57 = vld [vmem:[%s7227_s26 + $0x10] sm:$0xff]  ;;  %v10709_v12 = vld [vmem:[#allocation3_spill] sm:$0xff] }
 0x43e   : > { %5913 = vmatpush1.bf16.xpose.msra.mxu0 %v5912_v31 }
 0x440   : > { %v6382_v58 = vpop.eup %6381 }
 0x441   : > { %v1227_v56 = vmul.f32 %v6382_v58, %v7817_v17  ;;  %v1226_v14 = vmul.f32 %v6382_v58, %v7815_v43  ;;  %v10706_v17 = vmov 0.0   ;;  %v7898_v43 = vcombine.high %v5733_v57, %v5733_v57 }
 0x443   : > { %v5914_v3 = vpack.c.bf16 %v1227_v56, %v1225_v15  ;;  %v5916_v34 = vpack.c.bf16 %v1226_v14, %v1224_v61  ;;  %10707 = vst [vmem:[#allocation8_spill] sm:$0xff] %v7898_v43 }
 0x445   : > { %5915 = vmatprep.subr.bf16.mxu0 %v5914_v3 }
 0x446   : > { %5917 = vmatpush1.bf16.xpose.msra.mxu0 %v5916_v34 }
 0x447   : > { %1561 = vmatprep.subr.mxu0 %v1393_v0 }
 0x44d   : > { %1293 = vmatmul.mubr.f32.vlgmr.msra.gmra.mrb[6].mxu0 %v326_v29 }
 0x44e   : > { %1562 = vmatpush1.msra.mxu0 %v1391_v23  ;;  %1625 = vmatprep.mubr.f32.mxu0 %v10706_v17 }
 0x44f   : > { %5734 = vmatprep.subr.msk.mxu0 %vm242_vm0, %v7898_v43 }
 0x455   : > { %v1417_v39 = vpop.trf.xlu0 }
 0x456   : > { %5700 = vmatmul.mubr.msk.f32.vlgmr.msra.gmra.mrb[8].mxu0 %vm394_vm2, %v1417_v39 }
 0x457   : > { %1631 = vmatprep.mubr.f32.mxu0 %v10706_v17  ;;  %5735 = vmatpush1.msk.msra.mxu0 %vm242_vm0, %v5733_v57 }
 0x459   : > { %v1418_v42 = vpop.trf.xlu0 }
 0x45a   : > { %5701 = vmatmul.mubr.msk.f32.gmra.mrb[10].mxu0 %vm394_vm2, %v1418_v42 }
 0x45b   : > { %1637 = vmatprep.mubr.f32.mxu0 %v10706_v17 }
 0x45d   : > { %v1419_v26 = vpop.trf.xlu0 }
 0x45e   : > { %5702 = vmatmul.mubr.msk.f32.gmra.mrb[12].mxu0 %vm394_vm2, %v1419_v26  ;;  %v1449_v9 = vpop.trf.xlu1 }
 0x45f   : > { %1643 = vmatprep.mubr.f32.mxu0 %v10706_v17 }
 0x461   : > { %v1420_v36 = vpop.trf.xlu0 }
 0x462   : > { %5703 = vmatmul.mubr.msk.f32.gmra.mrb[14].mxu0 %vm394_vm2, %v1420_v36  ;;  %v1450_v20 = vpop.trf.xlu1 }
 0x463   : > { %1649 = vmatprep.mubr.f32.mxu0 %v10706_v17 }
 0x465   : > { %v1421_v24 = vpop.trf.xlu0 }
 0x466   : > { %5704 = vmatmul.mubr.msk.f32.gmra.mrb[16].mxu0 %vm394_vm2, %v1421_v24  ;;  %v1451_v6 = vpop.trf.xlu1 }
 0x467   : > { %1655 = vmatprep.mubr.f32.mxu0 %v10706_v17 }
 0x469   : > { %v1422_v40 = vpop.trf.xlu0 }
 0x46a   : > { %5705 = vmatmul.mubr.msk.f32.gmra.mrb[18].mxu0 %vm394_vm2, %v1422_v40  ;;  %v1452_v37 = vpop.trf.xlu1 }
 0x46b   : > { %1661 = vmatprep.mubr.f32.mxu0 %v10706_v17 }
 0x46d   : > { %v1423_v59 = vpop.trf.xlu0 }
 0x46e   : > { %5706 = vmatmul.mubr.msk.f32.gmra.mrb[20].mxu0 %vm394_vm2, %v1423_v59  ;;  %v1453_v35 = vpop.trf.xlu1 }
 0x46f   : > { %1667 = vmatprep.mubr.f32.mxu0 %v10706_v17 }
 0x471   : > { %v1424_v21 = vpop.trf.xlu0 }
 0x472   : > { %5707 = vmatmul.mubr.msk.f32.gmra.mrb[22].mxu0 %vm394_vm2, %v1424_v21  ;;  %v1454_v48 = vpop.trf.xlu1 }
 0x473   : > { %1673 = vmatprep.mubr.f32.mxu0 %v10706_v17 }
 0x475   : > { %v1425_v2 = vpop.trf.xlu0 }
 0x476   : > { %5708 = vmatmul.mubr.msk.f32.gmra.mrb[24].mxu0 %vm394_vm2, %v1425_v2  ;;  %v1455_v44 = vpop.trf.xlu1 }
 0x477   : > { %1679 = vmatprep.mubr.f32.mxu0 %v10706_v17 }
 0x479   : > { %v1426_v1 = vpop.trf.xlu0 }
 0x47a   : > { %5709 = vmatmul.mubr.msk.f32.gmra.mrb[26].mxu0 %vm394_vm2, %v1426_v1  ;;  %v1456_v8 = vpop.trf.xlu1 }
 0x47b   : > { %1685 = vmatprep.mubr.f32.mxu0 %v10706_v17 }
 0x47d   : > { %v1427_v45 = vpop.trf.xlu0 }
 0x47e   : > { %5710 = vmatmul.mubr.msk.f32.gmra.mrb[28].mxu0 %vm394_vm2, %v1427_v45  ;;  %v1457_v63 = vpop.trf.xlu1 }
 0x47f   : > { %1691 = vmatprep.mubr.f32.mxu0 %v10706_v17 }
 0x481   : > { %v1428_v19 = vpop.trf.xlu0 }
 0x482   : > { %5711 = vmatmul.mubr.msk.f32.gmra.mrb[30].mxu0 %vm394_vm2, %v1428_v19  ;;  %v1458_v18 = vpop.trf.xlu1 }
 0x483   : > { %1697 = vmatprep.mubr.f32.mxu0 %v10706_v17 }
 0x485   : > { %v1429_v13 = vpop.trf.xlu0 }
 0x486   : > { %5712 = vmatmul.mubr.msk.f32.gmra.mrb[32].mxu0 %vm394_vm2, %v1429_v13  ;;  %v1459_v53 = vpop.trf.xlu1 }
 0x487   : > { %1703 = vmatprep.mubr.f32.mxu0 %v10706_v17 }
 0x489   : > { %v1430_v30 = vpop.trf.xlu0 }
 0x48a   : > { %5713 = vmatmul.mubr.msk.f32.gmra.mrb[34].mxu0 %vm394_vm2, %v1430_v30  ;;  %v1460_v50 = vpop.trf.xlu1 }
 0x48b   : > { %1709 = vmatprep.mubr.f32.mxu0 %v10706_v17 }
 0x48d   : > { %v1431_v32 = vpop.trf.xlu0 }
 0x48e   : > { %5714 = vmatmul.mubr.msk.f32.gmra.mrb[36].mxu0 %vm394_vm2, %v1431_v32  ;;  %v1461_v16 = vpop.trf.xlu1 }
 0x48f   : > { %1715 = vmatprep.mubr.f32.mxu0 %v10706_v17 }
 0x491   : > { %v1432_v51 = vpop.trf.xlu0 }
 0x492   : > { %5715 = vmatmul.mubr.msk.f32.gmra.mrb[38].mxu0 %vm394_vm2, %v1432_v51  ;;  %v1462_v28 = vpop.trf.xlu1 }
 0x493   : > { %1721 = vmatprep.mubr.f32.mxu0 %v10706_v17 }
 0x496   : > { %5716 = vmatmul.mubr.msk.f32.gmra.mrb[40].mxu0 %vm394_vm2, %v1449_v9  ;;  %v1463_v62 = vpop.trf.xlu1 }
 0x497   : > { %1727 = vmatprep.mubr.f32.mxu0 %v10706_v17 }
 0x49a   : > { %5717 = vmatmul.mubr.msk.f32.gmra.mrb[42].mxu0 %vm394_vm2, %v1450_v20  ;;  %v1464_v11 = vpop.trf.xlu1 }
 0x49b   : > { %1733 = vmatprep.mubr.f32.mxu0 %v10706_v17 }
 0x49e   : > { %5718 = vmatmul.mubr.msk.f32.gmra.mrb[44].mxu0 %vm394_vm2, %v1451_v6 }
 0x49f   : > { %1739 = vmatprep.mubr.f32.mxu0 %v10706_v17 }
 0x4a2   : > { %5719 = vmatmul.mubr.msk.f32.gmra.mrb[46].mxu0 %vm394_vm2, %v1452_v37 }
 0x4a3   : > { %1745 = vmatprep.mubr.f32.mxu0 %v10706_v17 }
 0x4a6   : > { %5720 = vmatmul.mubr.msk.f32.gmra.mrb[48].mxu0 %vm394_vm2, %v1453_v35 }
 0x4a7   : > { %1751 = vmatprep.mubr.f32.mxu0 %v10706_v17 }
 0x4aa   : > { %5721 = vmatmul.mubr.msk.f32.gmra.mrb[50].mxu0 %vm394_vm2, %v1454_v48 }
 0x4ab   : > { %1757 = vmatprep.mubr.f32.mxu0 %v10706_v17 }
 0x4ae   : > { %5722 = vmatmul.mubr.msk.f32.gmra.mrb[52].mxu0 %vm394_vm2, %v1455_v44 }
 0x4af   : > { %1763 = vmatprep.mubr.f32.mxu0 %v10706_v17 }
 0x4b2   : > { %5723 = vmatmul.mubr.msk.f32.gmra.mrb[54].mxu0 %vm394_vm2, %v1456_v8 }
 0x4b3   : > { %1769 = vmatprep.mubr.f32.mxu0 %v10706_v17 }
 0x4b6   : > { %5724 = vmatmul.mubr.msk.f32.gmra.mrb[56].mxu0 %vm394_vm2, %v1457_v63 }
 0x4b7   : > { %1775 = vmatprep.mubr.f32.mxu0 %v10706_v17 }
 0x4ba   : > { %5725 = vmatmul.mubr.msk.f32.gmra.mrb[58].mxu0 %vm394_vm2, %v1458_v18 }
 0x4bb   : > { %1781 = vmatprep.mubr.f32.mxu0 %v10706_v17 }
 0x4be   : > { %5726 = vmatmul.mubr.msk.f32.gmra.mrb[60].mxu0 %vm394_vm2, %v1459_v53 }
 0x4bf   : > { %1787 = vmatprep.mubr.f32.mxu0 %v10706_v17 }
 0x4c2   : > { %5727 = vmatmul.mubr.msk.f32.gmra.mrb[62].mxu0 %vm394_vm2, %v1460_v50 }
 0x4c3   : > { %1793 = vmatprep.mubr.f32.mxu0 %v10706_v17 }
 0x4c6   : > { %5728 = vmatmul.mubr.msk.f32.gmra.mrb[64].mxu0 %vm394_vm2, %v1461_v16 }
 0x4c7   : > { %1799 = vmatprep.mubr.f32.mxu0 %v10706_v17 }
 0x4ca   : > { %5729 = vmatmul.mubr.msk.f32.gmra.mrb[66].mxu0 %vm394_vm2, %v1462_v28 }
 0x4cb   : > { %1805 = vmatprep.mubr.f32.mxu0 %v10706_v17 }
 0x4ce   : > { %5730 = vmatmul.mubr.msk.f32.gmra.mrb[68].mxu0 %vm394_vm2, %v1463_v62 }
 0x4cf   : > { %1811 = vmatprep.mubr.f32.mxu0 %v10706_v17 }
 0x4d2   : > { %5731 = vmatmul.mubr.msk.f32.gmra.mrb[70].mxu0 %vm394_vm2, %v1464_v11 }
 0x4d3   : > { %2452 = vmatprep.mubr.f32.mxu0 %v10706_v17 }
 0x4d6   : > { %5736 = vmatmul.mubr.msk.f32.vlgmr.msra.gmra.mrb[72].mxu0 %vm232_vm1, %v7151_v41 }
 0x4d7   : > { %2458 = vmatprep.mubr.f32.mxu0 %v10706_v17 }
 0x4da   : > { %5737 = vmatmul.mubr.msk.f32.gmra.mrb[74].mxu0 %vm232_vm1, %v7152_v7 }
 0x4db   : > { %2464 = vmatprep.mubr.f32.mxu0 %v10706_v17 }
 0x4de   : > { %5738 = vmatmul.mubr.msk.f32.gmra.mrb[76].mxu0 %vm232_vm1, %v7153_v54 }
 0x520   : > { %v1294_v52 = vpop.f32.mrb[6].mxu0 }
 0x521   : > { %v1300_v60 = vmul.f32 %v7981_v25, %v1294_v52  ;;  %v1296_v55 = vpop.f32.mrb[7].mxu0 }
 0x522   : > { %v1301_v46 = vmul.f32 %v7981_v25, %v1296_v55 }
 0x523   : > { %v1303_v33 = vadd.f32 %v7154_v27, %v1300_v60 }
 0x524   : > { %v1304_v31 = vadd.f32 %v1301_v46, %v10709_v12 }
 0x526   : > { %v1307_v22 = vcombine.low %v1303_v33, %v1304_v31 }
 0x528   : > { %1309 = vst [vmem:[%s7992_s3] sm:$0xff] %v1307_v22 }
 0x529   : > { %v7995_v58 = vpop.f32.mrb[8].mxu0 }
 0x52a   : > { %v7997_v15 = vpop.f32.mrb[9].mxu0 }
 0x52b   : > { %v1818_v56 = vmax.f32 %v7995_v58, %v7997_v15 }
 0x52d   : > { %1819 = vmax.xlane.f32.xlu0 %v1818_v56  ;;  %v8001_v61 = vpop.f32.mrb[10].mxu0 }
 0x52e   : > { %v8003_v14 = vpop.f32.mrb[11].mxu0 }
 0x52f   : > { %v1821_v3 = vmax.f32 %v8001_v61, %v8003_v14 }
 0x531   : > { %1822 = vmax.xlane.f32.xlu1 %v1821_v3  ;;  %v8007_v34 = vpop.f32.mrb[12].mxu0 }
 0x532   : > { %v8009_v10 = vpop.f32.mrb[13].mxu0 }
 0x533   : > { %v1824_v0 = vmax.f32 %v8007_v34, %v8009_v10 }
 0x535   : > { %1825 = vmax.xlane.f32.xlu0 %v1824_v0  ;;  %v8013_v29 = vpop.f32.mrb[14].mxu0 }
 0x536   : > { %v8015_v4 = vpop.f32.mrb[15].mxu0 }
 0x537   : > { %v1827_v23 = vmax.f32 %v8013_v29, %v8015_v4 }
 0x539   : > { %1828 = vmax.xlane.f32.xlu0 %v1827_v23  ;;  %v8019_v57 = vpop.f32.mrb[16].mxu0 }
 0x53a   : > { %v8021_v39 = vpop.f32.mrb[17].mxu0 }
 0x53b   : > { %v1830_v42 = vmax.f32 %v8019_v57, %v8021_v39 }
 0x53d   : > { %1831 = vmax.xlane.f32.xlu1 %v1830_v42  ;;  %v8025_v26 = vpop.f32.mrb[18].mxu0 }
 0x53e   : > { %v8027_v36 = vpop.f32.mrb[19].mxu0 }
 0x53f   : > { %v1833_v24 = vmax.f32 %v8025_v26, %v8027_v36 }
 0x541   : > { %1834 = vmax.xlane.f32.xlu0 %v1833_v24  ;;  %v8031_v40 = vpop.f32.mrb[20].mxu0 }
 0x542   : > { %v8033_v59 = vpop.f32.mrb[21].mxu0 }
 0x543   : > { %v1836_v21 = vmax.f32 %v8031_v40, %v8033_v59 }
 0x545   : > { %1837 = vmax.xlane.f32.xlu1 %v1836_v21  ;;  %v8037_v2 = vpop.f32.mrb[22].mxu0 }
 0x546   : > { %v8039_v9 = vpop.f32.mrb[23].mxu0 }
 0x547   : > { %v1839_v1 = vmax.f32 %v8037_v2, %v8039_v9 }
 0x549   : > { %1840 = vmax.xlane.f32.xlu0 %v1839_v1  ;;  %v8043_v20 = vpop.f32.mrb[24].mxu0 }
 0x54a   : > { %v8045_v45 = vpop.f32.mrb[25].mxu0 }
 0x54b   : > { %v1842_v19 = vmax.f32 %v8043_v20, %v8045_v45 }
 0x54d   : > { %1843 = vmax.xlane.f32.xlu1 %v1842_v19  ;;  %v8049_v6 = vpop.f32.mrb[26].mxu0 }
 0x54e   : > { %v8051_v13 = vpop.f32.mrb[27].mxu0 }
 0x54f   : > { %v1845_v37 = vmax.f32 %v8049_v6, %v8051_v13 }
 0x551   : > { %1846 = vmax.xlane.f32.xlu0 %v1845_v37  ;;  %v8055_v30 = vpop.f32.mrb[28].mxu0 }
 0x552   : > { %v8057_v32 = vpop.f32.mrb[29].mxu0 }
 0x553   : > { %v1848_v35 = vmax.f32 %v8055_v30, %v8057_v32 }
 0x555   : > { %1849 = vmax.xlane.f32.xlu1 %v1848_v35  ;;  %v8061_v51 = vpop.f32.mrb[30].mxu0 }
 0x556   : > { %v8063_v48 = vpop.f32.mrb[31].mxu0 }
 0x557   : > { %v1851_v44 = vmax.f32 %v8061_v51, %v8063_v48 }
 0x559   : > { %1852 = vmax.xlane.f32.xlu0 %v1851_v44  ;;  %v8067_v8 = vpop.f32.mrb[32].mxu0 }
 0x55a   : > { %v8069_v63 = vpop.f32.mrb[33].mxu0 }
 0x55b   : > { %v1854_v18 = vmax.f32 %v8067_v8, %v8069_v63 }
 0x55d   : > { %1855 = vmax.xlane.f32.xlu1 %v1854_v18  ;;  %v8073_v53 = vpop.f32.mrb[34].mxu0 }
 0x55e   : > { %v8075_v50 = vpop.f32.mrb[35].mxu0 }
 0x55f   : > { %v1857_v16 = vmax.f32 %v8073_v53, %v8075_v50 }
 0x561   : > { %1858 = vmax.xlane.f32.xlu0 %v1857_v16  ;;  %v8079_v28 = vpop.f32.mrb[36].mxu0 }
 0x562   : > { %v8081_v62 = vpop.f32.mrb[37].mxu0 }
 0x563   : > { %v1860_v11 = vmax.f32 %v8079_v28, %v8081_v62 }
 0x565   : > { %1861 = vmax.xlane.f32.xlu1 %v1860_v11  ;;  %v8085_v41 = vpop.f32.mrb[38].mxu0 }
 0x566   : > { %v8087_v7 = vpop.f32.mrb[39].mxu0 }
 0x567   : > { %v1863_v54 = vmax.f32 %v8085_v41, %v8087_v7 }
 0x569   : > { %1864 = vmax.xlane.f32.xlu0 %v1863_v54  ;;  %v8091_v52 = vpop.f32.mrb[40].mxu0 }
 0x56a   : > { %v8093_v60 = vpop.f32.mrb[41].mxu0 }
 0x56b   : > { %v1866_v55 = vmax.f32 %v8091_v52, %v8093_v60 }
 0x56d   : > { %1867 = vmax.xlane.f32.xlu1 %v1866_v55  ;;  %v8097_v46 = vpop.f32.mrb[42].mxu0 }
 0x56e   : > { %10710 = vst [vmem:[#allocation9_spill] sm:$0xff] %v8097_v46  ;;  %v8099_v27 = vpop.f32.mrb[43].mxu0 }
 0x56f   : > { %10711 = vst [vmem:[#allocation7_spill] sm:$0xff] %v8099_v27  ;;  %v1869_v33 = vmax.f32 %v8097_v46, %v8099_v27 }
 0x571   : > { %1870 = vmax.xlane.f32.xlu0 %v1869_v33  ;;  %v8103_v12 = vpop.f32.mrb[44].mxu0 }
 0x572   : > { %10712 = vst [vmem:[#allocation20_spill] sm:$0xff] %v8103_v12  ;;  %v8105_v31 = vpop.f32.mrb[45].mxu0 }
 0x573   : > { %10713 = vst [vmem:[#allocation12_spill] sm:$0xff] %v8105_v31  ;;  %v1872_v22 = vmax.f32 %v8103_v12, %v8105_v31 }
 0x575   : > { %1873 = vmax.xlane.f32.xlu1 %v1872_v22  ;;  %v8109_v56 = vpop.f32.mrb[46].mxu0 }
 0x576   : > { %10714 = vst [vmem:[#allocation11_spill] sm:$0xff] %v8109_v56  ;;  %v8111_v3 = vpop.f32.mrb[47].mxu0 }
 0x577   : > { %10715 = vst [vmem:[#allocation15_spill] sm:$0xff] %v8111_v3  ;;  %v1875_v0 = vmax.f32 %v8109_v56, %v8111_v3 }
 0x579   : > { %1876 = vmax.xlane.f32.xlu0 %v1875_v0  ;;  %v8115_v23 = vpop.f32.mrb[48].mxu0 }
 0x57a   : > { %10716 = vst [vmem:[#allocation14_spill] sm:$0xff] %v8115_v23  ;;  %v8117_v42 = vpop.f32.mrb[49].mxu0 }
 0x57b   : > { %10717 = vst [vmem:[#allocation13_spill] sm:$0xff] %v8117_v42  ;;  %v1878_v24 = vmax.f32 %v8115_v23, %v8117_v42 }
 0x57d   : > { %1879 = vmax.xlane.f32.xlu1 %v1878_v24  ;;  %v8121_v21 = vpop.f32.mrb[50].mxu0 }
 0x57e   : > { %10718 = vst [vmem:[#allocation17_spill] sm:$0xff] %v8121_v21  ;;  %v8123_v1 = vpop.f32.mrb[51].mxu0 }
 0x57f   : > { %10719 = vst [vmem:[#allocation23_spill] sm:$0xff] %v8123_v1  ;;  %v1881_v19 = vmax.f32 %v8121_v21, %v8123_v1 }
 0x581   : > { %1882 = vmax.xlane.f32.xlu0 %v1881_v19  ;;  %v8127_v37 = vpop.f32.mrb[52].mxu0 }
 0x582   : > { %10720 = vst [vmem:[#allocation18_spill] sm:$0xff] %v8127_v37  ;;  %v8129_v35 = vpop.f32.mrb[53].mxu0 }
 0x583   : > { %10721 = vst [vmem:[#allocation16_spill] sm:$0xff] %v8129_v35  ;;  %v1884_v44 = vmax.f32 %v8127_v37, %v8129_v35 }
 0x585   : > { %1885 = vmax.xlane.f32.xlu1 %v1884_v44  ;;  %v8133_v18 = vpop.f32.mrb[54].mxu0 }
 0x586   : > { %10722 = vst [vmem:[#allocation25_spill] sm:$0xff] %v8133_v18  ;;  %v8135_v16 = vpop.f32.mrb[55].mxu0 }
 0x587   : > { %10723 = vst [vmem:[#allocation24_spill] sm:$0xff] %v8135_v16  ;;  %v1887_v11 = vmax.f32 %v8133_v18, %v8135_v16 }
 0x589   : > { %1888 = vmax.xlane.f32.xlu0 %v1887_v11  ;;  %v8139_v54 = vpop.f32.mrb[56].mxu0 }
 0x58a   : > { %v8141_v55 = vpop.f32.mrb[57].mxu0 }
 0x58d   : > { %v8145_v22 = vpop.f32.mrb[58].mxu0 }
 0x58e   : > { %v8147_v0 = vpop.f32.mrb[59].mxu0 }
 0x591   : > { %v8151_v19 = vpop.f32.mrb[60].mxu0 }
 0x592   : > { %v8153_v44 = vpop.f32.mrb[61].mxu0 }
 0x595   : > { %v8157_v43 = vpop.f32.mrb[62].mxu0 }
 0x596   : > { %v8159_v25 = vpop.f32.mrb[63].mxu0 }
 0x599   : > { %v8163_v17 = vpop.f32.mrb[64].mxu0 }
 0x59a   : > { %v8165_v5 = vpop.f32.mrb[65].mxu0 }
 0x59d   : > { %v8169_v47 = vpop.f32.mrb[66].mxu0 }
 0x59e   : > { %v8171_v49 = vpop.f32.mrb[67].mxu0 }
 0x5a1   : > { %v8175_v16 = vpop.f32.mrb[68].mxu0 }
 0x5a2   : > { %v8177_v18 = vpop.f32.mrb[69].mxu0 }
 0x5a5   : > { %v8181_v35 = vpop.f32.mrb[70].mxu0 }
 0x5a6   : > { %v8183_v37 = vpop.f32.mrb[71].mxu0 }
 0x5a9   : > { %v8187_v1 = vpop.f32.mrb[72].mxu0 }
 0x5aa   : > { %10724 = vst [vmem:[#allocation22_spill] sm:$0xff] %v8187_v1  ;;  %v8189_v21 = vpop.f32.mrb[73].mxu0 }
 0x5ab   : > { %10725 = vst [vmem:[#allocation21_spill] sm:$0xff] %v8189_v21 }
 0x5ad   : > { %v8191_v42 = vpop.f32.mrb[74].mxu0 }
 0x5ae   : > { %10726 = vst [vmem:[#allocation3_spill] sm:$0xff] %v8191_v42  ;;  %v8193_v11 = vpop.f32.mrb[75].mxu0 }
 0x5af   : > { %10727 = vst [vmem:[#allocation27_spill] sm:$0xff] %v8193_v11 }
 0x5b1   : > { %v8195_v23 = vpop.f32.mrb[76].mxu0 }
 0x5b2   : > { %10728 = vst [vmem:[#allocation28_spill] sm:$0xff] %v8195_v23  ;;  %v2468_v3 = vpop.f32.mrb[77].mxu0 }
 0x5b3   : > { %v2469_v33 = vadd.f32 %v2468_v3, %v7876_v38 }
 0x5b5   : > { %3432 = vmatprep.mubr.f32.mxu0 %v2469_v33 }
 0x5ba   : > { %v1820_v56 = vpop.xlane.xlu0 %1819 }
 0x5bb   : > { %v1914_v31 = vsub.f32 %v7995_v58, %v1820_v56  ;;  %v1915_v12 = vsub.f32 %v7997_v15, %v1820_v56 }
 0x5bd   : > { %v1978_v24 = vmul.f32 1.442695, %v1914_v31  ;;  %v1980_v27 = vmul.f32 1.442695, %v1915_v12 }
 0x5be   : > { %v1823_v1 = vpop.xlane.xlu1 %1822 }
 0x5bf   : > { %6383 = vpow2.f32 %v1978_v24  ;;  %v1916_v21 = vsub.f32 %v8001_v61, %v1823_v1  ;;  %v1917_v42 = vsub.f32 %v8003_v14, %v1823_v1 }
 0x5c0   : > { %6385 = vpow2.f32 %v1980_v27 }
 0x5c1   : > { %v1982_v11 = vmul.f32 1.442695, %v1916_v21  ;;  %v1984_v23 = vmul.f32 1.442695, %v1917_v42 }
 0x5c2   : > { %v1826_v46 = vpop.xlane.xlu0 %1825 }
 0x5c3   : > { %6387 = vpow2.f32 %v1982_v11  ;;  %v1918_v3 = vsub.f32 %v8007_v34, %v1826_v46  ;;  %v1919_v33 = vsub.f32 %v8009_v10, %v1826_v46 }
 0x5c4   : > { %6389 = vpow2.f32 %v1984_v23 }
 0x5c5   : > { %v1986_v58 = vmul.f32 1.442695, %v1918_v3  ;;  %v1988_v15 = vmul.f32 1.442695, %v1919_v33 }
 0x5c6   : > { %v1829_v31 = vpop.xlane.xlu0 %1828 }
 0x5c7   : > { %6391 = vpow2.f32 %v1986_v58  ;;  %v1920_v12 = vsub.f32 %v8013_v29, %v1829_v31  ;;  %v1921_v61 = vsub.f32 %v8015_v4, %v1829_v31 }
 0x5c8   : > { %6393 = vpow2.f32 %v1988_v15  ;;  %v10729_v15 = vmax.f32 %v8139_v54, %v8141_v55 }
 0x5c9   : > { %v8206_v14 = vpop.eup %6383  ;;  %v1990_v27 = vmul.f32 1.442695, %v1920_v12  ;;  %v1992_v56 = vmul.f32 1.442695, %v1921_v61 }
 0x5ca   : > { %v8208_v42 = vpop.eup %6385  ;;  %v1832_v21 = vpop.xlane.xlu1 %1831 }
 0x5cb   : > { %6395 = vpow2.f32 %v1990_v27  ;;  %v1922_v34 = vsub.f32 %v8019_v57, %v1832_v21  ;;  %v1923_v10 = vsub.f32 %v8021_v39, %v1832_v21  ;;  %v2106_v46 = vadd.f32 %v8208_v42, %v8206_v14 }
 0x5cc   : > { %6397 = vpow2.f32 %v1992_v56 }
 0x5cd   : > { %v8214_v29 = vpop.eup %6387  ;;  %v1994_v4 = vmul.f32 1.442695, %v1922_v34  ;;  %v1996_v23 = vmul.f32 1.442695, %v1923_v10  ;;  %2107 = vadd.xlane.f32.xlu1 %v2106_v46  ;;  %v10730_v34 = vmax.f32 %v8145_v22, %v8147_v0 }
 0x5ce   : > { %v8216_v1 = vpop.eup %6389  ;;  %v1835_v24 = vpop.xlane.xlu0 %1834 }
 0x5cf   : > { %6399 = vpow2.f32 %v1994_v4  ;;  %v1924_v11 = vsub.f32 %v8025_v26, %v1835_v24  ;;  %v1925_v3 = vsub.f32 %v8027_v36, %v1835_v24  ;;  %v2109_v57 = vadd.f32 %v8216_v1, %v8214_v29 }
 0x5d0   : > { %6401 = vpow2.f32 %v1996_v23 }
 0x5d1   : > { %v8222_v39 = vpop.eup %6391  ;;  %v1998_v33 = vmul.f32 1.442695, %v1924_v11  ;;  %v2000_v58 = vmul.f32 1.442695, %v1925_v3  ;;  %1891 = vmax.xlane.f32.xlu1 %v10729_v15  ;;  %2110 = vadd.xlane.f32.xlu0 %v2109_v57  ;;  %v10731_v3 = vmax.f32 %v8151_v19, %v8153_v44 }
 0x5d2   : > { %v8227_v31 = vpop.eup %6393  ;;  %v1838_v12 = vpop.xlane.xlu1 %1837 }
 0x5d3   : > { %6403 = vpow2.f32 %v1998_v33  ;;  %v1926_v26 = vsub.f32 %v8031_v40, %v1838_v12  ;;  %v1927_v36 = vsub.f32 %v8033_v59, %v1838_v12  ;;  %v2112_v61 = vadd.f32 %v8227_v31, %v8222_v39 }
 0x5d4   : > { %6405 = vpow2.f32 %v2000_v58 }
 0x5d5   : > { %v8233_v27 = vpop.eup %6395  ;;  %v2002_v56 = vmul.f32 1.442695, %v1926_v26  ;;  %v2004_v21 = vmul.f32 1.442695, %v1927_v36  ;;  %2113 = vadd.xlane.f32.xlu1 %v2112_v61  ;;  %1894 = vmax.xlane.f32.xlu0 %v10730_v34  ;;  %v10732_v36 = vmax.f32 %v8157_v43, %v8159_v25 }
 0x5d6   : > { %v8238_v10 = vpop.eup %6397  ;;  %v1841_v46 = vpop.xlane.xlu0 %1840 }
 0x5d7   : > { %6407 = vpow2.f32 %v2002_v56  ;;  %v1928_v40 = vsub.f32 %v8037_v2, %v1841_v46  ;;  %v1929_v59 = vsub.f32 %v8039_v9, %v1841_v46  ;;  %v2115_v4 = vadd.f32 %v8238_v10, %v8233_v27 }
 0x5d8   : > { %6409 = vpow2.f32 %v2004_v21 }
 0x5d9   : > { %v8244_v23 = vpop.eup %6399  ;;  %v2006_v24 = vmul.f32 1.442695, %v1928_v40  ;;  %v2008_v11 = vmul.f32 1.442695, %v1929_v59  ;;  %1897 = vmax.xlane.f32.xlu1 %v10731_v3  ;;  %2116 = vadd.xlane.f32.xlu0 %v2115_v4  ;;  %v10733_v59 = vmax.f32 %v8163_v17, %v8165_v5 }
 0x5da   : > { %v8249_v57 = vpop.eup %6401  ;;  %v1844_v33 = vpop.xlane.xlu1 %1843 }
 0x5db   : > { %6411 = vpow2.f32 %v2006_v24  ;;  %v1930_v2 = vsub.f32 %v8043_v20, %v1844_v33  ;;  %v1931_v9 = vsub.f32 %v8045_v45, %v1844_v33  ;;  %v2118_v58 = vadd.f32 %v8249_v57, %v8244_v23 }
 0x5dc   : > { %6413 = vpow2.f32 %v2008_v11 }
 0x5dd   : > { %v8255_v15 = vpop.eup %6403  ;;  %v2010_v12 = vmul.f32 1.442695, %v1930_v2  ;;  %v2012_v26 = vmul.f32 1.442695, %v1931_v9  ;;  %1900 = vmax.xlane.f32.xlu0 %v10732_v36  ;;  %2119 = vadd.xlane.f32.xlu1 %v2118_v58  ;;  %v10734_v9 = vmax.f32 %v8169_v47, %v8171_v49 }
 0x5de   : > { %v8260_v61 = vpop.eup %6405  ;;  %v1847_v56 = vpop.xlane.xlu0 %1846 }
 0x5df   : > { %6415 = vpow2.f32 %v2010_v12  ;;  %v1932_v20 = vsub.f32 %v8049_v6, %v1847_v56  ;;  %v1933_v45 = vsub.f32 %v8051_v13, %v1847_v56  ;;  %v2121_v21 = vadd.f32 %v8260_v61, %v8255_v15 }
 0x5e0   : > { %6417 = vpow2.f32 %v2012_v26 }
 0x5e1   : > { %v8266_v34 = vpop.eup %6407  ;;  %v2014_v46 = vmul.f32 1.442695, %v1932_v20  ;;  %v2016_v40 = vmul.f32 1.442695, %v1933_v45  ;;  %2122 = vadd.xlane.f32.xlu0 %v2121_v21  ;;  %1903 = vmax.xlane.f32.xlu1 %v10733_v59  ;;  %v10735_v45 = vmax.f32 %v8175_v16, %v8177_v18 }
 0x5e2   : > { %v8271_v4 = vpop.eup %6409  ;;  %v1850_v24 = vpop.xlane.xlu1 %1849 }
 0x5e3   : > { %6419 = vpow2.f32 %v2014_v46  ;;  %v1934_v6 = vsub.f32 %v8055_v30, %v1850_v24  ;;  %v1935_v13 = vsub.f32 %v8057_v32, %v1850_v24  ;;  %v2124_v11 = vadd.f32 %v8271_v4, %v8266_v34 }
 0x5e4   : > { %6421 = vpow2.f32 %v2016_v40 }
 0x5e5   : > { %v8277_v3 = vpop.eup %6411  ;;  %v2018_v33 = vmul.f32 1.442695, %v1934_v6  ;;  %v2020_v2 = vmul.f32 1.442695, %v1935_v13  ;;  %1906 = vmax.xlane.f32.xlu0 %v10734_v9  ;;  %2125 = vadd.xlane.f32.xlu1 %v2124_v11  ;;  %v10736_v13 = vmax.f32 %v8181_v35, %v8183_v37 }
 0x5e6   : > { %v8282_v58 = vpop.eup %6413  ;;  %v1853_v12 = vpop.xlane.xlu0 %1852 }
 0x5e7   : > { %6423 = vpow2.f32 %v2018_v33  ;;  %v1936_v30 = vsub.f32 %v8061_v51, %v1853_v12  ;;  %v1937_v32 = vsub.f32 %v8063_v48, %v1853_v12  ;;  %v2127_v26 = vadd.f32 %v8282_v58, %v8277_v3 }
 0x5e8   : > { %6425 = vpow2.f32 %v2020_v2 }
 0x5e9   : > { %v8288_v36 = vpop.eup %6415  ;;  %v2022_v56 = vmul.f32 1.442695, %v1936_v30  ;;  %v2024_v20 = vmul.f32 1.442695, %v1937_v32  ;;  %2128 = vadd.xlane.f32.xlu0 %v2127_v26  ;;  %1909 = vmax.xlane.f32.xlu1 %v10735_v45 }
 0x5ea   : > { %v8293_v21 = vpop.eup %6417  ;;  %v1856_v46 = vpop.xlane.xlu1 %1855 }
 0x5eb   : > { %6427 = vpow2.f32 %v2022_v56  ;;  %v1938_v51 = vsub.f32 %v8067_v8, %v1856_v46  ;;  %v1939_v48 = vsub.f32 %v8069_v63, %v1856_v46  ;;  %v2130_v40 = vadd.f32 %v8293_v21, %v8288_v36 }
 0x5ec   : > { %6429 = vpow2.f32 %v2024_v20 }
 0x5ed   : > { %v8299_v59 = vpop.eup %6419  ;;  %v2026_v24 = vmul.f32 1.442695, %v1938_v51  ;;  %v2028_v6 = vmul.f32 1.442695, %v1939_v48  ;;  %1912 = vmax.xlane.f32.xlu0 %v10736_v13  ;;  %2131 = vadd.xlane.f32.xlu1 %v2130_v40 }
 0x5ee   : > { %v8304_v11 = vpop.eup %6421  ;;  %v1859_v33 = vpop.xlane.xlu0 %1858 }
 0x5ef   : > { %6431 = vpow2.f32 %v2026_v24  ;;  %v1940_v8 = vsub.f32 %v8073_v53, %v1859_v33  ;;  %v1941_v63 = vsub.f32 %v8075_v50, %v1859_v33  ;;  %v2133_v2 = vadd.f32 %v8304_v11, %v8299_v59 }
 0x5f0   : > { %6433 = vpow2.f32 %v2028_v6 }
 0x5f1   : > { %v8310_v9 = vpop.eup %6423  ;;  %v2030_v12 = vmul.f32 1.442695, %v1940_v8  ;;  %v2032_v30 = vmul.f32 1.442695, %v1941_v63  ;;  %2134 = vadd.xlane.f32.xlu0 %v2133_v2 }
 0x5f2   : > { %v8312_v32 = vpop.eup %6425  ;;  %v1862_v26 = vpop.xlane.xlu1 %1861 }
 0x5f3   : > { %6435 = vpow2.f32 %v2030_v12  ;;  %v1942_v56 = vsub.f32 %v8079_v28, %v1862_v26  ;;  %v1943_v20 = vsub.f32 %v8081_v62, %v1862_v26  ;;  %v2136_v53 = vadd.f32 %v8312_v32, %v8310_v9 }
 0x5f4   : > { %6437 = vpow2.f32 %v2032_v30 }
 0x5f5   : > { %v8318_v50 = vpop.eup %6427  ;;  %v2034_v45 = vmul.f32 1.442695, %v1942_v56  ;;  %v2036_v46 = vmul.f32 1.442695, %v1943_v20  ;;  %2137 = vadd.xlane.f32.xlu1 %v2136_v53  ;;  %v10737_v20 = vld [vmem:[#allocation9_spill] sm:$0xff] }
 0x5f6   : > { %v8320_v51 = vpop.eup %6429  ;;  %v1865_v48 = vpop.xlane.xlu0 %1864 }
 0x5f7   : > { %6439 = vpow2.f32 %v2034_v45  ;;  %v1944_v40 = vsub.f32 %v8085_v41, %v1865_v48  ;;  %v1945_v24 = vsub.f32 %v8087_v7, %v1865_v48  ;;  %v2139_v28 = vadd.f32 %v8320_v51, %v8318_v50  ;;  %v10738_v45 = vld [vmem:[#allocation7_spill] sm:$0xff] }
 0x5f8   : > { %6441 = vpow2.f32 %v2036_v46 }
 0x5f9   : > { %v8326_v62 = vpop.eup %6431  ;;  %v2038_v6 = vmul.f32 1.442695, %v1944_v40  ;;  %v2040_v13 = vmul.f32 1.442695, %v1945_v24  ;;  %2140 = vadd.xlane.f32.xlu0 %v2139_v28 }
 0x5fa   : > { %v8328_v33 = vpop.eup %6433  ;;  %v1868_v8 = vpop.xlane.xlu1 %1867 }
 0x5fb   : > { %6443 = vpow2.f32 %v2038_v6  ;;  %v1946_v63 = vsub.f32 %v8091_v52, %v1868_v8  ;;  %v1947_v2 = vsub.f32 %v8093_v60, %v1868_v8  ;;  %v2142_v41 = vadd.f32 %v8328_v33, %v8326_v62  ;;  %v10740_v6 = vld [vmem:[#allocation20_spill] sm:$0xff] }
 0x5fc   : > { %6445 = vpow2.f32 %v2040_v13  ;;  %v10741_v8 = vld [vmem:[#allocation12_spill] sm:$0xff] }
 0x5fd   : > { %v8334_v7 = vpop.eup %6435  ;;  %v2042_v12 = vmul.f32 1.442695, %v1946_v63  ;;  %v2044_v30 = vmul.f32 1.442695, %v1947_v2  ;;  %2143 = vadd.xlane.f32.xlu1 %v2142_v41 }
 0x5fe   : > { %v8336_v26 = vpop.eup %6437  ;;  %v1871_v56 = vpop.xlane.xlu0 %1870 }
 0x5ff   : > { %6447 = vpow2.f32 %v2042_v12  ;;  %v1948_v53 = vsub.f32 %v10737_v20, %v1871_v56  ;;  %v1949_v46 = vsub.f32 %v10738_v45, %v1871_v56  ;;  %v2145_v52 = vadd.f32 %v8336_v26, %v8334_v7 }
 0x600   : > { %6449 = vpow2.f32 %v2044_v30 }
 0x601   : > { %v8342_v60 = vpop.eup %6439  ;;  %v2046_v48 = vmul.f32 1.442695, %v1948_v53  ;;  %v2048_v40 = vmul.f32 1.442695, %v1949_v46  ;;  %2146 = vadd.xlane.f32.xlu0 %v2145_v52  ;;  %v10743_v53 = vld [vmem:[#allocation11_spill] sm:$0xff] }
 0x602   : > { %10739 = vst [vmem:[#allocation9_spill] sm:$0xff] %v8342_v60  ;;  %v8344_v24 = vpop.eup %6441  ;;  %v1874_v28 = vpop.xlane.xlu1 %1873  ;;  %v10744_v46 = vld [vmem:[#allocation15_spill] sm:$0xff] }
 0x603   : > { %6451 = vpow2.f32 %v2046_v48  ;;  %v1950_v13 = vsub.f32 %v10740_v6, %v1874_v28  ;;  %v1951_v63 = vsub.f32 %v10741_v8, %v1874_v28  ;;  %v2148_v2 = vadd.f32 %v8344_v24, %v8342_v60 }
 0x604   : > { %6453 = vpow2.f32 %v2048_v40 }
 0x605   : > { %v8350_v41 = vpop.eup %6443  ;;  %v2050_v12 = vmul.f32 1.442695, %v1950_v13  ;;  %v2052_v30 = vmul.f32 1.442695, %v1951_v63  ;;  %2149 = vadd.xlane.f32.xlu1 %v2148_v2  ;;  %v10747_v63 = vld [vmem:[#allocation14_spill] sm:$0xff] }
 0x606   : > { %10742 = vst [vmem:[#allocation7_spill] sm:$0xff] %v8350_v41  ;;  %v8352_v56 = vpop.eup %6445  ;;  %v1877_v20 = vpop.xlane.xlu0 %1876 }
 0x607   : > { %6455 = vpow2.f32 %v2050_v12  ;;  %v1952_v45 = vsub.f32 %v10743_v53, %v1877_v20  ;;  %v1953_v52 = vsub.f32 %v10744_v46, %v1877_v20  ;;  %v2151_v48 = vadd.f32 %v8352_v56, %v8350_v41  ;;  %v10748_v12 = vld [vmem:[#allocation13_spill] sm:$0xff] }
 0x608   : > { %6457 = vpow2.f32 %v2052_v30 }
 0x609   : > { %v8358_v28 = vpop.eup %6447  ;;  %v2054_v40 = vmul.f32 1.442695, %v1952_v45  ;;  %v2056_v6 = vmul.f32 1.442695, %v1953_v52  ;;  %2152 = vadd.xlane.f32.xlu0 %v2151_v48  ;;  %v10751_v48 = vld [vmem:[#allocation17_spill] sm:$0xff] }
 0x60a   : > { %10745 = vst [vmem:[#allocation20_spill] sm:$0xff] %v8358_v28  ;;  %v8360_v13 = vpop.eup %6449  ;;  %v1880_v8 = vpop.xlane.xlu1 %1879 }
 0x60b   : > { %10746 = vst [vmem:[#allocation12_spill] sm:$0xff] %v8360_v13  ;;  %6459 = vpow2.f32 %v2054_v40  ;;  %v1954_v2 = vsub.f32 %v10747_v63, %v1880_v8  ;;  %v1955_v38 = vsub.f32 %v10748_v12, %v1880_v8  ;;  %v2154_v20 = vadd.f32 %v8360_v13, %v8358_v28  ;;  %v10752_v40 = vld [vmem:[#allocation23_spill] sm:$0xff] }
 0x60c   : > { %6461 = vpow2.f32 %v2056_v6 }
 0x60d   : > { %v8366_v53 = vpop.eup %6451  ;;  %v2058_v30 = vmul.f32 1.442695, %v1954_v2  ;;  %v2060_v46 = vmul.f32 1.442695, %v1955_v38  ;;  %2155 = vadd.xlane.f32.xlu1 %v2154_v20  ;;  %v10753_v20 = vld [vmem:[#allocation18_spill] sm:$0xff] }
 0x60e   : > { %10749 = vst [vmem:[#allocation11_spill] sm:$0xff] %v8366_v53  ;;  %v8368_v45 = vpop.eup %6453  ;;  %v1883_v52 = vpop.xlane.xlu0 %1882 }
 0x60f   : > { %10750 = vst [vmem:[#allocation15_spill] sm:$0xff] %v8368_v45  ;;  %6463 = vpow2.f32 %v2058_v30  ;;  %v1956_v60 = vsub.f32 %v10751_v48, %v1883_v52  ;;  %v1957_v41 = vsub.f32 %v10752_v40, %v1883_v52  ;;  %v2157_v8 = vadd.f32 %v8368_v45, %v8366_v53  ;;  %v10754_v30 = vld [vmem:[#allocation16_spill] sm:$0xff] }
 0x610   : > { %6465 = vpow2.f32 %v2060_v46 }
 0x611   : > { %v8374_v63 = vpop.eup %6455  ;;  %v2062_v6 = vmul.f32 1.442695, %v1956_v60  ;;  %v2064_v12 = vmul.f32 1.442695, %v1957_v41  ;;  %2158 = vadd.xlane.f32.xlu0 %v2157_v8  ;;  %v10755_v8 = vld [vmem:[#allocation25_spill] sm:$0xff] }
 0x612   : > { %v8376_v2 = vpop.eup %6457  ;;  %v1886_v38 = vpop.xlane.xlu1 %1885 }
 0x613   : > { %6467 = vpow2.f32 %v2062_v6  ;;  %v1958_v28 = vsub.f32 %v10753_v20, %v1886_v38  ;;  %v1959_v13 = vsub.f32 %v10754_v30, %v1886_v38  ;;  %v2160_v52 = vadd.f32 %v8376_v2, %v8374_v63  ;;  %v10756_v6 = vld [vmem:[#allocation24_spill] sm:$0xff] }
 0x614   : > { %6469 = vpow2.f32 %v2064_v12 }
 0x615   : > { %v8382_v48 = vpop.eup %6459  ;;  %v2066_v46 = vmul.f32 1.442695, %v1958_v28  ;;  %v2068_v40 = vmul.f32 1.442695, %v1959_v13  ;;  %2161 = vadd.xlane.f32.xlu1 %v2160_v52 }
 0x616   : > { %v8384_v60 = vpop.eup %6461  ;;  %v1889_v41 = vpop.xlane.xlu0 %1888 }
 0x617   : > { %6471 = vpow2.f32 %v2066_v46  ;;  %v1960_v53 = vsub.f32 %v10755_v8, %v1889_v41  ;;  %v1961_v45 = vsub.f32 %v10756_v6, %v1889_v41  ;;  %v2163_v38 = vadd.f32 %v8384_v60, %v8382_v48 }
 0x618   : > { %6473 = vpow2.f32 %v2068_v40 }
 0x619   : > { %v8390_v20 = vpop.eup %6463  ;;  %v2070_v12 = vmul.f32 1.442695, %v1960_v53  ;;  %v2072_v30 = vmul.f32 1.442695, %v1961_v45  ;;  %2164 = vadd.xlane.f32.xlu0 %v2163_v38 }
 0x61a   : > { %10757 = vst [vmem:[#allocation14_spill] sm:$0xff] %v8390_v20  ;;  %v8392_v28 = vpop.eup %6465 }
 0x61b   : > { %10758 = vst [vmem:[#allocation13_spill] sm:$0xff] %v8392_v28  ;;  %6475 = vpow2.f32 %v2070_v12  ;;  %v2166_v13 = vadd.f32 %v8392_v28, %v8390_v20 }
 0x61c   : > { %6477 = vpow2.f32 %v2072_v30 }
 0x61d   : > { %v8396_v52 = vpop.eup %6467  ;;  %2167 = vadd.xlane.f32.xlu1 %v2166_v13 }
 0x61e   : > { %10759 = vst [vmem:[#allocation17_spill] sm:$0xff] %v8396_v52  ;;  %v8398_v46 = vpop.eup %6469 }
 0x61f   : > { %10760 = vst [vmem:[#allocation23_spill] sm:$0xff] %v8398_v46  ;;  %v2169_v40 = vadd.f32 %v8398_v46, %v8396_v52 }
 0x621   : > { %v8402_v41 = vpop.eup %6471  ;;  %2170 = vadd.xlane.f32.xlu0 %v2169_v40 }
 0x622   : > { %10761 = vst [vmem:[#allocation18_spill] sm:$0xff] %v8402_v41  ;;  %v8404_v53 = vpop.eup %6473 }
 0x623   : > { %10762 = vst [vmem:[#allocation16_spill] sm:$0xff] %v8404_v53  ;;  %v2172_v45 = vadd.f32 %v8404_v53, %v8402_v41 }
 0x625   : > { %v8408_v8 = vpop.eup %6475  ;;  %2173 = vadd.xlane.f32.xlu1 %v2172_v45 }
 0x626   : > { %10763 = vst [vmem:[#allocation25_spill] sm:$0xff] %v8408_v8  ;;  %v8410_v6 = vpop.eup %6477 }
 0x627   : > { %10764 = vst [vmem:[#allocation24_spill] sm:$0xff] %v8410_v6  ;;  %v2175_v38 = vadd.f32 %v8410_v6, %v8408_v8 }
 0x629   : > { %2176 = vadd.xlane.f32.xlu0 %v2175_v38 }
 0x65a   : > { %v2108_v12 = vpop.xlane.xlu1 %2107 }
 0x65b   : > { %6479 = vrcp.f32 %v2108_v12 }
 0x65e   : > { %v2111_v30 = vpop.xlane.xlu0 %2110  ;;  %v1892_v13 = vpop.xlane.xlu1 %1891 }
 0x65f   : > { %6481 = vrcp.f32 %v2111_v30  ;;  %v1962_v40 = vsub.f32 %v8139_v54, %v1892_v13  ;;  %v1963_v20 = vsub.f32 %v8141_v55, %v1892_v13 }
 0x661   : > { %v2074_v52 = vmul.f32 1.442695, %v1962_v40  ;;  %v2076_v41 = vmul.f32 1.442695, %v1963_v20 }
 0x662   : > { %v1895_v53 = vpop.xlane.xlu0 %1894  ;;  %v2114_v46 = vpop.xlane.xlu1 %2113 }
 0x663   : > { %6483 = vpow2.f32 %v2074_v52  ;;  %v1964_v45 = vsub.f32 %v8145_v22, %v1895_v53  ;;  %v1965_v28 = vsub.f32 %v8147_v0, %v1895_v53 }
 0x664   : > { %6485 = vpow2.f32 %v2076_v41 }
 0x665   : > { %v2078_v38 = vmul.f32 1.442695, %v1964_v45  ;;  %v2080_v8 = vmul.f32 1.442695, %v1965_v28  ;;  %6487 = vrcp.f32 %v2114_v46  ;;  %v6480_v30 = vpop.eup %6479 }
 0x666   : > { %v2117_v12 = vpop.xlane.xlu0 %2116  ;;  %v1898_v6 = vpop.xlane.xlu1 %1897  ;;  %v2235_v0 = vmul.f32 %v6480_v30, %v8208_v42  ;;  %v2234_v46 = vmul.f32 %v6480_v30, %v8206_v14 }
 0x667   : > { %6489 = vpow2.f32 %v2078_v38  ;;  %v1966_v54 = vsub.f32 %v8151_v19, %v1898_v6  ;;  %v1967_v55 = vsub.f32 %v8153_v44, %v1898_v6 }
 0x668   : > { %6491 = vpow2.f32 %v2080_v8 }
 0x669   : > { %v6482_v20 = vpop.eup %6481  ;;  %6493 = vrcp.f32 %v2117_v12  ;;  %v2082_v52 = vmul.f32 1.442695, %v1966_v54  ;;  %v2084_v13 = vmul.f32 1.442695, %v1967_v55 }
 0x66a   : > { %v1901_v22 = vpop.xlane.xlu0 %1900  ;;  %v2120_v40 = vpop.xlane.xlu1 %2119  ;;  %v2237_v28 = vmul.f32 %v6482_v20, %v8216_v1  ;;  %v2236_v41 = vmul.f32 %v6482_v20, %v8214_v29 }
 0x66b   : > { %6495 = vpow2.f32 %v2082_v52  ;;  %v1968_v19 = vsub.f32 %v8157_v43, %v1901_v22  ;;  %v1969_v44 = vsub.f32 %v8159_v25, %v1901_v22 }
 0x66c   : > { %6497 = vpow2.f32 %v2084_v13  ;;  %v5918_v53 = vpack.c.bf16 %v2237_v28, %v2235_v0  ;;  %v5920_v8 = vpack.c.bf16 %v2236_v41, %v2234_v46 }
 0x66d   : > { %v8426_v6 = vpop.eup %6483  ;;  %v2086_v45 = vmul.f32 1.442695, %v1968_v19  ;;  %v2088_v38 = vmul.f32 1.442695, %v1969_v44  ;;  %6499 = vrcp.f32 %v2120_v40 }
 0x66e   : > { %v8428_v42 = vpop.eup %6485  ;;  %v2123_v1 = vpop.xlane.xlu0 %2122  ;;  %5919 = vmatprep.subr.bf16.mxu1 %v5918_v53 }
 0x66f   : > { %v1904_v14 = vpop.xlane.xlu1 %1903  ;;  %v6488_v12 = vpop.eup %6487  ;;  %6501 = vpow2.f32 %v2086_v45  ;;  %5921 = vmatpush1.bf16.xpose.msra.mxu1 %v5920_v8  ;;  %v2178_v25 = vadd.f32 %v8428_v42, %v8426_v6 }
 0x670   : > { %v1970_v29 = vsub.f32 %v8163_v17, %v1904_v14  ;;  %v1971_v43 = vsub.f32 %v8165_v5, %v1904_v14  ;;  %6503 = vpow2.f32 %v2088_v38  ;;  %v2239_v22 = vmul.f32 %v6488_v12, %v8227_v31 }
 0x671   : > { %v8434_v30 = vpop.eup %6489  ;;  %6505 = vrcp.f32 %v2123_v1  ;;  %2179 = vadd.xlane.f32.xlu1 %v2178_v25  ;;  %v2238_v46 = vmul.f32 %v6488_v12, %v8222_v39 }
 0x672   : > { %v2090_v54 = vmul.f32 1.442695, %v1970_v29  ;;  %v2092_v55 = vmul.f32 1.442695, %v1971_v43  ;;  %v8436_v20 = vpop.eup %6491  ;;  %v1907_v52 = vpop.xlane.xlu0 %1906 }
 0x673   : > { %v2126_v13 = vpop.xlane.xlu1 %2125  ;;  %v6494_v17 = vpop.eup %6493  ;;  %v1972_v5 = vsub.f32 %v8169_v47, %v1907_v52  ;;  %v1973_v40 = vsub.f32 %v8171_v49, %v1907_v52  ;;  %v2181_v0 = vadd.f32 %v8436_v20, %v8434_v30 }
 0x674   : > { %6507 = vpow2.f32 %v2090_v54  ;;  %v2241_v28 = vmul.f32 %v6494_v17, %v8238_v10  ;;  %v2240_v41 = vmul.f32 %v6494_v17, %v8233_v27 }
 0x675   : > { %6509 = vpow2.f32 %v2092_v55  ;;  %v8446_v19 = vpop.eup %6495  ;;  %v2094_v44 = vmul.f32 1.442695, %v1972_v5  ;;  %v2096_v31 = vmul.f32 1.442695, %v1973_v40  ;;  %2182 = vadd.xlane.f32.xlu0 %v2181_v0 }
 0x676   : > { %v8448_v53 = vpop.eup %6497  ;;  %6511 = vrcp.f32 %v2126_v13  ;;  %v2129_v47 = vpop.xlane.xlu0 %2128  ;;  %v5922_v49 = vpack.c.bf16 %v2241_v28, %v2239_v22  ;;  %v5924_v45 = vpack.c.bf16 %v2240_v41, %v2238_v46 }
 0x677   : > { %v1910_v8 = vpop.xlane.xlu1 %1909  ;;  %v6500_v38 = vpop.eup %6499  ;;  %6513 = vpow2.f32 %v2094_v44  ;;  %v2184_v27 = vadd.f32 %v8448_v53, %v8446_v19 }
 0x678   : > { %v1974_v10 = vsub.f32 %v8175_v16, %v1910_v8  ;;  %v1975_v39 = vsub.f32 %v8177_v18, %v1910_v8  ;;  %6515 = vpow2.f32 %v2096_v31  ;;  %5923 = vmatprep.subr.bf16.mxu1 %v5922_v49  ;;  %v2243_v25 = vmul.f32 %v6500_v38, %v8249_v57 }
 0x679   : > { %v8454_v1 = vpop.eup %6501  ;;  %6517 = vrcp.f32 %v2129_v47  ;;  %5925 = vmatpush1.bf16.xpose.msra.mxu1 %v5924_v45  ;;  %2185 = vadd.xlane.f32.xlu1 %v2184_v27  ;;  %v2242_v22 = vmul.f32 %v6500_v38, %v8244_v23 }
 0x67a   : > { %v2098_v14 = vmul.f32 1.442695, %v1974_v10  ;;  %v2100_v12 = vmul.f32 1.442695, %v1975_v39  ;;  %v8456_v29 = vpop.eup %6503  ;;  %v1913_v43 = vpop.xlane.xlu0 %1912 }
 0x67b   : > { %v6506_v16 = vpop.eup %6505  ;;  %v1976_v18 = vsub.f32 %v8181_v35, %v1913_v43  ;;  %v1977_v54 = vsub.f32 %v8183_v37, %v1913_v43  ;;  %v2132_v55 = vpop.xlane.xlu1 %2131  ;;  %v2187_v52 = vadd.f32 %v8456_v29, %v8454_v1 }
 0x67c   : > { %6519 = vpow2.f32 %v2098_v14  ;;  %v2245_v13 = vmul.f32 %v6506_v16, %v8260_v61  ;;  %v2244_v17 = vmul.f32 %v6506_v16, %v8255_v15 }
 0x67d   : > { %6521 = vpow2.f32 %v2100_v12  ;;  %v2102_v57 = vmul.f32 1.442695, %v1976_v18  ;;  %v2104_v40 = vmul.f32 1.442695, %v1977_v54  ;;  %2188 = vadd.xlane.f32.xlu0 %v2187_v52 }
 0x67e   : > { %v8466_v5 = vpop.eup %6507  ;;  %6523 = vrcp.f32 %v2132_v55  ;;  %v2135_v37 = vpop.xlane.xlu0 %2134  ;;  %v5926_v35 = vpack.c.bf16 %v2245_v13, %v2243_v25  ;;  %v5928_v28 = vpack.c.bf16 %v2244_v17, %v2242_v22 }
 0x67f   : > { %v8468_v0 = vpop.eup %6509  ;;  %6525 = vpow2.f32 %v2102_v57 }
 0x680   : > { %v2190_v46 = vadd.f32 %v8468_v0, %v8466_v5  ;;  %v6512_v61 = vpop.eup %6511  ;;  %6527 = vpow2.f32 %v2104_v40  ;;  %5927 = vmatprep.subr.bf16.mxu1 %v5926_v35 }
 0x681   : > { %v8472_v23 = vpop.eup %6513  ;;  %6529 = vrcp.f32 %v2135_v37  ;;  %5929 = vmatpush1.bf16.xpose.msra.mxu1 %v5928_v28  ;;  %v2247_v47 = vmul.f32 %v6512_v61, %v8271_v4  ;;  %v2246_v8 = vmul.f32 %v6512_v61, %v8266_v34 }
 0x682   : > { %2191 = vadd.xlane.f32.xlu1 %v2190_v46  ;;  %v8474_v15 = vpop.eup %6515  ;;  %v2138_v41 = vpop.xlane.xlu1 %2137 }
 0x683   : > { %v6518_v44 = vpop.eup %6517  ;;  %v2193_v31 = vadd.f32 %v8474_v15, %v8472_v23  ;;  %6531 = vrcp.f32 %v2138_v41 }
 0x684   : > { %v2249_v49 = vmul.f32 %v6518_v44, %v8282_v58  ;;  %v2248_v45 = vmul.f32 %v6518_v44, %v8277_v3 }
 0x685   : > { %2194 = vadd.xlane.f32.xlu0 %v2193_v31 }
 0x686   : > { %v8482_v38 = vpop.eup %6519  ;;  %v2141_v39 = vpop.xlane.xlu0 %2140  ;;  %v5930_v27 = vpack.c.bf16 %v2249_v49, %v2247_v47  ;;  %v5932_v14 = vpack.c.bf16 %v2248_v45, %v2246_v8 }
 0x687   : > { %v8484_v10 = vpop.eup %6521  ;;  %6533 = vrcp.f32 %v2141_v39 }
 0x688   : > { %v2196_v12 = vadd.f32 %v8484_v10, %v8482_v38  ;;  %v6524_v4 = vpop.eup %6523  ;;  %5931 = vmatprep.subr.bf16.mxu1 %v5930_v27  ;;  %v10765_v27 = vld [vmem:[#allocation7_spill] sm:$0xff] }
 0x689   : > { %v8488_v58 = vpop.eup %6525  ;;  %5933 = vmatpush1.bf16.xpose.msra.mxu1 %v5932_v14  ;;  %v2251_v16 = vmul.f32 %v6524_v4, %v8293_v21  ;;  %v2250_v54 = vmul.f32 %v6524_v4, %v8288_v36  ;;  %v10766_v14 = vld [vmem:[#allocation9_spill] sm:$0xff] }
 0x68a   : > { %2197 = vadd.xlane.f32.xlu1 %v2196_v12  ;;  %v8490_v34 = vpop.eup %6527  ;;  %v2144_v3 = vpop.xlane.xlu1 %2143 }
 0x68b   : > { %v6530_v43 = vpop.eup %6529  ;;  %v2199_v25 = vadd.f32 %v8490_v34, %v8488_v58  ;;  %6535 = vrcp.f32 %v2144_v3 }
 0x68c   : > { %v2253_v18 = vmul.f32 %v6530_v43, %v8304_v11  ;;  %v2252_v55 = vmul.f32 %v6530_v43, %v8299_v59 }
 0x68d   : > { %2200 = vadd.xlane.f32.xlu0 %v2199_v25  ;;  %v6532_v17 = vpop.eup %6531 }
 0x68e   : > { %v2147_v52 = vpop.xlane.xlu0 %2146  ;;  %v5934_v13 = vpack.c.bf16 %v2253_v18, %v2251_v16  ;;  %v5936_v22 = vpack.c.bf16 %v2252_v55, %v2250_v54  ;;  %v2255_v37 = vmul.f32 %v6532_v17, %v8312_v32  ;;  %v2254_v36 = vmul.f32 %v6532_v17, %v8310_v9  ;;  %v10767_v16 = vld [vmem:[#allocation12_spill] sm:$0xff]  ;;  %v10768_v54 = vld [vmem:[#allocation15_spill] sm:$0xff] }
 0x68f   : > { %6537 = vrcp.f32 %v2147_v52  ;;  %v10769_v55 = vld [vmem:[#allocation11_spill] sm:$0xff]  ;;  %v10770_v52 = vld [vmem:[#allocation20_spill] sm:$0xff] }
 0x690   : > { %5935 = vmatprep.subr.bf16.mxu1 %v5934_v13 }
 0x691   : > { %v6534_v57 = vpop.eup %6533  ;;  %5937 = vmatpush1.bf16.xpose.msra.mxu1 %v5936_v22 }
 0x692   : > { %v2150_v40 = vpop.xlane.xlu1 %2149  ;;  %v2257_v21 = vmul.f32 %v6534_v57, %v8320_v51  ;;  %v2256_v11 = vmul.f32 %v6534_v57, %v8318_v50 }
 0x693   : > { %6539 = vrcp.f32 %v2150_v40 }
 0x694   : > { %v5938_v59 = vpack.c.bf16 %v2257_v21, %v2255_v37  ;;  %v5940_v35 = vpack.c.bf16 %v2256_v11, %v2254_v36 }
 0x695   : > { %v6536_v46 = vpop.eup %6535 }
 0x696   : > { %v2153_v28 = vpop.xlane.xlu0 %2152  ;;  %5939 = vmatprep.subr.bf16.mxu1 %v5938_v59  ;;  %v2259_v44 = vmul.f32 %v6536_v46, %v8328_v33  ;;  %v2258_v50 = vmul.f32 %v6536_v46, %v8326_v62 }
 0x697   : > { %6541 = vrcp.f32 %v2153_v28 }
 0x699   : > { %v6538_v61 = vpop.eup %6537  ;;  %5941 = vmatpush1.bf16.xpose.msra.mxu1 %v5940_v35 }
 0x69a   : > { %v2156_v41 = vpop.xlane.xlu1 %2155  ;;  %v2261_v32 = vmul.f32 %v6538_v61, %v8336_v26  ;;  %v2260_v51 = vmul.f32 %v6538_v61, %v8334_v7 }
 0x69b   : > { %6543 = vrcp.f32 %v2156_v41 }
 0x69c   : > { %v5942_v31 = vpack.c.bf16 %v2261_v32, %v2259_v44  ;;  %v5944_v9 = vpack.c.bf16 %v2260_v51, %v2258_v50  ;;  %v10771_v44 = vld [vmem:[#allocation4_spill] sm:$0xff]  ;;  %v10772_v32 = vld [vmem:[#allocation21_spill] sm:$0xff] }
 0x69d   : > { %v6540_v49 = vpop.eup %6539  ;;  %v2457_v51 = vadd.f32 %v10772_v32, %v10771_v44 }
 0x69e   : > { %v2159_v47 = vpop.xlane.xlu0 %2158  ;;  %5943 = vmatprep.subr.bf16.mxu1 %v5942_v31  ;;  %v2263_v39 = vmul.f32 %v6540_v49, %v8344_v24  ;;  %v2262_v7 = vmul.f32 %v6540_v49, %v10766_v14  ;;  %v10778_v14 = vld [vmem:[#allocation16_spill] sm:$0xff] }
 0x69f   : > { %6545 = vrcp.f32 %v2159_v47  ;;  %v10776_v47 = vld [vmem:[#allocation17_spill] sm:$0xff] }
 0x6a1   : > { %v6542_v8 = vpop.eup %6541  ;;  %5945 = vmatpush1.bf16.xpose.msra.mxu1 %v5944_v9  ;;  %v10775_v9 = vld [vmem:[#allocation23_spill] sm:$0xff] }
 0x6a2   : > { %v2162_v45 = vpop.xlane.xlu1 %2161  ;;  %v2265_v33 = vmul.f32 %v6542_v8, %v8352_v56  ;;  %v2264_v26 = vmul.f32 %v6542_v8, %v10765_v27  ;;  %v10777_v8 = vld [vmem:[#allocation14_spill] sm:$0xff] }
 0x6a3   : > { %6547 = vrcp.f32 %v2162_v45 }
 0x6a4   : > { %v5946_v12 = vpack.c.bf16 %v2265_v33, %v2263_v39  ;;  %v5948_v62 = vpack.c.bf16 %v2264_v26, %v2262_v7 }
 0x6a5   : > { %v6544_v3 = vpop.eup %6543 }
 0x6a6   : > { %v2165_v4 = vpop.xlane.xlu0 %2164  ;;  %5947 = vmatprep.subr.bf16.mxu1 %v5946_v12  ;;  %v2267_v18 = vmul.f32 %v6544_v3, %v10767_v16  ;;  %v2266_v13 = vmul.f32 %v6544_v3, %v10770_v52  ;;  %v10779_v12 = vld [vmem:[#allocation24_spill] sm:$0xff] }
 0x6a7   : > { %6549 = vrcp.f32 %v2165_v4  ;;  %v10780_v4 = vld [vmem:[#allocation25_spill] sm:$0xff] }
 0x6a9   : > { %v6546_v43 = vpop.eup %6545  ;;  %5949 = vmatpush1.bf16.xpose.msra.mxu1 %v5948_v62 }
 0x6aa   : > { %v2168_v25 = vpop.xlane.xlu1 %2167  ;;  %v2269_v24 = vmul.f32 %v6546_v43, %v10768_v54  ;;  %v2268_v56 = vmul.f32 %v6546_v43, %v10769_v55  ;;  %v10781_v43 = vld [vmem:[#allocation18_spill] sm:$0xff] }
 0x6ab   : > { %6551 = vrcp.f32 %v2168_v25 }
 0x6ac   : > { %v5950_v22 = vpack.c.bf16 %v2269_v24, %v2267_v18  ;;  %v5952_v17 = vpack.c.bf16 %v2268_v56, %v2266_v13 }
 0x6ad   : > { %v6548_v40 = vpop.eup %6547 }
 0x6ae   : > { %v2171_v57 = vpop.xlane.xlu0 %2170  ;;  %5951 = vmatprep.subr.bf16.mxu1 %v5950_v22  ;;  %v2271_v11 = vmul.f32 %v6548_v40, %v8376_v2  ;;  %v2270_v35 = vmul.f32 %v6548_v40, %v8374_v63  ;;  %v10773_v2 = vld [vmem:[#allocation22_spill] sm:$0xff] }
 0x6af   : > { %6553 = vrcp.f32 %v2171_v57  ;;  %v2455_v31 = vadd.f32 %v10773_v2, %v10771_v44 }
 0x6b1   : > { %v6550_v37 = vpop.eup %6549  ;;  %5953 = vmatpush1.bf16.xpose.msra.mxu1 %v5952_v17 }
 0x6b2   : > { %v2174_v21 = vpop.xlane.xlu1 %2173  ;;  %v2273_v36 = vmul.f32 %v6550_v37, %v8384_v60  ;;  %v2272_v59 = vmul.f32 %v6550_v37, %v8382_v48  ;;  %v10774_v60 = vld [vmem:[#allocation13_spill] sm:$0xff] }
 0x6b3   : > { %6555 = vrcp.f32 %v2174_v21 }
 0x6b4   : > { %v5954_v28 = vpack.c.bf16 %v2273_v36, %v2271_v11  ;;  %v5956_v46 = vpack.c.bf16 %v2272_v59, %v2270_v35 }
 0x6b5   : > { %v6552_v41 = vpop.eup %6551 }
 0x6b6   : > { %v2177_v61 = vpop.xlane.xlu0 %2176  ;;  %5955 = vmatprep.subr.bf16.mxu1 %v5954_v28  ;;  %v2275_v48 = vmul.f32 %v6552_v41, %v10774_v60  ;;  %v2274_v45 = vmul.f32 %v6552_v41, %v10777_v8  ;;  %v10784_v8 = vld [vmem:[#allocation19_spill] sm:$0xff] }
 0x6b7   : > { %6557 = vrcp.f32 %v2177_v61 }
 0x6b9   : > { %v6554_v50 = vpop.eup %6553  ;;  %5957 = vmatpush1.bf16.xpose.msra.mxu1 %v5956_v46 }
 0x6ba   : > { %2503 = vxpose.xlu0.b32.start.end [1/1] (short) %v2457_v51, 128  ;;  %v2277_v63 = vmul.f32 %v6554_v50, %v10775_v9  ;;  %v2276_v49 = vmul.f32 %v6554_v50, %v10776_v47 }
 0x6bc   : > { %v5958_v39 = vpack.c.bf16 %v2277_v63, %v2275_v48  ;;  %v5960_v33 = vpack.c.bf16 %v2276_v49, %v2274_v45  ;;  %v10783_v49 = vld [vmem:[#allocation27_spill] sm:$0xff]  ;;  %v10785_v45 = vld [vmem:[#allocation26_spill] sm:$0xff] }
 0x6bd   : > { %2471 = vxpose.xlu1.b32.start.end [1/1] (short) %v2455_v31, 128  ;;  %v6556_v27 = vpop.eup %6555 }
 0x6be   : > { %5959 = vmatprep.subr.bf16.mxu1 %v5958_v39  ;;  %v2279_v7 = vmul.f32 %v6556_v27, %v10778_v14  ;;  %v2278_v25 = vmul.f32 %v6556_v27, %v10781_v43  ;;  %v1397_v39 = vadd.f32 %v10785_v45, %v10784_v8 }
 0x6c1   : > { %v6558_v26 = vpop.eup %6557  ;;  %5961 = vmatpush1.bf16.xpose.msra.mxu1 %v5960_v33  ;;  %v10786_v33 = vld [vmem:[#allocation3_spill] sm:$0xff] }
 0x6c2   : > { %v2281_v62 = vmul.f32 %v6558_v26, %v10779_v12  ;;  %v2280_v3 = vmul.f32 %v6558_v26, %v10780_v4 }
 0x6c4   : > { %v5962_v16 = vpack.c.bf16 %v2281_v62, %v2279_v7  ;;  %v5964_v18 = vpack.c.bf16 %v2280_v3, %v2278_v25 }
 0x6c6   : > { %5963 = vmatprep.subr.bf16.mxu1 %v5962_v16 }
 0x6c9   : > { %5965 = vmatpush1.bf16.xpose.msra.mxu1 %v5964_v18 }
 0x6fe   : > { %v2180_v54 = vpop.xlane.xlu1 %2179 }
 0x6ff   : > { %6559 = vrcp.f32 %v2180_v54 }
 0x702   : > { %v2183_v24 = vpop.xlane.xlu0 %2182 }
 0x703   : > { %6561 = vrcp.f32 %v2183_v24 }
 0x706   : > { %v2186_v55 = vpop.xlane.xlu1 %2185 }
 0x707   : > { %6563 = vrcp.f32 %v2186_v55 }
 0x709   : > { %v6560_v52 = vpop.eup %6559 }
 0x70a   : > { %v2189_v56 = vpop.xlane.xlu0 %2188  ;;  %v2283_v17 = vmul.f32 %v6560_v52, %v8428_v42  ;;  %v2282_v40 = vmul.f32 %v6560_v52, %v8426_v6 }
 0x70b   : > { %6565 = vrcp.f32 %v2189_v56 }
 0x70d   : > { %v6562_v13 = vpop.eup %6561 }
 0x70e   : > { %v2285_v57 = vmul.f32 %v6562_v13, %v8436_v20  ;;  %v2284_v37 = vmul.f32 %v6562_v13, %v8434_v30 }
 0x70f   : > { %v2192_v22 = vpop.xlane.xlu1 %2191 }
 0x710   : > { %v5966_v21 = vpack.c.bf16 %v2285_v57, %v2283_v17  ;;  %v5968_v11 = vpack.c.bf16 %v2284_v37, %v2282_v40  ;;  %6567 = vrcp.f32 %v2192_v22 }
 0x711   : > { %v6564_v59 = vpop.eup %6563 }
 0x712   : > { %v2195_v36 = vpop.xlane.xlu0 %2194  ;;  %5967 = vmatprep.subr.bf16.mxu1 %v5966_v21  ;;  %v2287_v46 = vmul.f32 %v6564_v59, %v8448_v53  ;;  %v2286_v20 = vmul.f32 %v6564_v59, %v8446_v19 }
 0x713   : > { %6569 = vrcp.f32 %v2195_v36  ;;  %5969 = vmatpush1.bf16.xpose.msra.mxu1 %v5968_v11 }
 0x715   : > { %v6566_v35 = vpop.eup %6565 }
 0x716   : > { %v2289_v42 = vmul.f32 %v6566_v35, %v8456_v29  ;;  %v2288_v6 = vmul.f32 %v6566_v35, %v8454_v1 }
 0x717   : > { %v2198_v28 = vpop.xlane.xlu1 %2197 }
 0x718   : > { %v5970_v61 = vpack.c.bf16 %v2289_v42, %v2287_v46  ;;  %v5972_v30 = vpack.c.bf16 %v2288_v6, %v2286_v20  ;;  %6571 = vrcp.f32 %v2198_v28  ;;  %v7155_v6 = vld [vmem:[%s10462_s1] sm:$0xff] }
 0x71a   : > { %v2201_v41 = vpop.xlane.xlu0 %2200  ;;  %5971 = vmatprep.subr.bf16.mxu1 %v5970_v61  ;;  %v6568_v32 = vpop.eup %6567  ;;  %v7156_v61 = vld [vmem:[%s10462_s1 + $0x8] sm:$0xff] }
 0x71b   : > { %6573 = vrcp.f32 %v2201_v41  ;;  %5973 = vmatpush1.bf16.xpose.msra.mxu1 %v5972_v30  ;;  %v2291_v50 = vmul.f32 %v6568_v32, %v8468_v0  ;;  %v2290_v53 = vmul.f32 %v6568_v32, %v8466_v5  ;;  %v10782_v5 = vld [vmem:[#allocation5_spill] sm:$0xff]  ;;  %v10789_v32 = vld [vmem:[#allocation10_spill] sm:$0xff] }
 0x71c   : > { %v7157_v30 = vld [vmem:[%s10462_s1 + $0x10] sm:$0xff] }
 0x71d   : > { %v6570_v51 = vpop.eup %6569 }
 0x71e   : > { %v2293_v2 = vmul.f32 %v6570_v51, %v8474_v15  ;;  %v2292_v29 = vmul.f32 %v6570_v51, %v8472_v23  ;;  %v2463_v23 = vadd.f32 %v10783_v49, %v10782_v5 }
 0x720   : > { %v5974_v19 = vpack.c.bf16 %v2293_v2, %v2291_v50  ;;  %v5976_v31 = vpack.c.bf16 %v2292_v29, %v2290_v53  ;;  %v7158_v53 = vld [vmem:[%s7227_s26 + $0x8] sm:$0xff] }
 0x722   : > { %5975 = vmatprep.subr.bf16.mxu1 %v5974_v19  ;;  %v6572_v1 = vpop.eup %6571  ;;  %v10790_v19 = vld [vmem:[#allocation6_spill] sm:$0xff] }
 0x723   : > { %5977 = vmatpush1.bf16.xpose.msra.mxu1 %v5976_v31  ;;  %v2295_v48 = vmul.f32 %v6572_v1, %v8484_v10  ;;  %v2294_v63 = vmul.f32 %v6572_v1, %v8482_v38  ;;  %v2461_v10 = vadd.f32 %v10786_v33, %v10782_v5  ;;  %v5772_v38 = vld [vmem:[%s7227_s26 + $0x18] sm:$0xff] }
 0x725   : > { %v6574_v60 = vpop.eup %6573 }
 0x726   : > { %v2297_v9 = vmul.f32 %v6574_v60, %v8490_v34  ;;  %v2296_v0 = vmul.f32 %v6574_v60, %v8488_v58  ;;  %v10787_v34 = vmov 0.0   ;;  %v8554_v58 = vcombine.high %v5772_v38, %v5772_v38 }
 0x728   : > { %v5978_v15 = vpack.c.bf16 %v2297_v9, %v2295_v48  ;;  %v5980_v47 = vpack.c.bf16 %v2296_v0, %v2294_v63  ;;  %10788 = vst [vmem:[#allocation7_spill] sm:$0xff] %v8554_v58 }
 0x72a   : > { %5979 = vmatprep.subr.bf16.mxu1 %v5978_v15 }
 0x72b   : > { %5981 = vmatpush1.bf16.xpose.msra.mxu1 %v5980_v47 }
 0x72c   : > { %2631 = vmatprep.subr.mxu1 %v2463_v23 }
 0x732   : > { %2363 = vmatmul.mubr.f32.vlgmr.msra.gmra.mrb[70].mxu1 %v1397_v39 }
 0x733   : > { %2632 = vmatpush1.msra.mxu1 %v2461_v10  ;;  %2695 = vmatprep.mubr.f32.mxu1 %v10787_v34 }
 0x734   : > { %5773 = vmatprep.subr.msk.mxu1 %vm242_vm0, %v8554_v58 }
 0x73a   : > { %v2519_v25 = vpop.trf.xlu0 }
 0x73d   : > { %v2487_v27 = vpop.trf.xlu1 }
 0x73e   : > { %5739 = vmatmul.mubr.msk.f32.vlgmr.msra.gmra.mrb[72].mxu1 %vm394_vm2, %v2487_v27  ;;  %v2520_v18 = vpop.trf.xlu0 }
 0x73f   : > { %2701 = vmatprep.mubr.f32.mxu1 %v10787_v34  ;;  %5774 = vmatpush1.msk.msra.mxu1 %vm242_vm0, %v5772_v38 }
 0x741   : > { %v2488_v26 = vpop.trf.xlu1 }
 0x742   : > { %5740 = vmatmul.mubr.msk.f32.gmra.mrb[74].mxu1 %vm394_vm2, %v2488_v26  ;;  %v2521_v55 = vpop.trf.xlu0 }
 0x743   : > { %2707 = vmatprep.mubr.f32.mxu1 %v10787_v34 }
 0x745   : > { %v2489_v14 = vpop.trf.xlu1 }
 0x746   : > { %5741 = vmatmul.mubr.msk.f32.gmra.mrb[76].mxu1 %vm394_vm2, %v2489_v14  ;;  %v2522_v52 = vpop.trf.xlu0 }
 0x747   : > { %2713 = vmatprep.mubr.f32.mxu1 %v10787_v34 }
 0x749   : > { %v2490_v7 = vpop.trf.xlu1 }
 0x74a   : > { %5742 = vmatmul.mubr.msk.f32.gmra.mrb[78].mxu1 %vm394_vm2, %v2490_v7  ;;  %v2523_v17 = vpop.trf.xlu0 }
 0x74b   : > { %2719 = vmatprep.mubr.f32.mxu1 %v10787_v34 }
 0x74d   : > { %v2491_v12 = vpop.trf.xlu1 }
 0x74e   : > { %5743 = vmatmul.mubr.msk.f32.gmra.mrb[80].mxu1 %vm394_vm2, %v2491_v12  ;;  %v2524_v40 = vpop.trf.xlu0 }
 0x74f   : > { %2725 = vmatprep.mubr.f32.mxu1 %v10787_v34 }
 0x751   : > { %v2492_v62 = vpop.trf.xlu1 }
 0x752   : > { %5744 = vmatmul.mubr.msk.f32.gmra.mrb[82].mxu1 %vm394_vm2, %v2492_v62  ;;  %v2525_v37 = vpop.trf.xlu0 }
 0x753   : > { %2731 = vmatprep.mubr.f32.mxu1 %v10787_v34 }
 0x755   : > { %v2493_v4 = vpop.trf.xlu1 }
 0x756   : > { %5745 = vmatmul.mubr.msk.f32.gmra.mrb[84].mxu1 %vm394_vm2, %v2493_v4  ;;  %v2526_v21 = vpop.trf.xlu0 }
 0x757   : > { %2737 = vmatprep.mubr.f32.mxu1 %v10787_v34 }
 0x759   : > { %v2494_v3 = vpop.trf.xlu1 }
 0x75a   : > { %5746 = vmatmul.mubr.msk.f32.gmra.mrb[86].mxu1 %vm394_vm2, %v2494_v3  ;;  %v2527_v11 = vpop.trf.xlu0 }
 0x75b   : > { %2743 = vmatprep.mubr.f32.mxu1 %v10787_v34 }
 0x75d   : > { %v2495_v43 = vpop.trf.xlu1 }
 0x75e   : > { %5747 = vmatmul.mubr.msk.f32.gmra.mrb[88].mxu1 %vm394_vm2, %v2495_v43  ;;  %v2528_v36 = vpop.trf.xlu0 }
 0x75f   : > { %2749 = vmatprep.mubr.f32.mxu1 %v10787_v34 }
 0x761   : > { %v2496_v16 = vpop.trf.xlu1 }
 0x762   : > { %5748 = vmatmul.mubr.msk.f32.gmra.mrb[90].mxu1 %vm394_vm2, %v2496_v16  ;;  %v2529_v59 = vpop.trf.xlu0 }
 0x763   : > { %2755 = vmatprep.mubr.f32.mxu1 %v10787_v34 }
 0x765   : > { %v2497_v54 = vpop.trf.xlu1 }
 0x766   : > { %5749 = vmatmul.mubr.msk.f32.gmra.mrb[92].mxu1 %vm394_vm2, %v2497_v54  ;;  %v2530_v35 = vpop.trf.xlu0 }
 0x767   : > { %2761 = vmatprep.mubr.f32.mxu1 %v10787_v34 }
 0x769   : > { %v2498_v24 = vpop.trf.xlu1 }
 0x76a   : > { %5750 = vmatmul.mubr.msk.f32.gmra.mrb[94].mxu1 %vm394_vm2, %v2498_v24  ;;  %v2531_v28 = vpop.trf.xlu0 }
 0x76b   : > { %2767 = vmatprep.mubr.f32.mxu1 %v10787_v34 }
 0x76d   : > { %v2499_v56 = vpop.trf.xlu1 }
 0x76e   : > { %5751 = vmatmul.mubr.msk.f32.gmra.mrb[96].mxu1 %vm394_vm2, %v2499_v56  ;;  %v2532_v46 = vpop.trf.xlu0 }
 0x76f   : > { %2773 = vmatprep.mubr.f32.mxu1 %v10787_v34 }
 0x771   : > { %v2500_v13 = vpop.trf.xlu1 }
 0x772   : > { %5752 = vmatmul.mubr.msk.f32.gmra.mrb[98].mxu1 %vm394_vm2, %v2500_v13  ;;  %v2533_v42 = vpop.trf.xlu0 }
 0x773   : > { %2779 = vmatprep.mubr.f32.mxu1 %v10787_v34 }
 0x775   : > { %v2501_v22 = vpop.trf.xlu1 }
 0x776   : > { %5753 = vmatmul.mubr.msk.f32.gmra.mrb[100].mxu1 %vm394_vm2, %v2501_v22  ;;  %v2534_v20 = vpop.trf.xlu0 }
 0x777   : > { %2785 = vmatprep.mubr.f32.mxu1 %v10787_v34 }
 0x779   : > { %v2502_v57 = vpop.trf.xlu1 }
 0x77a   : > { %5754 = vmatmul.mubr.msk.f32.gmra.mrb[102].mxu1 %vm394_vm2, %v2502_v57 }
 0x77b   : > { %2791 = vmatprep.mubr.f32.mxu1 %v10787_v34 }
 0x77e   : > { %5755 = vmatmul.mubr.msk.f32.gmra.mrb[104].mxu1 %vm394_vm2, %v2519_v25 }
 0x77f   : > { %2797 = vmatprep.mubr.f32.mxu1 %v10787_v34 }
 0x782   : > { %5756 = vmatmul.mubr.msk.f32.gmra.mrb[106].mxu1 %vm394_vm2, %v2520_v18 }
 0x783   : > { %2803 = vmatprep.mubr.f32.mxu1 %v10787_v34 }
 0x786   : > { %5757 = vmatmul.mubr.msk.f32.gmra.mrb[108].mxu1 %vm394_vm2, %v2521_v55 }
 0x787   : > { %2809 = vmatprep.mubr.f32.mxu1 %v10787_v34 }
 0x78a   : > { %5758 = vmatmul.mubr.msk.f32.gmra.mrb[110].mxu1 %vm394_vm2, %v2522_v52 }
 0x78b   : > { %2815 = vmatprep.mubr.f32.mxu1 %v10787_v34 }
 0x78e   : > { %5759 = vmatmul.mubr.msk.f32.gmra.mrb[112].mxu1 %vm394_vm2, %v2523_v17 }
 0x78f   : > { %2821 = vmatprep.mubr.f32.mxu1 %v10787_v34 }
 0x792   : > { %5760 = vmatmul.mubr.msk.f32.gmra.mrb[114].mxu1 %vm394_vm2, %v2524_v40 }
 0x793   : > { %2827 = vmatprep.mubr.f32.mxu1 %v10787_v34 }
 0x796   : > { %5761 = vmatmul.mubr.msk.f32.gmra.mrb[116].mxu1 %vm394_vm2, %v2525_v37 }
 0x797   : > { %2833 = vmatprep.mubr.f32.mxu1 %v10787_v34 }
 0x79a   : > { %5762 = vmatmul.mubr.msk.f32.gmra.mrb[118].mxu1 %vm394_vm2, %v2526_v21 }
 0x79b   : > { %2839 = vmatprep.mubr.f32.mxu1 %v10787_v34 }
 0x79e   : > { %5763 = vmatmul.mubr.msk.f32.gmra.mrb[120].mxu1 %vm394_vm2, %v2527_v11 }
 0x79f   : > { %2845 = vmatprep.mubr.f32.mxu1 %v10787_v34 }
 0x7a2   : > { %5764 = vmatmul.mubr.msk.f32.gmra.mrb[122].mxu1 %vm394_vm2, %v2528_v36 }
 0x7a3   : > { %2851 = vmatprep.mubr.f32.mxu1 %v10787_v34 }
 0x7a6   : > { %5765 = vmatmul.mubr.msk.f32.gmra.mrb[124].mxu1 %vm394_vm2, %v2529_v59 }
 0x7a7   : > { %2857 = vmatprep.mubr.f32.mxu1 %v10787_v34 }
 0x7aa   : > { %5766 = vmatmul.mubr.msk.f32.gmra.mrb[126].mxu1 %vm394_vm2, %v2530_v35 }
 0x7ab   : > { %2863 = vmatprep.mubr.f32.mxu1 %v10787_v34 }
 0x7ae   : > { %5767 = vmatmul.mubr.msk.f32.gmra.mrb[128].mxu1 %vm394_vm2, %v2531_v28 }
 0x7af   : > { %2869 = vmatprep.mubr.f32.mxu1 %v10787_v34 }
 0x7b2   : > { %5768 = vmatmul.mubr.msk.f32.gmra.mrb[130].mxu1 %vm394_vm2, %v2532_v46 }
 0x7b3   : > { %2875 = vmatprep.mubr.f32.mxu1 %v10787_v34 }
 0x7b6   : > { %5769 = vmatmul.mubr.msk.f32.gmra.mrb[132].mxu1 %vm394_vm2, %v2533_v42 }
 0x7b7   : > { %2881 = vmatprep.mubr.f32.mxu1 %v10787_v34 }
 0x7ba   : > { %5770 = vmatmul.mubr.msk.f32.gmra.mrb[134].mxu1 %vm394_vm2, %v2534_v20 }
 0x7bb   : > { %3522 = vmatprep.mubr.f32.mxu1 %v10787_v34 }
 0x7be   : > { %5775 = vmatmul.mubr.msk.f32.vlgmr.msra.gmra.mrb[136].mxu1 %vm232_vm1, %v7155_v6 }
 0x7bf   : > { %3528 = vmatprep.mubr.f32.mxu1 %v10787_v34 }
 0x7c2   : > { %5776 = vmatmul.mubr.msk.f32.gmra.mrb[138].mxu1 %vm232_vm1, %v7156_v61 }
 0x7c3   : > { %3534 = vmatprep.mubr.f32.mxu1 %v10787_v34 }
 0x7c6   : > { %5777 = vmatmul.mubr.msk.f32.gmra.mrb[140].mxu1 %vm232_vm1, %v7157_v30 }
 0x805   : > { %v2364_v41 = vpop.f32.mrb[70].mxu1 }
 0x806   : > { %v2369_v51 = vmul.f32 %v2364_v41, %v10789_v32  ;;  %v2366_v50 = vpop.f32.mrb[71].mxu1 }
 0x807   : > { %v2370_v2 = vmul.f32 %v2366_v50, %v10789_v32 }
 0x808   : > { %v2372_v29 = vadd.f32 %v7158_v53, %v2369_v51 }
 0x809   : > { %v2373_v31 = vadd.f32 %v2370_v2, %v10790_v19 }
 0x80b   : > { %v2376_v1 = vcombine.low %v2372_v29, %v2373_v31 }
 0x80d   : > { %5732 = vst [vmem:[%s7992_s3 + $0x8] sm:$0xff] %v2376_v1 }
 0x811   : > { %v8642_v60 = vpop.f32.mrb[72].mxu1 }
 0x812   : > { %v8644_v48 = vpop.f32.mrb[73].mxu1 }
 0x813   : > { %v2888_v9 = vmax.f32 %v8642_v60, %v8644_v48 }
 0x815   : > { %2889 = vmax.xlane.f32.xlu0 %v2888_v9  ;;  %v8648_v63 = vpop.f32.mrb[74].mxu1 }
 0x816   : > { %v8650_v0 = vpop.f32.mrb[75].mxu1 }
 0x817   : > { %v2891_v15 = vmax.f32 %v8648_v63, %v8650_v0 }
 0x819   : > { %2892 = vmax.xlane.f32.xlu1 %v2891_v15  ;;  %v8654_v47 = vpop.f32.mrb[76].mxu1 }
 0x81a   : > { %v8656_v49 = vpop.f32.mrb[77].mxu1 }
 0x81b   : > { %v2894_v23 = vmax.f32 %v8654_v47, %v8656_v49 }
 0x81d   : > { %2895 = vmax.xlane.f32.xlu1 %v2894_v23  ;;  %v8660_v45 = vpop.f32.mrb[78].mxu1 }
 0x81e   : > { %v8662_v39 = vpop.f32.mrb[79].mxu1 }
 0x81f   : > { %v2897_v33 = vmax.f32 %v8660_v45, %v8662_v39 }
 0x821   : > { %2898 = vmax.xlane.f32.xlu0 %v2897_v33  ;;  %v8666_v10 = vpop.f32.mrb[80].mxu1 }
 0x822   : > { %v8668_v38 = vpop.f32.mrb[81].mxu1 }
 0x823   : > { %v2900_v27 = vmax.f32 %v8666_v10, %v8668_v38 }
 0x825   : > { %2901 = vmax.xlane.f32.xlu1 %v2900_v27  ;;  %v8672_v26 = vpop.f32.mrb[82].mxu1 }
 0x826   : > { %v8674_v14 = vpop.f32.mrb[83].mxu1 }
 0x827   : > { %v2903_v7 = vmax.f32 %v8672_v26, %v8674_v14 }
 0x829   : > { %2904 = vmax.xlane.f32.xlu0 %v2903_v7  ;;  %v8678_v12 = vpop.f32.mrb[84].mxu1 }
 0x82a   : > { %v8680_v62 = vpop.f32.mrb[85].mxu1 }
 0x82b   : > { %v2906_v4 = vmax.f32 %v8678_v12, %v8680_v62 }
 0x82d   : > { %2907 = vmax.xlane.f32.xlu1 %v2906_v4  ;;  %v8684_v3 = vpop.f32.mrb[86].mxu1 }
 0x82e   : > { %v8686_v43 = vpop.f32.mrb[87].mxu1 }
 0x82f   : > { %v2909_v25 = vmax.f32 %v8684_v3, %v8686_v43 }
 0x831   : > { %2910 = vmax.xlane.f32.xlu0 %v2909_v25  ;;  %v8690_v16 = vpop.f32.mrb[88].mxu1 }
 0x832   : > { %v8692_v18 = vpop.f32.mrb[89].mxu1 }
 0x833   : > { %v2912_v54 = vmax.f32 %v8690_v16, %v8692_v18 }
 0x835   : > { %2913 = vmax.xlane.f32.xlu1 %v2912_v54  ;;  %v8696_v24 = vpop.f32.mrb[90].mxu1 }
 0x836   : > { %v8698_v55 = vpop.f32.mrb[91].mxu1 }
 0x837   : > { %v2915_v56 = vmax.f32 %v8696_v24, %v8698_v55 }
 0x839   : > { %2916 = vmax.xlane.f32.xlu0 %v2915_v56  ;;  %v8702_v52 = vpop.f32.mrb[92].mxu1 }
 0x83a   : > { %v8704_v13 = vpop.f32.mrb[93].mxu1 }
 0x83b   : > { %v2918_v22 = vmax.f32 %v8702_v52, %v8704_v13 }
 0x83d   : > { %2919 = vmax.xlane.f32.xlu1 %v2918_v22  ;;  %v8708_v17 = vpop.f32.mrb[94].mxu1 }
 0x83e   : > { %v8710_v57 = vpop.f32.mrb[95].mxu1 }
 0x83f   : > { %v2921_v40 = vmax.f32 %v8708_v17, %v8710_v57 }
 0x841   : > { %2922 = vmax.xlane.f32.xlu0 %v2921_v40  ;;  %v8714_v37 = vpop.f32.mrb[96].mxu1 }
 0x842   : > { %v8716_v21 = vpop.f32.mrb[97].mxu1 }
 0x843   : > { %v2924_v11 = vmax.f32 %v8714_v37, %v8716_v21 }
 0x845   : > { %2925 = vmax.xlane.f32.xlu1 %v2924_v11  ;;  %v8720_v36 = vpop.f32.mrb[98].mxu1 }
 0x846   : > { %v8722_v59 = vpop.f32.mrb[99].mxu1 }
 0x847   : > { %v2927_v35 = vmax.f32 %v8720_v36, %v8722_v59 }
 0x849   : > { %2928 = vmax.xlane.f32.xlu0 %v2927_v35  ;;  %v8726_v28 = vpop.f32.mrb[100].mxu1 }
 0x84a   : > { %v8728_v46 = vpop.f32.mrb[101].mxu1 }
 0x84b   : > { %v2930_v42 = vmax.f32 %v8726_v28, %v8728_v46 }
 0x84d   : > { %2931 = vmax.xlane.f32.xlu1 %v2930_v42  ;;  %v8732_v20 = vpop.f32.mrb[102].mxu1 }
 0x84e   : > { %v8734_v6 = vpop.f32.mrb[103].mxu1 }
 0x84f   : > { %v2933_v61 = vmax.f32 %v8732_v20, %v8734_v6 }
 0x851   : > { %2934 = vmax.xlane.f32.xlu0 %v2933_v61  ;;  %v8738_v30 = vpop.f32.mrb[104].mxu1 }
 0x852   : > { %v8740_v41 = vpop.f32.mrb[105].mxu1 }
 0x853   : > { %v2936_v51 = vmax.f32 %v8738_v30, %v8740_v41 }
 0x855   : > { %2937 = vmax.xlane.f32.xlu1 %v2936_v51  ;;  %v8744_v50 = vpop.f32.mrb[106].mxu1 }
 0x856   : > { %10791 = vst [vmem:[#allocation9_spill] sm:$0xff] %v8744_v50  ;;  %v8746_v2 = vpop.f32.mrb[107].mxu1 }
 0x857   : > { %10792 = vst [vmem:[#allocation12_spill] sm:$0xff] %v8746_v2  ;;  %v2939_v53 = vmax.f32 %v8744_v50, %v8746_v2 }
 0x859   : > { %2940 = vmax.xlane.f32.xlu0 %v2939_v53  ;;  %v8750_v29 = vpop.f32.mrb[108].mxu1 }
 0x85a   : > { %10793 = vst [vmem:[#allocation15_spill] sm:$0xff] %v8750_v29  ;;  %v8752_v19 = vpop.f32.mrb[109].mxu1 }
 0x85b   : > { %10794 = vst [vmem:[#allocation11_spill] sm:$0xff] %v8752_v19  ;;  %v2942_v31 = vmax.f32 %v8750_v29, %v8752_v19 }
 0x85d   : > { %2943 = vmax.xlane.f32.xlu1 %v2942_v31  ;;  %v8756_v1 = vpop.f32.mrb[110].mxu1 }
 0x85e   : > { %10795 = vst [vmem:[#allocation20_spill] sm:$0xff] %v8756_v1  ;;  %v8758_v9 = vpop.f32.mrb[111].mxu1 }
 0x85f   : > { %10796 = vst [vmem:[#allocation21_spill] sm:$0xff] %v8758_v9  ;;  %v2945_v15 = vmax.f32 %v8756_v1, %v8758_v9 }
 0x861   : > { %2946 = vmax.xlane.f32.xlu0 %v2945_v15  ;;  %v8762_v23 = vpop.f32.mrb[112].mxu1 }
 0x862   : > { %10797 = vst [vmem:[#allocation22_spill] sm:$0xff] %v8762_v23  ;;  %v8764_v33 = vpop.f32.mrb[113].mxu1 }
 0x863   : > { %10798 = vst [vmem:[#allocation13_spill] sm:$0xff] %v8764_v33  ;;  %v2948_v27 = vmax.f32 %v8762_v23, %v8764_v33 }
 0x865   : > { %2949 = vmax.xlane.f32.xlu1 %v2948_v27  ;;  %v8768_v7 = vpop.f32.mrb[114].mxu1 }
 0x866   : > { %10799 = vst [vmem:[#allocation23_spill] sm:$0xff] %v8768_v7  ;;  %v8770_v4 = vpop.f32.mrb[115].mxu1 }
 0x867   : > { %10800 = vst [vmem:[#allocation17_spill] sm:$0xff] %v8770_v4  ;;  %v2951_v25 = vmax.f32 %v8768_v7, %v8770_v4 }
 0x869   : > { %2952 = vmax.xlane.f32.xlu0 %v2951_v25  ;;  %v8774_v54 = vpop.f32.mrb[116].mxu1 }
 0x86a   : > { %10801 = vst [vmem:[#allocation14_spill] sm:$0xff] %v8774_v54  ;;  %v8776_v56 = vpop.f32.mrb[117].mxu1 }
 0x86b   : > { %10802 = vst [vmem:[#allocation16_spill] sm:$0xff] %v8776_v56  ;;  %v2954_v22 = vmax.f32 %v8774_v54, %v8776_v56 }
 0x86d   : > { %2955 = vmax.xlane.f32.xlu1 %v2954_v22  ;;  %v8780_v40 = vpop.f32.mrb[118].mxu1 }
 0x86e   : > { %10803 = vst [vmem:[#allocation24_spill] sm:$0xff] %v8780_v40  ;;  %v8782_v11 = vpop.f32.mrb[119].mxu1 }
 0x86f   : > { %10804 = vst [vmem:[#allocation25_spill] sm:$0xff] %v8782_v11  ;;  %v2957_v35 = vmax.f32 %v8780_v40, %v8782_v11 }
 0x871   : > { %2958 = vmax.xlane.f32.xlu0 %v2957_v35  ;;  %v8786_v42 = vpop.f32.mrb[120].mxu1 }
 0x872   : > { %v8788_v61 = vpop.f32.mrb[121].mxu1 }
 0x875   : > { %v8792_v53 = vpop.f32.mrb[122].mxu1 }
 0x876   : > { %v8794_v31 = vpop.f32.mrb[123].mxu1 }
 0x879   : > { %v8798_v27 = vpop.f32.mrb[124].mxu1 }
 0x87a   : > { %v8800_v25 = vpop.f32.mrb[125].mxu1 }
 0x87d   : > { %v8804_v35 = vpop.f32.mrb[126].mxu1 }
 0x87e   : > { %v8806_v58 = vpop.f32.mrb[127].mxu1 }
 0x881   : > { %v8810_v32 = vpop.f32.mrb[128].mxu1 }
 0x882   : > { %v8812_v34 = vpop.f32.mrb[129].mxu1 }
 0x885   : > { %v8816_v5 = vpop.f32.mrb[130].mxu1 }
 0x886   : > { %v8818_v44 = vpop.f32.mrb[131].mxu1 }
 0x889   : > { %v8822_v11 = vpop.f32.mrb[132].mxu1 }
 0x88a   : > { %v8824_v40 = vpop.f32.mrb[133].mxu1 }
 0x88d   : > { %v8828_v56 = vpop.f32.mrb[134].mxu1 }
 0x88e   : > { %v8830_v54 = vpop.f32.mrb[135].mxu1 }
 0x891   : > { %v8834_v4 = vpop.f32.mrb[136].mxu1 }
 0x892   : > { %10805 = vst [vmem:[#allocation18_spill] sm:$0xff] %v8834_v4  ;;  %v8836_v7 = vpop.f32.mrb[137].mxu1 }
 0x893   : > { %10806 = vst [vmem:[#allocation27_spill] sm:$0xff] %v8836_v7 }
 0x895   : > { %v8838_v33 = vpop.f32.mrb[138].mxu1 }
 0x896   : > { %10807 = vst [vmem:[#allocation26_spill] sm:$0xff] %v8838_v33  ;;  %v8840_v22 = vpop.f32.mrb[139].mxu1 }
 0x897   : > { %10808 = vst [vmem:[#allocation3_spill] sm:$0xff] %v8840_v22 }
 0x899   : > { %v8842_v23 = vpop.f32.mrb[140].mxu1 }
 0x89a   : > { %10809 = vst [vmem:[#allocation6_spill] sm:$0xff] %v8842_v23  ;;  %v3538_v9 = vpop.f32.mrb[141].mxu1 }
 0x89b   : > { %v3539_v51 = vadd.f32 %v3538_v9, %v10784_v8 }
 0x89d   : > { %4502 = vmatprep.mubr.f32.mxu1 %v3539_v51 }
 0x8a2   : > { %v2890_v1 = vpop.xlane.xlu0 %2889 }
 0x8a3   : > { %v2984_v19 = vsub.f32 %v8642_v60, %v2890_v1  ;;  %v2985_v29 = vsub.f32 %v8644_v48, %v2890_v1 }
 0x8a5   : > { %v3048_v15 = vmul.f32 1.442695, %v2984_v19  ;;  %v3050_v2 = vmul.f32 1.442695, %v2985_v29 }
 0x8a6   : > { %v2893_v4 = vpop.xlane.xlu1 %2892 }
 0x8a7   : > { %6575 = vpow2.f32 %v3048_v15  ;;  %v2986_v7 = vsub.f32 %v8648_v63, %v2893_v4  ;;  %v2987_v33 = vsub.f32 %v8650_v0, %v2893_v4 }
 0x8a8   : > { %6577 = vpow2.f32 %v3050_v2 }
 0x8a9   : > { %v3052_v22 = vmul.f32 1.442695, %v2986_v7  ;;  %v3054_v23 = vmul.f32 1.442695, %v2987_v33 }
 0x8aa   : > { %v2896_v50 = vpop.xlane.xlu1 %2895 }
 0x8ab   : > { %6579 = vpow2.f32 %v3052_v22  ;;  %v2988_v9 = vsub.f32 %v8654_v47, %v2896_v50  ;;  %v2989_v51 = vsub.f32 %v8656_v49, %v2896_v50 }
 0x8ac   : > { %6581 = vpow2.f32 %v3054_v23 }
 0x8ad   : > { %v3056_v60 = vmul.f32 1.442695, %v2988_v9  ;;  %v3058_v48 = vmul.f32 1.442695, %v2989_v51 }
 0x8ae   : > { %v2899_v19 = vpop.xlane.xlu0 %2898 }
 0x8af   : > { %6583 = vpow2.f32 %v3056_v60  ;;  %v2990_v29 = vsub.f32 %v8660_v45, %v2899_v19  ;;  %v2991_v63 = vsub.f32 %v8662_v39, %v2899_v19 }
 0x8b0   : > { %6585 = vpow2.f32 %v3058_v48  ;;  %v10810_v48 = vmax.f32 %v8786_v42, %v8788_v61 }
 0x8b1   : > { %v8853_v0 = vpop.eup %6575  ;;  %v3060_v2 = vmul.f32 1.442695, %v2990_v29  ;;  %v3062_v1 = vmul.f32 1.442695, %v2991_v63 }
 0x8b2   : > { %v8855_v33 = vpop.eup %6577  ;;  %v2902_v7 = vpop.xlane.xlu1 %2901 }
 0x8b3   : > { %6587 = vpow2.f32 %v3060_v2  ;;  %v2992_v47 = vsub.f32 %v8666_v10, %v2902_v7  ;;  %v2993_v49 = vsub.f32 %v8668_v38, %v2902_v7  ;;  %v3176_v50 = vadd.f32 %v8855_v33, %v8853_v0 }
 0x8b4   : > { %6589 = vpow2.f32 %v3062_v1 }
 0x8b5   : > { %v8861_v45 = vpop.eup %6579  ;;  %v3064_v39 = vmul.f32 1.442695, %v2992_v47  ;;  %v3066_v23 = vmul.f32 1.442695, %v2993_v49  ;;  %3177 = vadd.xlane.f32.xlu1 %v3176_v50  ;;  %v10811_v47 = vmax.f32 %v8792_v53, %v8794_v31 }
 0x8b6   : > { %v8863_v4 = vpop.eup %6581  ;;  %v2905_v15 = vpop.xlane.xlu0 %2904 }
 0x8b7   : > { %6591 = vpow2.f32 %v3064_v39  ;;  %v2994_v22 = vsub.f32 %v8672_v26, %v2905_v15  ;;  %v2995_v9 = vsub.f32 %v8674_v14, %v2905_v15  ;;  %v3179_v10 = vadd.f32 %v8863_v4, %v8861_v45 }
 0x8b8   : > { %6593 = vpow2.f32 %v3066_v23 }
 0x8b9   : > { %v8869_v38 = vpop.eup %6583  ;;  %v3068_v51 = vmul.f32 1.442695, %v2994_v22  ;;  %v3070_v60 = vmul.f32 1.442695, %v2995_v9  ;;  %2961 = vmax.xlane.f32.xlu1 %v10810_v48  ;;  %3180 = vadd.xlane.f32.xlu0 %v3179_v10  ;;  %v10812_v9 = vmax.f32 %v8798_v27, %v8800_v25 }
 0x8ba   : > { %v8874_v19 = vpop.eup %6585  ;;  %v2908_v29 = vpop.xlane.xlu1 %2907 }
 0x8bb   : > { %6595 = vpow2.f32 %v3068_v51  ;;  %v2996_v26 = vsub.f32 %v8678_v12, %v2908_v29  ;;  %v2997_v14 = vsub.f32 %v8680_v62, %v2908_v29  ;;  %v3182_v63 = vadd.f32 %v8874_v19, %v8869_v38 }
 0x8bc   : > { %6597 = vpow2.f32 %v3070_v60 }
 0x8bd   : > { %v8880_v2 = vpop.eup %6587  ;;  %v3072_v1 = vmul.f32 1.442695, %v2996_v26  ;;  %v3074_v7 = vmul.f32 1.442695, %v2997_v14  ;;  %2964 = vmax.xlane.f32.xlu0 %v10811_v47  ;;  %3183 = vadd.xlane.f32.xlu1 %v3182_v63  ;;  %v10813_v14 = vmax.f32 %v8804_v35, %v8806_v58 }
 0x8be   : > { %v8885_v49 = vpop.eup %6589  ;;  %v2911_v50 = vpop.xlane.xlu0 %2910 }
 0x8bf   : > { %6599 = vpow2.f32 %v3072_v1  ;;  %v2998_v12 = vsub.f32 %v8684_v3, %v2911_v50  ;;  %v2999_v62 = vsub.f32 %v8686_v43, %v2911_v50  ;;  %v3185_v39 = vadd.f32 %v8885_v49, %v8880_v2 }
 0x8c0   : > { %6601 = vpow2.f32 %v3074_v7 }
 0x8c1   : > { %v8891_v23 = vpop.eup %6591  ;;  %v3076_v15 = vmul.f32 1.442695, %v2998_v12  ;;  %v3078_v22 = vmul.f32 1.442695, %v2999_v62  ;;  %3186 = vadd.xlane.f32.xlu0 %v3185_v39  ;;  %2967 = vmax.xlane.f32.xlu1 %v10812_v9  ;;  %v10814_v62 = vmax.f32 %v8810_v32, %v8812_v34 }
 0x8c2   : > { %v8896_v10 = vpop.eup %6593  ;;  %v2914_v51 = vpop.xlane.xlu1 %2913 }
 0x8c3   : > { %6603 = vpow2.f32 %v3076_v15  ;;  %v3000_v3 = vsub.f32 %v8690_v16, %v2914_v51  ;;  %v3001_v43 = vsub.f32 %v8692_v18, %v2914_v51  ;;  %v3188_v60 = vadd.f32 %v8896_v10, %v8891_v23 }
 0x8c4   : > { %6605 = vpow2.f32 %v3078_v22 }
 0x8c5   : > { %v8902_v48 = vpop.eup %6595  ;;  %v3080_v29 = vmul.f32 1.442695, %v3000_v3  ;;  %v3082_v26 = vmul.f32 1.442695, %v3001_v43  ;;  %2970 = vmax.xlane.f32.xlu0 %v10813_v14  ;;  %3189 = vadd.xlane.f32.xlu1 %v3188_v60  ;;  %v10815_v43 = vmax.f32 %v8816_v5, %v8818_v44 }
 0x8c6   : > { %v8907_v63 = vpop.eup %6597  ;;  %v2917_v1 = vpop.xlane.xlu0 %2916 }
 0x8c7   : > { %6607 = vpow2.f32 %v3080_v29  ;;  %v3002_v16 = vsub.f32 %v8696_v24, %v2917_v1  ;;  %v3003_v18 = vsub.f32 %v8698_v55, %v2917_v1  ;;  %v3191_v7 = vadd.f32 %v8907_v63, %v8902_v48 }
 0x8c8   : > { %6609 = vpow2.f32 %v3082_v26 }
 0x8c9   : > { %v8913_v47 = vpop.eup %6599  ;;  %v3084_v50 = vmul.f32 1.442695, %v3002_v16  ;;  %v3086_v12 = vmul.f32 1.442695, %v3003_v18  ;;  %3192 = vadd.xlane.f32.xlu0 %v3191_v7  ;;  %2973 = vmax.xlane.f32.xlu1 %v10814_v62  ;;  %v10816_v18 = vmax.f32 %v8822_v11, %v8824_v40 }
 0x8ca   : > { %v8918_v39 = vpop.eup %6601  ;;  %v2920_v15 = vpop.xlane.xlu1 %2919 }
 0x8cb   : > { %6611 = vpow2.f32 %v3084_v50  ;;  %v3004_v24 = vsub.f32 %v8702_v52, %v2920_v15  ;;  %v3005_v55 = vsub.f32 %v8704_v13, %v2920_v15  ;;  %v3194_v22 = vadd.f32 %v8918_v39, %v8913_v47 }
 0x8cc   : > { %6613 = vpow2.f32 %v3086_v12 }
 0x8cd   : > { %v8924_v9 = vpop.eup %6603  ;;  %v3088_v51 = vmul.f32 1.442695, %v3004_v24  ;;  %v3090_v3 = vmul.f32 1.442695, %v3005_v55  ;;  %2976 = vmax.xlane.f32.xlu0 %v10815_v43  ;;  %3195 = vadd.xlane.f32.xlu1 %v3194_v22  ;;  %v10817_v55 = vmax.f32 %v8828_v56, %v8830_v54 }
 0x8ce   : > { %v8929_v60 = vpop.eup %6605  ;;  %v2923_v29 = vpop.xlane.xlu0 %2922 }
 0x8cf   : > { %6615 = vpow2.f32 %v3088_v51  ;;  %v3006_v52 = vsub.f32 %v8708_v17, %v2923_v29  ;;  %v3007_v13 = vsub.f32 %v8710_v57, %v2923_v29  ;;  %v3197_v26 = vadd.f32 %v8929_v60, %v8924_v9 }
 0x8d0   : > { %6617 = vpow2.f32 %v3090_v3 }
 0x8d1   : > { %v8935_v14 = vpop.eup %6607  ;;  %v3092_v1 = vmul.f32 1.442695, %v3006_v52  ;;  %v3094_v16 = vmul.f32 1.442695, %v3007_v13  ;;  %3198 = vadd.xlane.f32.xlu0 %v3197_v26  ;;  %2979 = vmax.xlane.f32.xlu1 %v10816_v18 }
 0x8d2   : > { %v8940_v7 = vpop.eup %6609  ;;  %v2926_v50 = vpop.xlane.xlu1 %2925 }
 0x8d3   : > { %6619 = vpow2.f32 %v3092_v1  ;;  %v3008_v17 = vsub.f32 %v8714_v37, %v2926_v50  ;;  %v3009_v57 = vsub.f32 %v8716_v21, %v2926_v50  ;;  %v3200_v12 = vadd.f32 %v8940_v7, %v8935_v14 }
 0x8d4   : > { %6621 = vpow2.f32 %v3094_v16 }
 0x8d5   : > { %v8946_v62 = vpop.eup %6611  ;;  %v3096_v15 = vmul.f32 1.442695, %v3008_v17  ;;  %v3098_v24 = vmul.f32 1.442695, %v3009_v57  ;;  %2982 = vmax.xlane.f32.xlu0 %v10817_v55  ;;  %3201 = vadd.xlane.f32.xlu1 %v3200_v12 }
 0x8d6   : > { %v8951_v22 = vpop.eup %6613  ;;  %v2929_v51 = vpop.xlane.xlu0 %2928 }
 0x8d7   : > { %6623 = vpow2.f32 %v3096_v15  ;;  %v3010_v37 = vsub.f32 %v8720_v36, %v2929_v51  ;;  %v3011_v21 = vsub.f32 %v8722_v59, %v2929_v51  ;;  %v3203_v3 = vadd.f32 %v8951_v22, %v8946_v62 }
 0x8d8   : > { %6625 = vpow2.f32 %v3098_v24 }
 0x8d9   : > { %v8957_v43 = vpop.eup %6615  ;;  %v3100_v29 = vmul.f32 1.442695, %v3010_v37  ;;  %v3102_v52 = vmul.f32 1.442695, %v3011_v21  ;;  %3204 = vadd.xlane.f32.xlu0 %v3203_v3 }
 0x8da   : > { %v8959_v13 = vpop.eup %6617  ;;  %v2932_v26 = vpop.xlane.xlu1 %2931 }
 0x8db   : > { %6627 = vpow2.f32 %v3100_v29  ;;  %v3012_v1 = vsub.f32 %v8726_v28, %v2932_v26  ;;  %v3013_v16 = vsub.f32 %v8728_v46, %v2932_v26  ;;  %v3206_v36 = vadd.f32 %v8959_v13, %v8957_v43 }
 0x8dc   : > { %6629 = vpow2.f32 %v3102_v52 }
 0x8dd   : > { %v8965_v59 = vpop.eup %6619  ;;  %v3104_v18 = vmul.f32 1.442695, %v3012_v1  ;;  %v3106_v50 = vmul.f32 1.442695, %v3013_v16  ;;  %3207 = vadd.xlane.f32.xlu1 %v3206_v36  ;;  %v10818_v16 = vld [vmem:[#allocation9_spill] sm:$0xff] }
 0x8de   : > { %v8967_v17 = vpop.eup %6621  ;;  %v2935_v57 = vpop.xlane.xlu0 %2934 }
 0x8df   : > { %6631 = vpow2.f32 %v3104_v18  ;;  %v3014_v12 = vsub.f32 %v8732_v20, %v2935_v57  ;;  %v3015_v15 = vsub.f32 %v8734_v6, %v2935_v57  ;;  %v3209_v28 = vadd.f32 %v8967_v17, %v8965_v59  ;;  %v10819_v18 = vld [vmem:[#allocation12_spill] sm:$0xff] }
 0x8e0   : > { %6633 = vpow2.f32 %v3106_v50 }
 0x8e1   : > { %v8973_v46 = vpop.eup %6623  ;;  %v3108_v24 = vmul.f32 1.442695, %v3014_v12  ;;  %v3110_v55 = vmul.f32 1.442695, %v3015_v15  ;;  %3210 = vadd.xlane.f32.xlu0 %v3209_v28 }
 0x8e2   : > { %v8975_v51 = vpop.eup %6625  ;;  %v2938_v37 = vpop.xlane.xlu1 %2937 }
 0x8e3   : > { %6635 = vpow2.f32 %v3108_v24  ;;  %v3016_v21 = vsub.f32 %v8738_v30, %v2938_v37  ;;  %v3017_v3 = vsub.f32 %v8740_v41, %v2938_v37  ;;  %v3212_v20 = vadd.f32 %v8975_v51, %v8973_v46  ;;  %v10821_v24 = vld [vmem:[#allocation15_spill] sm:$0xff] }
 0x8e4   : > { %6637 = vpow2.f32 %v3110_v55  ;;  %v10822_v37 = vld [vmem:[#allocation11_spill] sm:$0xff] }
 0x8e5   : > { %v8981_v6 = vpop.eup %6627  ;;  %v3112_v29 = vmul.f32 1.442695, %v3016_v21  ;;  %v3114_v52 = vmul.f32 1.442695, %v3017_v3  ;;  %3213 = vadd.xlane.f32.xlu1 %v3212_v20 }
 0x8e6   : > { %v8983_v26 = vpop.eup %6629  ;;  %v2941_v1 = vpop.xlane.xlu0 %2940 }
 0x8e7   : > { %6639 = vpow2.f32 %v3112_v29  ;;  %v3018_v36 = vsub.f32 %v10818_v16, %v2941_v1  ;;  %v3019_v50 = vsub.f32 %v10819_v18, %v2941_v1  ;;  %v3215_v30 = vadd.f32 %v8983_v26, %v8981_v6 }
 0x8e8   : > { %6641 = vpow2.f32 %v3114_v52 }
 0x8e9   : > { %v8989_v41 = vpop.eup %6631  ;;  %v3116_v57 = vmul.f32 1.442695, %v3018_v36  ;;  %v3118_v12 = vmul.f32 1.442695, %v3019_v50  ;;  %3216 = vadd.xlane.f32.xlu0 %v3215_v30  ;;  %v10824_v36 = vld [vmem:[#allocation20_spill] sm:$0xff]  ;;  %v10825_v50 = vld [vmem:[#allocation21_spill] sm:$0xff] }
 0x8ea   : > { %10820 = vst [vmem:[#allocation9_spill] sm:$0xff] %v8989_v41  ;;  %v8991_v15 = vpop.eup %6633  ;;  %v2944_v28 = vpop.xlane.xlu1 %2943 }
 0x8eb   : > { %6643 = vpow2.f32 %v3116_v57  ;;  %v3020_v55 = vsub.f32 %v10821_v24, %v2944_v28  ;;  %v3021_v21 = vsub.f32 %v10822_v37, %v2944_v28  ;;  %v3218_v3 = vadd.f32 %v8991_v15, %v8989_v41 }
 0x8ec   : > { %6645 = vpow2.f32 %v3118_v12 }
 0x8ed   : > { %v8997_v20 = vpop.eup %6635  ;;  %v3120_v29 = vmul.f32 1.442695, %v3020_v55  ;;  %v3122_v52 = vmul.f32 1.442695, %v3021_v21  ;;  %3219 = vadd.xlane.f32.xlu1 %v3218_v3  ;;  %v10828_v21 = vld [vmem:[#allocation22_spill] sm:$0xff] }
 0x8ee   : > { %10823 = vst [vmem:[#allocation12_spill] sm:$0xff] %v8997_v20  ;;  %v8999_v1 = vpop.eup %6637  ;;  %v2947_v16 = vpop.xlane.xlu0 %2946 }
 0x8ef   : > { %6647 = vpow2.f32 %v3120_v29  ;;  %v3022_v18 = vsub.f32 %v10824_v36, %v2947_v16  ;;  %v3023_v30 = vsub.f32 %v10825_v50, %v2947_v16  ;;  %v3221_v57 = vadd.f32 %v8999_v1, %v8997_v20  ;;  %v10829_v29 = vld [vmem:[#allocation13_spill] sm:$0xff] }
 0x8f0   : > { %6649 = vpow2.f32 %v3122_v52 }
 0x8f1   : > { %v9005_v28 = vpop.eup %6639  ;;  %v3124_v12 = vmul.f32 1.442695, %v3022_v18  ;;  %v3126_v24 = vmul.f32 1.442695, %v3023_v30  ;;  %3222 = vadd.xlane.f32.xlu0 %v3221_v57  ;;  %v10832_v57 = vld [vmem:[#allocation23_spill] sm:$0xff] }
 0x8f2   : > { %10826 = vst [vmem:[#allocation15_spill] sm:$0xff] %v9005_v28  ;;  %v9007_v55 = vpop.eup %6641  ;;  %v2950_v37 = vpop.xlane.xlu1 %2949 }
 0x8f3   : > { %10827 = vst [vmem:[#allocation11_spill] sm:$0xff] %v9007_v55  ;;  %6651 = vpow2.f32 %v3124_v12  ;;  %v3024_v3 = vsub.f32 %v10828_v21, %v2950_v37  ;;  %v3025_v8 = vsub.f32 %v10829_v29, %v2950_v37  ;;  %v3224_v16 = vadd.f32 %v9007_v55, %v9005_v28  ;;  %v10833_v12 = vld [vmem:[#allocation17_spill] sm:$0xff] }
 0x8f4   : > { %6653 = vpow2.f32 %v3126_v24 }
 0x8f5   : > { %v9013_v36 = vpop.eup %6643  ;;  %v3128_v52 = vmul.f32 1.442695, %v3024_v3  ;;  %v3130_v50 = vmul.f32 1.442695, %v3025_v8  ;;  %3225 = vadd.xlane.f32.xlu1 %v3224_v16  ;;  %v10834_v16 = vld [vmem:[#allocation14_spill] sm:$0xff] }
 0x8f6   : > { %10830 = vst [vmem:[#allocation20_spill] sm:$0xff] %v9013_v36  ;;  %v9015_v18 = vpop.eup %6645  ;;  %v2953_v30 = vpop.xlane.xlu0 %2952 }
 0x8f7   : > { %10831 = vst [vmem:[#allocation21_spill] sm:$0xff] %v9015_v18  ;;  %6655 = vpow2.f32 %v3128_v52  ;;  %v3026_v41 = vsub.f32 %v10832_v57, %v2953_v30  ;;  %v3027_v20 = vsub.f32 %v10833_v12, %v2953_v30  ;;  %v3227_v37 = vadd.f32 %v9015_v18, %v9013_v36  ;;  %v10835_v52 = vld [vmem:[#allocation16_spill] sm:$0xff] }
 0x8f8   : > { %6657 = vpow2.f32 %v3130_v50 }
 0x8f9   : > { %v9021_v21 = vpop.eup %6647  ;;  %v3132_v24 = vmul.f32 1.442695, %v3026_v41  ;;  %v3134_v29 = vmul.f32 1.442695, %v3027_v20  ;;  %3228 = vadd.xlane.f32.xlu0 %v3227_v37  ;;  %v10836_v37 = vld [vmem:[#allocation24_spill] sm:$0xff] }
 0x8fa   : > { %v9023_v3 = vpop.eup %6649  ;;  %v2956_v8 = vpop.xlane.xlu1 %2955 }
 0x8fb   : > { %6659 = vpow2.f32 %v3132_v24  ;;  %v3028_v28 = vsub.f32 %v10834_v16, %v2956_v8  ;;  %v3029_v55 = vsub.f32 %v10835_v52, %v2956_v8  ;;  %v3230_v30 = vadd.f32 %v9023_v3, %v9021_v21  ;;  %v10837_v24 = vld [vmem:[#allocation25_spill] sm:$0xff] }
 0x8fc   : > { %6661 = vpow2.f32 %v3134_v29 }
 0x8fd   : > { %v9029_v57 = vpop.eup %6651  ;;  %v3136_v50 = vmul.f32 1.442695, %v3028_v28  ;;  %v3138_v12 = vmul.f32 1.442695, %v3029_v55  ;;  %3231 = vadd.xlane.f32.xlu1 %v3230_v30 }
 0x8fe   : > { %v9031_v41 = vpop.eup %6653  ;;  %v2959_v20 = vpop.xlane.xlu0 %2958 }
 0x8ff   : > { %6663 = vpow2.f32 %v3136_v50  ;;  %v3030_v36 = vsub.f32 %v10836_v37, %v2959_v20  ;;  %v3031_v18 = vsub.f32 %v10837_v24, %v2959_v20  ;;  %v3233_v8 = vadd.f32 %v9031_v41, %v9029_v57 }
 0x900   : > { %6665 = vpow2.f32 %v3138_v12 }
 0x901   : > { %v9037_v16 = vpop.eup %6655  ;;  %v3140_v29 = vmul.f32 1.442695, %v3030_v36  ;;  %v3142_v52 = vmul.f32 1.442695, %v3031_v18  ;;  %3234 = vadd.xlane.f32.xlu0 %v3233_v8 }
 0x902   : > { %10838 = vst [vmem:[#allocation22_spill] sm:$0xff] %v9037_v16  ;;  %v9039_v28 = vpop.eup %6657 }
 0x903   : > { %10839 = vst [vmem:[#allocation13_spill] sm:$0xff] %v9039_v28  ;;  %6667 = vpow2.f32 %v3140_v29  ;;  %v3236_v55 = vadd.f32 %v9039_v28, %v9037_v16 }
 0x904   : > { %6669 = vpow2.f32 %v3142_v52 }
 0x905   : > { %v9043_v30 = vpop.eup %6659  ;;  %3237 = vadd.xlane.f32.xlu1 %v3236_v55 }
 0x906   : > { %10840 = vst [vmem:[#allocation23_spill] sm:$0xff] %v9043_v30  ;;  %v9045_v50 = vpop.eup %6661 }
 0x907   : > { %10841 = vst [vmem:[#allocation17_spill] sm:$0xff] %v9045_v50  ;;  %v3239_v12 = vadd.f32 %v9045_v50, %v9043_v30 }
 0x909   : > { %v9049_v20 = vpop.eup %6663  ;;  %3240 = vadd.xlane.f32.xlu0 %v3239_v12 }
 0x90a   : > { %10842 = vst [vmem:[#allocation14_spill] sm:$0xff] %v9049_v20  ;;  %v9051_v36 = vpop.eup %6665 }
 0x90b   : > { %10843 = vst [vmem:[#allocation16_spill] sm:$0xff] %v9051_v36  ;;  %v3242_v18 = vadd.f32 %v9051_v36, %v9049_v20 }
 0x90d   : > { %v9055_v37 = vpop.eup %6667  ;;  %3243 = vadd.xlane.f32.xlu1 %v3242_v18 }
 0x90e   : > { %10844 = vst [vmem:[#allocation24_spill] sm:$0xff] %v9055_v37  ;;  %v9057_v24 = vpop.eup %6669 }
 0x90f   : > { %10845 = vst [vmem:[#allocation25_spill] sm:$0xff] %v9057_v24  ;;  %v3245_v8 = vadd.f32 %v9057_v24, %v9055_v37 }
 0x911   : > { %3246 = vadd.xlane.f32.xlu0 %v3245_v8 }
 0x942   : > { %v3178_v29 = vpop.xlane.xlu1 %3177 }
 0x943   : > { %6671 = vrcp.f32 %v3178_v29 }
 0x946   : > { %v3181_v52 = vpop.xlane.xlu0 %3180  ;;  %v2962_v55 = vpop.xlane.xlu1 %2961 }
 0x947   : > { %6673 = vrcp.f32 %v3181_v52  ;;  %v3032_v12 = vsub.f32 %v8786_v42, %v2962_v55  ;;  %v3033_v16 = vsub.f32 %v8788_v61, %v2962_v55 }
 0x949   : > { %v3144_v30 = vmul.f32 1.442695, %v3032_v12  ;;  %v3146_v20 = vmul.f32 1.442695, %v3033_v16 }
 0x94a   : > { %v2965_v36 = vpop.xlane.xlu0 %2964  ;;  %v3184_v50 = vpop.xlane.xlu1 %3183 }
 0x94b   : > { %6675 = vpow2.f32 %v3144_v30  ;;  %v3034_v18 = vsub.f32 %v8792_v53, %v2965_v36  ;;  %v3035_v28 = vsub.f32 %v8794_v31, %v2965_v36 }
 0x94c   : > { %6677 = vpow2.f32 %v3146_v20 }
 0x94d   : > { %v3148_v8 = vmul.f32 1.442695, %v3034_v18  ;;  %v3150_v37 = vmul.f32 1.442695, %v3035_v28  ;;  %6679 = vrcp.f32 %v3184_v50  ;;  %v6672_v52 = vpop.eup %6671 }
 0x94e   : > { %v3187_v29 = vpop.xlane.xlu0 %3186  ;;  %v2968_v24 = vpop.xlane.xlu1 %2967  ;;  %v3305_v31 = vmul.f32 %v6672_v52, %v8855_v33  ;;  %v3304_v50 = vmul.f32 %v6672_v52, %v8853_v0 }
 0x94f   : > { %6681 = vpow2.f32 %v3148_v8  ;;  %v3036_v42 = vsub.f32 %v8798_v27, %v2968_v24  ;;  %v3037_v61 = vsub.f32 %v8800_v25, %v2968_v24 }
 0x950   : > { %6683 = vpow2.f32 %v3150_v37 }
 0x951   : > { %v6674_v16 = vpop.eup %6673  ;;  %6685 = vrcp.f32 %v3187_v29  ;;  %v3152_v30 = vmul.f32 1.442695, %v3036_v42  ;;  %v3154_v55 = vmul.f32 1.442695, %v3037_v61 }
 0x952   : > { %v2971_v53 = vpop.xlane.xlu0 %2970  ;;  %v3190_v12 = vpop.xlane.xlu1 %3189  ;;  %v3307_v28 = vmul.f32 %v6674_v16, %v8863_v4  ;;  %v3306_v20 = vmul.f32 %v6674_v16, %v8861_v45 }
 0x953   : > { %6687 = vpow2.f32 %v3152_v30  ;;  %v3038_v27 = vsub.f32 %v8804_v35, %v2971_v53  ;;  %v3039_v25 = vsub.f32 %v8806_v58, %v2971_v53 }
 0x954   : > { %6689 = vpow2.f32 %v3154_v55  ;;  %v5982_v36 = vpack.c.bf16 %v3307_v28, %v3305_v31  ;;  %v5984_v37 = vpack.c.bf16 %v3306_v20, %v3304_v50 }
 0x955   : > { %v9073_v24 = vpop.eup %6675  ;;  %v3156_v18 = vmul.f32 1.442695, %v3038_v27  ;;  %v3158_v8 = vmul.f32 1.442695, %v3039_v25  ;;  %6691 = vrcp.f32 %v3190_v12 }
 0x956   : > { %v9075_v33 = vpop.eup %6677  ;;  %v3193_v4 = vpop.xlane.xlu0 %3192  ;;  %5983 = vmatprep.subr.bf16.mxu0 %v5982_v36 }
 0x957   : > { %v2974_v0 = vpop.xlane.xlu1 %2973  ;;  %v6680_v29 = vpop.eup %6679  ;;  %6693 = vpow2.f32 %v3156_v18  ;;  %5985 = vmatpush1.bf16.xpose.msra.mxu0 %v5984_v37  ;;  %v3248_v58 = vadd.f32 %v9075_v33, %v9073_v24 }
 0x958   : > { %v3040_v45 = vsub.f32 %v8810_v32, %v2974_v0  ;;  %v3041_v35 = vsub.f32 %v8812_v34, %v2974_v0  ;;  %6695 = vpow2.f32 %v3158_v8  ;;  %v3309_v53 = vmul.f32 %v6680_v29, %v8874_v19 }
 0x959   : > { %v9081_v52 = vpop.eup %6681  ;;  %6697 = vrcp.f32 %v3193_v4  ;;  %3249 = vadd.xlane.f32.xlu1 %v3248_v58  ;;  %v3308_v50 = vmul.f32 %v6680_v29, %v8869_v38 }
 0x95a   : > { %v3160_v42 = vmul.f32 1.442695, %v3040_v45  ;;  %v3162_v61 = vmul.f32 1.442695, %v3041_v35  ;;  %v9083_v16 = vpop.eup %6683  ;;  %v2977_v30 = vpop.xlane.xlu0 %2976 }
 0x95b   : > { %v3196_v55 = vpop.xlane.xlu1 %3195  ;;  %v6686_v32 = vpop.eup %6685  ;;  %v3042_v34 = vsub.f32 %v8816_v5, %v2977_v30  ;;  %v3043_v12 = vsub.f32 %v8818_v44, %v2977_v30  ;;  %v3251_v31 = vadd.f32 %v9083_v16, %v9081_v52 }
 0x95c   : > { %6699 = vpow2.f32 %v3160_v42  ;;  %v3311_v28 = vmul.f32 %v6686_v32, %v8885_v49  ;;  %v3310_v20 = vmul.f32 %v6686_v32, %v8880_v2 }
 0x95d   : > { %6701 = vpow2.f32 %v3162_v61  ;;  %v9093_v27 = vpop.eup %6687  ;;  %v3164_v25 = vmul.f32 1.442695, %v3042_v34  ;;  %v3166_v19 = vmul.f32 1.442695, %v3043_v12  ;;  %3252 = vadd.xlane.f32.xlu0 %v3251_v31 }
 0x95e   : > { %v9095_v36 = vpop.eup %6689  ;;  %6703 = vrcp.f32 %v3196_v55  ;;  %v3199_v5 = vpop.xlane.xlu0 %3198  ;;  %v5986_v44 = vpack.c.bf16 %v3311_v28, %v3309_v53  ;;  %v5988_v18 = vpack.c.bf16 %v3310_v20, %v3308_v50 }
 0x95f   : > { %v2980_v37 = vpop.xlane.xlu1 %2979  ;;  %v6692_v8 = vpop.eup %6691  ;;  %6705 = vpow2.f32 %v3164_v25  ;;  %v3254_v2 = vadd.f32 %v9095_v36, %v9093_v27 }
 0x960   : > { %v3044_v49 = vsub.f32 %v8822_v11, %v2980_v37  ;;  %v3045_v38 = vsub.f32 %v8824_v40, %v2980_v37  ;;  %6707 = vpow2.f32 %v3166_v19  ;;  %5987 = vmatprep.subr.bf16.mxu0 %v5986_v44  ;;  %v3313_v58 = vmul.f32 %v6692_v8, %v8896_v10 }
 0x961   : > { %v9101_v4 = vpop.eup %6693  ;;  %6709 = vrcp.f32 %v3199_v5  ;;  %5989 = vmatpush1.bf16.xpose.msra.mxu0 %v5988_v18  ;;  %3255 = vadd.xlane.f32.xlu1 %v3254_v2  ;;  %v3312_v53 = vmul.f32 %v6692_v8, %v8891_v23 }
 0x962   : > { %v3168_v0 = vmul.f32 1.442695, %v3044_v49  ;;  %v3170_v29 = vmul.f32 1.442695, %v3045_v38  ;;  %v9103_v45 = vpop.eup %6695  ;;  %v2983_v35 = vpop.xlane.xlu0 %2982 }
 0x963   : > { %v6698_v11 = vpop.eup %6697  ;;  %v3046_v40 = vsub.f32 %v8828_v56, %v2983_v35  ;;  %v3047_v42 = vsub.f32 %v8830_v54, %v2983_v35  ;;  %v3202_v61 = vpop.xlane.xlu1 %3201  ;;  %v3257_v30 = vadd.f32 %v9103_v45, %v9101_v4 }
 0x964   : > { %6711 = vpow2.f32 %v3168_v0  ;;  %v3315_v55 = vmul.f32 %v6698_v11, %v8907_v63  ;;  %v3314_v32 = vmul.f32 %v6698_v11, %v8902_v48 }
 0x965   : > { %6713 = vpow2.f32 %v3170_v29  ;;  %v3172_v10 = vmul.f32 1.442695, %v3046_v40  ;;  %v3174_v12 = vmul.f32 1.442695, %v3047_v42  ;;  %3258 = vadd.xlane.f32.xlu0 %v3257_v30 }
 0x966   : > { %v9113_v34 = vpop.eup %6699  ;;  %6715 = vrcp.f32 %v3202_v61  ;;  %v3205_v54 = vpop.xlane.xlu0 %3204  ;;  %v5990_v56 = vpack.c.bf16 %v3315_v55, %v3313_v58  ;;  %v5992_v28 = vpack.c.bf16 %v3314_v32, %v3312_v53 }
 0x967   : > { %v9115_v31 = vpop.eup %6701  ;;  %6717 = vpow2.f32 %v3172_v10 }
 0x968   : > { %v3260_v50 = vadd.f32 %v9115_v31, %v9113_v34  ;;  %v6704_v63 = vpop.eup %6703  ;;  %6719 = vpow2.f32 %v3174_v12  ;;  %5991 = vmatprep.subr.bf16.mxu0 %v5990_v56 }
 0x969   : > { %v9119_v23 = vpop.eup %6705  ;;  %6721 = vrcp.f32 %v3205_v54  ;;  %5993 = vmatpush1.bf16.xpose.msra.mxu0 %v5992_v28  ;;  %v3317_v5 = vmul.f32 %v6704_v63, %v8918_v39  ;;  %v3316_v37 = vmul.f32 %v6704_v63, %v8913_v47 }
 0x96a   : > { %3261 = vadd.xlane.f32.xlu1 %v3260_v50  ;;  %v9121_v48 = vpop.eup %6707  ;;  %v3208_v20 = vpop.xlane.xlu1 %3207 }
 0x96b   : > { %v6710_v25 = vpop.eup %6709  ;;  %v3263_v19 = vadd.f32 %v9121_v48, %v9119_v23  ;;  %6723 = vrcp.f32 %v3208_v20 }
 0x96c   : > { %v3319_v44 = vmul.f32 %v6710_v25, %v8929_v60  ;;  %v3318_v18 = vmul.f32 %v6710_v25, %v8924_v9 }
 0x96d   : > { %3264 = vadd.xlane.f32.xlu0 %v3263_v19 }
 0x96e   : > { %v9129_v8 = vpop.eup %6711  ;;  %v3211_v38 = vpop.xlane.xlu0 %3210  ;;  %v5994_v2 = vpack.c.bf16 %v3319_v44, %v3317_v5  ;;  %v5996_v0 = vpack.c.bf16 %v3318_v18, %v3316_v37 }
 0x96f   : > { %v9131_v49 = vpop.eup %6713  ;;  %6725 = vrcp.f32 %v3211_v38 }
 0x970   : > { %v3266_v29 = vadd.f32 %v9131_v49, %v9129_v8  ;;  %v6716_v39 = vpop.eup %6715  ;;  %5995 = vmatprep.subr.bf16.mxu0 %v5994_v2  ;;  %v10846_v2 = vld [vmem:[#allocation12_spill] sm:$0xff] }
 0x971   : > { %v9135_v60 = vpop.eup %6717  ;;  %5997 = vmatpush1.bf16.xpose.msra.mxu0 %v5996_v0  ;;  %v3321_v11 = vmul.f32 %v6716_v39, %v8940_v7  ;;  %v3320_v42 = vmul.f32 %v6716_v39, %v8935_v14  ;;  %v10847_v0 = vld [vmem:[#allocation9_spill] sm:$0xff] }
 0x972   : > { %3267 = vadd.xlane.f32.xlu1 %v3266_v29  ;;  %v9137_v47 = vpop.eup %6719  ;;  %v3214_v9 = vpop.xlane.xlu1 %3213 }
 0x973   : > { %v6722_v35 = vpop.eup %6721  ;;  %v3269_v58 = vadd.f32 %v9137_v47, %v9135_v60  ;;  %6727 = vrcp.f32 %v3214_v9 }
 0x974   : > { %v3323_v40 = vmul.f32 %v6722_v35, %v8951_v22  ;;  %v3322_v61 = vmul.f32 %v6722_v35, %v8946_v62 }
 0x975   : > { %3270 = vadd.xlane.f32.xlu0 %v3269_v58  ;;  %v6724_v32 = vpop.eup %6723 }
 0x976   : > { %v3217_v30 = vpop.xlane.xlu0 %3216  ;;  %v5998_v55 = vpack.c.bf16 %v3323_v40, %v3321_v11  ;;  %v6000_v53 = vpack.c.bf16 %v3322_v61, %v3320_v42  ;;  %v3325_v54 = vmul.f32 %v6724_v32, %v8959_v13  ;;  %v3324_v14 = vmul.f32 %v6724_v32, %v8957_v43  ;;  %v10848_v11 = vld [vmem:[#allocation11_spill] sm:$0xff]  ;;  %v10849_v42 = vld [vmem:[#allocation21_spill] sm:$0xff]  ;;  %v10850_v61 = vld [vmem:[#allocation20_spill] sm:$0xff] }
 0x977   : > { %6729 = vrcp.f32 %v3217_v30  ;;  %v10851_v30 = vld [vmem:[#allocation15_spill] sm:$0xff] }
 0x978   : > { %5999 = vmatprep.subr.bf16.mxu0 %v5998_v55 }
 0x979   : > { %v6726_v10 = vpop.eup %6725  ;;  %6001 = vmatpush1.bf16.xpose.msra.mxu0 %v6000_v53 }
 0x97a   : > { %v3220_v12 = vpop.xlane.xlu1 %3219  ;;  %v3327_v7 = vmul.f32 %v6726_v10, %v8967_v17  ;;  %v3326_v22 = vmul.f32 %v6726_v10, %v8965_v59 }
 0x97b   : > { %6731 = vrcp.f32 %v3220_v12 }
 0x97c   : > { %v6002_v62 = vpack.c.bf16 %v3327_v7, %v3325_v54  ;;  %v6004_v56 = vpack.c.bf16 %v3326_v22, %v3324_v14 }
 0x97d   : > { %v6728_v50 = vpop.eup %6727 }
 0x97e   : > { %v3223_v28 = vpop.xlane.xlu0 %3222  ;;  %6003 = vmatprep.subr.bf16.mxu0 %v6002_v62  ;;  %v3329_v25 = vmul.f32 %v6728_v50, %v8975_v51  ;;  %v3328_v59 = vmul.f32 %v6728_v50, %v8973_v46 }
 0x97f   : > { %6733 = vrcp.f32 %v3223_v28 }
 0x981   : > { %v6730_v63 = vpop.eup %6729  ;;  %6005 = vmatpush1.bf16.xpose.msra.mxu0 %v6004_v56 }
 0x982   : > { %v3226_v20 = vpop.xlane.xlu1 %3225  ;;  %v3331_v13 = vmul.f32 %v6730_v63, %v8983_v26  ;;  %v3330_v17 = vmul.f32 %v6730_v63, %v8981_v6 }
 0x983   : > { %6735 = vrcp.f32 %v3226_v20 }
 0x984   : > { %v6006_v19 = vpack.c.bf16 %v3331_v13, %v3329_v25  ;;  %v6008_v43 = vpack.c.bf16 %v3330_v17, %v3328_v59  ;;  %v10852_v25 = vld [vmem:[#allocation4_spill] sm:$0xff]  ;;  %v10853_v13 = vld [vmem:[#allocation27_spill] sm:$0xff] }
 0x985   : > { %v6732_v44 = vpop.eup %6731  ;;  %v3527_v17 = vadd.f32 %v10853_v13, %v10852_v25 }
 0x986   : > { %v3229_v5 = vpop.xlane.xlu0 %3228  ;;  %6007 = vmatprep.subr.bf16.mxu0 %v6006_v19  ;;  %v3333_v38 = vmul.f32 %v6732_v44, %v8991_v15  ;;  %v3332_v6 = vmul.f32 %v6732_v44, %v10847_v0  ;;  %v10859_v0 = vld [vmem:[#allocation16_spill] sm:$0xff] }
 0x987   : > { %6737 = vrcp.f32 %v3229_v5  ;;  %v10857_v5 = vld [vmem:[#allocation23_spill] sm:$0xff] }
 0x989   : > { %v6734_v37 = vpop.eup %6733  ;;  %6009 = vmatpush1.bf16.xpose.msra.mxu0 %v6008_v43  ;;  %v10856_v43 = vld [vmem:[#allocation17_spill] sm:$0xff] }
 0x98a   : > { %v3232_v18 = vpop.xlane.xlu1 %3231  ;;  %v3335_v51 = vmul.f32 %v6734_v37, %v8999_v1  ;;  %v3334_v26 = vmul.f32 %v6734_v37, %v10846_v2  ;;  %v10858_v37 = vld [vmem:[#allocation22_spill] sm:$0xff] }
 0x98b   : > { %6739 = vrcp.f32 %v3232_v18 }
 0x98c   : > { %v6010_v29 = vpack.c.bf16 %v3335_v51, %v3333_v38  ;;  %v6012_v46 = vpack.c.bf16 %v3334_v26, %v3332_v6 }
 0x98d   : > { %v6736_v9 = vpop.eup %6735 }
 0x98e   : > { %v3235_v39 = vpop.xlane.xlu0 %3234  ;;  %6011 = vmatprep.subr.bf16.mxu0 %v6010_v29  ;;  %v3337_v40 = vmul.f32 %v6736_v9, %v10848_v11  ;;  %v3336_v55 = vmul.f32 %v6736_v9, %v10851_v30  ;;  %v10860_v29 = vld [vmem:[#allocation25_spill] sm:$0xff] }
 0x98f   : > { %6741 = vrcp.f32 %v3235_v39  ;;  %v10861_v39 = vld [vmem:[#allocation24_spill] sm:$0xff] }
 0x991   : > { %v6738_v35 = vpop.eup %6737  ;;  %6013 = vmatpush1.bf16.xpose.msra.mxu0 %v6012_v46 }
 0x992   : > { %v3238_v58 = vpop.xlane.xlu1 %3237  ;;  %v3339_v15 = vmul.f32 %v6738_v35, %v10849_v42  ;;  %v3338_v1 = vmul.f32 %v6738_v35, %v10850_v61  ;;  %v10862_v35 = vld [vmem:[#allocation14_spill] sm:$0xff] }
 0x993   : > { %6743 = vrcp.f32 %v3238_v58 }
 0x994   : > { %v6014_v53 = vpack.c.bf16 %v3339_v15, %v3337_v40  ;;  %v6016_v32 = vpack.c.bf16 %v3338_v1, %v3336_v55 }
 0x995   : > { %v6740_v12 = vpop.eup %6739 }
 0x996   : > { %v3241_v10 = vpop.xlane.xlu0 %3240  ;;  %6015 = vmatprep.subr.bf16.mxu0 %v6014_v53  ;;  %v3341_v22 = vmul.f32 %v6740_v12, %v9023_v3  ;;  %v3340_v56 = vmul.f32 %v6740_v12, %v9021_v21  ;;  %v10854_v3 = vld [vmem:[#allocation18_spill] sm:$0xff] }
 0x997   : > { %6745 = vrcp.f32 %v3241_v10  ;;  %v3525_v19 = vadd.f32 %v10854_v3, %v10852_v25 }
 0x999   : > { %v6742_v54 = vpop.eup %6741  ;;  %6017 = vmatpush1.bf16.xpose.msra.mxu0 %v6016_v32 }
 0x99a   : > { %v3244_v7 = vpop.xlane.xlu1 %3243  ;;  %v3343_v14 = vmul.f32 %v6742_v54, %v9031_v41  ;;  %v3342_v62 = vmul.f32 %v6742_v54, %v9029_v57  ;;  %v10855_v41 = vld [vmem:[#allocation13_spill] sm:$0xff] }
 0x99b   : > { %6747 = vrcp.f32 %v3244_v7 }
 0x99c   : > { %v6018_v28 = vpack.c.bf16 %v3343_v14, %v3341_v22  ;;  %v6020_v50 = vpack.c.bf16 %v3342_v62, %v3340_v56 }
 0x99d   : > { %v6744_v20 = vpop.eup %6743 }
 0x99e   : > { %v3247_v63 = vpop.xlane.xlu0 %3246  ;;  %6019 = vmatprep.subr.bf16.mxu0 %v6018_v28  ;;  %v3345_v57 = vmul.f32 %v6744_v20, %v10855_v41  ;;  %v3344_v18 = vmul.f32 %v6744_v20, %v10858_v37  ;;  %v10865_v37 = vld [vmem:[#allocation19_spill] sm:$0xff] }
 0x99f   : > { %6749 = vrcp.f32 %v3247_v63 }
 0x9a1   : > { %v6746_v59 = vpop.eup %6745  ;;  %6021 = vmatpush1.bf16.xpose.msra.mxu0 %v6020_v50 }
 0x9a2   : > { %3573 = vxpose.xlu0.b32.start.end [1/1] (short) %v3527_v17, 128  ;;  %v3347_v21 = vmul.f32 %v6746_v59, %v10856_v43  ;;  %v3346_v44 = vmul.f32 %v6746_v59, %v10857_v5 }
 0x9a4   : > { %v6022_v38 = vpack.c.bf16 %v3347_v21, %v3345_v57  ;;  %v6024_v51 = vpack.c.bf16 %v3346_v44, %v3344_v18  ;;  %v10864_v44 = vld [vmem:[#allocation3_spill] sm:$0xff]  ;;  %v10866_v18 = vld [vmem:[#allocation28_spill] sm:$0xff] }
 0x9a5   : > { %3541 = vxpose.xlu1.b32.start.end [1/1] (short) %v3525_v19, 128  ;;  %v6748_v2 = vpop.eup %6747 }
 0x9a6   : > { %6023 = vmatprep.subr.bf16.mxu0 %v6022_v38  ;;  %v3349_v6 = vmul.f32 %v6748_v2, %v10859_v0  ;;  %v3348_v58 = vmul.f32 %v6748_v2, %v10862_v35  ;;  %v2467_v38 = vadd.f32 %v10866_v18, %v10865_v37 }
 0x9a9   : > { %v6750_v26 = vpop.eup %6749  ;;  %6025 = vmatpush1.bf16.xpose.msra.mxu0 %v6024_v51  ;;  %v10867_v51 = vld [vmem:[#allocation26_spill] sm:$0xff] }
 0x9aa   : > { %v3351_v46 = vmul.f32 %v6750_v26, %v10860_v29  ;;  %v3350_v9 = vmul.f32 %v6750_v26, %v10861_v39 }
 0x9ac   : > { %v6026_v11 = vpack.c.bf16 %v3351_v46, %v3349_v6  ;;  %v6028_v40 = vpack.c.bf16 %v3350_v9, %v3348_v58 }
 0x9ae   : > { %6027 = vmatprep.subr.bf16.mxu0 %v6026_v11 }
 0x9b1   : > { %6029 = vmatpush1.bf16.xpose.msra.mxu0 %v6028_v40 }
 0x9e6   : > { %v3250_v42 = vpop.xlane.xlu1 %3249 }
 0x9e7   : > { %6751 = vrcp.f32 %v3250_v42 }
 0x9ea   : > { %v3253_v15 = vpop.xlane.xlu0 %3252 }
 0x9eb   : > { %6753 = vrcp.f32 %v3253_v15 }
 0x9ee   : > { %v3256_v61 = vpop.xlane.xlu1 %3255 }
 0x9ef   : > { %6755 = vrcp.f32 %v3256_v61 }
 0x9f1   : > { %v6752_v30 = vpop.eup %6751 }
 0x9f2   : > { %v3259_v1 = vpop.xlane.xlu0 %3258  ;;  %v3353_v32 = vmul.f32 %v6752_v30, %v9075_v33  ;;  %v3352_v12 = vmul.f32 %v6752_v30, %v9073_v24 }
 0x9f3   : > { %6757 = vrcp.f32 %v3259_v1 }
 0x9f5   : > { %v6754_v55 = vpop.eup %6753 }
 0x9f6   : > { %v3355_v10 = vmul.f32 %v6754_v55, %v9083_v16  ;;  %v3354_v54 = vmul.f32 %v6754_v55, %v9081_v52 }
 0x9f7   : > { %v3262_v53 = vpop.xlane.xlu1 %3261 }
 0x9f8   : > { %v6030_v7 = vpack.c.bf16 %v3355_v10, %v3353_v32  ;;  %v6032_v22 = vpack.c.bf16 %v3354_v54, %v3352_v12  ;;  %6759 = vrcp.f32 %v3262_v53 }
 0x9f9   : > { %v6756_v62 = vpop.eup %6755 }
 0x9fa   : > { %v3265_v14 = vpop.xlane.xlu0 %3264  ;;  %6031 = vmatprep.subr.bf16.mxu0 %v6030_v7  ;;  %v3357_v50 = vmul.f32 %v6756_v62, %v9095_v36  ;;  %v3356_v16 = vmul.f32 %v6756_v62, %v9093_v27 }
 0x9fb   : > { %6761 = vrcp.f32 %v3265_v14  ;;  %6033 = vmatpush1.bf16.xpose.msra.mxu0 %v6032_v22 }
 0x9fd   : > { %v6758_v56 = vpop.eup %6757 }
 0x9fe   : > { %v3359_v33 = vmul.f32 %v6758_v56, %v9103_v45  ;;  %v3358_v24 = vmul.f32 %v6758_v56, %v9101_v4 }
 0x9ff   : > { %v3268_v28 = vpop.xlane.xlu1 %3267 }
 0xa00   : > { %v6034_v63 = vpack.c.bf16 %v3359_v33, %v3357_v50  ;;  %v6036_v52 = vpack.c.bf16 %v3358_v24, %v3356_v16  ;;  %6763 = vrcp.f32 %v3268_v28  ;;  %v7159_v24 = vld [vmem:[%s10462_s1] sm:$0xff] }
 0xa02   : > { %v3271_v20 = vpop.xlane.xlu0 %3270  ;;  %6035 = vmatprep.subr.bf16.mxu0 %v6034_v63  ;;  %v6760_v13 = vpop.eup %6759  ;;  %v7160_v63 = vld [vmem:[%s10462_s1 + $0x8] sm:$0xff] }
 0xa03   : > { %6765 = vrcp.f32 %v3271_v20  ;;  %6037 = vmatpush1.bf16.xpose.msra.mxu0 %v6036_v52  ;;  %v3361_v59 = vmul.f32 %v6760_v13, %v9115_v31  ;;  %v3360_v36 = vmul.f32 %v6760_v13, %v9113_v34  ;;  %v10863_v34 = vld [vmem:[#allocation5_spill] sm:$0xff]  ;;  %v10870_v13 = vld [vmem:[#allocation10_spill] sm:$0xff] }
 0xa04   : > { %v7161_v52 = vld [vmem:[%s10462_s1 + $0x10] sm:$0xff] }
 0xa05   : > { %v6762_v17 = vpop.eup %6761 }
 0xa06   : > { %v3363_v3 = vmul.f32 %v6762_v17, %v9121_v48  ;;  %v3362_v45 = vmul.f32 %v6762_v17, %v9119_v23  ;;  %v3533_v23 = vadd.f32 %v10864_v44, %v10863_v34 }
 0xa08   : > { %v6038_v27 = vpack.c.bf16 %v3363_v3, %v3361_v59  ;;  %v6040_v19 = vpack.c.bf16 %v3362_v45, %v3360_v36  ;;  %v7162_v36 = vld [vmem:[%s7227_s26 + $0x10] sm:$0xff] }
 0xa0a   : > { %6039 = vmatprep.subr.bf16.mxu0 %v6038_v27  ;;  %v6764_v4 = vpop.eup %6763  ;;  %v10871_v27 = vld [vmem:[#allocation8_spill] sm:$0xff] }
 0xa0b   : > { %6041 = vmatpush1.bf16.xpose.msra.mxu0 %v6040_v19  ;;  %v3365_v57 = vmul.f32 %v6764_v4, %v9131_v49  ;;  %v3364_v21 = vmul.f32 %v6764_v4, %v9129_v8  ;;  %v3531_v49 = vadd.f32 %v10867_v51, %v10863_v34  ;;  %v5811_v8 = vld [vmem:[%s7227_s26 + $0x20] sm:$0xff] }
 0xa0d   : > { %v6766_v41 = vpop.eup %6765 }
 0xa0e   : > { %v3367_v43 = vmul.f32 %v6766_v41, %v9137_v47  ;;  %v3366_v31 = vmul.f32 %v6766_v41, %v9135_v60  ;;  %v10868_v47 = vmov 0.0   ;;  %v9201_v60 = vcombine.high %v5811_v8, %v5811_v8 }
 0xa10   : > { %v6042_v48 = vpack.c.bf16 %v3367_v43, %v3365_v57  ;;  %v6044_v5 = vpack.c.bf16 %v3366_v31, %v3364_v21  ;;  %10869 = vst [vmem:[#allocation12_spill] sm:$0xff] %v9201_v60 }
 0xa12   : > { %6043 = vmatprep.subr.bf16.mxu0 %v6042_v48 }
 0xa13   : > { %6045 = vmatpush1.bf16.xpose.msra.mxu0 %v6044_v5 }
 0xa14   : > { %3701 = vmatprep.subr.mxu0 %v3533_v23 }
 0xa1a   : > { %3433 = vmatmul.mubr.f32.vlgmr.msra.gmra.mrb[78].mxu0 %v2467_v38 }
 0xa1b   : > { %3702 = vmatpush1.msra.mxu0 %v3531_v49  ;;  %3765 = vmatprep.mubr.f32.mxu0 %v10868_v47 }
 0xa1c   : > { %5812 = vmatprep.subr.msk.mxu0 %vm242_vm0, %v9201_v60 }
 0xa22   : > { %v3589_v58 = vpop.trf.xlu0 }
 0xa25   : > { %v3557_v2 = vpop.trf.xlu1 }
 0xa26   : > { %5778 = vmatmul.mubr.msk.f32.vlgmr.msra.gmra.mrb[80].mxu0 %vm394_vm2, %v3557_v2  ;;  %v3590_v40 = vpop.trf.xlu0 }
 0xa27   : > { %3771 = vmatprep.mubr.f32.mxu0 %v10868_v47  ;;  %5813 = vmatpush1.msk.msra.mxu0 %vm242_vm0, %v5811_v8 }
 0xa29   : > { %v3558_v26 = vpop.trf.xlu1 }
 0xa2a   : > { %5779 = vmatmul.mubr.msk.f32.gmra.mrb[82].mxu0 %vm394_vm2, %v3558_v26  ;;  %v3591_v61 = vpop.trf.xlu0 }
 0xa2b   : > { %3777 = vmatprep.mubr.f32.mxu0 %v10868_v47 }
 0xa2d   : > { %v3559_v0 = vpop.trf.xlu1 }
 0xa2e   : > { %5780 = vmatmul.mubr.msk.f32.gmra.mrb[84].mxu0 %vm394_vm2, %v3559_v0  ;;  %v3592_v30 = vpop.trf.xlu0 }
 0xa2f   : > { %3783 = vmatprep.mubr.f32.mxu0 %v10868_v47 }
 0xa31   : > { %v3560_v6 = vpop.trf.xlu1 }
 0xa32   : > { %5781 = vmatmul.mubr.msk.f32.gmra.mrb[86].mxu0 %vm394_vm2, %v3560_v6  ;;  %v3593_v32 = vpop.trf.xlu0 }
 0xa33   : > { %3789 = vmatprep.mubr.f32.mxu0 %v10868_v47 }
 0xa35   : > { %v3561_v29 = vpop.trf.xlu1 }
 0xa36   : > { %5782 = vmatmul.mubr.msk.f32.gmra.mrb[88].mxu0 %vm394_vm2, %v3561_v29  ;;  %v3594_v12 = vpop.trf.xlu0 }
 0xa37   : > { %3795 = vmatprep.mubr.f32.mxu0 %v10868_v47 }
 0xa39   : > { %v3562_v46 = vpop.trf.xlu1 }
 0xa3a   : > { %5783 = vmatmul.mubr.msk.f32.gmra.mrb[90].mxu0 %vm394_vm2, %v3562_v46  ;;  %v3595_v54 = vpop.trf.xlu0 }
 0xa3b   : > { %3801 = vmatprep.mubr.f32.mxu0 %v10868_v47 }
 0xa3d   : > { %v3563_v39 = vpop.trf.xlu1 }
 0xa3e   : > { %5784 = vmatmul.mubr.msk.f32.gmra.mrb[92].mxu0 %vm394_vm2, %v3563_v39  ;;  %v3596_v7 = vpop.trf.xlu0 }
 0xa3f   : > { %3807 = vmatprep.mubr.f32.mxu0 %v10868_v47 }
 0xa41   : > { %v3564_v9 = vpop.trf.xlu1 }
 0xa42   : > { %5785 = vmatmul.mubr.msk.f32.gmra.mrb[94].mxu0 %vm394_vm2, %v3564_v9  ;;  %v3597_v22 = vpop.trf.xlu0 }
 0xa43   : > { %3813 = vmatprep.mubr.f32.mxu0 %v10868_v47 }
 0xa45   : > { %v3565_v35 = vpop.trf.xlu1 }
 0xa46   : > { %5786 = vmatmul.mubr.msk.f32.gmra.mrb[96].mxu0 %vm394_vm2, %v3565_v35  ;;  %v3598_v14 = vpop.trf.xlu0 }
 0xa47   : > { %3819 = vmatprep.mubr.f32.mxu0 %v10868_v47 }
 0xa49   : > { %v3566_v11 = vpop.trf.xlu1 }
 0xa4a   : > { %5787 = vmatmul.mubr.msk.f32.gmra.mrb[98].mxu0 %vm394_vm2, %v3566_v11  ;;  %v3599_v62 = vpop.trf.xlu0 }
 0xa4b   : > { %3825 = vmatprep.mubr.f32.mxu0 %v10868_v47 }
 0xa4d   : > { %v3567_v42 = vpop.trf.xlu1 }
 0xa4e   : > { %5788 = vmatmul.mubr.msk.f32.gmra.mrb[100].mxu0 %vm394_vm2, %v3567_v42  ;;  %v3600_v56 = vpop.trf.xlu0 }
 0xa4f   : > { %3831 = vmatprep.mubr.f32.mxu0 %v10868_v47 }
 0xa51   : > { %v3568_v15 = vpop.trf.xlu1 }
 0xa52   : > { %5789 = vmatmul.mubr.msk.f32.gmra.mrb[102].mxu0 %vm394_vm2, %v3568_v15  ;;  %v3601_v28 = vpop.trf.xlu0 }
 0xa53   : > { %3837 = vmatprep.mubr.f32.mxu0 %v10868_v47 }
 0xa55   : > { %v3569_v1 = vpop.trf.xlu1 }
 0xa56   : > { %5790 = vmatmul.mubr.msk.f32.gmra.mrb[104].mxu0 %vm394_vm2, %v3569_v1  ;;  %v3602_v50 = vpop.trf.xlu0 }
 0xa57   : > { %3843 = vmatprep.mubr.f32.mxu0 %v10868_v47 }
 0xa59   : > { %v3570_v55 = vpop.trf.xlu1 }
 0xa5a   : > { %5791 = vmatmul.mubr.msk.f32.gmra.mrb[106].mxu0 %vm394_vm2, %v3570_v55  ;;  %v3603_v33 = vpop.trf.xlu0 }
 0xa5b   : > { %3849 = vmatprep.mubr.f32.mxu0 %v10868_v47 }
 0xa5d   : > { %v3571_v53 = vpop.trf.xlu1 }
 0xa5e   : > { %5792 = vmatmul.mubr.msk.f32.gmra.mrb[108].mxu0 %vm394_vm2, %v3571_v53  ;;  %v3604_v16 = vpop.trf.xlu0 }
 0xa5f   : > { %3855 = vmatprep.mubr.f32.mxu0 %v10868_v47 }
 0xa61   : > { %v3572_v10 = vpop.trf.xlu1 }
 0xa62   : > { %5793 = vmatmul.mubr.msk.f32.gmra.mrb[110].mxu0 %vm394_vm2, %v3572_v10 }
 0xa63   : > { %3861 = vmatprep.mubr.f32.mxu0 %v10868_v47 }
 0xa66   : > { %5794 = vmatmul.mubr.msk.f32.gmra.mrb[112].mxu0 %vm394_vm2, %v3589_v58 }
 0xa67   : > { %3867 = vmatprep.mubr.f32.mxu0 %v10868_v47 }
 0xa6a   : > { %5795 = vmatmul.mubr.msk.f32.gmra.mrb[114].mxu0 %vm394_vm2, %v3590_v40 }
 0xa6b   : > { %3873 = vmatprep.mubr.f32.mxu0 %v10868_v47 }
 0xa6e   : > { %5796 = vmatmul.mubr.msk.f32.gmra.mrb[116].mxu0 %vm394_vm2, %v3591_v61 }
 0xa6f   : > { %3879 = vmatprep.mubr.f32.mxu0 %v10868_v47 }
 0xa72   : > { %5797 = vmatmul.mubr.msk.f32.gmra.mrb[118].mxu0 %vm394_vm2, %v3592_v30 }
 0xa73   : > { %3885 = vmatprep.mubr.f32.mxu0 %v10868_v47 }
 0xa76   : > { %5798 = vmatmul.mubr.msk.f32.gmra.mrb[120].mxu0 %vm394_vm2, %v3593_v32 }
 0xa77   : > { %3891 = vmatprep.mubr.f32.mxu0 %v10868_v47 }
 0xa7a   : > { %5799 = vmatmul.mubr.msk.f32.gmra.mrb[122].mxu0 %vm394_vm2, %v3594_v12 }
 0xa7b   : > { %3897 = vmatprep.mubr.f32.mxu0 %v10868_v47 }
 0xa7e   : > { %5800 = vmatmul.mubr.msk.f32.gmra.mrb[124].mxu0 %vm394_vm2, %v3595_v54 }
 0xa7f   : > { %3903 = vmatprep.mubr.f32.mxu0 %v10868_v47 }
 0xa82   : > { %5801 = vmatmul.mubr.msk.f32.gmra.mrb[126].mxu0 %vm394_vm2, %v3596_v7 }
 0xa83   : > { %3909 = vmatprep.mubr.f32.mxu0 %v10868_v47 }
 0xa86   : > { %5802 = vmatmul.mubr.msk.f32.gmra.mrb[128].mxu0 %vm394_vm2, %v3597_v22 }
 0xa87   : > { %3915 = vmatprep.mubr.f32.mxu0 %v10868_v47 }
 0xa8a   : > { %5803 = vmatmul.mubr.msk.f32.gmra.mrb[130].mxu0 %vm394_vm2, %v3598_v14 }
 0xa8b   : > { %3921 = vmatprep.mubr.f32.mxu0 %v10868_v47 }
 0xa8e   : > { %5804 = vmatmul.mubr.msk.f32.gmra.mrb[132].mxu0 %vm394_vm2, %v3599_v62 }
 0xa8f   : > { %3927 = vmatprep.mubr.f32.mxu0 %v10868_v47 }
 0xa92   : > { %5805 = vmatmul.mubr.msk.f32.gmra.mrb[134].mxu0 %vm394_vm2, %v3600_v56 }
 0xa93   : > { %3933 = vmatprep.mubr.f32.mxu0 %v10868_v47 }
 0xa96   : > { %5806 = vmatmul.mubr.msk.f32.gmra.mrb[136].mxu0 %vm394_vm2, %v3601_v28 }
 0xa97   : > { %3939 = vmatprep.mubr.f32.mxu0 %v10868_v47 }
 0xa9a   : > { %5807 = vmatmul.mubr.msk.f32.gmra.mrb[138].mxu0 %vm394_vm2, %v3602_v50 }
 0xa9b   : > { %3945 = vmatprep.mubr.f32.mxu0 %v10868_v47 }
 0xa9e   : > { %5808 = vmatmul.mubr.msk.f32.gmra.mrb[140].mxu0 %vm394_vm2, %v3603_v33 }
 0xa9f   : > { %3951 = vmatprep.mubr.f32.mxu0 %v10868_v47 }
 0xaa2   : > { %5809 = vmatmul.mubr.msk.f32.gmra.mrb[142].mxu0 %vm394_vm2, %v3604_v16 }
 0xaa3   : > { %4592 = vmatprep.mubr.f32.mxu0 %v10868_v47 }
 0xaa6   : > { %5814 = vmatmul.mubr.msk.f32.vlgmr.msra.gmra.mrb[144].mxu0 %vm232_vm1, %v7159_v24 }
 0xaa7   : > { %4598 = vmatprep.mubr.f32.mxu0 %v10868_v47 }
 0xaaa   : > { %5815 = vmatmul.mubr.msk.f32.gmra.mrb[146].mxu0 %vm232_vm1, %v7160_v63 }
 0xaab   : > { %4604 = vmatprep.mubr.f32.mxu0 %v10868_v47 }
 0xaae   : > { %5816 = vmatmul.mubr.msk.f32.gmra.mrb[148].mxu0 %vm232_vm1, %v7161_v52 }
 0xaed   : > { %v3434_v20 = vpop.f32.mrb[78].mxu0 }
 0xaee   : > { %v3439_v17 = vmul.f32 %v3434_v20, %v10870_v13  ;;  %v3436_v59 = vpop.f32.mrb[79].mxu0 }
 0xaef   : > { %v3440_v3 = vmul.f32 %v3436_v59, %v10870_v13 }
 0xaf0   : > { %v3442_v45 = vadd.f32 %v7162_v36, %v3439_v17 }
 0xaf1   : > { %v3443_v19 = vadd.f32 %v3440_v3, %v10871_v27 }
 0xaf3   : > { %v3446_v4 = vcombine.low %v3442_v45, %v3443_v19 }
 0xaf5   : > { %5771 = vst [vmem:[%s7992_s3 + $0x10] sm:$0xff] %v3446_v4 }
 0xaf9   : > { %v9289_v41 = vpop.f32.mrb[80].mxu0 }
 0xafa   : > { %v9291_v57 = vpop.f32.mrb[81].mxu0 }
 0xafb   : > { %v3958_v43 = vmax.f32 %v9289_v41, %v9291_v57 }
 0xafd   : > { %3959 = vmax.xlane.f32.xlu0 %v3958_v43  ;;  %v9295_v21 = vpop.f32.mrb[82].mxu0 }
 0xafe   : > { %v9297_v31 = vpop.f32.mrb[83].mxu0 }
 0xaff   : > { %v3961_v48 = vmax.f32 %v9295_v21, %v9297_v31 }
 0xb01   : > { %3962 = vmax.xlane.f32.xlu1 %v3961_v48  ;;  %v9301_v5 = vpop.f32.mrb[84].mxu0 }
 0xb02   : > { %v9303_v44 = vpop.f32.mrb[85].mxu0 }
 0xb03   : > { %v3964_v23 = vmax.f32 %v9301_v5, %v9303_v44 }
 0xb05   : > { %3965 = vmax.xlane.f32.xlu1 %v3964_v23  ;;  %v9307_v18 = vpop.f32.mrb[86].mxu0 }
 0xb06   : > { %v9309_v38 = vpop.f32.mrb[87].mxu0 }
 0xb07   : > { %v3967_v51 = vmax.f32 %v9307_v18, %v9309_v38 }
 0xb09   : > { %3968 = vmax.xlane.f32.xlu0 %v3967_v51  ;;  %v9313_v49 = vpop.f32.mrb[88].mxu0 }
 0xb0a   : > { %v9315_v8 = vpop.f32.mrb[89].mxu0 }
 0xb0b   : > { %v3970_v2 = vmax.f32 %v9313_v49, %v9315_v8 }
 0xb0d   : > { %3971 = vmax.xlane.f32.xlu1 %v3970_v2  ;;  %v9319_v26 = vpop.f32.mrb[90].mxu0 }
 0xb0e   : > { %v9321_v0 = vpop.f32.mrb[91].mxu0 }
 0xb0f   : > { %v3973_v6 = vmax.f32 %v9319_v26, %v9321_v0 }
 0xb11   : > { %3974 = vmax.xlane.f32.xlu0 %v3973_v6  ;;  %v9325_v29 = vpop.f32.mrb[92].mxu0 }
 0xb12   : > { %v9327_v46 = vpop.f32.mrb[93].mxu0 }
 0xb13   : > { %v3976_v39 = vmax.f32 %v9325_v29, %v9327_v46 }
 0xb15   : > { %3977 = vmax.xlane.f32.xlu1 %v3976_v39  ;;  %v9331_v9 = vpop.f32.mrb[94].mxu0 }
 0xb16   : > { %v9333_v35 = vpop.f32.mrb[95].mxu0 }
 0xb17   : > { %v3979_v58 = vmax.f32 %v9331_v9, %v9333_v35 }
 0xb19   : > { %3980 = vmax.xlane.f32.xlu0 %v3979_v58  ;;  %v9337_v11 = vpop.f32.mrb[96].mxu0 }
 0xb1a   : > { %v9339_v40 = vpop.f32.mrb[97].mxu0 }
 0xb1b   : > { %v3982_v42 = vmax.f32 %v9337_v11, %v9339_v40 }
 0xb1d   : > { %3983 = vmax.xlane.f32.xlu1 %v3982_v42  ;;  %v9343_v15 = vpop.f32.mrb[98].mxu0 }
 0xb1e   : > { %v9345_v61 = vpop.f32.mrb[99].mxu0 }
 0xb1f   : > { %v3985_v1 = vmax.f32 %v9343_v15, %v9345_v61 }
 0xb21   : > { %3986 = vmax.xlane.f32.xlu0 %v3985_v1  ;;  %v9349_v30 = vpop.f32.mrb[100].mxu0 }
 0xb22   : > { %v9351_v55 = vpop.f32.mrb[101].mxu0 }
 0xb23   : > { %v3988_v53 = vmax.f32 %v9349_v30, %v9351_v55 }
 0xb25   : > { %3989 = vmax.xlane.f32.xlu1 %v3988_v53  ;;  %v9355_v32 = vpop.f32.mrb[102].mxu0 }
 0xb26   : > { %v9357_v10 = vpop.f32.mrb[103].mxu0 }
 0xb27   : > { %v3991_v12 = vmax.f32 %v9355_v32, %v9357_v10 }
 0xb29   : > { %3992 = vmax.xlane.f32.xlu0 %v3991_v12  ;;  %v9361_v54 = vpop.f32.mrb[104].mxu0 }
 0xb2a   : > { %v9363_v7 = vpop.f32.mrb[105].mxu0 }
 0xb2b   : > { %v3994_v22 = vmax.f32 %v9361_v54, %v9363_v7 }
 0xb2d   : > { %3995 = vmax.xlane.f32.xlu1 %v3994_v22  ;;  %v9367_v14 = vpop.f32.mrb[106].mxu0 }
 0xb2e   : > { %v9369_v62 = vpop.f32.mrb[107].mxu0 }
 0xb2f   : > { %v3997_v56 = vmax.f32 %v9367_v14, %v9369_v62 }
 0xb31   : > { %3998 = vmax.xlane.f32.xlu0 %v3997_v56  ;;  %v9373_v28 = vpop.f32.mrb[108].mxu0 }
 0xb32   : > { %v9375_v50 = vpop.f32.mrb[109].mxu0 }
 0xb33   : > { %v4000_v33 = vmax.f32 %v9373_v28, %v9375_v50 }
 0xb35   : > { %4001 = vmax.xlane.f32.xlu1 %v4000_v33  ;;  %v9379_v16 = vpop.f32.mrb[110].mxu0 }
 0xb36   : > { %v9381_v24 = vpop.f32.mrb[111].mxu0 }
 0xb37   : > { %v4003_v63 = vmax.f32 %v9379_v16, %v9381_v24 }
 0xb39   : > { %4004 = vmax.xlane.f32.xlu0 %v4003_v63  ;;  %v9385_v52 = vpop.f32.mrb[112].mxu0 }
 0xb3a   : > { %v9387_v20 = vpop.f32.mrb[113].mxu0 }
 0xb3b   : > { %v4006_v17 = vmax.f32 %v9385_v52, %v9387_v20 }
 0xb3d   : > { %4007 = vmax.xlane.f32.xlu1 %v4006_v17  ;;  %v9391_v59 = vpop.f32.mrb[114].mxu0 }
 0xb3e   : > { %10872 = vst [vmem:[#allocation9_spill] sm:$0xff] %v9391_v59  ;;  %v9393_v3 = vpop.f32.mrb[115].mxu0 }
 0xb3f   : > { %10873 = vst [vmem:[#allocation11_spill] sm:$0xff] %v9393_v3  ;;  %v4009_v36 = vmax.f32 %v9391_v59, %v9393_v3 }
 0xb41   : > { %4010 = vmax.xlane.f32.xlu0 %v4009_v36  ;;  %v9397_v45 = vpop.f32.mrb[116].mxu0 }
 0xb42   : > { %10874 = vst [vmem:[#allocation21_spill] sm:$0xff] %v9397_v45  ;;  %v9399_v27 = vpop.f32.mrb[117].mxu0 }
 0xb43   : > { %10875 = vst [vmem:[#allocation20_spill] sm:$0xff] %v9399_v27  ;;  %v4012_v19 = vmax.f32 %v9397_v45, %v9399_v27 }
 0xb45   : > { %4013 = vmax.xlane.f32.xlu1 %v4012_v19  ;;  %v9403_v4 = vpop.f32.mrb[118].mxu0 }
 0xb46   : > { %10876 = vst [vmem:[#allocation15_spill] sm:$0xff] %v9403_v4  ;;  %v9405_v43 = vpop.f32.mrb[119].mxu0 }
 0xb47   : > { %10877 = vst [vmem:[#allocation27_spill] sm:$0xff] %v9405_v43  ;;  %v4015_v48 = vmax.f32 %v9403_v4, %v9405_v43 }
 0xb49   : > { %4016 = vmax.xlane.f32.xlu0 %v4015_v48  ;;  %v9409_v23 = vpop.f32.mrb[120].mxu0 }
 0xb4a   : > { %10878 = vst [vmem:[#allocation18_spill] sm:$0xff] %v9409_v23  ;;  %v9411_v51 = vpop.f32.mrb[121].mxu0 }
 0xb4b   : > { %10879 = vst [vmem:[#allocation13_spill] sm:$0xff] %v9411_v51  ;;  %v4018_v2 = vmax.f32 %v9409_v23, %v9411_v51 }
 0xb4d   : > { %4019 = vmax.xlane.f32.xlu1 %v4018_v2  ;;  %v9415_v6 = vpop.f32.mrb[122].mxu0 }
 0xb4e   : > { %10880 = vst [vmem:[#allocation17_spill] sm:$0xff] %v9415_v6  ;;  %v9417_v39 = vpop.f32.mrb[123].mxu0 }
 0xb4f   : > { %10881 = vst [vmem:[#allocation23_spill] sm:$0xff] %v9417_v39  ;;  %v4021_v58 = vmax.f32 %v9415_v6, %v9417_v39 }
 0xb51   : > { %4022 = vmax.xlane.f32.xlu0 %v4021_v58  ;;  %v9421_v42 = vpop.f32.mrb[124].mxu0 }
 0xb52   : > { %10882 = vst [vmem:[#allocation22_spill] sm:$0xff] %v9421_v42  ;;  %v9423_v1 = vpop.f32.mrb[125].mxu0 }
 0xb53   : > { %10883 = vst [vmem:[#allocation16_spill] sm:$0xff] %v9423_v1  ;;  %v4024_v53 = vmax.f32 %v9421_v42, %v9423_v1 }
 0xb55   : > { %4025 = vmax.xlane.f32.xlu1 %v4024_v53  ;;  %v9427_v12 = vpop.f32.mrb[126].mxu0 }
 0xb56   : > { %10884 = vst [vmem:[#allocation25_spill] sm:$0xff] %v9427_v12  ;;  %v9429_v22 = vpop.f32.mrb[127].mxu0 }
 0xb57   : > { %10885 = vst [vmem:[#allocation24_spill] sm:$0xff] %v9429_v22  ;;  %v4027_v56 = vmax.f32 %v9427_v12, %v9429_v22 }
 0xb59   : > { %4028 = vmax.xlane.f32.xlu0 %v4027_v56  ;;  %v9433_v33 = vpop.f32.mrb[128].mxu0 }
 0xb5a   : > { %v9435_v63 = vpop.f32.mrb[129].mxu0 }
 0xb5d   : > { %v9439_v36 = vpop.f32.mrb[130].mxu0 }
 0xb5e   : > { %v9441_v19 = vpop.f32.mrb[131].mxu0 }
 0xb61   : > { %v9445_v2 = vpop.f32.mrb[132].mxu0 }
 0xb62   : > { %v9447_v58 = vpop.f32.mrb[133].mxu0 }
 0xb65   : > { %v9451_v56 = vpop.f32.mrb[134].mxu0 }
 0xb66   : > { %v9453_v60 = vpop.f32.mrb[135].mxu0 }
 0xb69   : > { %v9457_v13 = vpop.f32.mrb[136].mxu0 }
 0xb6a   : > { %v9459_v47 = vpop.f32.mrb[137].mxu0 }
 0xb6d   : > { %v9463_v34 = vpop.f32.mrb[138].mxu0 }
 0xb6e   : > { %v9465_v25 = vpop.f32.mrb[139].mxu0 }
 0xb71   : > { %v9469_v22 = vpop.f32.mrb[140].mxu0 }
 0xb72   : > { %v9471_v12 = vpop.f32.mrb[141].mxu0 }
 0xb75   : > { %v9475_v1 = vpop.f32.mrb[142].mxu0 }
 0xb76   : > { %v9477_v42 = vpop.f32.mrb[143].mxu0 }
 0xb79   : > { %v9481_v39 = vpop.f32.mrb[144].mxu0 }
 0xb7a   : > { %10886 = vst [vmem:[#allocation14_spill] sm:$0xff] %v9481_v39  ;;  %v9483_v6 = vpop.f32.mrb[145].mxu0 }
 0xb7b   : > { %10887 = vst [vmem:[#allocation3_spill] sm:$0xff] %v9483_v6 }
 0xb7d   : > { %v9485_v51 = vpop.f32.mrb[146].mxu0 }
 0xb7e   : > { %10888 = vst [vmem:[#allocation28_spill] sm:$0xff] %v9485_v51  ;;  %v9487_v53 = vpop.f32.mrb[147].mxu0 }
 0xb7f   : > { %10889 = vst [vmem:[#allocation26_spill] sm:$0xff] %v9487_v53 }
 0xb81   : > { %v9489_v23 = vpop.f32.mrb[148].mxu0 }
 0xb82   : > { %10890 = vst [vmem:[#allocation8_spill] sm:$0xff] %v9489_v23  ;;  %v4608_v43 = vpop.f32.mrb[149].mxu0 }
 0xb83   : > { %v4609_v17 = vadd.f32 %v4608_v43, %v10865_v37 }
 0xb85   : > { %5572 = vmatprep.mubr.f32.mxu0 %v4609_v17 }
 0xb8a   : > { %v3960_v4 = vpop.xlane.xlu0 %3959 }
 0xb8b   : > { %v4054_v27 = vsub.f32 %v9289_v41, %v3960_v4  ;;  %v4055_v45 = vsub.f32 %v9291_v57, %v3960_v4 }
 0xb8d   : > { %v4118_v48 = vmul.f32 1.442695, %v4054_v27  ;;  %v4120_v3 = vmul.f32 1.442695, %v4055_v45 }
 0xb8e   : > { %v3963_v39 = vpop.xlane.xlu1 %3962 }
 0xb8f   : > { %6767 = vpow2.f32 %v4118_v48  ;;  %v4056_v6 = vsub.f32 %v9295_v21, %v3963_v39  ;;  %v4057_v51 = vsub.f32 %v9297_v31, %v3963_v39 }
 0xb90   : > { %6769 = vpow2.f32 %v4120_v3 }
 0xb91   : > { %v4122_v53 = vmul.f32 1.442695, %v4056_v6  ;;  %v4124_v23 = vmul.f32 1.442695, %v4057_v51 }
 0xb92   : > { %v3966_v59 = vpop.xlane.xlu1 %3965 }
 0xb93   : > { %6771 = vpow2.f32 %v4122_v53  ;;  %v4058_v43 = vsub.f32 %v9301_v5, %v3966_v59  ;;  %v4059_v17 = vsub.f32 %v9303_v44, %v3966_v59 }
 0xb94   : > { %6773 = vpow2.f32 %v4124_v23 }
 0xb95   : > { %v4126_v41 = vmul.f32 1.442695, %v4058_v43  ;;  %v4128_v57 = vmul.f32 1.442695, %v4059_v17 }
 0xb96   : > { %v3969_v27 = vpop.xlane.xlu0 %3968 }
 0xb97   : > { %6775 = vpow2.f32 %v4126_v41  ;;  %v4060_v45 = vsub.f32 %v9307_v18, %v3969_v27  ;;  %v4061_v21 = vsub.f32 %v9309_v38, %v3969_v27 }
 0xb98   : > { %6777 = vpow2.f32 %v4128_v57  ;;  %v10891_v57 = vmax.f32 %v9433_v33, %v9435_v63 }
 0xb99   : > { %v9500_v31 = vpop.eup %6767  ;;  %v4130_v3 = vmul.f32 1.442695, %v4060_v45  ;;  %v4132_v4 = vmul.f32 1.442695, %v4061_v21 }
 0xb9a   : > { %v9502_v51 = vpop.eup %6769  ;;  %v3972_v6 = vpop.xlane.xlu1 %3971 }
 0xb9b   : > { %6779 = vpow2.f32 %v4130_v3  ;;  %v4062_v5 = vsub.f32 %v9313_v49, %v3972_v6  ;;  %v4063_v44 = vsub.f32 %v9315_v8, %v3972_v6  ;;  %v4246_v59 = vadd.f32 %v9502_v51, %v9500_v31 }
 0xb9c   : > { %6781 = vpow2.f32 %v4132_v4 }
 0xb9d   : > { %v9508_v18 = vpop.eup %6771  ;;  %v4134_v38 = vmul.f32 1.442695, %v4062_v5  ;;  %v4136_v23 = vmul.f32 1.442695, %v4063_v44  ;;  %4247 = vadd.xlane.f32.xlu1 %v4246_v59  ;;  %v10892_v5 = vmax.f32 %v9439_v36, %v9441_v19 }
 0xb9e   : > { %v9510_v39 = vpop.eup %6773  ;;  %v3975_v48 = vpop.xlane.xlu0 %3974 }
 0xb9f   : > { %6783 = vpow2.f32 %v4134_v38  ;;  %v4064_v53 = vsub.f32 %v9319_v26, %v3975_v48  ;;  %v4065_v43 = vsub.f32 %v9321_v0, %v3975_v48  ;;  %v4249_v49 = vadd.f32 %v9510_v39, %v9508_v18 }
 0xba0   : > { %6785 = vpow2.f32 %v4136_v23 }
 0xba1   : > { %v9516_v8 = vpop.eup %6775  ;;  %v4138_v17 = vmul.f32 1.442695, %v4064_v53  ;;  %v4140_v41 = vmul.f32 1.442695, %v4065_v43  ;;  %4031 = vmax.xlane.f32.xlu1 %v10891_v57  ;;  %4250 = vadd.xlane.f32.xlu0 %v4249_v49  ;;  %v10893_v43 = vmax.f32 %v9445_v2, %v9447_v58 }
 0xba2   : > { %v9521_v27 = vpop.eup %6777  ;;  %v3978_v45 = vpop.xlane.xlu1 %3977 }
 0xba3   : > { %6787 = vpow2.f32 %v4138_v17  ;;  %v4066_v26 = vsub.f32 %v9325_v29, %v3978_v45  ;;  %v4067_v0 = vsub.f32 %v9327_v46, %v3978_v45  ;;  %v4252_v21 = vadd.f32 %v9521_v27, %v9516_v8 }
 0xba4   : > { %6789 = vpow2.f32 %v4140_v41 }
 0xba5   : > { %v9527_v3 = vpop.eup %6779  ;;  %v4142_v4 = vmul.f32 1.442695, %v4066_v26  ;;  %v4144_v6 = vmul.f32 1.442695, %v4067_v0  ;;  %4034 = vmax.xlane.f32.xlu0 %v10892_v5  ;;  %4253 = vadd.xlane.f32.xlu1 %v4252_v21  ;;  %v10894_v0 = vmax.f32 %v9451_v56, %v9453_v60 }
 0xba6   : > { %v9532_v44 = vpop.eup %6781  ;;  %v3981_v59 = vpop.xlane.xlu0 %3980 }
 0xba7   : > { %6791 = vpow2.f32 %v4142_v4  ;;  %v4068_v29 = vsub.f32 %v9331_v9, %v3981_v59  ;;  %v4069_v46 = vsub.f32 %v9333_v35, %v3981_v59  ;;  %v4255_v38 = vadd.f32 %v9532_v44, %v9527_v3 }
 0xba8   : > { %6793 = vpow2.f32 %v4144_v6 }
 0xba9   : > { %v9538_v23 = vpop.eup %6783  ;;  %v4146_v48 = vmul.f32 1.442695, %v4068_v29  ;;  %v4148_v53 = vmul.f32 1.442695, %v4069_v46  ;;  %4256 = vadd.xlane.f32.xlu0 %v4255_v38  ;;  %4037 = vmax.xlane.f32.xlu1 %v10893_v43  ;;  %v10895_v46 = vmax.f32 %v9457_v13, %v9459_v47 }
 0xbaa   : > { %v9543_v49 = vpop.eup %6785  ;;  %v3984_v17 = vpop.xlane.xlu1 %3983 }
 0xbab   : > { %6795 = vpow2.f32 %v4146_v48  ;;  %v4070_v9 = vsub.f32 %v9337_v11, %v3984_v17  ;;  %v4071_v35 = vsub.f32 %v9339_v40, %v3984_v17  ;;  %v4258_v41 = vadd.f32 %v9543_v49, %v9538_v23 }
 0xbac   : > { %6797 = vpow2.f32 %v4148_v53 }
 0xbad   : > { %v9549_v57 = vpop.eup %6787  ;;  %v4150_v45 = vmul.f32 1.442695, %v4070_v9  ;;  %v4152_v26 = vmul.f32 1.442695, %v4071_v35  ;;  %4040 = vmax.xlane.f32.xlu0 %v10894_v0  ;;  %4259 = vadd.xlane.f32.xlu1 %v4258_v41  ;;  %v10896_v35 = vmax.f32 %v9463_v34, %v9465_v25 }
 0xbae   : > { %v9554_v21 = vpop.eup %6789  ;;  %v3987_v4 = vpop.xlane.xlu0 %3986 }
 0xbaf   : > { %6799 = vpow2.f32 %v4150_v45  ;;  %v4072_v11 = vsub.f32 %v9343_v15, %v3987_v4  ;;  %v4073_v40 = vsub.f32 %v9345_v61, %v3987_v4  ;;  %v4261_v6 = vadd.f32 %v9554_v21, %v9549_v57 }
 0xbb0   : > { %6801 = vpow2.f32 %v4152_v26 }
 0xbb1   : > { %v9560_v5 = vpop.eup %6791  ;;  %v4154_v59 = vmul.f32 1.442695, %v4072_v11  ;;  %v4156_v29 = vmul.f32 1.442695, %v4073_v40  ;;  %4262 = vadd.xlane.f32.xlu0 %v4261_v6  ;;  %4043 = vmax.xlane.f32.xlu1 %v10895_v46  ;;  %v10897_v40 = vmax.f32 %v9469_v22, %v9471_v12 }
 0xbb2   : > { %v9565_v38 = vpop.eup %6793  ;;  %v3990_v48 = vpop.xlane.xlu1 %3989 }
 0xbb3   : > { %6803 = vpow2.f32 %v4154_v59  ;;  %v4074_v15 = vsub.f32 %v9349_v30, %v3990_v48  ;;  %v4075_v61 = vsub.f32 %v9351_v55, %v3990_v48  ;;  %v4264_v53 = vadd.f32 %v9565_v38, %v9560_v5 }
 0xbb4   : > { %6805 = vpow2.f32 %v4156_v29 }
 0xbb5   : > { %v9571_v43 = vpop.eup %6795  ;;  %v4158_v17 = vmul.f32 1.442695, %v4074_v15  ;;  %v4160_v9 = vmul.f32 1.442695, %v4075_v61  ;;  %4046 = vmax.xlane.f32.xlu0 %v10896_v35  ;;  %4265 = vadd.xlane.f32.xlu1 %v4264_v53  ;;  %v10898_v61 = vmax.f32 %v9475_v1, %v9477_v42 }
 0xbb6   : > { %v9576_v41 = vpop.eup %6797  ;;  %v3993_v45 = vpop.xlane.xlu0 %3992 }
 0xbb7   : > { %6807 = vpow2.f32 %v4158_v17  ;;  %v4076_v30 = vsub.f32 %v9355_v32, %v3993_v45  ;;  %v4077_v55 = vsub.f32 %v9357_v10, %v3993_v45  ;;  %v4267_v26 = vadd.f32 %v9576_v41, %v9571_v43 }
 0xbb8   : > { %6809 = vpow2.f32 %v4160_v9 }
 0xbb9   : > { %v9582_v0 = vpop.eup %6799  ;;  %v4162_v4 = vmul.f32 1.442695, %v4076_v30  ;;  %v4164_v11 = vmul.f32 1.442695, %v4077_v55  ;;  %4268 = vadd.xlane.f32.xlu0 %v4267_v26  ;;  %4049 = vmax.xlane.f32.xlu1 %v10897_v40 }
 0xbba   : > { %v9587_v6 = vpop.eup %6801  ;;  %v3996_v59 = vpop.xlane.xlu1 %3995 }
 0xbbb   : > { %6811 = vpow2.f32 %v4162_v4  ;;  %v4078_v32 = vsub.f32 %v9361_v54, %v3996_v59  ;;  %v4079_v10 = vsub.f32 %v9363_v7, %v3996_v59  ;;  %v4270_v29 = vadd.f32 %v9587_v6, %v9582_v0 }
 0xbbc   : > { %6813 = vpow2.f32 %v4164_v11 }
 0xbbd   : > { %v9593_v46 = vpop.eup %6803  ;;  %v4166_v48 = vmul.f32 1.442695, %v4078_v32  ;;  %v4168_v15 = vmul.f32 1.442695, %v4079_v10  ;;  %4052 = vmax.xlane.f32.xlu0 %v10898_v61  ;;  %4271 = vadd.xlane.f32.xlu1 %v4270_v29 }
 0xbbe   : > { %v9598_v53 = vpop.eup %6805  ;;  %v3999_v17 = vpop.xlane.xlu0 %3998 }
 0xbbf   : > { %6815 = vpow2.f32 %v4166_v48  ;;  %v4080_v54 = vsub.f32 %v9367_v14, %v3999_v17  ;;  %v4081_v7 = vsub.f32 %v9369_v62, %v3999_v17  ;;  %v4273_v9 = vadd.f32 %v9598_v53, %v9593_v46 }
 0xbc0   : > { %6817 = vpow2.f32 %v4168_v15 }
 0xbc1   : > { %v9604_v35 = vpop.eup %6807  ;;  %v4170_v45 = vmul.f32 1.442695, %v4080_v54  ;;  %v4172_v30 = vmul.f32 1.442695, %v4081_v7  ;;  %4274 = vadd.xlane.f32.xlu0 %v4273_v9 }
 0xbc2   : > { %v9606_v55 = vpop.eup %6809  ;;  %v4002_v26 = vpop.xlane.xlu1 %4001 }
 0xbc3   : > { %6819 = vpow2.f32 %v4170_v45  ;;  %v4082_v4 = vsub.f32 %v9373_v28, %v4002_v26  ;;  %v4083_v11 = vsub.f32 %v9375_v50, %v4002_v26  ;;  %v4276_v14 = vadd.f32 %v9606_v55, %v9604_v35 }
 0xbc4   : > { %6821 = vpow2.f32 %v4172_v30 }
 0xbc5   : > { %v9612_v62 = vpop.eup %6811  ;;  %v4174_v40 = vmul.f32 1.442695, %v4082_v4  ;;  %v4176_v59 = vmul.f32 1.442695, %v4083_v11  ;;  %4277 = vadd.xlane.f32.xlu1 %v4276_v14  ;;  %v10899_v11 = vld [vmem:[#allocation9_spill] sm:$0xff] }
 0xbc6   : > { %v9614_v32 = vpop.eup %6813  ;;  %v4005_v10 = vpop.xlane.xlu0 %4004 }
 0xbc7   : > { %6823 = vpow2.f32 %v4174_v40  ;;  %v4084_v29 = vsub.f32 %v9379_v16, %v4005_v10  ;;  %v4085_v48 = vsub.f32 %v9381_v24, %v4005_v10  ;;  %v4279_v28 = vadd.f32 %v9614_v32, %v9612_v62  ;;  %v10900_v40 = vld [vmem:[#allocation11_spill] sm:$0xff] }
 0xbc8   : > { %6825 = vpow2.f32 %v4176_v59 }
 0xbc9   : > { %v9620_v50 = vpop.eup %6815  ;;  %v4178_v15 = vmul.f32 1.442695, %v4084_v29  ;;  %v4180_v61 = vmul.f32 1.442695, %v4085_v48  ;;  %4280 = vadd.xlane.f32.xlu0 %v4279_v28 }
 0xbca   : > { %v9622_v17 = vpop.eup %6817  ;;  %v4008_v54 = vpop.xlane.xlu1 %4007 }
 0xbcb   : > { %6827 = vpow2.f32 %v4178_v15  ;;  %v4086_v7 = vsub.f32 %v9385_v52, %v4008_v54  ;;  %v4087_v9 = vsub.f32 %v9387_v20, %v4008_v54  ;;  %v4282_v16 = vadd.f32 %v9622_v17, %v9620_v50  ;;  %v10902_v15 = vld [vmem:[#allocation21_spill] sm:$0xff]  ;;  %v10903_v54 = vld [vmem:[#allocation20_spill] sm:$0xff] }
 0xbcc   : > { %6829 = vpow2.f32 %v4180_v61 }
 0xbcd   : > { %v9628_v24 = vpop.eup %6819  ;;  %v4182_v45 = vmul.f32 1.442695, %v4086_v7  ;;  %v4184_v30 = vmul.f32 1.442695, %v4087_v9  ;;  %4283 = vadd.xlane.f32.xlu1 %v4282_v16 }
 0xbce   : > { %v9630_v26 = vpop.eup %6821  ;;  %v4011_v4 = vpop.xlane.xlu0 %4010 }
 0xbcf   : > { %6831 = vpow2.f32 %v4182_v45  ;;  %v4088_v14 = vsub.f32 %v10899_v11, %v4011_v4  ;;  %v4089_v59 = vsub.f32 %v10900_v40, %v4011_v4  ;;  %v4285_v52 = vadd.f32 %v9630_v26, %v9628_v24 }
 0xbd0   : > { %6833 = vpow2.f32 %v4184_v30 }
 0xbd1   : > { %v9636_v20 = vpop.eup %6823  ;;  %v4186_v10 = vmul.f32 1.442695, %v4088_v14  ;;  %v4188_v29 = vmul.f32 1.442695, %v4089_v59  ;;  %4286 = vadd.xlane.f32.xlu0 %v4285_v52  ;;  %v10905_v14 = vld [vmem:[#allocation15_spill] sm:$0xff] }
 0xbd2   : > { %10901 = vst [vmem:[#allocation9_spill] sm:$0xff] %v9636_v20  ;;  %v9638_v48 = vpop.eup %6825  ;;  %v4014_v28 = vpop.xlane.xlu1 %4013  ;;  %v10906_v59 = vld [vmem:[#allocation27_spill] sm:$0xff] }
 0xbd3   : > { %6835 = vpow2.f32 %v4186_v10  ;;  %v4090_v61 = vsub.f32 %v10902_v15, %v4014_v28  ;;  %v4091_v7 = vsub.f32 %v10903_v54, %v4014_v28  ;;  %v4288_v9 = vadd.f32 %v9638_v48, %v9636_v20 }
 0xbd4   : > { %6837 = vpow2.f32 %v4188_v29 }
 0xbd5   : > { %v9644_v16 = vpop.eup %6827  ;;  %v4190_v45 = vmul.f32 1.442695, %v4090_v61  ;;  %v4192_v30 = vmul.f32 1.442695, %v4091_v7  ;;  %4289 = vadd.xlane.f32.xlu1 %v4288_v9  ;;  %v10909_v7 = vld [vmem:[#allocation18_spill] sm:$0xff] }
 0xbd6   : > { %10904 = vst [vmem:[#allocation11_spill] sm:$0xff] %v9644_v16  ;;  %v9646_v4 = vpop.eup %6829  ;;  %v4017_v11 = vpop.xlane.xlu0 %4016 }
 0xbd7   : > { %6839 = vpow2.f32 %v4190_v45  ;;  %v4092_v40 = vsub.f32 %v10905_v14, %v4017_v11  ;;  %v4093_v52 = vsub.f32 %v10906_v59, %v4017_v11  ;;  %v4291_v10 = vadd.f32 %v9646_v4, %v9644_v16  ;;  %v10910_v45 = vld [vmem:[#allocation13_spill] sm:$0xff] }
 0xbd8   : > { %6841 = vpow2.f32 %v4192_v30 }
 0xbd9   : > { %v9652_v28 = vpop.eup %6831  ;;  %v4194_v29 = vmul.f32 1.442695, %v4092_v40  ;;  %v4196_v15 = vmul.f32 1.442695, %v4093_v52  ;;  %4292 = vadd.xlane.f32.xlu0 %v4291_v10  ;;  %v10913_v10 = vld [vmem:[#allocation17_spill] sm:$0xff] }
 0xbda   : > { %10907 = vst [vmem:[#allocation21_spill] sm:$0xff] %v9652_v28  ;;  %v9654_v61 = vpop.eup %6833  ;;  %v4020_v54 = vpop.xlane.xlu1 %4019 }
 0xbdb   : > { %10908 = vst [vmem:[#allocation20_spill] sm:$0xff] %v9654_v61  ;;  %6843 = vpow2.f32 %v4194_v29  ;;  %v4094_v9 = vsub.f32 %v10909_v7, %v4020_v54  ;;  %v4095_v37 = vsub.f32 %v10910_v45, %v4020_v54  ;;  %v4294_v11 = vadd.f32 %v9654_v61, %v9652_v28  ;;  %v10914_v29 = vld [vmem:[#allocation23_spill] sm:$0xff] }
 0xbdc   : > { %6845 = vpow2.f32 %v4196_v15 }
 0xbdd   : > { %v9660_v14 = vpop.eup %6835  ;;  %v4198_v30 = vmul.f32 1.442695, %v4094_v9  ;;  %v4200_v59 = vmul.f32 1.442695, %v4095_v37  ;;  %4295 = vadd.xlane.f32.xlu1 %v4294_v11  ;;  %v10915_v11 = vld [vmem:[#allocation22_spill] sm:$0xff] }
 0xbde   : > { %10911 = vst [vmem:[#allocation15_spill] sm:$0xff] %v9660_v14  ;;  %v9662_v40 = vpop.eup %6837  ;;  %v4023_v52 = vpop.xlane.xlu0 %4022 }
 0xbdf   : > { %10912 = vst [vmem:[#allocation27_spill] sm:$0xff] %v9662_v40  ;;  %6847 = vpow2.f32 %v4198_v30  ;;  %v4096_v20 = vsub.f32 %v10913_v10, %v4023_v52  ;;  %v4097_v16 = vsub.f32 %v10914_v29, %v4023_v52  ;;  %v4297_v54 = vadd.f32 %v9662_v40, %v9660_v14  ;;  %v10916_v30 = vld [vmem:[#allocation16_spill] sm:$0xff] }
 0xbe0   : > { %6849 = vpow2.f32 %v4200_v59 }
 0xbe1   : > { %v9668_v7 = vpop.eup %6839  ;;  %v4202_v15 = vmul.f32 1.442695, %v4096_v20  ;;  %v4204_v45 = vmul.f32 1.442695, %v4097_v16  ;;  %4298 = vadd.xlane.f32.xlu0 %v4297_v54  ;;  %v10917_v54 = vld [vmem:[#allocation25_spill] sm:$0xff] }
 0xbe2   : > { %v9670_v9 = vpop.eup %6841  ;;  %v4026_v37 = vpop.xlane.xlu1 %4025 }
 0xbe3   : > { %6851 = vpow2.f32 %v4202_v15  ;;  %v4098_v28 = vsub.f32 %v10915_v11, %v4026_v37  ;;  %v4099_v61 = vsub.f32 %v10916_v30, %v4026_v37  ;;  %v4300_v52 = vadd.f32 %v9670_v9, %v9668_v7  ;;  %v10918_v15 = vld [vmem:[#allocation24_spill] sm:$0xff] }
 0xbe4   : > { %6853 = vpow2.f32 %v4204_v45 }
 0xbe5   : > { %v9676_v10 = vpop.eup %6843  ;;  %v4206_v59 = vmul.f32 1.442695, %v4098_v28  ;;  %v4208_v29 = vmul.f32 1.442695, %v4099_v61  ;;  %4301 = vadd.xlane.f32.xlu1 %v4300_v52 }
 0xbe6   : > { %v9678_v20 = vpop.eup %6845  ;;  %v4029_v16 = vpop.xlane.xlu0 %4028 }
 0xbe7   : > { %6855 = vpow2.f32 %v4206_v59  ;;  %v4100_v14 = vsub.f32 %v10917_v54, %v4029_v16  ;;  %v4101_v40 = vsub.f32 %v10918_v15, %v4029_v16  ;;  %v4303_v37 = vadd.f32 %v9678_v20, %v9676_v10 }
 0xbe8   : > { %6857 = vpow2.f32 %v4208_v29 }
 0xbe9   : > { %v9684_v11 = vpop.eup %6847  ;;  %v4210_v45 = vmul.f32 1.442695, %v4100_v14  ;;  %v4212_v30 = vmul.f32 1.442695, %v4101_v40  ;;  %4304 = vadd.xlane.f32.xlu0 %v4303_v37 }
 0xbea   : > { %10919 = vst [vmem:[#allocation18_spill] sm:$0xff] %v9684_v11  ;;  %v9686_v28 = vpop.eup %6849 }
 0xbeb   : > { %10920 = vst [vmem:[#allocation13_spill] sm:$0xff] %v9686_v28  ;;  %6859 = vpow2.f32 %v4210_v45  ;;  %v4306_v61 = vadd.f32 %v9686_v28, %v9684_v11 }
 0xbec   : > { %6861 = vpow2.f32 %v4212_v30 }
 0xbed   : > { %v9690_v52 = vpop.eup %6851  ;;  %4307 = vadd.xlane.f32.xlu1 %v4306_v61 }
 0xbee   : > { %10921 = vst [vmem:[#allocation17_spill] sm:$0xff] %v9690_v52  ;;  %v9692_v59 = vpop.eup %6853 }
 0xbef   : > { %10922 = vst [vmem:[#allocation23_spill] sm:$0xff] %v9692_v59  ;;  %v4309_v29 = vadd.f32 %v9692_v59, %v9690_v52 }
 0xbf1   : > { %v9696_v16 = vpop.eup %6855  ;;  %4310 = vadd.xlane.f32.xlu0 %v4309_v29 }
 0xbf2   : > { %10923 = vst [vmem:[#allocation22_spill] sm:$0xff] %v9696_v16  ;;  %v9698_v14 = vpop.eup %6857 }
 0xbf3   : > { %10924 = vst [vmem:[#allocation16_spill] sm:$0xff] %v9698_v14  ;;  %v4312_v40 = vadd.f32 %v9698_v14, %v9696_v16 }
 0xbf5   : > { %v9702_v54 = vpop.eup %6859  ;;  %4313 = vadd.xlane.f32.xlu1 %v4312_v40 }
 0xbf6   : > { %10925 = vst [vmem:[#allocation25_spill] sm:$0xff] %v9702_v54  ;;  %v9704_v15 = vpop.eup %6861 }
 0xbf7   : > { %10926 = vst [vmem:[#allocation24_spill] sm:$0xff] %v9704_v15  ;;  %v4315_v37 = vadd.f32 %v9704_v15, %v9702_v54 }
 0xbf9   : > { %4316 = vadd.xlane.f32.xlu0 %v4315_v37 }
 0xc2a   : > { %v4248_v45 = vpop.xlane.xlu1 %4247 }
 0xc2b   : > { %6863 = vrcp.f32 %v4248_v45 }
 0xc2e   : > { %v4251_v30 = vpop.xlane.xlu0 %4250  ;;  %v4032_v61 = vpop.xlane.xlu1 %4031 }
 0xc2f   : > { %6865 = vrcp.f32 %v4251_v30  ;;  %v4102_v29 = vsub.f32 %v9433_v33, %v4032_v61  ;;  %v4103_v11 = vsub.f32 %v9435_v63, %v4032_v61 }
 0xc31   : > { %v4214_v52 = vmul.f32 1.442695, %v4102_v29  ;;  %v4216_v16 = vmul.f32 1.442695, %v4103_v11 }
 0xc32   : > { %v4035_v14 = vpop.xlane.xlu0 %4034  ;;  %v4254_v59 = vpop.xlane.xlu1 %4253 }
 0xc33   : > { %6867 = vpow2.f32 %v4214_v52  ;;  %v4104_v40 = vsub.f32 %v9439_v36, %v4035_v14  ;;  %v4105_v28 = vsub.f32 %v9441_v19, %v4035_v14 }
 0xc34   : > { %6869 = vpow2.f32 %v4216_v16 }
 0xc35   : > { %v4218_v37 = vmul.f32 1.442695, %v4104_v40  ;;  %v4220_v54 = vmul.f32 1.442695, %v4105_v28  ;;  %6871 = vrcp.f32 %v4254_v59  ;;  %v6864_v30 = vpop.eup %6863 }
 0xc36   : > { %v4257_v45 = vpop.xlane.xlu0 %4256  ;;  %v4038_v15 = vpop.xlane.xlu1 %4037  ;;  %v4375_v19 = vmul.f32 %v6864_v30, %v9502_v51  ;;  %v4374_v59 = vmul.f32 %v6864_v30, %v9500_v31 }
 0xc37   : > { %6873 = vpow2.f32 %v4218_v37  ;;  %v4106_v33 = vsub.f32 %v9445_v2, %v4038_v15  ;;  %v4107_v63 = vsub.f32 %v9447_v58, %v4038_v15 }
 0xc38   : > { %6875 = vpow2.f32 %v4220_v54 }
 0xc39   : > { %v6866_v11 = vpop.eup %6865  ;;  %6877 = vrcp.f32 %v4257_v45  ;;  %v4222_v52 = vmul.f32 1.442695, %v4106_v33  ;;  %v4224_v61 = vmul.f32 1.442695, %v4107_v63 }
 0xc3a   : > { %v4041_v36 = vpop.xlane.xlu0 %4040  ;;  %v4260_v29 = vpop.xlane.xlu1 %4259  ;;  %v4377_v28 = vmul.f32 %v6866_v11, %v9510_v39  ;;  %v4376_v16 = vmul.f32 %v6866_v11, %v9508_v18 }
 0xc3b   : > { %6879 = vpow2.f32 %v4222_v52  ;;  %v4108_v2 = vsub.f32 %v9451_v56, %v4041_v36  ;;  %v4109_v58 = vsub.f32 %v9453_v60, %v4041_v36 }
 0xc3c   : > { %6881 = vpow2.f32 %v4224_v61  ;;  %v6046_v14 = vpack.c.bf16 %v4377_v28, %v4375_v19  ;;  %v6048_v54 = vpack.c.bf16 %v4376_v16, %v4374_v59 }
 0xc3d   : > { %v9720_v15 = vpop.eup %6867  ;;  %v4226_v40 = vmul.f32 1.442695, %v4108_v2  ;;  %v4228_v37 = vmul.f32 1.442695, %v4109_v58  ;;  %6883 = vrcp.f32 %v4260_v29 }
 0xc3e   : > { %v9722_v51 = vpop.eup %6869  ;;  %v4263_v39 = vpop.xlane.xlu0 %4262  ;;  %6047 = vmatprep.subr.bf16.mxu1 %v6046_v14 }
 0xc3f   : > { %v4044_v31 = vpop.xlane.xlu1 %4043  ;;  %v6872_v45 = vpop.eup %6871  ;;  %6885 = vpow2.f32 %v4226_v40  ;;  %6049 = vmatpush1.bf16.xpose.msra.mxu1 %v6048_v54  ;;  %v4318_v60 = vadd.f32 %v9722_v51, %v9720_v15 }
 0xc40   : > { %v4110_v18 = vsub.f32 %v9457_v13, %v4044_v31  ;;  %v4111_v56 = vsub.f32 %v9459_v47, %v4044_v31  ;;  %6887 = vpow2.f32 %v4228_v37  ;;  %v4379_v36 = vmul.f32 %v6872_v45, %v9521_v27 }
 0xc41   : > { %v9728_v30 = vpop.eup %6873  ;;  %6889 = vrcp.f32 %v4263_v39  ;;  %4319 = vadd.xlane.f32.xlu1 %v4318_v60  ;;  %v4378_v59 = vmul.f32 %v6872_v45, %v9516_v8 }
 0xc42   : > { %v4230_v33 = vmul.f32 1.442695, %v4110_v18  ;;  %v4232_v63 = vmul.f32 1.442695, %v4111_v56  ;;  %v9730_v11 = vpop.eup %6875  ;;  %v4047_v52 = vpop.xlane.xlu0 %4046 }
 0xc43   : > { %v4266_v61 = vpop.xlane.xlu1 %4265  ;;  %v6878_v13 = vpop.eup %6877  ;;  %v4112_v47 = vsub.f32 %v9463_v34, %v4047_v52  ;;  %v4113_v29 = vsub.f32 %v9465_v25, %v4047_v52  ;;  %v4321_v19 = vadd.f32 %v9730_v11, %v9728_v30 }
 0xc44   : > { %6891 = vpow2.f32 %v4230_v33  ;;  %v4381_v28 = vmul.f32 %v6878_v13, %v9532_v44  ;;  %v4380_v16 = vmul.f32 %v6878_v13, %v9527_v3 }
 0xc45   : > { %6893 = vpow2.f32 %v4232_v63  ;;  %v9740_v2 = vpop.eup %6879  ;;  %v4234_v58 = vmul.f32 1.442695, %v4112_v47  ;;  %v4236_v27 = vmul.f32 1.442695, %v4113_v29  ;;  %4322 = vadd.xlane.f32.xlu0 %v4321_v19 }
 0xc46   : > { %v9742_v14 = vpop.eup %6881  ;;  %6895 = vrcp.f32 %v4266_v61  ;;  %v4269_v34 = vpop.xlane.xlu0 %4268  ;;  %v6050_v25 = vpack.c.bf16 %v4381_v28, %v4379_v36  ;;  %v6052_v40 = vpack.c.bf16 %v4380_v16, %v4378_v59 }
 0xc47   : > { %v4050_v54 = vpop.xlane.xlu1 %4049  ;;  %v6884_v37 = vpop.eup %6883  ;;  %6897 = vpow2.f32 %v4234_v58  ;;  %v4324_v3 = vadd.f32 %v9742_v14, %v9740_v2 }
 0xc48   : > { %v4114_v44 = vsub.f32 %v9469_v22, %v4050_v54  ;;  %v4115_v8 = vsub.f32 %v9471_v12, %v4050_v54  ;;  %6899 = vpow2.f32 %v4236_v27  ;;  %6051 = vmatprep.subr.bf16.mxu1 %v6050_v25  ;;  %v4383_v60 = vmul.f32 %v6884_v37, %v9543_v49 }
 0xc49   : > { %v9748_v39 = vpop.eup %6885  ;;  %6901 = vrcp.f32 %v4269_v34  ;;  %6053 = vmatpush1.bf16.xpose.msra.mxu1 %v6052_v40  ;;  %4325 = vadd.xlane.f32.xlu1 %v4324_v3  ;;  %v4382_v36 = vmul.f32 %v6884_v37, %v9538_v23 }
 0xc4a   : > { %v4238_v31 = vmul.f32 1.442695, %v4114_v44  ;;  %v4240_v45 = vmul.f32 1.442695, %v4115_v8  ;;  %v9750_v18 = vpop.eup %6887  ;;  %v4053_v56 = vpop.xlane.xlu0 %4052 }
 0xc4b   : > { %v6890_v22 = vpop.eup %6889  ;;  %v4116_v12 = vsub.f32 %v9475_v1, %v4053_v56  ;;  %v4117_v33 = vsub.f32 %v9477_v42, %v4053_v56  ;;  %v4272_v63 = vpop.xlane.xlu1 %4271  ;;  %v4327_v52 = vadd.f32 %v9750_v18, %v9748_v39 }
 0xc4c   : > { %6903 = vpow2.f32 %v4238_v31  ;;  %v4385_v61 = vmul.f32 %v6890_v22, %v9554_v21  ;;  %v4384_v13 = vmul.f32 %v6890_v22, %v9549_v57 }
 0xc4d   : > { %6905 = vpow2.f32 %v4240_v45  ;;  %v4242_v49 = vmul.f32 1.442695, %v4116_v12  ;;  %v4244_v29 = vmul.f32 1.442695, %v4117_v33  ;;  %4328 = vadd.xlane.f32.xlu0 %v4327_v52 }
 0xc4e   : > { %v9760_v47 = vpop.eup %6891  ;;  %6907 = vrcp.f32 %v4272_v63  ;;  %v4275_v42 = vpop.xlane.xlu0 %4274  ;;  %v6054_v1 = vpack.c.bf16 %v4385_v61, %v4383_v60  ;;  %v6056_v28 = vpack.c.bf16 %v4384_v13, %v4382_v36 }
 0xc4f   : > { %v9762_v19 = vpop.eup %6893  ;;  %6909 = vpow2.f32 %v4242_v49 }
 0xc50   : > { %v4330_v59 = vadd.f32 %v9762_v19, %v9760_v47  ;;  %v6896_v21 = vpop.eup %6895  ;;  %6911 = vpow2.f32 %v4244_v29  ;;  %6055 = vmatprep.subr.bf16.mxu1 %v6054_v1 }
 0xc51   : > { %v9766_v23 = vpop.eup %6897  ;;  %6913 = vrcp.f32 %v4275_v42  ;;  %6057 = vmatpush1.bf16.xpose.msra.mxu1 %v6056_v28  ;;  %v4387_v34 = vmul.f32 %v6896_v21, %v9565_v38  ;;  %v4386_v54 = vmul.f32 %v6896_v21, %v9560_v5 }
 0xc52   : > { %4331 = vadd.xlane.f32.xlu1 %v4330_v59  ;;  %v9768_v57 = vpop.eup %6899  ;;  %v4278_v16 = vpop.xlane.xlu1 %4277 }
 0xc53   : > { %v6902_v58 = vpop.eup %6901  ;;  %v4333_v27 = vadd.f32 %v9768_v57, %v9766_v23  ;;  %6915 = vrcp.f32 %v4278_v16 }
 0xc54   : > { %v4389_v25 = vmul.f32 %v6902_v58, %v9576_v41  ;;  %v4388_v40 = vmul.f32 %v6902_v58, %v9571_v43 }
 0xc55   : > { %4334 = vadd.xlane.f32.xlu0 %v4333_v27 }
 0xc56   : > { %v9776_v37 = vpop.eup %6903  ;;  %v4281_v8 = vpop.xlane.xlu0 %4280  ;;  %v6058_v3 = vpack.c.bf16 %v4389_v25, %v4387_v34  ;;  %v6060_v31 = vpack.c.bf16 %v4388_v40, %v4386_v54 }
 0xc57   : > { %v9778_v44 = vpop.eup %6905  ;;  %6917 = vrcp.f32 %v4281_v8 }
 0xc58   : > { %v4336_v45 = vadd.f32 %v9778_v44, %v9776_v37  ;;  %v6908_v38 = vpop.eup %6907  ;;  %6059 = vmatprep.subr.bf16.mxu1 %v6058_v3  ;;  %v10927_v3 = vld [vmem:[#allocation11_spill] sm:$0xff] }
 0xc59   : > { %v9782_v41 = vpop.eup %6909  ;;  %6061 = vmatpush1.bf16.xpose.msra.mxu1 %v6060_v31  ;;  %v4391_v22 = vmul.f32 %v6908_v38, %v9587_v6  ;;  %v4390_v33 = vmul.f32 %v6908_v38, %v9582_v0  ;;  %v10928_v31 = vld [vmem:[#allocation9_spill] sm:$0xff] }
 0xc5a   : > { %4337 = vadd.xlane.f32.xlu1 %v4336_v45  ;;  %v9784_v5 = vpop.eup %6911  ;;  %v4284_v43 = vpop.xlane.xlu1 %4283 }
 0xc5b   : > { %v6914_v56 = vpop.eup %6913  ;;  %v4339_v60 = vadd.f32 %v9784_v5, %v9782_v41  ;;  %6919 = vrcp.f32 %v4284_v43 }
 0xc5c   : > { %v4393_v12 = vmul.f32 %v6914_v56, %v9598_v53  ;;  %v4392_v63 = vmul.f32 %v6914_v56, %v9593_v46 }
 0xc5d   : > { %4340 = vadd.xlane.f32.xlu0 %v4339_v60  ;;  %v6916_v13 = vpop.eup %6915 }
 0xc5e   : > { %v4287_v52 = vpop.xlane.xlu0 %4286  ;;  %v6062_v61 = vpack.c.bf16 %v4393_v12, %v4391_v22  ;;  %v6064_v36 = vpack.c.bf16 %v4392_v63, %v4390_v33  ;;  %v4395_v42 = vmul.f32 %v6916_v13, %v9606_v55  ;;  %v4394_v0 = vmul.f32 %v6916_v13, %v9604_v35  ;;  %v10929_v22 = vld [vmem:[#allocation20_spill] sm:$0xff]  ;;  %v10930_v33 = vld [vmem:[#allocation27_spill] sm:$0xff] }
 0xc5f   : > { %6921 = vrcp.f32 %v4287_v52  ;;  %v10931_v63 = vld [vmem:[#allocation15_spill] sm:$0xff]  ;;  %v10932_v52 = vld [vmem:[#allocation21_spill] sm:$0xff] }
 0xc60   : > { %6063 = vmatprep.subr.bf16.mxu1 %v6062_v61 }
 0xc61   : > { %v6918_v49 = vpop.eup %6917  ;;  %6065 = vmatpush1.bf16.xpose.msra.mxu1 %v6064_v36 }
 0xc62   : > { %v4290_v29 = vpop.xlane.xlu1 %4289  ;;  %v4397_v6 = vmul.f32 %v6918_v49, %v9614_v32  ;;  %v4396_v53 = vmul.f32 %v6918_v49, %v9612_v62 }
 0xc63   : > { %6923 = vrcp.f32 %v4290_v29 }
 0xc64   : > { %v6066_v46 = vpack.c.bf16 %v4397_v6, %v4395_v42  ;;  %v6068_v1 = vpack.c.bf16 %v4396_v53, %v4394_v0 }
 0xc65   : > { %v6920_v59 = vpop.eup %6919 }
 0xc66   : > { %v4293_v28 = vpop.xlane.xlu0 %4292  ;;  %6067 = vmatprep.subr.bf16.mxu1 %v6066_v46  ;;  %v4399_v58 = vmul.f32 %v6920_v59, %v9622_v17  ;;  %v4398_v62 = vmul.f32 %v6920_v59, %v9620_v50 }
 0xc67   : > { %6925 = vrcp.f32 %v4293_v28 }
 0xc69   : > { %v6922_v21 = vpop.eup %6921  ;;  %6069 = vmatpush1.bf16.xpose.msra.mxu1 %v6068_v1 }
 0xc6a   : > { %v4296_v16 = vpop.xlane.xlu1 %4295  ;;  %v4401_v55 = vmul.f32 %v6922_v21, %v9630_v26  ;;  %v4400_v32 = vmul.f32 %v6922_v21, %v9628_v24 }
 0xc6b   : > { %6927 = vrcp.f32 %v4296_v16 }
 0xc6c   : > { %v6070_v27 = vpack.c.bf16 %v4401_v55, %v4399_v58  ;;  %v6072_v35 = vpack.c.bf16 %v4400_v32, %v4398_v62  ;;  %v10933_v58 = vld [vmem:[#allocation4_spill] sm:$0xff]  ;;  %v10934_v55 = vld [vmem:[#allocation3_spill] sm:$0xff] }
 0xc6d   : > { %v6924_v25 = vpop.eup %6923  ;;  %v4597_v32 = vadd.f32 %v10934_v55, %v10933_v58 }
 0xc6e   : > { %v4299_v34 = vpop.xlane.xlu0 %4298  ;;  %6071 = vmatprep.subr.bf16.mxu1 %v6070_v27  ;;  %v4403_v8 = vmul.f32 %v6924_v25, %v9638_v48  ;;  %v4402_v24 = vmul.f32 %v6924_v25, %v10928_v31  ;;  %v10940_v31 = vld [vmem:[#allocation16_spill] sm:$0xff] }
 0xc6f   : > { %6929 = vrcp.f32 %v4299_v34  ;;  %v10938_v34 = vld [vmem:[#allocation17_spill] sm:$0xff] }
 0xc71   : > { %v6926_v54 = vpop.eup %6925  ;;  %6073 = vmatpush1.bf16.xpose.msra.mxu1 %v6072_v35  ;;  %v10937_v35 = vld [vmem:[#allocation23_spill] sm:$0xff] }
 0xc72   : > { %v4302_v40 = vpop.xlane.xlu1 %4301  ;;  %v4405_v17 = vmul.f32 %v6926_v54, %v9646_v4  ;;  %v4404_v26 = vmul.f32 %v6926_v54, %v10927_v3  ;;  %v10939_v54 = vld [vmem:[#allocation18_spill] sm:$0xff] }
 0xc73   : > { %6931 = vrcp.f32 %v4302_v40 }
 0xc74   : > { %v6074_v45 = vpack.c.bf16 %v4405_v17, %v4403_v8  ;;  %v6076_v50 = vpack.c.bf16 %v4404_v26, %v4402_v24 }
 0xc75   : > { %v6928_v43 = vpop.eup %6927 }
 0xc76   : > { %v4305_v38 = vpop.xlane.xlu0 %4304  ;;  %6075 = vmatprep.subr.bf16.mxu1 %v6074_v45  ;;  %v4407_v12 = vmul.f32 %v6928_v43, %v10929_v22  ;;  %v4406_v61 = vmul.f32 %v6928_v43, %v10932_v52  ;;  %v10941_v45 = vld [vmem:[#allocation24_spill] sm:$0xff] }
 0xc77   : > { %6933 = vrcp.f32 %v4305_v38  ;;  %v10942_v38 = vld [vmem:[#allocation25_spill] sm:$0xff] }
 0xc79   : > { %v6930_v56 = vpop.eup %6929  ;;  %6077 = vmatpush1.bf16.xpose.msra.mxu1 %v6076_v50 }
 0xc7a   : > { %v4308_v60 = vpop.xlane.xlu1 %4307  ;;  %v4409_v48 = vmul.f32 %v6930_v56, %v10930_v33  ;;  %v4408_v4 = vmul.f32 %v6930_v56, %v10931_v63  ;;  %v10943_v56 = vld [vmem:[#allocation22_spill] sm:$0xff] }
 0xc7b   : > { %6935 = vrcp.f32 %v4308_v60 }
 0xc7c   : > { %v6078_v36 = vpack.c.bf16 %v4409_v48, %v4407_v12  ;;  %v6080_v13 = vpack.c.bf16 %v4408_v4, %v4406_v61 }
 0xc7d   : > { %v6932_v29 = vpop.eup %6931 }
 0xc7e   : > { %v4311_v49 = vpop.xlane.xlu0 %4310  ;;  %6079 = vmatprep.subr.bf16.mxu1 %v6078_v36  ;;  %v4411_v53 = vmul.f32 %v6932_v29, %v9670_v9  ;;  %v4410_v1 = vmul.f32 %v6932_v29, %v9668_v7  ;;  %v10935_v9 = vld [vmem:[#allocation14_spill] sm:$0xff] }
 0xc7f   : > { %6937 = vrcp.f32 %v4311_v49  ;;  %v4595_v27 = vadd.f32 %v10935_v9, %v10933_v58 }
 0xc81   : > { %v6934_v42 = vpop.eup %6933  ;;  %6081 = vmatpush1.bf16.xpose.msra.mxu1 %v6080_v13 }
 0xc82   : > { %v4314_v6 = vpop.xlane.xlu1 %4313  ;;  %v4413_v0 = vmul.f32 %v6934_v42, %v9678_v20  ;;  %v4412_v46 = vmul.f32 %v6934_v42, %v9676_v10  ;;  %v10936_v20 = vld [vmem:[#allocation13_spill] sm:$0xff] }
 0xc83   : > { %6939 = vrcp.f32 %v4314_v6 }
 0xc84   : > { %v6082_v28 = vpack.c.bf16 %v4413_v0, %v4411_v53  ;;  %v6084_v59 = vpack.c.bf16 %v4412_v46, %v4410_v1 }
 0xc85   : > { %v6936_v16 = vpop.eup %6935 }
 0xc86   : > { %v4317_v21 = vpop.xlane.xlu0 %4316  ;;  %6083 = vmatprep.subr.bf16.mxu1 %v6082_v28  ;;  %v4415_v10 = vmul.f32 %v6936_v16, %v10936_v20  ;;  %v4414_v40 = vmul.f32 %v6936_v16, %v10939_v54  ;;  %v10947_v54 = vld [vmem:[#allocation6_spill] sm:$0xff] }
 0xc87   : > { %6941 = vrcp.f32 %v4317_v21 }
 0xc89   : > { %v6938_v62 = vpop.eup %6937  ;;  %6085 = vmatpush1.bf16.xpose.msra.mxu1 %v6084_v59 }
 0xc8a   : > { %4643 = vxpose.xlu0.b32.start.end [1/1] (short) %v4597_v32, 128  ;;  %v4417_v7 = vmul.f32 %v6938_v62, %v10937_v35  ;;  %v4416_v25 = vmul.f32 %v6938_v62, %v10938_v34  ;;  %v10944_v34 = vld [vmem:[#allocation5_spill] sm:$0xff] }
 0xc8c   : > { %v6086_v8 = vpack.c.bf16 %v4417_v7, %v4415_v10  ;;  %v6088_v17 = vpack.c.bf16 %v4416_v25, %v4414_v40 }
 0xc8d   : > { %4611 = vxpose.xlu1.b32.start.end [1/1] (short) %v4595_v27, 128  ;;  %v6940_v3 = vpop.eup %6939 }
 0xc8e   : > { %6087 = vmatprep.subr.bf16.mxu1 %v6086_v8  ;;  %v4419_v24 = vmul.f32 %v6940_v3, %v10940_v31  ;;  %v4418_v60 = vmul.f32 %v6940_v3, %v10943_v56  ;;  %v10948_v8 = vld [vmem:[#allocation28_spill] sm:$0xff] }
 0xc91   : > { %v6942_v26 = vpop.eup %6941  ;;  %6089 = vmatpush1.bf16.xpose.msra.mxu1 %v6088_v17 }
 0xc92   : > { %v4421_v50 = vmul.f32 %v6942_v26, %v10941_v45  ;;  %v4420_v43 = vmul.f32 %v6942_v26, %v10942_v38 }
 0xc94   : > { %v6090_v22 = vpack.c.bf16 %v4421_v50, %v4419_v24  ;;  %v6092_v12 = vpack.c.bf16 %v4420_v43, %v4418_v60 }
 0xc96   : > { %6091 = vmatprep.subr.bf16.mxu1 %v6090_v22 }
 0xc99   : > { %6093 = vmatpush1.bf16.xpose.msra.mxu1 %v6092_v12 }
 0xcce   : > { %v4320_v33 = vpop.xlane.xlu1 %4319 }
 0xccf   : > { %6943 = vrcp.f32 %v4320_v33 }
 0xcd2   : > { %v4323_v48 = vpop.xlane.xlu0 %4322 }
 0xcd3   : > { %6945 = vrcp.f32 %v4323_v48 }
 0xcd6   : > { %v4326_v63 = vpop.xlane.xlu1 %4325 }
 0xcd7   : > { %6947 = vrcp.f32 %v4326_v63 }
 0xcd9   : > { %v6944_v52 = vpop.eup %6943 }
 0xcda   : > { %v4329_v4 = vpop.xlane.xlu0 %4328  ;;  %v4423_v13 = vmul.f32 %v6944_v52, %v9722_v51  ;;  %v4422_v29 = vmul.f32 %v6944_v52, %v9720_v15 }
 0xcdb   : > { %6949 = vrcp.f32 %v4329_v4 }
 0xcdd   : > { %v6946_v61 = vpop.eup %6945 }
 0xcde   : > { %v4425_v49 = vmul.f32 %v6946_v61, %v9730_v11  ;;  %v4424_v42 = vmul.f32 %v6946_v61, %v9728_v30 }
 0xcdf   : > { %v4332_v36 = vpop.xlane.xlu1 %4331 }
 0xce0   : > { %v6094_v6 = vpack.c.bf16 %v4425_v49, %v4423_v13  ;;  %v6096_v53 = vpack.c.bf16 %v4424_v42, %v4422_v29  ;;  %6951 = vrcp.f32 %v4332_v36 }
 0xce1   : > { %v6948_v46 = vpop.eup %6947 }
 0xce2   : > { %v4335_v0 = vpop.xlane.xlu0 %4334  ;;  %6095 = vmatprep.subr.bf16.mxu1 %v6094_v6  ;;  %v4427_v59 = vmul.f32 %v6948_v46, %v9742_v14  ;;  %v4426_v11 = vmul.f32 %v6948_v46, %v9740_v2 }
 0xce3   : > { %6953 = vrcp.f32 %v4335_v0  ;;  %6097 = vmatpush1.bf16.xpose.msra.mxu1 %v6096_v53 }
 0xce5   : > { %v6950_v1 = vpop.eup %6949 }
 0xce6   : > { %v4429_v51 = vmul.f32 %v6950_v1, %v9750_v18  ;;  %v4428_v15 = vmul.f32 %v6950_v1, %v9748_v39 }
 0xce7   : > { %v4338_v28 = vpop.xlane.xlu1 %4337 }
 0xce8   : > { %v6098_v21 = vpack.c.bf16 %v4429_v51, %v4427_v59  ;;  %v6100_v30 = vpack.c.bf16 %v4428_v15, %v4426_v11  ;;  %6955 = vrcp.f32 %v4338_v28  ;;  %v10950_v51 = vld [vmem:[#allocation10_spill] sm:$0xff] }
 0xcea   : > { %v4341_v16 = vpop.xlane.xlu0 %4340  ;;  %6099 = vmatprep.subr.bf16.mxu1 %v6098_v21  ;;  %v6952_v58 = vpop.eup %6951 }
 0xceb   : > { %6957 = vrcp.f32 %v4341_v16  ;;  %6101 = vmatpush1.bf16.xpose.msra.mxu1 %v6100_v30  ;;  %v4431_v32 = vmul.f32 %v6952_v58, %v9762_v19  ;;  %v4430_v14 = vmul.f32 %v6952_v58, %v9760_v47  ;;  %v10945_v47 = vld [vmem:[#allocation26_spill] sm:$0xff]  ;;  %v10951_v58 = vld [vmem:[#allocation7_spill] sm:$0xff] }
 0xcec   : > { %v4603_v25 = vadd.f32 %v10945_v47, %v10944_v34  ;;  %v7163_v30 = vld [vmem:[%s7227_s26 + $0x18] sm:$0xff] }
 0xced   : > { %v6954_v55 = vpop.eup %6953 }
 0xcee   : > { %v4433_v62 = vmul.f32 %v6954_v55, %v9768_v57  ;;  %v4432_v18 = vmul.f32 %v6954_v55, %v9766_v23  ;;  %v10946_v23 = vld [vmem:[#allocation19_spill] sm:$0xff] }
 0xcef   : > { %v3537_v40 = vadd.f32 %v10947_v54, %v10946_v23 }
 0xcf0   : > { %v6102_v2 = vpack.c.bf16 %v4433_v62, %v4431_v32  ;;  %v6104_v9 = vpack.c.bf16 %v4432_v18, %v4430_v14 }
 0xcf2   : > { %6103 = vmatprep.subr.bf16.mxu1 %v6102_v2  ;;  %v6956_v39 = vpop.eup %6955 }
 0xcf3   : > { %6105 = vmatpush1.bf16.xpose.msra.mxu1 %v6104_v9  ;;  %v4435_v20 = vmul.f32 %v6956_v39, %v9778_v44  ;;  %v4434_v35 = vmul.f32 %v6956_v39, %v9776_v37  ;;  %v4601_v44 = vadd.f32 %v10948_v8, %v10944_v34 }
 0xcf5   : > { %v6958_v27 = vpop.eup %6957 }
 0xcf6   : > { %v4437_v10 = vmul.f32 %v6958_v27, %v9784_v5  ;;  %v4436_v19 = vmul.f32 %v6958_v27, %v9782_v41  ;;  %v10949_v5 = vmov 0.0  }
 0xcf8   : > { %v6106_v7 = vpack.c.bf16 %v4437_v10, %v4435_v20  ;;  %v6108_v57 = vpack.c.bf16 %v4436_v19, %v4434_v35 }
 0xcfa   : > { %6107 = vmatprep.subr.bf16.mxu1 %v6106_v7 }
 0xcfb   : > { %6109 = vmatpush1.bf16.xpose.msra.mxu1 %v6108_v57 }
 0xcfc   : > { %4771 = vmatprep.subr.mxu1 %v4603_v25 }
 0xd02   : > { %4503 = vmatmul.mubr.f32.vlgmr.msra.gmra.mrb[142].mxu1 %v3537_v40 }
 0xd03   : > { %4772 = vmatpush1.msra.mxu1 %v4601_v44  ;;  %4835 = vmatprep.mubr.f32.mxu1 %v10949_v5 }
 0xd0a   : > { %v4659_v38 = vpop.trf.xlu0 }
 0xd0d   : > { %v4627_v37 = vpop.trf.xlu1 }
 0xd0e   : > { %5817 = vmatmul.mubr.msk.f32.vlgmr.msra.gmra.mrb[144].mxu1 %vm394_vm2, %v4627_v37  ;;  %v4660_v60 = vpop.trf.xlu0 }
 0xd0f   : > { %4841 = vmatprep.mubr.f32.mxu1 %v10949_v5 }
 0xd11   : > { %v4628_v41 = vpop.trf.xlu1 }
 0xd12   : > { %5818 = vmatmul.mubr.msk.f32.gmra.mrb[146].mxu1 %vm394_vm2, %v4628_v41  ;;  %v4661_v12 = vpop.trf.xlu0 }
 0xd13   : > { %4847 = vmatprep.mubr.f32.mxu1 %v10949_v5 }
 0xd15   : > { %v4629_v17 = vpop.trf.xlu1 }
 0xd16   : > { %5819 = vmatmul.mubr.msk.f32.gmra.mrb[148].mxu1 %vm394_vm2, %v4629_v17  ;;  %v4662_v63 = vpop.trf.xlu0 }
 0xd17   : > { %4853 = vmatprep.mubr.f32.mxu1 %v10949_v5 }
 0xd19   : > { %v4630_v3 = vpop.trf.xlu1 }
 0xd1a   : > { %5820 = vmatmul.mubr.msk.f32.gmra.mrb[150].mxu1 %vm394_vm2, %v4630_v3  ;;  %v4663_v52 = vpop.trf.xlu0 }
 0xd1b   : > { %4859 = vmatprep.mubr.f32.mxu1 %v10949_v5 }
 0xd1d   : > { %v4631_v26 = vpop.trf.xlu1 }
 0xd1e   : > { %5821 = vmatmul.mubr.msk.f32.gmra.mrb[152].mxu1 %vm394_vm2, %v4631_v26  ;;  %v4664_v36 = vpop.trf.xlu0 }
 0xd1f   : > { %4865 = vmatprep.mubr.f32.mxu1 %v10949_v5 }
 0xd21   : > { %v4632_v31 = vpop.trf.xlu1 }
 0xd22   : > { %5822 = vmatmul.mubr.msk.f32.gmra.mrb[154].mxu1 %vm394_vm2, %v4632_v31  ;;  %v4665_v13 = vpop.trf.xlu0 }
 0xd23   : > { %4871 = vmatprep.mubr.f32.mxu1 %v10949_v5 }
 0xd25   : > { %v4633_v24 = vpop.trf.xlu1 }
 0xd26   : > { %5823 = vmatmul.mubr.msk.f32.gmra.mrb[156].mxu1 %vm394_vm2, %v4633_v24  ;;  %v4666_v49 = vpop.trf.xlu0 }
 0xd27   : > { %4877 = vmatprep.mubr.f32.mxu1 %v10949_v5 }
 0xd29   : > { %v4634_v45 = vpop.trf.xlu1 }
 0xd2a   : > { %5824 = vmatmul.mubr.msk.f32.gmra.mrb[158].mxu1 %vm394_vm2, %v4634_v45  ;;  %v4667_v29 = vpop.trf.xlu0 }
 0xd2b   : > { %4883 = vmatprep.mubr.f32.mxu1 %v10949_v5 }
 0xd2d   : > { %v4635_v50 = vpop.trf.xlu1 }
 0xd2e   : > { %5825 = vmatmul.mubr.msk.f32.gmra.mrb[160].mxu1 %vm394_vm2, %v4635_v50  ;;  %v4668_v42 = vpop.trf.xlu0 }
 0xd2f   : > { %4889 = vmatprep.mubr.f32.mxu1 %v10949_v5 }
 0xd31   : > { %v4636_v43 = vpop.trf.xlu1 }
 0xd32   : > { %5826 = vmatmul.mubr.msk.f32.gmra.mrb[162].mxu1 %vm394_vm2, %v4636_v43  ;;  %v4669_v6 = vpop.trf.xlu0 }
 0xd33   : > { %4895 = vmatprep.mubr.f32.mxu1 %v10949_v5 }
 0xd35   : > { %v4637_v56 = vpop.trf.xlu1 }
 0xd36   : > { %5827 = vmatmul.mubr.msk.f32.gmra.mrb[164].mxu1 %vm394_vm2, %v4637_v56  ;;  %v4670_v53 = vpop.trf.xlu0 }
 0xd37   : > { %4901 = vmatprep.mubr.f32.mxu1 %v10949_v5 }
 0xd39   : > { %v4638_v22 = vpop.trf.xlu1 }
 0xd3a   : > { %5828 = vmatmul.mubr.msk.f32.gmra.mrb[166].mxu1 %vm394_vm2, %v4638_v22  ;;  %v4671_v0 = vpop.trf.xlu0 }
 0xd3b   : > { %4907 = vmatprep.mubr.f32.mxu1 %v10949_v5 }
 0xd3d   : > { %v4639_v33 = vpop.trf.xlu1 }
 0xd3e   : > { %5829 = vmatmul.mubr.msk.f32.gmra.mrb[168].mxu1 %vm394_vm2, %v4639_v33  ;;  %v4672_v46 = vpop.trf.xlu0 }
 0xd3f   : > { %4913 = vmatprep.mubr.f32.mxu1 %v10949_v5 }
 0xd41   : > { %v4640_v48 = vpop.trf.xlu1 }
 0xd42   : > { %5830 = vmatmul.mubr.msk.f32.gmra.mrb[170].mxu1 %vm394_vm2, %v4640_v48  ;;  %v4673_v1 = vpop.trf.xlu0 }
 0xd43   : > { %4919 = vmatprep.mubr.f32.mxu1 %v10949_v5 }
 0xd45   : > { %v4641_v4 = vpop.trf.xlu1 }
 0xd46   : > { %5831 = vmatmul.mubr.msk.f32.gmra.mrb[172].mxu1 %vm394_vm2, %v4641_v4  ;;  %v4674_v28 = vpop.trf.xlu0 }
 0xd47   : > { %4925 = vmatprep.mubr.f32.mxu1 %v10949_v5 }
 0xd49   : > { %v4642_v61 = vpop.trf.xlu1 }
 0xd4a   : > { %5832 = vmatmul.mubr.msk.f32.gmra.mrb[174].mxu1 %vm394_vm2, %v4642_v61 }
 0xd4b   : > { %4931 = vmatprep.mubr.f32.mxu1 %v10949_v5 }
 0xd4e   : > { %5833 = vmatmul.mubr.msk.f32.gmra.mrb[176].mxu1 %vm394_vm2, %v4659_v38 }
 0xd4f   : > { %4937 = vmatprep.mubr.f32.mxu1 %v10949_v5 }
 0xd52   : > { %5834 = vmatmul.mubr.msk.f32.gmra.mrb[178].mxu1 %vm394_vm2, %v4660_v60 }
 0xd53   : > { %4943 = vmatprep.mubr.f32.mxu1 %v10949_v5 }
 0xd56   : > { %5835 = vmatmul.mubr.msk.f32.gmra.mrb[180].mxu1 %vm394_vm2, %v4661_v12 }
 0xd57   : > { %4949 = vmatprep.mubr.f32.mxu1 %v10949_v5 }
 0xd5a   : > { %5836 = vmatmul.mubr.msk.f32.gmra.mrb[182].mxu1 %vm394_vm2, %v4662_v63 }
 0xd5b   : > { %4955 = vmatprep.mubr.f32.mxu1 %v10949_v5 }
 0xd5e   : > { %5837 = vmatmul.mubr.msk.f32.gmra.mrb[184].mxu1 %vm394_vm2, %v4663_v52 }
 0xd5f   : > { %4961 = vmatprep.mubr.f32.mxu1 %v10949_v5 }
 0xd62   : > { %5838 = vmatmul.mubr.msk.f32.gmra.mrb[186].mxu1 %vm394_vm2, %v4664_v36 }
 0xd63   : > { %4967 = vmatprep.mubr.f32.mxu1 %v10949_v5 }
 0xd66   : > { %5839 = vmatmul.mubr.msk.f32.gmra.mrb[188].mxu1 %vm394_vm2, %v4665_v13 }
 0xd67   : > { %4973 = vmatprep.mubr.f32.mxu1 %v10949_v5 }
 0xd6a   : > { %5840 = vmatmul.mubr.msk.f32.gmra.mrb[190].mxu1 %vm394_vm2, %v4666_v49 }
 0xd6b   : > { %4979 = vmatprep.mubr.f32.mxu1 %v10949_v5 }
 0xd6e   : > { %5841 = vmatmul.mubr.msk.f32.gmra.mrb[192].mxu1 %vm394_vm2, %v4667_v29 }
 0xd6f   : > { %4985 = vmatprep.mubr.f32.mxu1 %v10949_v5 }
 0xd72   : > { %5842 = vmatmul.mubr.msk.f32.gmra.mrb[194].mxu1 %vm394_vm2, %v4668_v42 }
 0xd73   : > { %4991 = vmatprep.mubr.f32.mxu1 %v10949_v5 }
 0xd76   : > { %5843 = vmatmul.mubr.msk.f32.gmra.mrb[196].mxu1 %vm394_vm2, %v4669_v6 }
 0xd77   : > { %4997 = vmatprep.mubr.f32.mxu1 %v10949_v5 }
 0xd7a   : > { %5844 = vmatmul.mubr.msk.f32.gmra.mrb[198].mxu1 %vm394_vm2, %v4670_v53 }
 0xd7b   : > { %5003 = vmatprep.mubr.f32.mxu1 %v10949_v5 }
 0xd7e   : > { %5845 = vmatmul.mubr.msk.f32.gmra.mrb[200].mxu1 %vm394_vm2, %v4671_v0 }
 0xd7f   : > { %5009 = vmatprep.mubr.f32.mxu1 %v10949_v5 }
 0xd82   : > { %5846 = vmatmul.mubr.msk.f32.gmra.mrb[202].mxu1 %vm394_vm2, %v4672_v46 }
 0xd83   : > { %5015 = vmatprep.mubr.f32.mxu1 %v10949_v5 }
 0xd86   : > { %5847 = vmatmul.mubr.msk.f32.gmra.mrb[204].mxu1 %vm394_vm2, %v4673_v1 }
 0xd87   : > { %5021 = vmatprep.mubr.f32.mxu1 %v10949_v5 }
 0xd8a   : > { %5848 = vmatmul.mubr.msk.f32.gmra.mrb[206].mxu1 %vm394_vm2, %v4674_v28 }
 0xdd5   : > { %v4504_v59 = vpop.f32.mrb[142].mxu1 }
 0xdd6   : > { %v4509_v11 = vmul.f32 %v4504_v59, %v10950_v51  ;;  %v4506_v15 = vpop.f32.mrb[143].mxu1 }
 0xdd7   : > { %v4510_v21 = vmul.f32 %v4506_v15, %v10950_v51 }
 0xdd8   : > { %v4512_v16 = vadd.f32 %v7163_v30, %v4509_v11 }
 0xdd9   : > { %v4513_v55 = vadd.f32 %v4510_v21, %v10951_v58 }
 0xddb   : > { %v4516_v32 = vcombine.low %v4512_v16, %v4513_v55 }
 0xddd   : > { %5810 = vst [vmem:[%s7992_s3 + $0x18] sm:$0xff] %v4516_v32 }
 0xde1   : > { %v9915_v62 = vpop.f32.mrb[144].mxu1 }
 0xde2   : > { %v9917_v14 = vpop.f32.mrb[145].mxu1 }
 0xde3   : > { %v5028_v18 = vmax.f32 %v9915_v62, %v9917_v14 }
 0xde5   : > { %5029 = vmax.xlane.f32.xlu0 %v5028_v18  ;;  %v9921_v2 = vpop.f32.mrb[146].mxu1 }
 0xde6   : > { %v9923_v9 = vpop.f32.mrb[147].mxu1 }
 0xde7   : > { %v5031_v39 = vmax.f32 %v9921_v2, %v9923_v9 }
 0xde9   : > { %5032 = vmax.xlane.f32.xlu1 %v5031_v39  ;;  %v9927_v27 = vpop.f32.mrb[148].mxu1 }
 0xdea   : > { %v9929_v20 = vpop.f32.mrb[149].mxu1 }
 0xdeb   : > { %v5034_v10 = vmax.f32 %v9927_v27, %v9929_v20 }
 0xded   : > { %5035 = vmax.xlane.f32.xlu1 %v5034_v10  ;;  %v9933_v35 = vpop.f32.mrb[150].mxu1 }
 0xdee   : > { %v9935_v19 = vpop.f32.mrb[151].mxu1 }
 0xdef   : > { %v5037_v7 = vmax.f32 %v9933_v35, %v9935_v19 }
 0xdf1   : > { %5038 = vmax.xlane.f32.xlu0 %v5037_v7  ;;  %v9939_v57 = vpop.f32.mrb[152].mxu1 }
 0xdf2   : > { %v9941_v34 = vpop.f32.mrb[153].mxu1 }
 0xdf3   : > { %v5040_v47 = vmax.f32 %v9939_v57, %v9941_v34 }
 0xdf5   : > { %5041 = vmax.xlane.f32.xlu1 %v5040_v47  ;;  %v9945_v25 = vpop.f32.mrb[154].mxu1 }
 0xdf6   : > { %v9947_v54 = vpop.f32.mrb[155].mxu1 }
 0xdf7   : > { %v5043_v40 = vmax.f32 %v9945_v25, %v9947_v54 }
 0xdf9   : > { %5044 = vmax.xlane.f32.xlu0 %v5043_v40  ;;  %v9951_v8 = vpop.f32.mrb[156].mxu1 }
 0xdfa   : > { %v9953_v44 = vpop.f32.mrb[157].mxu1 }
 0xdfb   : > { %v5046_v5 = vmax.f32 %v9951_v8, %v9953_v44 }
 0xdfd   : > { %5047 = vmax.xlane.f32.xlu1 %v5046_v5  ;;  %v9957_v37 = vpop.f32.mrb[158].mxu1 }
 0xdfe   : > { %v9959_v41 = vpop.f32.mrb[159].mxu1 }
 0xdff   : > { %v5049_v17 = vmax.f32 %v9957_v37, %v9959_v41 }
 0xe01   : > { %5050 = vmax.xlane.f32.xlu0 %v5049_v17  ;;  %v9963_v3 = vpop.f32.mrb[160].mxu1 }
 0xe02   : > { %v9965_v26 = vpop.f32.mrb[161].mxu1 }
 0xe03   : > { %v5052_v31 = vmax.f32 %v9963_v3, %v9965_v26 }
 0xe05   : > { %5053 = vmax.xlane.f32.xlu1 %v5052_v31  ;;  %v9969_v24 = vpop.f32.mrb[162].mxu1 }
 0xe06   : > { %v9971_v45 = vpop.f32.mrb[163].mxu1 }
 0xe07   : > { %v5055_v50 = vmax.f32 %v9969_v24, %v9971_v45 }
 0xe09   : > { %5056 = vmax.xlane.f32.xlu0 %v5055_v50  ;;  %v9975_v38 = vpop.f32.mrb[164].mxu1 }
 0xe0a   : > { %v9977_v43 = vpop.f32.mrb[165].mxu1 }
 0xe0b   : > { %v5058_v56 = vmax.f32 %v9975_v38, %v9977_v43 }
 0xe0d   : > { %5059 = vmax.xlane.f32.xlu1 %v5058_v56  ;;  %v9981_v60 = vpop.f32.mrb[166].mxu1 }
 0xe0e   : > { %v9983_v22 = vpop.f32.mrb[167].mxu1 }
 0xe0f   : > { %v5061_v12 = vmax.f32 %v9981_v60, %v9983_v22 }
 0xe11   : > { %5062 = vmax.xlane.f32.xlu0 %v5061_v12  ;;  %v9987_v33 = vpop.f32.mrb[168].mxu1 }
 0xe12   : > { %v9989_v48 = vpop.f32.mrb[169].mxu1 }
 0xe13   : > { %v5064_v63 = vmax.f32 %v9987_v33, %v9989_v48 }
 0xe15   : > { %5065 = vmax.xlane.f32.xlu1 %v5064_v63  ;;  %v9993_v4 = vpop.f32.mrb[170].mxu1 }
 0xe16   : > { %v9995_v52 = vpop.f32.mrb[171].mxu1 }
 0xe17   : > { %v5067_v61 = vmax.f32 %v9993_v4, %v9995_v52 }
 0xe19   : > { %5068 = vmax.xlane.f32.xlu0 %v5067_v61  ;;  %v9999_v36 = vpop.f32.mrb[172].mxu1 }
 0xe1a   : > { %v10001_v13 = vpop.f32.mrb[173].mxu1 }
 0xe1b   : > { %v5070_v49 = vmax.f32 %v9999_v36, %v10001_v13 }
 0xe1d   : > { %5071 = vmax.xlane.f32.xlu1 %v5070_v49  ;;  %v10005_v29 = vpop.f32.mrb[174].mxu1 }
 0xe1e   : > { %v10007_v42 = vpop.f32.mrb[175].mxu1 }
 0xe1f   : > { %v5073_v6 = vmax.f32 %v10005_v29, %v10007_v42 }
 0xe21   : > { %5074 = vmax.xlane.f32.xlu0 %v5073_v6  ;;  %v10011_v53 = vpop.f32.mrb[176].mxu1 }
 0xe22   : > { %v10013_v0 = vpop.f32.mrb[177].mxu1 }
 0xe23   : > { %v5076_v46 = vmax.f32 %v10011_v53, %v10013_v0 }
 0xe25   : > { %5077 = vmax.xlane.f32.xlu1 %v5076_v46  ;;  %v10017_v1 = vpop.f32.mrb[178].mxu1 }
 0xe26   : > { %v10019_v28 = vpop.f32.mrb[179].mxu1 }
 0xe27   : > { %10952 = vst [vmem:[#allocation11_spill] sm:$0xff] %v10019_v28  ;;  %v5079_v59 = vmax.f32 %v10017_v1, %v10019_v28 }
 0xe29   : > { %5080 = vmax.xlane.f32.xlu0 %v5079_v59  ;;  %v10023_v11 = vpop.f32.mrb[180].mxu1 }
 0xe2a   : > { %10953 = vst [vmem:[#allocation9_spill] sm:$0xff] %v10023_v11  ;;  %v10025_v15 = vpop.f32.mrb[181].mxu1 }
 0xe2b   : > { %10954 = vst [vmem:[#allocation20_spill] sm:$0xff] %v10025_v15  ;;  %v5082_v21 = vmax.f32 %v10023_v11, %v10025_v15 }
 0xe2d   : > { %5083 = vmax.xlane.f32.xlu1 %v5082_v21  ;;  %v10029_v30 = vpop.f32.mrb[182].mxu1 }
 0xe2e   : > { %10955 = vst [vmem:[#allocation27_spill] sm:$0xff] %v10029_v30  ;;  %v10031_v16 = vpop.f32.mrb[183].mxu1 }
 0xe2f   : > { %10956 = vst [vmem:[#allocation15_spill] sm:$0xff] %v10031_v16  ;;  %v5085_v58 = vmax.f32 %v10029_v30, %v10031_v16 }
 0xe31   : > { %5086 = vmax.xlane.f32.xlu0 %v5085_v58  ;;  %v10035_v55 = vpop.f32.mrb[184].mxu1 }
 0xe32   : > { %10957 = vst [vmem:[#allocation21_spill] sm:$0xff] %v10035_v55  ;;  %v10037_v32 = vpop.f32.mrb[185].mxu1 }
 0xe33   : > { %10958 = vst [vmem:[#allocation4_spill] sm:$0xff] %v10037_v32  ;;  %v5088_v18 = vmax.f32 %v10035_v55, %v10037_v32 }
 0xe35   : > { %5089 = vmax.xlane.f32.xlu1 %v5088_v18  ;;  %v10041_v39 = vpop.f32.mrb[186].mxu1 }
 0xe36   : > { %10959 = vst [vmem:[#allocation3_spill] sm:$0xff] %v10041_v39  ;;  %v10043_v10 = vpop.f32.mrb[187].mxu1 }
 0xe37   : > { %10960 = vst [vmem:[#allocation14_spill] sm:$0xff] %v10043_v10  ;;  %v5091_v7 = vmax.f32 %v10041_v39, %v10043_v10 }
 0xe39   : > { %5092 = vmax.xlane.f32.xlu0 %v5091_v7  ;;  %v10047_v47 = vpop.f32.mrb[188].mxu1 }
 0xe3a   : > { %10961 = vst [vmem:[#allocation13_spill] sm:$0xff] %v10047_v47  ;;  %v10049_v40 = vpop.f32.mrb[189].mxu1 }
 0xe3b   : > { %10962 = vst [vmem:[#allocation23_spill] sm:$0xff] %v10049_v40  ;;  %v5094_v5 = vmax.f32 %v10047_v47, %v10049_v40 }
 0xe3d   : > { %5095 = vmax.xlane.f32.xlu1 %v5094_v5  ;;  %v10053_v17 = vpop.f32.mrb[190].mxu1 }
 0xe3e   : > { %10963 = vst [vmem:[#allocation17_spill] sm:$0xff] %v10053_v17  ;;  %v10055_v31 = vpop.f32.mrb[191].mxu1 }
 0xe3f   : > { %10964 = vst [vmem:[#allocation18_spill] sm:$0xff] %v10055_v31  ;;  %v5097_v50 = vmax.f32 %v10053_v17, %v10055_v31 }
 0xe41   : > { %5098 = vmax.xlane.f32.xlu0 %v5097_v50  ;;  %v10059_v56 = vpop.f32.mrb[192].mxu1 }
 0xe42   : > { %v10061_v12 = vpop.f32.mrb[193].mxu1 }
 0xe45   : > { %v10065_v61 = vpop.f32.mrb[194].mxu1 }
 0xe46   : > { %v10067_v49 = vpop.f32.mrb[195].mxu1 }
 0xe49   : > { %v10071_v46 = vpop.f32.mrb[196].mxu1 }
 0xe4a   : > { %v10073_v59 = vpop.f32.mrb[197].mxu1 }
 0xe4d   : > { %v10077_v58 = vpop.f32.mrb[198].mxu1 }
 0xe4e   : > { %v10079_v18 = vpop.f32.mrb[199].mxu1 }
 0xe51   : > { %v10083_v5 = vpop.f32.mrb[200].mxu1 }
 0xe52   : > { %v10085_v50 = vpop.f32.mrb[201].mxu1 }
 0xe55   : > { %v10089_v63 = vpop.f32.mrb[202].mxu1 }
 0xe56   : > { %v10091_v51 = vpop.f32.mrb[203].mxu1 }
 0xe59   : > { %v10095_v23 = vpop.f32.mrb[204].mxu1 }
 0xe5a   : > { %v10097_v31 = vpop.f32.mrb[205].mxu1 }
 0xe5d   : > { %v10101_v17 = vpop.f32.mrb[206].mxu1 }
 0xe5e   : > { %v10103_v40 = vpop.f32.mrb[207].mxu1 }
 0xe72   : > { %v5030_v47 = vpop.xlane.xlu0 %5029 }
 0xe73   : > { %v5124_v10 = vsub.f32 %v9915_v62, %v5030_v47  ;;  %v5125_v39 = vsub.f32 %v9917_v14, %v5030_v47 }
 0xe75   : > { %v5188_v21 = vmul.f32 1.442695, %v5124_v10  ;;  %v5190_v32 = vmul.f32 1.442695, %v5125_v39 }
 0xe76   : > { %v5033_v55 = vpop.xlane.xlu1 %5032 }
 0xe77   : > { %6959 = vpow2.f32 %v5188_v21  ;;  %v5126_v16 = vsub.f32 %v9921_v2, %v5033_v55  ;;  %v5127_v7 = vsub.f32 %v9923_v9, %v5033_v55 }
 0xe78   : > { %6961 = vpow2.f32 %v5190_v32 }
 0xe79   : > { %v5192_v30 = vmul.f32 1.442695, %v5126_v16  ;;  %v5194_v15 = vmul.f32 1.442695, %v5127_v7 }
 0xe7a   : > { %v5036_v11 = vpop.xlane.xlu1 %5035 }
 0xe7b   : > { %6963 = vpow2.f32 %v5192_v30  ;;  %v5128_v6 = vsub.f32 %v9927_v27, %v5036_v11  ;;  %v5129_v28 = vsub.f32 %v9929_v20, %v5036_v11 }
 0xe7c   : > { %6965 = vpow2.f32 %v5194_v15 }
 0xe7d   : > { %v5196_v62 = vmul.f32 1.442695, %v5128_v6  ;;  %v5198_v14 = vmul.f32 1.442695, %v5129_v28 }
 0xe7e   : > { %v5039_v10 = vpop.xlane.xlu0 %5038 }
 0xe7f   : > { %6967 = vpow2.f32 %v5196_v62  ;;  %v5130_v39 = vsub.f32 %v9933_v35, %v5039_v10  ;;  %v5131_v2 = vsub.f32 %v9935_v19, %v5039_v10 }
 0xe80   : > { %6969 = vpow2.f32 %v5198_v14  ;;  %v10965_v14 = vmax.f32 %v10059_v56, %v10061_v12 }
 0xe81   : > { %v10115_v9 = vpop.eup %6959  ;;  %v5200_v16 = vmul.f32 1.442695, %v5130_v39  ;;  %v5202_v55 = vmul.f32 1.442695, %v5131_v2 }
 0xe82   : > { %v10117_v32 = vpop.eup %6961  ;;  %v5042_v30 = vpop.xlane.xlu1 %5041 }
 0xe83   : > { %6971 = vpow2.f32 %v5200_v16  ;;  %v5132_v27 = vsub.f32 %v9939_v57, %v5042_v30  ;;  %v5133_v20 = vsub.f32 %v9941_v34, %v5042_v30  ;;  %v5316_v28 = vadd.f32 %v10117_v32, %v10115_v9 }
 0xe84   : > { %6973 = vpow2.f32 %v5202_v55 }
 0xe85   : > { %v10123_v35 = vpop.eup %6963  ;;  %v5204_v19 = vmul.f32 1.442695, %v5132_v27  ;;  %v5206_v11 = vmul.f32 1.442695, %v5133_v20  ;;  %5317 = vadd.xlane.f32.xlu1 %v5316_v28  ;;  %v10966_v27 = vmax.f32 %v10065_v61, %v10067_v49 }
 0xe86   : > { %v10125_v15 = vpop.eup %6965  ;;  %v5045_v47 = vpop.xlane.xlu0 %5044 }
 0xe87   : > { %6975 = vpow2.f32 %v5204_v19  ;;  %v5134_v6 = vsub.f32 %v9945_v25, %v5045_v47  ;;  %v5135_v21 = vsub.f32 %v9947_v54, %v5045_v47  ;;  %v5319_v57 = vadd.f32 %v10125_v15, %v10123_v35 }
 0xe88   : > { %6977 = vpow2.f32 %v5206_v11 }
 0xe89   : > { %v10131_v34 = vpop.eup %6967  ;;  %v5208_v7 = vmul.f32 1.442695, %v5134_v6  ;;  %v5210_v62 = vmul.f32 1.442695, %v5135_v21  ;;  %5101 = vmax.xlane.f32.xlu1 %v10965_v14  ;;  %5320 = vadd.xlane.f32.xlu0 %v5319_v57  ;;  %v10967_v21 = vmax.f32 %v10071_v46, %v10073_v59 }
 0xe8a   : > { %v10136_v10 = vpop.eup %6969  ;;  %v5048_v39 = vpop.xlane.xlu1 %5047 }
 0xe8b   : > { %6979 = vpow2.f32 %v5208_v7  ;;  %v5136_v25 = vsub.f32 %v9951_v8, %v5048_v39  ;;  %v5137_v54 = vsub.f32 %v9953_v44, %v5048_v39  ;;  %v5322_v2 = vadd.f32 %v10136_v10, %v10131_v34 }
 0xe8c   : > { %6981 = vpow2.f32 %v5210_v62 }
 0xe8d   : > { %v10142_v16 = vpop.eup %6971  ;;  %v5212_v55 = vmul.f32 1.442695, %v5136_v25  ;;  %v5214_v30 = vmul.f32 1.442695, %v5137_v54  ;;  %5104 = vmax.xlane.f32.xlu0 %v10966_v27  ;;  %5323 = vadd.xlane.f32.xlu1 %v5322_v2  ;;  %v10968_v54 = vmax.f32 %v10077_v58, %v10079_v18 }
 0xe8e   : > { %v10147_v20 = vpop.eup %6973  ;;  %v5051_v28 = vpop.xlane.xlu0 %5050 }
 0xe8f   : > { %6983 = vpow2.f32 %v5212_v55  ;;  %v5138_v8 = vsub.f32 %v9957_v37, %v5051_v28  ;;  %v5139_v44 = vsub.f32 %v9959_v41, %v5051_v28  ;;  %v5325_v19 = vadd.f32 %v10147_v20, %v10142_v16 }
 0xe90   : > { %6985 = vpow2.f32 %v5214_v30 }
 0xe91   : > { %v10153_v11 = vpop.eup %6975  ;;  %v5216_v47 = vmul.f32 1.442695, %v5138_v8  ;;  %v5218_v6 = vmul.f32 1.442695, %v5139_v44  ;;  %5326 = vadd.xlane.f32.xlu0 %v5325_v19  ;;  %5107 = vmax.xlane.f32.xlu1 %v10967_v21  ;;  %v10969_v44 = vmax.f32 %v10083_v5, %v10085_v50 }
 0xe92   : > { %v10158_v57 = vpop.eup %6977  ;;  %v5054_v7 = vpop.xlane.xlu1 %5053 }
 0xe93   : > { %6987 = vpow2.f32 %v5216_v47  ;;  %v5140_v37 = vsub.f32 %v9963_v3, %v5054_v7  ;;  %v5141_v41 = vsub.f32 %v9965_v26, %v5054_v7  ;;  %v5328_v62 = vadd.f32 %v10158_v57, %v10153_v11 }
 0xe94   : > { %6989 = vpow2.f32 %v5218_v6 }
 0xe95   : > { %v10164_v14 = vpop.eup %6979  ;;  %v5220_v39 = vmul.f32 1.442695, %v5140_v37  ;;  %v5222_v25 = vmul.f32 1.442695, %v5141_v41  ;;  %5110 = vmax.xlane.f32.xlu0 %v10968_v54  ;;  %5329 = vadd.xlane.f32.xlu1 %v5328_v62  ;;  %v10970_v41 = vmax.f32 %v10089_v63, %v10091_v51 }
 0xe96   : > { %v10169_v2 = vpop.eup %6981  ;;  %v5057_v55 = vpop.xlane.xlu0 %5056 }
 0xe97   : > { %6991 = vpow2.f32 %v5220_v39  ;;  %v5142_v3 = vsub.f32 %v9969_v24, %v5057_v55  ;;  %v5143_v26 = vsub.f32 %v9971_v45, %v5057_v55  ;;  %v5331_v30 = vadd.f32 %v10169_v2, %v10164_v14 }
 0xe98   : > { %6993 = vpow2.f32 %v5222_v25 }
 0xe99   : > { %v10175_v27 = vpop.eup %6983  ;;  %v5224_v28 = vmul.f32 1.442695, %v5142_v3  ;;  %v5226_v8 = vmul.f32 1.442695, %v5143_v26  ;;  %5332 = vadd.xlane.f32.xlu0 %v5331_v30  ;;  %5113 = vmax.xlane.f32.xlu1 %v10969_v44  ;;  %v10971_v26 = vmax.f32 %v10095_v23, %v10097_v31 }
 0xe9a   : > { %v10180_v19 = vpop.eup %6985  ;;  %v5060_v47 = vpop.xlane.xlu1 %5059 }
 0xe9b   : > { %6995 = vpow2.f32 %v5224_v28  ;;  %v5144_v24 = vsub.f32 %v9975_v38, %v5060_v47  ;;  %v5145_v45 = vsub.f32 %v9977_v43, %v5060_v47  ;;  %v5334_v6 = vadd.f32 %v10180_v19, %v10175_v27 }
 0xe9c   : > { %6997 = vpow2.f32 %v5226_v8 }
 0xe9d   : > { %v10186_v21 = vpop.eup %6987  ;;  %v5228_v7 = vmul.f32 1.442695, %v5144_v24  ;;  %v5230_v37 = vmul.f32 1.442695, %v5145_v45  ;;  %5116 = vmax.xlane.f32.xlu0 %v10970_v41  ;;  %5335 = vadd.xlane.f32.xlu1 %v5334_v6  ;;  %v10972_v45 = vmax.f32 %v10101_v17, %v10103_v40 }
 0xe9e   : > { %v10191_v62 = vpop.eup %6989  ;;  %v5063_v39 = vpop.xlane.xlu0 %5062 }
 0xe9f   : > { %6999 = vpow2.f32 %v5228_v7  ;;  %v5146_v38 = vsub.f32 %v9981_v60, %v5063_v39  ;;  %v5147_v43 = vsub.f32 %v9983_v22, %v5063_v39  ;;  %v5337_v25 = vadd.f32 %v10191_v62, %v10186_v21 }
 0xea0   : > { %7001 = vpow2.f32 %v5230_v37 }
 0xea1   : > { %v10197_v54 = vpop.eup %6991  ;;  %v5232_v55 = vmul.f32 1.442695, %v5146_v38  ;;  %v5234_v3 = vmul.f32 1.442695, %v5147_v43  ;;  %5338 = vadd.xlane.f32.xlu0 %v5337_v25  ;;  %5119 = vmax.xlane.f32.xlu1 %v10971_v26 }
 0xea2   : > { %v10202_v30 = vpop.eup %6993  ;;  %v5066_v28 = vpop.xlane.xlu1 %5065 }
 0xea3   : > { %7003 = vpow2.f32 %v5232_v55  ;;  %v5148_v60 = vsub.f32 %v9987_v33, %v5066_v28  ;;  %v5149_v22 = vsub.f32 %v9989_v48, %v5066_v28  ;;  %v5340_v8 = vadd.f32 %v10202_v30, %v10197_v54 }
 0xea4   : > { %7005 = vpow2.f32 %v5234_v3 }
 0xea5   : > { %v10208_v44 = vpop.eup %6995  ;;  %v5236_v47 = vmul.f32 1.442695, %v5148_v60  ;;  %v5238_v24 = vmul.f32 1.442695, %v5149_v22  ;;  %5122 = vmax.xlane.f32.xlu0 %v10972_v45  ;;  %5341 = vadd.xlane.f32.xlu1 %v5340_v8 }
 0xea6   : > { %v10213_v6 = vpop.eup %6997  ;;  %v5069_v7 = vpop.xlane.xlu0 %5068 }
 0xea7   : > { %7007 = vpow2.f32 %v5236_v47  ;;  %v5150_v33 = vsub.f32 %v9993_v4, %v5069_v7  ;;  %v5151_v48 = vsub.f32 %v9995_v52, %v5069_v7  ;;  %v5343_v37 = vadd.f32 %v10213_v6, %v10208_v44 }
 0xea8   : > { %7009 = vpow2.f32 %v5238_v24 }
 0xea9   : > { %v10219_v41 = vpop.eup %6999  ;;  %v5240_v39 = vmul.f32 1.442695, %v5150_v33  ;;  %v5242_v38 = vmul.f32 1.442695, %v5151_v48  ;;  %5344 = vadd.xlane.f32.xlu0 %v5343_v37 }
 0xeaa   : > { %v10221_v43 = vpop.eup %7001  ;;  %v5072_v25 = vpop.xlane.xlu1 %5071 }
 0xeab   : > { %7011 = vpow2.f32 %v5240_v39  ;;  %v5152_v55 = vsub.f32 %v9999_v36, %v5072_v25  ;;  %v5153_v3 = vsub.f32 %v10001_v13, %v5072_v25  ;;  %v5346_v4 = vadd.f32 %v10221_v43, %v10219_v41 }
 0xeac   : > { %7013 = vpow2.f32 %v5242_v38 }
 0xead   : > { %v10227_v52 = vpop.eup %7003  ;;  %v5244_v26 = vmul.f32 1.442695, %v5152_v55  ;;  %v5246_v28 = vmul.f32 1.442695, %v5153_v3  ;;  %5347 = vadd.xlane.f32.xlu1 %v5346_v4  ;;  %v10973_v4 = vld [vmem:[#allocation11_spill] sm:$0xff] }
 0xeae   : > { %v10229_v60 = vpop.eup %7005  ;;  %v5075_v22 = vpop.xlane.xlu0 %5074 }
 0xeaf   : > { %7015 = vpow2.f32 %v5244_v26  ;;  %v5154_v8 = vsub.f32 %v10005_v29, %v5075_v22  ;;  %v5155_v47 = vsub.f32 %v10007_v42, %v5075_v22  ;;  %v5349_v36 = vadd.f32 %v10229_v60, %v10227_v52 }
 0xeb0   : > { %7017 = vpow2.f32 %v5246_v28 }
 0xeb1   : > { %v10235_v13 = vpop.eup %7007  ;;  %v5248_v24 = vmul.f32 1.442695, %v5154_v8  ;;  %v5250_v45 = vmul.f32 1.442695, %v5155_v47  ;;  %5350 = vadd.xlane.f32.xlu0 %v5349_v36  ;;  %v10975_v36 = vld [vmem:[#allocation9_spill] sm:$0xff] }
 0xeb2   : > { %v10237_v7 = vpop.eup %7009  ;;  %v5078_v33 = vpop.xlane.xlu1 %5077 }
 0xeb3   : > { %7019 = vpow2.f32 %v5248_v24  ;;  %v5156_v48 = vsub.f32 %v10011_v53, %v5078_v33  ;;  %v5157_v37 = vsub.f32 %v10013_v0, %v5078_v33  ;;  %v5352_v29 = vadd.f32 %v10237_v7, %v10235_v13 }
 0xeb4   : > { %7021 = vpow2.f32 %v5250_v45  ;;  %v10976_v45 = vld [vmem:[#allocation20_spill] sm:$0xff] }
 0xeb5   : > { %v10243_v42 = vpop.eup %7011  ;;  %v5252_v39 = vmul.f32 1.442695, %v5156_v48  ;;  %v5254_v38 = vmul.f32 1.442695, %v5157_v37  ;;  %5353 = vadd.xlane.f32.xlu1 %v5352_v29 }
 0xeb6   : > { %v10245_v25 = vpop.eup %7013  ;;  %v5081_v55 = vpop.xlane.xlu0 %5080 }
 0xeb7   : > { %7023 = vpow2.f32 %v5252_v39  ;;  %v5158_v3 = vsub.f32 %v10017_v1, %v5081_v55  ;;  %v5159_v26 = vsub.f32 %v10973_v4, %v5081_v55  ;;  %v5355_v53 = vadd.f32 %v10245_v25, %v10243_v42  ;;  %v10978_v55 = vld [vmem:[#allocation27_spill] sm:$0xff] }
 0xeb8   : > { %7025 = vpow2.f32 %v5254_v38  ;;  %v10979_v4 = vld [vmem:[#allocation15_spill] sm:$0xff] }
 0xeb9   : > { %v10251_v0 = vpop.eup %7015  ;;  %v5256_v28 = vmul.f32 1.442695, %v5158_v3  ;;  %v5258_v22 = vmul.f32 1.442695, %v5159_v26  ;;  %5356 = vadd.xlane.f32.xlu0 %v5355_v53 }
 0xeba   : > { %10974 = vst [vmem:[#allocation16_spill] sm:$0xff] %v10251_v0  ;;  %v10253_v8 = vpop.eup %7017  ;;  %v5084_v47 = vpop.xlane.xlu1 %5083 }
 0xebb   : > { %7027 = vpow2.f32 %v5256_v28  ;;  %v5160_v24 = vsub.f32 %v10975_v36, %v5084_v47  ;;  %v5161_v33 = vsub.f32 %v10976_v45, %v5084_v47  ;;  %v5358_v1 = vadd.f32 %v10253_v8, %v10251_v0  ;;  %v10982_v45 = vld [vmem:[#allocation21_spill] sm:$0xff] }
 0xebc   : > { %7029 = vpow2.f32 %v5258_v22 }
 0xebd   : > { %v10259_v48 = vpop.eup %7019  ;;  %v5260_v37 = vmul.f32 1.442695, %v5160_v24  ;;  %v5262_v29 = vmul.f32 1.442695, %v5161_v33  ;;  %5359 = vadd.xlane.f32.xlu1 %v5358_v1  ;;  %v10983_v1 = vld [vmem:[#allocation4_spill] sm:$0xff] }
 0xebe   : > { %10977 = vst [vmem:[#allocation24_spill] sm:$0xff] %v10259_v48  ;;  %v10261_v39 = vpop.eup %7021  ;;  %v5087_v38 = vpop.xlane.xlu0 %5086 }
 0xebf   : > { %7031 = vpow2.f32 %v5260_v37  ;;  %v5162_v3 = vsub.f32 %v10978_v55, %v5087_v38  ;;  %v5163_v26 = vsub.f32 %v10979_v4, %v5087_v38  ;;  %v5361_v53 = vadd.f32 %v10261_v39, %v10259_v48 }
 0xec0   : > { %7033 = vpow2.f32 %v5262_v29 }
 0xec1   : > { %v10267_v28 = vpop.eup %7023  ;;  %v5264_v22 = vmul.f32 1.442695, %v5162_v3  ;;  %v5266_v47 = vmul.f32 1.442695, %v5163_v26  ;;  %5362 = vadd.xlane.f32.xlu0 %v5361_v53  ;;  %v10986_v53 = vld [vmem:[#allocation3_spill] sm:$0xff] }
 0xec2   : > { %10980 = vst [vmem:[#allocation25_spill] sm:$0xff] %v10267_v28  ;;  %v10269_v36 = vpop.eup %7025  ;;  %v5090_v24 = vpop.xlane.xlu1 %5089 }
 0xec3   : > { %10981 = vst [vmem:[#allocation22_spill] sm:$0xff] %v10269_v36  ;;  %7035 = vpow2.f32 %v5264_v22  ;;  %v5164_v33 = vsub.f32 %v10982_v45, %v5090_v24  ;;  %v5165_v37 = vsub.f32 %v10983_v1, %v5090_v24  ;;  %v5364_v38 = vadd.f32 %v10269_v36, %v10267_v28  ;;  %v10987_v22 = vld [vmem:[#allocation14_spill] sm:$0xff] }
 0xec4   : > { %7037 = vpow2.f32 %v5266_v47 }
 0xec5   : > { %v10275_v55 = vpop.eup %7027  ;;  %v5268_v29 = vmul.f32 1.442695, %v5164_v33  ;;  %v5270_v4 = vmul.f32 1.442695, %v5165_v37  ;;  %5365 = vadd.xlane.f32.xlu1 %v5364_v38  ;;  %v10988_v38 = vld [vmem:[#allocation13_spill] sm:$0xff] }
 0xec6   : > { %10984 = vst [vmem:[#allocation5_spill] sm:$0xff] %v10275_v55  ;;  %v10277_v3 = vpop.eup %7029  ;;  %v5093_v26 = vpop.xlane.xlu0 %5092 }
 0xec7   : > { %10985 = vst [vmem:[#allocation26_spill] sm:$0xff] %v10277_v3  ;;  %7039 = vpow2.f32 %v5268_v29  ;;  %v5166_v0 = vsub.f32 %v10986_v53, %v5093_v26  ;;  %v5167_v48 = vsub.f32 %v10987_v22, %v5093_v26  ;;  %v5367_v24 = vadd.f32 %v10277_v3, %v10275_v55  ;;  %v10989_v29 = vld [vmem:[#allocation23_spill] sm:$0xff] }
 0xec8   : > { %7041 = vpow2.f32 %v5270_v4 }
 0xec9   : > { %v10283_v45 = vpop.eup %7031  ;;  %v5272_v47 = vmul.f32 1.442695, %v5166_v0  ;;  %v5274_v1 = vmul.f32 1.442695, %v5167_v48  ;;  %5368 = vadd.xlane.f32.xlu0 %v5367_v24  ;;  %v10990_v24 = vld [vmem:[#allocation17_spill] sm:$0xff] }
 0xeca   : > { %v10285_v33 = vpop.eup %7033  ;;  %v5096_v37 = vpop.xlane.xlu1 %5095 }
 0xecb   : > { %7043 = vpow2.f32 %v5272_v47  ;;  %v5168_v28 = vsub.f32 %v10988_v38, %v5096_v37  ;;  %v5169_v36 = vsub.f32 %v10989_v29, %v5096_v37  ;;  %v5370_v26 = vadd.f32 %v10285_v33, %v10283_v45  ;;  %v10991_v47 = vld [vmem:[#allocation18_spill] sm:$0xff] }
 0xecc   : > { %7045 = vpow2.f32 %v5274_v1 }
 0xecd   : > { %v10291_v53 = vpop.eup %7035  ;;  %v5276_v4 = vmul.f32 1.442695, %v5168_v28  ;;  %v5278_v22 = vmul.f32 1.442695, %v5169_v36  ;;  %5371 = vadd.xlane.f32.xlu1 %v5370_v26 }
 0xece   : > { %v10293_v0 = vpop.eup %7037  ;;  %v5099_v48 = vpop.xlane.xlu0 %5098 }
 0xecf   : > { %7047 = vpow2.f32 %v5276_v4  ;;  %v5170_v55 = vsub.f32 %v10990_v24, %v5099_v48  ;;  %v5171_v3 = vsub.f32 %v10991_v47, %v5099_v48  ;;  %v5373_v37 = vadd.f32 %v10293_v0, %v10291_v53 }
 0xed0   : > { %7049 = vpow2.f32 %v5278_v22 }
 0xed1   : > { %v10299_v38 = vpop.eup %7039  ;;  %v5280_v1 = vmul.f32 1.442695, %v5170_v55  ;;  %v5282_v29 = vmul.f32 1.442695, %v5171_v3  ;;  %5374 = vadd.xlane.f32.xlu0 %v5373_v37 }
 0xed2   : > { %10992 = vst [vmem:[#allocation6_spill] sm:$0xff] %v10299_v38  ;;  %v10301_v28 = vpop.eup %7041 }
 0xed3   : > { %10993 = vst [vmem:[#allocation28_spill] sm:$0xff] %v10301_v28  ;;  %7051 = vpow2.f32 %v5280_v1  ;;  %v5376_v36 = vadd.f32 %v10301_v28, %v10299_v38 }
 0xed4   : > { %7053 = vpow2.f32 %v5282_v29 }
 0xed5   : > { %v10305_v26 = vpop.eup %7043  ;;  %5377 = vadd.xlane.f32.xlu1 %v5376_v36 }
 0xed6   : > { %10994 = vst [vmem:[#allocation7_spill] sm:$0xff] %v10305_v26  ;;  %v10307_v4 = vpop.eup %7045 }
 0xed7   : > { %10995 = vst [vmem:[#allocation11_spill] sm:$0xff] %v10307_v4  ;;  %v5379_v22 = vadd.f32 %v10307_v4, %v10305_v26 }
 0xed9   : > { %v10311_v48 = vpop.eup %7047  ;;  %5380 = vadd.xlane.f32.xlu0 %v5379_v22 }
 0xeda   : > { %10996 = vst [vmem:[#allocation9_spill] sm:$0xff] %v10311_v48  ;;  %v10313_v55 = vpop.eup %7049 }
 0xedb   : > { %10997 = vst [vmem:[#allocation20_spill] sm:$0xff] %v10313_v55  ;;  %v5382_v3 = vadd.f32 %v10313_v55, %v10311_v48 }
 0xedd   : > { %v10317_v24 = vpop.eup %7051  ;;  %5383 = vadd.xlane.f32.xlu1 %v5382_v3 }
 0xede   : > { %10998 = vst [vmem:[#allocation27_spill] sm:$0xff] %v10317_v24  ;;  %v10319_v47 = vpop.eup %7053 }
 0xedf   : > { %10999 = vst [vmem:[#allocation15_spill] sm:$0xff] %v10319_v47  ;;  %v5385_v37 = vadd.f32 %v10319_v47, %v10317_v24 }
 0xee1   : > { %5386 = vadd.xlane.f32.xlu0 %v5385_v37 }
 0xf12   : > { %v5318_v1 = vpop.xlane.xlu1 %5317 }
 0xf13   : > { %7055 = vrcp.f32 %v5318_v1 }
 0xf16   : > { %v5321_v29 = vpop.xlane.xlu0 %5320  ;;  %v5102_v36 = vpop.xlane.xlu1 %5101 }
 0xf17   : > { %7057 = vrcp.f32 %v5321_v29  ;;  %v5172_v22 = vsub.f32 %v10059_v56, %v5102_v36  ;;  %v5173_v38 = vsub.f32 %v10061_v12, %v5102_v36 }
 0xf19   : > { %v5284_v26 = vmul.f32 1.442695, %v5172_v22  ;;  %v5286_v48 = vmul.f32 1.442695, %v5173_v38 }
 0xf1a   : > { %v5105_v55 = vpop.xlane.xlu0 %5104  ;;  %v5324_v4 = vpop.xlane.xlu1 %5323 }
 0xf1b   : > { %7059 = vpow2.f32 %v5284_v26  ;;  %v5174_v3 = vsub.f32 %v10065_v61, %v5105_v55  ;;  %v5175_v28 = vsub.f32 %v10067_v49, %v5105_v55 }
 0xf1c   : > { %7061 = vpow2.f32 %v5286_v48 }
 0xf1d   : > { %v5288_v37 = vmul.f32 1.442695, %v5174_v3  ;;  %v5290_v24 = vmul.f32 1.442695, %v5175_v28  ;;  %7063 = vrcp.f32 %v5324_v4  ;;  %v7056_v29 = vpop.eup %7055 }
 0xf1e   : > { %v5327_v1 = vpop.xlane.xlu0 %5326  ;;  %v5108_v47 = vpop.xlane.xlu1 %5107  ;;  %v5445_v49 = vmul.f32 %v7056_v29, %v10117_v32  ;;  %v5444_v4 = vmul.f32 %v7056_v29, %v10115_v9 }
 0xf1f   : > { %7065 = vpow2.f32 %v5288_v37  ;;  %v5176_v56 = vsub.f32 %v10071_v46, %v5108_v47  ;;  %v5177_v12 = vsub.f32 %v10073_v59, %v5108_v47 }
 0xf20   : > { %7067 = vpow2.f32 %v5290_v24 }
 0xf21   : > { %v7058_v38 = vpop.eup %7057  ;;  %7069 = vrcp.f32 %v5327_v1  ;;  %v5292_v26 = vmul.f32 1.442695, %v5176_v56  ;;  %v5294_v36 = vmul.f32 1.442695, %v5177_v12 }
 0xf22   : > { %v5111_v61 = vpop.xlane.xlu0 %5110  ;;  %v5330_v22 = vpop.xlane.xlu1 %5329  ;;  %v5447_v28 = vmul.f32 %v7058_v38, %v10125_v15  ;;  %v5446_v48 = vmul.f32 %v7058_v38, %v10123_v35 }
 0xf23   : > { %7071 = vpow2.f32 %v5292_v26  ;;  %v5178_v46 = vsub.f32 %v10077_v58, %v5111_v61  ;;  %v5179_v59 = vsub.f32 %v10079_v18, %v5111_v61 }
 0xf24   : > { %7073 = vpow2.f32 %v5294_v36  ;;  %v6110_v55 = vpack.c.bf16 %v5447_v28, %v5445_v49  ;;  %v6112_v24 = vpack.c.bf16 %v5446_v48, %v5444_v4 }
 0xf25   : > { %v10335_v47 = vpop.eup %7059  ;;  %v5296_v3 = vmul.f32 1.442695, %v5178_v46  ;;  %v5298_v37 = vmul.f32 1.442695, %v5179_v59  ;;  %7075 = vrcp.f32 %v5330_v22 }
 0xf26   : > { %v10337_v32 = vpop.eup %7061  ;;  %v5333_v15 = vpop.xlane.xlu0 %5332  ;;  %6111 = vmatprep.subr.bf16.mxu0 %v6110_v55 }
 0xf27   : > { %v5114_v9 = vpop.xlane.xlu1 %5113  ;;  %v7064_v1 = vpop.eup %7063  ;;  %7077 = vpow2.f32 %v5296_v3  ;;  %6113 = vmatpush1.bf16.xpose.msra.mxu0 %v6112_v24  ;;  %v5388_v18 = vadd.f32 %v10337_v32, %v10335_v47 }
 0xf28   : > { %v5180_v35 = vsub.f32 %v10083_v5, %v5114_v9  ;;  %v5181_v58 = vsub.f32 %v10085_v50, %v5114_v9  ;;  %7079 = vpow2.f32 %v5298_v37  ;;  %v5449_v61 = vmul.f32 %v7064_v1, %v10136_v10 }
 0xf29   : > { %v10343_v29 = vpop.eup %7065  ;;  %7081 = vrcp.f32 %v5333_v15  ;;  %5389 = vadd.xlane.f32.xlu1 %v5388_v18  ;;  %v5448_v4 = vmul.f32 %v7064_v1, %v10131_v34 }
 0xf2a   : > { %v5300_v56 = vmul.f32 1.442695, %v5180_v35  ;;  %v5302_v12 = vmul.f32 1.442695, %v5181_v58  ;;  %v10345_v38 = vpop.eup %7067  ;;  %v5117_v26 = vpop.xlane.xlu0 %5116 }
 0xf2b   : > { %v5336_v36 = vpop.xlane.xlu1 %5335  ;;  %v7070_v5 = vpop.eup %7069  ;;  %v5182_v50 = vsub.f32 %v10089_v63, %v5117_v26  ;;  %v5183_v22 = vsub.f32 %v10091_v51, %v5117_v26  ;;  %v5391_v49 = vadd.f32 %v10345_v38, %v10343_v29 }
 0xf2c   : > { %7083 = vpow2.f32 %v5300_v56  ;;  %v5451_v28 = vmul.f32 %v7070_v5, %v10147_v20  ;;  %v5450_v48 = vmul.f32 %v7070_v5, %v10142_v16 }
 0xf2d   : > { %7085 = vpow2.f32 %v5302_v12  ;;  %v10355_v46 = vpop.eup %7071  ;;  %v5304_v59 = vmul.f32 1.442695, %v5182_v50  ;;  %v5306_v10 = vmul.f32 1.442695, %v5183_v22  ;;  %5392 = vadd.xlane.f32.xlu0 %v5391_v49 }
 0xf2e   : > { %v10357_v55 = vpop.eup %7073  ;;  %7087 = vrcp.f32 %v5336_v36  ;;  %v5339_v63 = vpop.xlane.xlu0 %5338  ;;  %v6114_v51 = vpack.c.bf16 %v5451_v28, %v5449_v61  ;;  %v6116_v3 = vpack.c.bf16 %v5450_v48, %v5448_v4 }
 0xf2f   : > { %v5120_v24 = vpop.xlane.xlu1 %5119  ;;  %v7076_v37 = vpop.eup %7075  ;;  %7089 = vpow2.f32 %v5304_v59  ;;  %v5394_v16 = vadd.f32 %v10357_v55, %v10355_v46 }
 0xf30   : > { %v5184_v20 = vsub.f32 %v10095_v23, %v5120_v24  ;;  %v5185_v34 = vsub.f32 %v10097_v31, %v5120_v24  ;;  %7091 = vpow2.f32 %v5306_v10  ;;  %6115 = vmatprep.subr.bf16.mxu0 %v6114_v51  ;;  %v5453_v18 = vmul.f32 %v7076_v37, %v10158_v57 }
 0xf31   : > { %v10363_v15 = vpop.eup %7077  ;;  %7093 = vrcp.f32 %v5339_v63  ;;  %6117 = vmatpush1.bf16.xpose.msra.mxu0 %v6116_v3  ;;  %5395 = vadd.xlane.f32.xlu1 %v5394_v16  ;;  %v5452_v61 = vmul.f32 %v7076_v37, %v10153_v11 }
 0xf32   : > { %v5308_v9 = vmul.f32 1.442695, %v5184_v20  ;;  %v5310_v1 = vmul.f32 1.442695, %v5185_v34  ;;  %v10365_v35 = vpop.eup %7079  ;;  %v5123_v58 = vpop.xlane.xlu0 %5122 }
 0xf33   : > { %v7082_v23 = vpop.eup %7081  ;;  %v5186_v31 = vsub.f32 %v10101_v17, %v5123_v58  ;;  %v5187_v56 = vsub.f32 %v10103_v40, %v5123_v58  ;;  %v5342_v12 = vpop.xlane.xlu1 %5341  ;;  %v5397_v26 = vadd.f32 %v10365_v35, %v10363_v15 }
 0xf34   : > { %7095 = vpow2.f32 %v5308_v9  ;;  %v5455_v36 = vmul.f32 %v7082_v23, %v10169_v2  ;;  %v5454_v5 = vmul.f32 %v7082_v23, %v10164_v14 }
 0xf35   : > { %7097 = vpow2.f32 %v5310_v1  ;;  %v5312_v57 = vmul.f32 1.442695, %v5186_v31  ;;  %v5314_v22 = vmul.f32 1.442695, %v5187_v56  ;;  %5398 = vadd.xlane.f32.xlu0 %v5397_v26 }
 0xf36   : > { %v10375_v50 = vpop.eup %7083  ;;  %7099 = vrcp.f32 %v5342_v12  ;;  %v5345_v40 = vpop.xlane.xlu0 %5344  ;;  %v6118_v17 = vpack.c.bf16 %v5455_v36, %v5453_v18  ;;  %v6120_v28 = vpack.c.bf16 %v5454_v5, %v5452_v61 }
 0xf37   : > { %v10377_v49 = vpop.eup %7085  ;;  %7101 = vpow2.f32 %v5312_v57 }
 0xf38   : > { %v5400_v4 = vadd.f32 %v10377_v49, %v10375_v50  ;;  %v7088_v2 = vpop.eup %7087  ;;  %7103 = vpow2.f32 %v5314_v22  ;;  %6119 = vmatprep.subr.bf16.mxu0 %v6118_v17 }
 0xf39   : > { %v10381_v11 = vpop.eup %7089  ;;  %7105 = vrcp.f32 %v5345_v40  ;;  %6121 = vmatpush1.bf16.xpose.msra.mxu0 %v6120_v28  ;;  %v5457_v63 = vmul.f32 %v7088_v2, %v10180_v19  ;;  %v5456_v24 = vmul.f32 %v7088_v2, %v10175_v27 }
 0xf3a   : > { %5401 = vadd.xlane.f32.xlu1 %v5400_v4  ;;  %v10383_v14 = vpop.eup %7091  ;;  %v5348_v48 = vpop.xlane.xlu1 %5347 }
 0xf3b   : > { %v7094_v59 = vpop.eup %7093  ;;  %v5403_v10 = vadd.f32 %v10383_v14, %v10381_v11  ;;  %7107 = vrcp.f32 %v5348_v48 }
 0xf3c   : > { %v5459_v51 = vmul.f32 %v7094_v59, %v10191_v62  ;;  %v5458_v3 = vmul.f32 %v7094_v59, %v10186_v21 }
 0xf3d   : > { %5404 = vadd.xlane.f32.xlu0 %v5403_v10 }
 0xf3e   : > { %v10391_v37 = vpop.eup %7095  ;;  %v5351_v34 = vpop.xlane.xlu0 %5350  ;;  %v6122_v16 = vpack.c.bf16 %v5459_v51, %v5457_v63  ;;  %v6124_v9 = vpack.c.bf16 %v5458_v3, %v5456_v24 }
 0xf3f   : > { %v10393_v20 = vpop.eup %7097  ;;  %7109 = vrcp.f32 %v5351_v34 }
 0xf40   : > { %v5406_v1 = vadd.f32 %v10393_v20, %v10391_v37  ;;  %v7100_v19 = vpop.eup %7099  ;;  %6123 = vmatprep.subr.bf16.mxu0 %v6122_v16  ;;  %v11000_v16 = vld [vmem:[#allocation24_spill] sm:$0xff] }
 0xf41   : > { %v10397_v62 = vpop.eup %7101  ;;  %6125 = vmatpush1.bf16.xpose.msra.mxu0 %v6124_v9  ;;  %v5461_v23 = vmul.f32 %v7100_v19, %v10202_v30  ;;  %v5460_v56 = vmul.f32 %v7100_v19, %v10197_v54  ;;  %v11001_v9 = vld [vmem:[#allocation16_spill] sm:$0xff] }
 0xf42   : > { %5407 = vadd.xlane.f32.xlu1 %v5406_v1  ;;  %v10399_v27 = vpop.eup %7103  ;;  %v5354_v21 = vpop.xlane.xlu1 %5353 }
 0xf43   : > { %v7106_v58 = vpop.eup %7105  ;;  %v5409_v18 = vadd.f32 %v10399_v27, %v10397_v62  ;;  %7111 = vrcp.f32 %v5354_v21 }
 0xf44   : > { %v5463_v31 = vmul.f32 %v7106_v58, %v10213_v6  ;;  %v5462_v12 = vmul.f32 %v7106_v58, %v10208_v44 }
 0xf45   : > { %5410 = vadd.xlane.f32.xlu0 %v5409_v18  ;;  %v7108_v5 = vpop.eup %7107 }
 0xf46   : > { %v5357_v26 = vpop.xlane.xlu0 %5356  ;;  %v6126_v36 = vpack.c.bf16 %v5463_v31, %v5461_v23  ;;  %v6128_v61 = vpack.c.bf16 %v5462_v12, %v5460_v56  ;;  %v5465_v40 = vmul.f32 %v7108_v5, %v10221_v43  ;;  %v5464_v54 = vmul.f32 %v7108_v5, %v10219_v41  ;;  %v11002_v23 = vld [vmem:[#allocation22_spill] sm:$0xff]  ;;  %v11004_v12 = vld [vmem:[#allocation5_spill] sm:$0xff] }
 0xf47   : > { %7113 = vrcp.f32 %v5357_v26  ;;  %v11003_v56 = vld [vmem:[#allocation26_spill] sm:$0xff]  ;;  %v11005_v26 = vld [vmem:[#allocation25_spill] sm:$0xff] }
 0xf48   : > { %6127 = vmatprep.subr.bf16.mxu0 %v6126_v36 }
 0xf49   : > { %v7110_v57 = vpop.eup %7109  ;;  %6129 = vmatpush1.bf16.xpose.msra.mxu0 %v6128_v61 }
 0xf4a   : > { %v5360_v22 = vpop.xlane.xlu1 %5359  ;;  %v5467_v30 = vmul.f32 %v7110_v57, %v10229_v60  ;;  %v5466_v6 = vmul.f32 %v7110_v57, %v10227_v52 }
 0xf4b   : > { %7115 = vrcp.f32 %v5360_v22 }
 0xf4c   : > { %v6130_v44 = vpack.c.bf16 %v5467_v30, %v5465_v40  ;;  %v6132_v17 = vpack.c.bf16 %v5466_v6, %v5464_v54 }
 0xf4d   : > { %v7112_v4 = vpop.eup %7111 }
 0xf4e   : > { %v5363_v28 = vpop.xlane.xlu0 %5362  ;;  %6131 = vmatprep.subr.bf16.mxu0 %v6130_v44  ;;  %v5469_v59 = vmul.f32 %v7112_v4, %v10237_v7  ;;  %v5468_v52 = vmul.f32 %v7112_v4, %v10235_v13 }
 0xf4f   : > { %7117 = vrcp.f32 %v5363_v28 }
 0xf51   : > { %v7114_v2 = vpop.eup %7113  ;;  %6133 = vmatpush1.bf16.xpose.msra.mxu0 %v6132_v17 }
 0xf52   : > { %v5366_v48 = vpop.xlane.xlu1 %5365  ;;  %v5471_v43 = vmul.f32 %v7114_v2, %v10245_v25  ;;  %v5470_v60 = vmul.f32 %v7114_v2, %v10243_v42 }
 0xf53   : > { %7119 = vrcp.f32 %v5366_v48 }
 0xf54   : > { %v6134_v10 = vpack.c.bf16 %v5471_v43, %v5469_v59  ;;  %v6136_v41 = vpack.c.bf16 %v5470_v60, %v5468_v52  ;;  %v11006_v43 = vld [vmem:[#allocation28_spill] sm:$0xff]  ;;  %v11007_v52 = vld [vmem:[#allocation11_spill] sm:$0xff] }
 0xf55   : > { %v7116_v51 = vpop.eup %7115 }
 0xf56   : > { %v5369_v63 = vpop.xlane.xlu0 %5368  ;;  %6135 = vmatprep.subr.bf16.mxu0 %v6134_v10  ;;  %v5473_v34 = vmul.f32 %v7116_v51, %v10253_v8  ;;  %v5472_v42 = vmul.f32 %v7116_v51, %v11001_v9 }
 0xf57   : > { %7121 = vrcp.f32 %v5369_v63 }
 0xf59   : > { %v7118_v24 = vpop.eup %7117  ;;  %6137 = vmatpush1.bf16.xpose.msra.mxu0 %v6136_v41 }
 0xf5a   : > { %v5372_v3 = vpop.xlane.xlu1 %5371  ;;  %v5475_v7 = vmul.f32 %v7118_v24, %v10261_v39  ;;  %v5474_v25 = vmul.f32 %v7118_v24, %v11000_v16 }
 0xf5b   : > { %7123 = vrcp.f32 %v5372_v3  ;;  %v11010_v3 = vld [vmem:[#allocation20_spill] sm:$0xff] }
 0xf5c   : > { %v6138_v1 = vpack.c.bf16 %v5475_v7, %v5473_v34  ;;  %v6140_v13 = vpack.c.bf16 %v5474_v25, %v5472_v42  ;;  %v11011_v7 = vld [vmem:[#allocation15_spill] sm:$0xff]  ;;  %v11013_v42 = vld [vmem:[#allocation9_spill] sm:$0xff] }
 0xf5d   : > { %v7120_v21 = vpop.eup %7119  ;;  %v11012_v25 = vld [vmem:[#allocation27_spill] sm:$0xff] }
 0xf5e   : > { %v5375_v19 = vpop.xlane.xlu0 %5374  ;;  %6139 = vmatprep.subr.bf16.mxu0 %v6138_v1  ;;  %v5477_v31 = vmul.f32 %v7120_v21, %v11002_v23  ;;  %v5476_v36 = vmul.f32 %v7120_v21, %v11005_v26 }
 0xf5f   : > { %7125 = vrcp.f32 %v5375_v19 }
 0xf61   : > { %v7122_v58 = vpop.eup %7121  ;;  %6141 = vmatpush1.bf16.xpose.msra.mxu0 %v6140_v13 }
 0xf62   : > { %v5378_v18 = vpop.xlane.xlu1 %5377  ;;  %v5479_v8 = vmul.f32 %v7122_v58, %v11003_v56  ;;  %v5478_v39 = vmul.f32 %v7122_v58, %v11004_v12 }
 0xf63   : > { %7127 = vrcp.f32 %v5378_v18 }
 0xf64   : > { %v6142_v61 = vpack.c.bf16 %v5479_v8, %v5477_v31  ;;  %v6144_v5 = vpack.c.bf16 %v5478_v39, %v5476_v36 }
 0xf65   : > { %v7124_v22 = vpop.eup %7123 }
 0xf66   : > { %v5381_v57 = vpop.xlane.xlu0 %5380  ;;  %6143 = vmatprep.subr.bf16.mxu0 %v6142_v61  ;;  %v5481_v6 = vmul.f32 %v7124_v22, %v10285_v33  ;;  %v5480_v17 = vmul.f32 %v7124_v22, %v10283_v45  ;;  %v11008_v33 = vld [vmem:[#allocation7_spill] sm:$0xff] }
 0xf67   : > { %7129 = vrcp.f32 %v5381_v57 }
 0xf69   : > { %v7126_v40 = vpop.eup %7125  ;;  %6145 = vmatpush1.bf16.xpose.msra.mxu0 %v6144_v5 }
 0xf6a   : > { %v5384_v30 = vpop.xlane.xlu1 %5383  ;;  %v5483_v54 = vmul.f32 %v7126_v40, %v10293_v0  ;;  %v5482_v44 = vmul.f32 %v7126_v40, %v10291_v53  ;;  %v11009_v0 = vld [vmem:[#allocation6_spill] sm:$0xff] }
 0xf6b   : > { %7131 = vrcp.f32 %v5384_v30 }
 0xf6c   : > { %v6146_v28 = vpack.c.bf16 %v5483_v54, %v5481_v6  ;;  %v6148_v4 = vpack.c.bf16 %v5482_v44, %v5480_v17 }
 0xf6d   : > { %v7128_v48 = vpop.eup %7127 }
 0xf6e   : > { %v5387_v2 = vpop.xlane.xlu0 %5386  ;;  %6147 = vmatprep.subr.bf16.mxu0 %v6146_v28  ;;  %v5485_v60 = vmul.f32 %v7128_v48, %v11006_v43  ;;  %v5484_v63 = vmul.f32 %v7128_v48, %v11009_v0  ;;  %v11016_v0 = vld [vmem:[#allocation10_spill] sm:$0xff] }
 0xf6f   : > { %7133 = vrcp.f32 %v5387_v2 }
 0xf71   : > { %v7130_v59 = vpop.eup %7129  ;;  %6149 = vmatpush1.bf16.xpose.msra.mxu0 %v6148_v4 }
 0xf72   : > { %v5487_v10 = vmul.f32 %v7130_v59, %v11007_v52  ;;  %v5486_v41 = vmul.f32 %v7130_v59, %v11008_v33 }
 0xf74   : > { %v6150_v53 = vpack.c.bf16 %v5487_v10, %v5485_v60  ;;  %v6152_v51 = vpack.c.bf16 %v5486_v41, %v5484_v63  ;;  %v11015_v10 = vld [vmem:[#allocation8_spill] sm:$0xff] }
 0xf75   : > { %v7132_v45 = vpop.eup %7131 }
 0xf76   : > { %6151 = vmatprep.subr.bf16.mxu0 %v6150_v53  ;;  %v5489_v34 = vmul.f32 %v7132_v45, %v11010_v3  ;;  %v5488_v1 = vmul.f32 %v7132_v45, %v11013_v42 }
 0xf79   : > { %v7134_v24 = vpop.eup %7133  ;;  %6153 = vmatpush1.bf16.xpose.msra.mxu0 %v6152_v51 }
 0xf7a   : > { %v5491_v16 = vmul.f32 %v7134_v24, %v11011_v7  ;;  %v5490_v9 = vmul.f32 %v7134_v24, %v11012_v25 }
 0xf7c   : > { %v6154_v13 = vpack.c.bf16 %v5491_v16, %v5489_v34  ;;  %v6156_v19 = vpack.c.bf16 %v5490_v9, %v5488_v1 }
 0xf7e   : > { %6155 = vmatprep.subr.bf16.mxu0 %v6154_v13 }
 0xf81   : > { %6157 = vmatpush1.bf16.xpose.msra.mxu0 %v6156_v19 }
 0xfb6   : > { %v5390_v21 = vpop.xlane.xlu1 %5389 }
 0xfb7   : > { %7135 = vrcp.f32 %v5390_v21 }
 0xfba   : > { %v5393_v58 = vpop.xlane.xlu0 %5392 }
 0xfbb   : > { %7137 = vrcp.f32 %v5393_v58 }
 0xfbe   : > { %v5396_v18 = vpop.xlane.xlu1 %5395 }
 0xfbf   : > { %7139 = vrcp.f32 %v5396_v18 }
 0xfc1   : > { %v7136_v31 = vpop.eup %7135 }
 0xfc2   : > { %v5399_v23 = vpop.xlane.xlu0 %5398  ;;  %v5493_v12 = vmul.f32 %v7136_v31, %v10337_v32  ;;  %v5492_v26 = vmul.f32 %v7136_v31, %v10335_v47 }
 0xfc3   : > { %7141 = vrcp.f32 %v5399_v23 }
 0xfc5   : > { %v7138_v56 = vpop.eup %7137 }
 0xfc6   : > { %v5495_v39 = vmul.f32 %v7138_v56, %v10345_v38  ;;  %v5494_v36 = vmul.f32 %v7138_v56, %v10343_v29 }
 0xfc7   : > { %v5402_v8 = vpop.xlane.xlu1 %5401 }
 0xfc8   : > { %v6158_v61 = vpack.c.bf16 %v5495_v39, %v5493_v12  ;;  %v6160_v5 = vpack.c.bf16 %v5494_v36, %v5492_v26  ;;  %7143 = vrcp.f32 %v5402_v8 }
 0xfc9   : > { %v7140_v22 = vpop.eup %7139 }
 0xfca   : > { %v5405_v57 = vpop.xlane.xlu0 %5404  ;;  %6159 = vmatprep.subr.bf16.mxu0 %v6158_v61  ;;  %v5497_v6 = vmul.f32 %v7140_v22, %v10357_v55  ;;  %v5496_v38 = vmul.f32 %v7140_v22, %v10355_v46 }
 0xfcb   : > { %7145 = vrcp.f32 %v5405_v57  ;;  %6161 = vmatpush1.bf16.xpose.msra.mxu0 %v6160_v5 }
 0xfcd   : > { %v7142_v40 = vpop.eup %7141 }
 0xfce   : > { %v5499_v32 = vmul.f32 %v7142_v40, %v10365_v35  ;;  %v5498_v47 = vmul.f32 %v7142_v40, %v10363_v15 }
 0xfcf   : > { %v5408_v30 = vpop.xlane.xlu1 %5407 }
 0xfd0   : > { %v6162_v54 = vpack.c.bf16 %v5499_v32, %v5497_v6  ;;  %v6164_v29 = vpack.c.bf16 %v5498_v47, %v5496_v38  ;;  %7147 = vrcp.f32 %v5408_v30 }
 0xfd2   : > { %v5411_v44 = vpop.xlane.xlu0 %5410  ;;  %6163 = vmatprep.subr.bf16.mxu0 %v6162_v54  ;;  %v7144_v17 = vpop.eup %7143 }
 0xfd3   : > { %7149 = vrcp.f32 %v5411_v44  ;;  %6165 = vmatpush1.bf16.xpose.msra.mxu0 %v6164_v29  ;;  %v5501_v4 = vmul.f32 %v7144_v17, %v10377_v49  ;;  %v5500_v55 = vmul.f32 %v7144_v17, %v10375_v50 }
 0xfd5   : > { %v7146_v28 = vpop.eup %7145 }
 0xfd6   : > { %v5503_v2 = vmul.f32 %v7146_v28, %v10383_v14  ;;  %v5502_v35 = vmul.f32 %v7146_v28, %v10381_v11  ;;  %v11014_v11 = vld [vmem:[#allocation19_spill] sm:$0xff] }
 0xfd7   : > { %v4607_v33 = vadd.f32 %v11015_v10, %v11014_v11 }
 0xfd8   : > { %v6166_v46 = vpack.c.bf16 %v5503_v2, %v5501_v4  ;;  %v6168_v48 = vpack.c.bf16 %v5502_v35, %v5500_v55 }
 0xfda   : > { %6167 = vmatprep.subr.bf16.mxu0 %v6166_v46  ;;  %v7148_v15 = vpop.eup %7147 }
 0xfdb   : > { %6169 = vmatpush1.bf16.xpose.msra.mxu0 %v6168_v48  ;;  %v5505_v43 = vmul.f32 %v7148_v15, %v10393_v20  ;;  %v5504_v52 = vmul.f32 %v7148_v15, %v10391_v37  ;;  %v11017_v37 = vld [vmem:[#allocation12_spill] sm:$0xff] }
 0xfdd   : > { %v7150_v59 = vpop.eup %7149 }
 0xfde   : > { %v5507_v60 = vmul.f32 %v7150_v59, %v10399_v27  ;;  %v5506_v49 = vmul.f32 %v7150_v59, %v10397_v62  ;;  %v7164_v27 = vld [vmem:[%s7227_s26 + $0x20] sm:$0xff] }
 0xfe0   : > { %v6170_v14 = vpack.c.bf16 %v5507_v60, %v5505_v43  ;;  %v6172_v50 = vpack.c.bf16 %v5506_v49, %v5504_v52 }
 0xfe2   : > { %6171 = vmatprep.subr.bf16.mxu0 %v6170_v14 }
 0xfe3   : > { %6173 = vmatpush1.bf16.xpose.msra.mxu0 %v6172_v50 }
 0xfea   : > { %5573 = vmatmul.mubr.f32.vlgmr.msra.gmra.mrb[150].mxu0 %v4607_v33 }
0x10bd   : > { %v5574_v41 = vpop.f32.mrb[150].mxu0 }
0x10be   : > { %v5579_v63 = vmul.f32 %v5574_v41, %v11016_v0  ;;  %v5576_v53 = vpop.f32.mrb[151].mxu0 }
0x10bf   : > { %v5580_v20 = vmul.f32 %v5576_v53, %v11016_v0 }
0x10c0   : > { %v5582_v51 = vadd.f32 %v7164_v27, %v5579_v63 }
0x10c1   : > { %v5583_v45 = vadd.f32 %v5580_v20, %v11017_v37 }
0x10c3   : > { %v5586_v24 = vcombine.low %v5582_v51, %v5583_v45 }
0x10c5   : > { %5849 = vst [vmem:[%s7992_s3 + $0x20] sm:$0xff] %v5586_v24 }
0x10c6 PF: > { %s15_s17 = sadd.s32 1, %s7171_s17  }
0x10c7   : > { %p12_p4 = scmp.ge.s32.totalorder %s15_s17, 8  }
0x10c9   :  { %14 = sbr.rel (!%p12_p4) target bundleno = 2 (0x2), region = 74 }

</bundles_post_ra>
